<compile_context>
chip_gen: v7x
topology: tpu7x:2x2x1
jax: 0.10.0
libtpu: 0.0.40
codegen_flags: <defaults>
</compile_context>

<pallas_src>
import functools

import jax
import jax.numpy as jnp
from jax.experimental import pallas as pl
from jax.experimental.pallas import tpu as pltpu

_VMEM_LIMIT = 48 * 1024 * 1024  # above v5e/v6e scoped defaults, < v7x 64 MiB


def _round_up(x, m):
    return ((x + m - 1) // m) * m


def _row_blocking(n):
    """Padded row count + row tile; prefer 128 unless 256 adds no padding."""
    pad128 = _round_up(max(n, 1), 128)
    pad256 = _round_up(max(n, 1), 256)
    if n > 256 and pad256 == pad128:
        return pad256, 256
    return pad128, 128


def _k_blocking(ncl_pad):
    """Clause-axis tile for the message matmul (bounds resident VMEM)."""
    if ncl_pad <= 1024:
        return ncl_pad
    for cand in (1024, 512, 256, 128):
        if ncl_pad % cand == 0:
            return cand
    return 128


# ---------------------------------------------------------------------------
# Kernels
# ---------------------------------------------------------------------------
def _clause_update_kernel(cmask_ref, vars_ref, xc_ref, xch_ref,
                          wx_ref, wh_ref, b_ref,
                          xc_out_ref, xch_out_ref, xcb_out_ref, *, d_pad):
    """Fused C_sq + C_equi LSTM step + square/equi row blend (one clause-row tile)."""
    x = vars_ref[...]                              # [tm, 4*d_pad] bf16
    h0 = xc_ref[...]                               # [tm, d_pad] f32
    c0 = xch_ref[...]

    # One MXU pass produces the gates of BOTH clause LSTMs ([sq | eq] along N).
    gates2 = (jnp.dot(x, wx_ref[...], preferred_element_type=jnp.float32)
              + jnp.dot(h0.astype(jnp.bfloat16), wh_ref[...],
                        preferred_element_type=jnp.float32)
              + b_ref[...])                        # [tm, 8*d_pad]
    is_sq = cmask_ref[...] > 0.5                   # [tm, 1] row-wise select
    gates = jnp.where(is_sq, gates2[:, :4 * d_pad], gates2[:, 4 * d_pad:])

    i = jax.nn.sigmoid(gates[:, 0:d_pad])
    f = jax.nn.sigmoid(gates[:, d_pad:2 * d_pad])
    g = jnp.tanh(gates[:, 2 * d_pad:3 * d_pad])
    o = jax.nn.sigmoid(gates[:, 3 * d_pad:4 * d_pad])
    c1 = f * c0 + i * g
    h1 = o * jnp.tanh(c1)
    xc_out_ref[...] = h1
    xch_out_ref[...] = c1
    xcb_out_ref[...] = h1.astype(jnp.bfloat16)     # bf16 copy for literal kernel


def clause_update(c_mask, vars_cat, x_c, x_c_h, wx, wh, b, *, tile_m):
    n_pad, d_pad = x_c.shape
    di = 4 * d_pad
    row = lambda i: (i, 0)
    const = lambda i: (0, 0)
    return pl.pallas_call(
        functools.partial(_clause_update_kernel, d_pad=d_pad),
        out_shape=(jax.ShapeDtypeStruct((n_pad, d_pad), jnp.float32),
                   jax.ShapeDtypeStruct((n_pad, d_pad), jnp.float32),
                   jax.ShapeDtypeStruct((n_pad, d_pad), jnp.bfloat16)),
        grid=(n_pad // tile_m,),
        in_specs=[
            pl.BlockSpec((tile_m, 1), row),          # c_t mask
            pl.BlockSpec((tile_m, di), row),         # gathered literal states (bf16)
            pl.BlockSpec((tile_m, d_pad), row),      # x_c   (h0)
            pl.BlockSpec((tile_m, d_pad), row),      # x_c_h (c0)
            pl.BlockSpec((di, 2 * di), const),       # fused [Wih_sq|Wih_eq]
            pl.BlockSpec((d_pad, 2 * di), const),    # fused [Whh_sq|Whh_eq]
            pl.BlockSpec((1, 2 * di), const),        # fused bias
        ],
        out_specs=(pl.BlockSpec((tile_m, d_pad), row),
                   pl.BlockSpec((tile_m, d_pad), row),
                   pl.BlockSpec((tile_m, d_pad), row)),
        compiler_params=pltpu.CompilerParams(
            dimension_semantics=("parallel",),
            vmem_limit_bytes=_VMEM_LIMIT),
    )(c_mask, vars_cat, x_c, x_c_h, wx, wh, b)


def _literal_update_kernel(pmask_ref, adj_ref, xcb_ref, xp_ref, xph_ref,
                           wih_ref, whh_ref, b_ref,
                           xp_out_ref, xph_out_ref, xpb_out_ref,
                           msg_acc_ref, *, d_pad):
    """K-tiled (adj^T @ x_c) message accumulation + L_u LSTM + fixed/vars blend."""
    k = pl.program_id(1)

    @pl.when(k == 0)
    def _():
        msg_acc_ref[...] = jnp.zeros_like(msg_acc_ref)

    # int8 0/1 adjacency tile upcast to bf16 right before the MXU.
    adj_b = adj_ref[...].astype(jnp.bfloat16)                  # [tm, tk]
    msg_acc_ref[...] += jnp.dot(adj_b, xcb_ref[...],
                                preferred_element_type=jnp.float32)

    @pl.when(k == pl.num_programs(1) - 1)
    def _():
        h0 = xp_ref[...]
        c0 = xph_ref[...]
        gates = (jnp.dot(msg_acc_ref[...].astype(jnp.bfloat16), wih_ref[...],
                         preferred_element_type=jnp.float32)
                 + jnp.dot(h0.astype(jnp.bfloat16), whh_ref[...],
                           preferred_element_type=jnp.float32)
                 + b_ref[...])
        i = jax.nn.sigmoid(gates[:, 0:d_pad])
        f = jax.nn.sigmoid(gates[:, d_pad:2 * d_pad])
        g = jnp.tanh(gates[:, 2 * d_pad:3 * d_pad])
        o = jax.nn.sigmoid(gates[:, 3 * d_pad:4 * d_pad])
        c1 = f * c0 + i * g
        h1 = o * jnp.tanh(c1)
        fixed = pmask_ref[...] > 0.5                 # fixed rows keep old state
        h_new = jnp.where(fixed, h0, h1)
        c_new = jnp.where(fixed, c0, c1)
        xp_out_ref[...] = h_new
        xph_out_ref[...] = c_new
        xpb_out_ref[...] = h_new.astype(jnp.bfloat16)


def literal_update(p_mask, adj_lit, x_c_b, x_p, x_p_h, wih, whh, b,
                   *, tile_m, tile_k):
    nl_pad, d_pad = x_p.shape
    ncl_pad = adj_lit.shape[1]
    di = 4 * d_pad
    row = lambda i, k: (i, 0)
    const = lambda i, k: (0, 0)
    return pl.pallas_call(
        functools.partial(_literal_update_kernel, d_pad=d_pad),
        out_shape=(jax.ShapeDtypeStruct((nl_pad, d_pad), jnp.float32),
                   jax.ShapeDtypeStruct((nl_pad, d_pad), jnp.float32),
                   jax.ShapeDtypeStruct((nl_pad, d_pad), jnp.bfloat16)),
        grid=(nl_pad // tile_m, ncl_pad // tile_k),
        in_specs=[
            pl.BlockSpec((tile_m, 1), row),                    # p_t mask
            pl.BlockSpec((tile_m, tile_k), lambda i, k: (i, k)),  # adj^T tile (int8)
            pl.BlockSpec((tile_k, d_pad), lambda i, k: (k, 0)),   # x_c (bf16) K tile
            pl.BlockSpec((tile_m, d_pad), row),                # x_p   (h0)
            pl.BlockSpec((tile_m, d_pad), row),                # x_p_h (c0)
            pl.BlockSpec((d_pad, di), const),                  # L_u Wih
            pl.BlockSpec((d_pad, di), const),                  # L_u Whh
            pl.BlockSpec((1, di), const),                      # L_u bias
        ],
        out_specs=(pl.BlockSpec((tile_m, d_pad), row),
                   pl.BlockSpec((tile_m, d_pad), row),
                   pl.BlockSpec((tile_m, d_pad), row)),
        scratch_shapes=[pltpu.VMEM((tile_m, d_pad), jnp.float32)],
        compiler_params=pltpu.CompilerParams(
            dimension_semantics=("parallel", "arbitrary"),
            vmem_limit_bytes=_VMEM_LIMIT),
    )(p_mask, adj_lit, x_c_b, x_p, x_p_h, wih, whh, b)


def _classifier_kernel(x_ref, w_ref, b_ref, o_ref):
    o_ref[...] = (jnp.dot(x_ref[...], w_ref[...],
                          preferred_element_type=jnp.float32) + b_ref[...])


def classifier_logits(x_p_b, cls_w_t, cls_b, *, tile_m):
    n_pad, d_pad = x_p_b.shape
    v_pad = cls_w_t.shape[1]
    return pl.pallas_call(
        _classifier_kernel,
        out_shape=jax.ShapeDtypeStruct((n_pad, v_pad), jnp.float32),
        grid=(n_pad // tile_m,),
        in_specs=[pl.BlockSpec((tile_m, d_pad), lambda i: (i, 0)),
                  pl.BlockSpec((d_pad, v_pad), lambda i: (0, 0)),
                  pl.BlockSpec((1, v_pad), lambda i: (0, 0))],
        out_specs=pl.BlockSpec((tile_m, v_pad), lambda i: (i, 0)),
        compiler_params=pltpu.CompilerParams(
            dimension_semantics=("parallel",),
            vmem_limit_bytes=_VMEM_LIMIT),
    )(x_p_b, cls_w_t, cls_b)


# ---------------------------------------------------------------------------
# Parameters (deterministic synthetic init; mirrors NeuroSAT.__init__ shapes)
# ---------------------------------------------------------------------------
def init_params(key, d, vocab_size=900):
    ks = jax.random.split(key, 13)
    u = lambda k, shape, s=0.1: jax.random.uniform(k, shape, jnp.float32, -s, s)
    return {
        "C_init_w": u(ks[0], (d, 1)), "C_init_b": u(ks[1], (d,)),
        "embedding": u(ks[2], (vocab_size, d)), "cls_b": u(ks[3], (vocab_size,)),
        # LSTM weights pre-transposed [in, 4d]; gate order i,f,g,o; b = b_ih+b_hh
        "Lu_wih_t": u(ks[4], (d, 4 * d)), "Lu_whh_t": u(ks[5], (d, 4 * d)),
        "Lu_b": u(ks[6], (1, 4 * d)),
        "Csq_wih_t": u(ks[7], (4 * d, 4 * d)), "Csq_whh_t": u(ks[8], (d, 4 * d)),
        "Csq_b": u(ks[9], (1, 4 * d)),
        "Ceq_wih_t": u(ks[10], (4 * d, 4 * d)), "Ceq_whh_t": u(ks[11], (d, 4 * d)),
        "Ceq_b": u(ks[12], (1, 4 * d)),
    }


def prepare_params(params, d, vocab_size):
    """Pad to lane-friendly sizes, pre-cast MXU weights to bf16, fuse C_sq|C_equi.

    Gate blocks [i|f|g|o] are padded block-wise (zero weights/biases in padded
    lanes) so padded hidden lanes stay exactly 0 through the recurrences.
    Returns (arrays_pytree, static_dims).
    """
    d_pad = _round_up(d, 128)
    v_pad = _round_up(vocab_size, 128)

    def pad_gate_cols(w):                       # [in, 4d] -> [in, 4*d_pad]
        w4 = w.reshape(w.shape[0], 4, d)
        return jnp.pad(w4, ((0, 0), (0, 0), (0, d_pad - d))).reshape(w.shape[0], 4 * d_pad)

    def pad_hidden_rows(w):                     # input axis = one d-wide block
        return jnp.pad(w, ((0, d_pad - d), (0, 0)))

    def pad_cat_rows(w):                        # input axis = 4 concatenated d-blocks
        w4 = w.reshape(4, d, w.shape[1])
        return jnp.pad(w4, ((0, 0), (0, d_pad - d), (0, 0))).reshape(4 * d_pad, w.shape[1])

    def lstm(wih, whh, b, cat_input):
        wih = pad_gate_cols(wih)
        wih = pad_cat_rows(wih) if cat_input else pad_hidden_rows(wih)
        whh = pad_hidden_rows(pad_gate_cols(whh))
        return wih.astype(jnp.bfloat16), whh.astype(jnp.bfloat16), pad_gate_cols(b)

    sq_wx, sq_wh, sq_b = lstm(params["Csq_wih_t"], params["Csq_whh_t"],
                              params["Csq_b"], cat_input=True)
    eq_wx, eq_wh, eq_b = lstm(params["Ceq_wih_t"], params["Ceq_whh_t"],
                              params["Ceq_b"], cat_input=True)
    lu_wx, lu_wh, lu_b = lstm(params["Lu_wih_t"], params["Lu_whh_t"],
                              params["Lu_b"], cat_input=False)

    emb_pad = jnp.pad(params["embedding"], ((0, v_pad - vocab_size), (0, d_pad - d)))
    c_init = params["C_init_w"] @ jnp.ones((1,), jnp.float32) + params["C_init_b"]

    arrays = {
        "emb": emb_pad,                                    # f32 embedding lookup
        "cls_w_t": emb_pad.T.astype(jnp.bfloat16),         # tied classifier (transposed)
        "cls_b": jnp.pad(params["cls_b"], (0, v_pad - vocab_size)).reshape(1, v_pad),
        "c_init": jnp.pad(c_init, (0, d_pad - d)),
        # C_sq / C_equi fused along the gate axis -> one MXU call for both LSTMs.
        "C_wx": jnp.concatenate([sq_wx, eq_wx], axis=1),
        "C_wh": jnp.concatenate([sq_wh, eq_wh], axis=1),
        "C_b": jnp.concatenate([sq_b, eq_b], axis=1),
        "Lu_wx": lu_wx, "Lu_wh": lu_wh, "Lu_b": lu_b,
    }
    dims = {"d": d, "d_pad": d_pad, "vocab": vocab_size, "vocab_pad": v_pad}
    return arrays, dims


# ---------------------------------------------------------------------------
# Forward pass (semantics of NeuroSAT.forward)
# ---------------------------------------------------------------------------
def neurosat_forward(arrays, data, rng, *, dims, num_iters):
    d, d_pad, vocab = dims["d"], dims["d_pad"], dims["vocab"]
    adj_t, p_t, c_t = data["adj_t"], data["p_t"], data["c_t"]
    y, p2c = data["y"], data["p2c"]
    n_lits, n_clauses = p_t.shape[0], c_t.shape[0]

    nl_pad, tile_l = _row_blocking(n_lits)
    ncl_pad, tile_c = _row_blocking(n_clauses)
    tile_k = _k_blocking(ncl_pad)

    # Adjacency pre-transposed ONCE to [lits, clauses] (loop invariant), 0/1 int8.
    adj_lit = jnp.pad(adj_t.T.astype(jnp.int8),
                      ((0, nl_pad - n_lits), (0, ncl_pad - n_clauses)))
    p_mask = jnp.pad((p_t == 1).astype(jnp.float32), (0, nl_pad - n_lits))[:, None]
    c_mask = jnp.pad((c_t == 1).astype(jnp.float32), (0, ncl_pad - n_clauses))[:, None]
    p2c_pad = jnp.pad(p2c, (0, 4 * ncl_pad - p2c.shape[0]))

    # x_p: embedding on fixed rows, random init on variable rows (torch.rand -> uniform)
    embs = jnp.take(arrays["emb"], y, axis=0)                   # [n_lits, d_pad]
    x_p_rand = jnp.pad(jax.random.uniform(rng, (n_lits, d), jnp.float32),
                       ((0, 0), (0, d_pad - d)))
    x_p = jnp.where((p_t == 1)[:, None], embs, x_p_rand)
    x_p = jnp.pad(x_p, ((0, nl_pad - n_lits), (0, 0)))
    x_p_b = x_p.astype(jnp.bfloat16)                            # bf16 copy (cast once)
    x_c = jnp.pad(jnp.tile(arrays["c_init"][None, :], (n_clauses, 1)),
                  ((0, ncl_pad - n_clauses), (0, 0)))
    x_p_h = jnp.zeros((nl_pad, d_pad), jnp.float32)
    x_c_h = jnp.zeros((ncl_pad, d_pad), jnp.float32)

    def run_classifier(xpb):
        logits = classifier_logits(xpb, arrays["cls_w_t"], arrays["cls_b"],
                                   tile_m=tile_l)
        return logits[:n_lits, :vocab]

    intermediate = [(x_p[:n_lits, :d], run_classifier(x_p_b))]

    for _ in range(num_iters):
        # TODO(synk): fold this p2c row-gather into the clause kernel's input DMA
        # (PrefetchScalarGridSpec + pl.Element); interim: gather from the bf16 copy.
        vars_cat = jnp.take(x_p_b, p2c_pad, axis=0).reshape(ncl_pad, 4 * d_pad)

        x_c, x_c_h, x_c_b = clause_update(
            c_mask, vars_cat, x_c, x_c_h,
            arrays["C_wx"], arrays["C_wh"], arrays["C_b"], tile_m=tile_c)

        x_p, x_p_h, x_p_b = literal_update(
            p_mask, adj_lit, x_c_b, x_p, x_p_h,
            arrays["Lu_wx"], arrays["Lu_wh"], arrays["Lu_b"],
            tile_m=tile_l, tile_k=tile_k)

        intermediate.append((x_p[:n_lits, :d], run_classifier(x_p_b)))

    # Final classifier(x_p) equals the last intermediate entry; no duplicate call.
    logits = intermediate[-1][1]
    return logits, intermediate


# ---------------------------------------------------------------------------
if __name__ == "__main__":
    d = 32
    n_lits = 16
    n_clauses = 8
    vocab_size = 30 ** 2
    num_iters = 2

    key = jax.random.PRNGKey(0)
    k_params, k_data, k_rand = jax.random.split(key, 3)
    raw_params = init_params(k_params, d, vocab_size)
    arrays, dims = prepare_params(raw_params, d, vocab_size)

    kd = jax.random.split(k_data, 5)
    adj_t = (jax.random.uniform(kd[0], (n_clauses, n_lits)) < 0.3).astype(jnp.float32)
    p_t = (jax.random.uniform(kd[1], (n_lits,)) < 0.5).astype(jnp.int32)
    c_t = (jax.random.uniform(kd[2], (n_clauses,)) < 0.5).astype(jnp.int32)
    y = jax.random.randint(kd[3], (n_lits,), 0, vocab_size)
    p2c = jax.random.randint(kd[4], (n_clauses * 4,), 0, n_lits)
    data = {"adj_t": adj_t, "p_t": p_t, "c_t": c_t, "y": y, "p2c": p2c}

    # num_iters / dims are bound as Python constants -> static under jit.
    fwd = jax.jit(functools.partial(neurosat_forward, dims=dims, num_iters=num_iters))
    logits, inter = fwd(arrays, data, k_rand)
    jax.block_until_ready((logits, inter))

    assert logits.shape == (n_lits, vocab_size)
    assert len(inter) == num_iters + 1
    assert inter[0][0].shape == (n_lits, d)
    assert bool(jnp.all(jnp.isfinite(logits)))
    for xp, lg in inter:
        assert bool(jnp.all(jnp.isfinite(xp))) and bool(jnp.all(jnp.isfinite(lg)))
    print("KERNEL_OK")
</pallas_src>

<mosaic_0001>
module attributes {stable_mosaic.version = 11 : i64} {
  func.func @_clause_update_kernel(%arg0: i32, %arg1: memref<128x1xf32, #tpu.memory_space<vmem>>, %arg2: memref<128x512xbf16, #tpu.memory_space<vmem>>, %arg3: memref<128x128xf32, #tpu.memory_space<vmem>>, %arg4: memref<128x128xf32, #tpu.memory_space<vmem>>, %arg5: memref<512x1024xbf16, #tpu.memory_space<vmem>>, %arg6: memref<128x1024xbf16, #tpu.memory_space<vmem>>, %arg7: memref<1x1024xf32, #tpu.memory_space<vmem>>, %arg8: memref<128x128xf32, #tpu.memory_space<vmem>>, %arg9: memref<128x128xf32, #tpu.memory_space<vmem>>, %arg10: memref<128x128xbf16, #tpu.memory_space<vmem>>) attributes {dimension_semantics = [#tpu.dimension_semantics<parallel>], iteration_bounds = array<i64: 1>, scalar_prefetch = 0 : i64, scratch_operands = 0 : i64, tpu.core_type = #tpu.core_type<tc>, window_params = [{transform_indices = @transform_0, window_bounds = array<i64: 128, 1>}, {transform_indices = @transform_1, window_bounds = array<i64: 128, 512>}, {transform_indices = @transform_2, window_bounds = array<i64: 128, 128>}, {transform_indices = @transform_3, window_bounds = array<i64: 128, 128>}, {pipeline_mode = #tpu.pipeline_mode<synchronous>, transform_indices = @transform_4, window_bounds = array<i64: 512, 1024>}, {pipeline_mode = #tpu.pipeline_mode<synchronous>, transform_indices = @transform_5, window_bounds = array<i64: 128, 1024>}, {pipeline_mode = #tpu.pipeline_mode<synchronous>, transform_indices = @transform_6, window_bounds = array<i64: 1, 1024>}, {transform_indices = @transform_7, window_bounds = array<i64: 128, 128>}, {transform_indices = @transform_8, window_bounds = array<i64: 128, 128>}, {transform_indices = @transform_9, window_bounds = array<i64: 128, 128>}]} {
    %c0 = arith.constant 0 : index
    %c0_0 = arith.constant 0 : index
    %0 = vector.load %arg2[%c0, %c0_0] : memref<128x512xbf16, #tpu.memory_space<vmem>>, vector<128x512xbf16>
    %c0_1 = arith.constant 0 : index
    %c0_2 = arith.constant 0 : index
    %1 = vector.load %arg3[%c0_1, %c0_2] : memref<128x128xf32, #tpu.memory_space<vmem>>, vector<128x128xf32>
    %c0_3 = arith.constant 0 : index
    %c0_4 = arith.constant 0 : index
    %2 = vector.load %arg4[%c0_3, %c0_4] : memref<128x128xf32, #tpu.memory_space<vmem>>, vector<128x128xf32>
    %c0_5 = arith.constant 0 : index
    %c0_6 = arith.constant 0 : index
    %3 = vector.load %arg5[%c0_5, %c0_6] : memref<512x1024xbf16, #tpu.memory_space<vmem>>, vector<512x1024xbf16>
    %cst = arith.constant dense<0.000000e+00> : vector<128x1024xf32>
    %4 = tpu.matmul %0, %3, %cst {dimension_numbers = #tpu.dot_dimension_numbers<[1], [0], [0], [1], [0, 0, 1, 1], [], []>} : vector<128x512xbf16>, vector<512x1024xbf16>, vector<128x1024xf32> -> vector<128x1024xf32>
    %5 = arith.truncf %1 : vector<128x128xf32> to vector<128x128xbf16>
    %c0_7 = arith.constant 0 : index
    %c0_8 = arith.constant 0 : index
    %6 = vector.load %arg6[%c0_7, %c0_8] : memref<128x1024xbf16, #tpu.memory_space<vmem>>, vector<128x1024xbf16>
    %cst_9 = arith.constant dense<0.000000e+00> : vector<128x1024xf32>
    %7 = tpu.matmul %5, %6, %cst_9 {dimension_numbers = #tpu.dot_dimension_numbers<[1], [0], [0], [1], [0, 0, 1, 1], [], []>} : vector<128x128xbf16>, vector<128x1024xbf16>, vector<128x1024xf32> -> vector<128x1024xf32>
    %8 = arith.addf %4, %7 : vector<128x1024xf32>
    %c0_10 = arith.constant 0 : index
    %c0_11 = arith.constant 0 : index
    %9 = vector.load %arg7[%c0_10, %c0_11] : memref<1x1024xf32, #tpu.memory_space<vmem>>, vector<1x1024xf32>
    %10 = vector.broadcast %9 : vector<1x1024xf32> to vector<128x1024xf32>
    %11 = arith.addf %8, %10 : vector<128x1024xf32>
    %c0_12 = arith.constant 0 : index
    %c0_13 = arith.constant 0 : index
    %12 = vector.load %arg1[%c0_12, %c0_13] : memref<128x1xf32, #tpu.memory_space<vmem>>, vector<128x1xf32>
    %cst_14 = arith.constant 5.000000e-01 : f32
    %13 = vector.broadcast %cst_14 : f32 to vector<128x1xf32>
    %14 = arith.cmpf ogt, %12, %13 : vector<128x1xf32>
    %15 = vector.extract_strided_slice %11 {offsets = [0, 0], sizes = [128, 512], strides = [1, 1]} : vector<128x1024xf32> to vector<128x512xf32>
    %16 = vector.extract_strided_slice %11 {offsets = [0, 512], sizes = [128, 512], strides = [1, 1]} : vector<128x1024xf32> to vector<128x512xf32>
    %17 = vector.shape_cast %14 : vector<128x1xi1> to vector<128x1xi1>
    %18 = vector.broadcast %17 : vector<128x1xi1> to vector<128x512xi1>
    %19 = arith.select %18, %15, %16 : vector<128x512xi1>, vector<128x512xf32>
    %20 = vector.extract_strided_slice %19 {offsets = [0, 0], sizes = [128, 128], strides = [1, 1]} : vector<128x512xf32> to vector<128x128xf32>
    %21 = arith.negf %20 : vector<128x128xf32>
    %22 = math.exp %21 : vector<128x128xf32>
    %cst_15 = arith.constant 1.000000e+00 : f32
    %23 = vector.broadcast %cst_15 : f32 to vector<128x128xf32>
    %24 = arith.addf %23, %22 : vector<128x128xf32>
    %25 = arith.divf %23, %24 : vector<128x128xf32>
    %26 = vector.extract_strided_slice %19 {offsets = [0, 128], sizes = [128, 128], strides = [1, 1]} : vector<128x512xf32> to vector<128x128xf32>
    %27 = arith.negf %26 : vector<128x128xf32>
    %28 = math.exp %27 : vector<128x128xf32>
    %cst_16 = arith.constant 1.000000e+00 : f32
    %29 = vector.broadcast %cst_16 : f32 to vector<128x128xf32>
    %30 = arith.addf %29, %28 : vector<128x128xf32>
    %31 = arith.divf %29, %30 : vector<128x128xf32>
    %32 = vector.extract_strided_slice %19 {offsets = [0, 256], sizes = [128, 128], strides = [1, 1]} : vector<128x512xf32> to vector<128x128xf32>
    %33 = math.tanh %32 : vector<128x128xf32>
    %34 = vector.extract_strided_slice %19 {offsets = [0, 384], sizes = [128, 128], strides = [1, 1]} : vector<128x512xf32> to vector<128x128xf32>
    %35 = arith.negf %34 : vector<128x128xf32>
    %36 = math.exp %35 : vector<128x128xf32>
    %cst_17 = arith.constant 1.000000e+00 : f32
    %37 = vector.broadcast %cst_17 : f32 to vector<128x128xf32>
    %38 = arith.addf %37, %36 : vector<128x128xf32>
    %39 = arith.divf %37, %38 : vector<128x128xf32>
    %40 = arith.mulf %31, %2 : vector<128x128xf32>
    %41 = arith.mulf %25, %33 : vector<128x128xf32>
    %42 = arith.addf %40, %41 : vector<128x128xf32>
    %43 = math.tanh %42 : vector<128x128xf32>
    %44 = arith.mulf %39, %43 : vector<128x128xf32>
    %c0_18 = arith.constant 0 : index
    %c0_19 = arith.constant 0 : index
    %45 = vector.load %arg8[%c0_18, %c0_19] : memref<128x128xf32, #tpu.memory_space<vmem>>, vector<128x128xf32>
    tpu.vector_store %arg8[%c0_18, %c0_19], %44 {strides = array<i32>} : memref<128x128xf32, #tpu.memory_space<vmem>>, vector<128x128xf32>,
    %c0_20 = arith.constant 0 : index
    %c0_21 = arith.constant 0 : index
    %46 = vector.load %arg9[%c0_20, %c0_21] : memref<128x128xf32, #tpu.memory_space<vmem>>, vector<128x128xf32>
    tpu.vector_store %arg9[%c0_20, %c0_21], %42 {strides = array<i32>} : memref<128x128xf32, #tpu.memory_space<vmem>>, vector<128x128xf32>,
    %47 = arith.truncf %44 : vector<128x128xf32> to vector<128x128xbf16>
    %c0_22 = arith.constant 0 : index
    %c0_23 = arith.constant 0 : index
    %48 = vector.load %arg10[%c0_22, %c0_23] : memref<128x128xbf16, #tpu.memory_space<vmem>>, vector<128x128xbf16>
    tpu.vector_store %arg10[%c0_22, %c0_23], %47 {strides = array<i32>} : memref<128x128xbf16, #tpu.memory_space<vmem>>, vector<128x128xbf16>,
    return
  }
  func.func @transform_0(%arg0: i32) -> (i32, i32) {
    %c0_i32 = arith.constant 0 : i32
    %c0_i32_0 = arith.constant 0 : i32
    return %arg0, %c0_i32 : i32, i32
  }
  func.func @transform_1(%arg0: i32) -> (i32, i32) {
    %c0_i32 = arith.constant 0 : i32
    %c0_i32_0 = arith.constant 0 : i32
    return %arg0, %c0_i32 : i32, i32
  }
  func.func @transform_2(%arg0: i32) -> (i32, i32) {
    %c0_i32 = arith.constant 0 : i32
    %c0_i32_0 = arith.constant 0 : i32
    return %arg0, %c0_i32 : i32, i32
  }
  func.func @transform_3(%arg0: i32) -> (i32, i32) {
    %c0_i32 = arith.constant 0 : i32
    %c0_i32_0 = arith.constant 0 : i32
    return %arg0, %c0_i32 : i32, i32
  }
  func.func @transform_4(%arg0: i32) -> (i32, i32) {
    %c0_i32 = arith.constant 0 : i32
    %c0_i32_0 = arith.constant 0 : i32
    %c0_i32_1 = arith.constant 0 : i32
    return %c0_i32, %c0_i32_0 : i32, i32
  }
  func.func @transform_5(%arg0: i32) -> (i32, i32) {
    %c0_i32 = arith.constant 0 : i32
    %c0_i32_0 = arith.constant 0 : i32
    %c0_i32_1 = arith.constant 0 : i32
    return %c0_i32, %c0_i32_0 : i32, i32
  }
  func.func @transform_6(%arg0: i32) -> (i32, i32) {
    %c0_i32 = arith.constant 0 : i32
    %c0_i32_0 = arith.constant 0 : i32
    %c0_i32_1 = arith.constant 0 : i32
    return %c0_i32, %c0_i32_0 : i32, i32
  }
  func.func @transform_7(%arg0: i32) -> (i32, i32) {
    %c0_i32 = arith.constant 0 : i32
    %c0_i32_0 = arith.constant 0 : i32
    return %arg0, %c0_i32 : i32, i32
  }
  func.func @transform_8(%arg0: i32) -> (i32, i32) {
    %c0_i32 = arith.constant 0 : i32
    %c0_i32_0 = arith.constant 0 : i32
    return %arg0, %c0_i32 : i32, i32
  }
  func.func @transform_9(%arg0: i32) -> (i32, i32) {
    %c0_i32 = arith.constant 0 : i32
    %c0_i32_0 = arith.constant 0 : i32
    return %arg0, %c0_i32 : i32, i32
  }
}

module attributes {stable_mosaic.version = 11 : i64} {
  func.func @_literal_update_kernel(%arg0: i32, %arg1: i32, %arg2: memref<128x1xf32, #tpu.memory_space<vmem>>, %arg3: memref<128x128xi8, #tpu.memory_space<vmem>>, %arg4: memref<128x128xbf16, #tpu.memory_space<vmem>>, %arg5: memref<128x128xf32, #tpu.memory_space<vmem>>, %arg6: memref<128x128xf32, #tpu.memory_space<vmem>>, %arg7: memref<128x512xbf16, #tpu.memory_space<vmem>>, %arg8: memref<128x512xbf16, #tpu.memory_space<vmem>>, %arg9: memref<1x512xf32, #tpu.memory_space<vmem>>, %arg10: memref<128x128xf32, #tpu.memory_space<vmem>>, %arg11: memref<128x128xf32, #tpu.memory_space<vmem>>, %arg12: memref<128x128xbf16, #tpu.memory_space<vmem>>, %arg13: memref<128x128xf32, #tpu.memory_space<vmem>>) attributes {dimension_semantics = [#tpu.dimension_semantics<parallel>, #tpu.dimension_semantics<arbitrary>], iteration_bounds = array<i64: 1, 1>, scalar_prefetch = 0 : i64, scratch_operands = 1 : i64, tpu.core_type = #tpu.core_type<tc>, window_params = [{transform_indices = @transform_0, window_bounds = array<i64: 128, 1>}, {transform_indices = @transform_1, window_bounds = array<i64: 128, 128>}, {transform_indices = @transform_2, window_bounds = array<i64: 128, 128>}, {transform_indices = @transform_3, window_bounds = array<i64: 128, 128>}, {transform_indices = @transform_4, window_bounds = array<i64: 128, 128>}, {pipeline_mode = #tpu.pipeline_mode<synchronous>, transform_indices = @transform_5, window_bounds = array<i64: 128, 512>}, {pipeline_mode = #tpu.pipeline_mode<synchronous>, transform_indices = @transform_6, window_bounds = array<i64: 128, 512>}, {pipeline_mode = #tpu.pipeline_mode<synchronous>, transform_indices = @transform_7, window_bounds = array<i64: 1, 512>}, {transform_indices = @transform_8, window_bounds = array<i64: 128, 128>}, {transform_indices = @transform_9, window_bounds = array<i64: 128, 128>}, {transform_indices = @transform_10, window_bounds = array<i64: 128, 128>}]} {
    %c0_i32 = arith.constant 0 : i32
    %0 = arith.cmpi eq, %arg1, %c0_i32 : i32
    %1 = arith.extui %0 : i1 to i32
    %c0_i32_0 = arith.constant 0 : i32
    %2 = arith.cmpi ne, %1, %c0_i32_0 : i32
    scf.if %2 {
      %cst_10 = arith.constant 0.000000e+00 : f32
      %13 = vector.broadcast %cst_10 : f32 to vector<128x128xf32>
      %c0_11 = arith.constant 0 : index
      %c0_12 = arith.constant 0 : index
      %14 = vector.load %arg13[%c0_11, %c0_12] : memref<128x128xf32, #tpu.memory_space<vmem>>, vector<128x128xf32>
      tpu.vector_store %arg13[%c0_11, %c0_12], %13 {strides = array<i32>} : memref<128x128xf32, #tpu.memory_space<vmem>>, vector<128x128xf32>,
    } else {
    }
    %c0 = arith.constant 0 : index
    %c0_1 = arith.constant 0 : index
    %3 = vector.load %arg3[%c0, %c0_1] : memref<128x128xi8, #tpu.memory_space<vmem>>, vector<128x128xi8>
    %4 = arith.sitofp %3 : vector<128x128xi8> to vector<128x128xbf16>
    %c0_2 = arith.constant 0 : index
    %c0_3 = arith.constant 0 : index
    %5 = vector.load %arg13[%c0_2, %c0_3] : memref<128x128xf32, #tpu.memory_space<vmem>>, vector<128x128xf32>
    %c0_4 = arith.constant 0 : index
    %c0_5 = arith.constant 0 : index
    %6 = vector.load %arg4[%c0_4, %c0_5] : memref<128x128xbf16, #tpu.memory_space<vmem>>, vector<128x128xbf16>
    %cst = arith.constant dense<0.000000e+00> : vector<128x128xf32>
    %7 = tpu.matmul %4, %6, %cst {dimension_numbers = #tpu.dot_dimension_numbers<[1], [0], [0], [1], [0, 0, 1, 1], [], []>} : vector<128x128xbf16>, vector<128x128xbf16>, vector<128x128xf32> -> vector<128x128xf32>
    %8 = arith.addf %5, %7 : vector<128x128xf32>
    %c0_6 = arith.constant 0 : index
    %c0_7 = arith.constant 0 : index
    %9 = vector.load %arg13[%c0_6, %c0_7] : memref<128x128xf32, #tpu.memory_space<vmem>>, vector<128x128xf32>
    tpu.vector_store %arg13[%c0_6, %c0_7], %8 {strides = array<i32>} : memref<128x128xf32, #tpu.memory_space<vmem>>, vector<128x128xf32>,
    %c0_i32_8 = arith.constant 0 : i32
    %10 = arith.cmpi eq, %arg1, %c0_i32_8 : i32
    %11 = arith.extui %10 : i1 to i32
    %c0_i32_9 = arith.constant 0 : i32
    %12 = arith.cmpi ne, %11, %c0_i32_9 : i32
    scf.if %12 {
      %c0_10 = arith.constant 0 : index
      %c0_11 = arith.constant 0 : index
      %13 = vector.load %arg5[%c0_10, %c0_11] : memref<128x128xf32, #tpu.memory_space<vmem>>, vector<128x128xf32>
      %c0_12 = arith.constant 0 : index
      %c0_13 = arith.constant 0 : index
      %14 = vector.load %arg6[%c0_12, %c0_13] : memref<128x128xf32, #tpu.memory_space<vmem>>, vector<128x128xf32>
      %c0_14 = arith.constant 0 : index
      %c0_15 = arith.constant 0 : index
      %15 = vector.load %arg13[%c0_14, %c0_15] : memref<128x128xf32, #tpu.memory_space<vmem>>, vector<128x128xf32>
      %16 = arith.truncf %15 : vector<128x128xf32> to vector<128x128xbf16>
      %c0_16 = arith.constant 0 : index
      %c0_17 = arith.constant 0 : index
      %17 = vector.load %arg7[%c0_16, %c0_17] : memref<128x512xbf16, #tpu.memory_space<vmem>>, vector<128x512xbf16>
      %cst_18 = arith.constant dense<0.000000e+00> : vector<128x512xf32>
      %18 = tpu.matmul %16, %17, %cst_18 {dimension_numbers = #tpu.dot_dimension_numbers<[1], [0], [0], [1], [0, 0, 1, 1], [], []>} : vector<128x128xbf16>, vector<128x512xbf16>, vector<128x512xf32> -> vector<128x512xf32>
      %19 = arith.truncf %13 : vector<128x128xf32> to vector<128x128xbf16>
      %c0_19 = arith.constant 0 : index
      %c0_20 = arith.constant 0 : index
      %20 = vector.load %arg8[%c0_19, %c0_20] : memref<128x512xbf16, #tpu.memory_space<vmem>>, vector<128x512xbf16>
      %cst_21 = arith.constant dense<0.000000e+00> : vector<128x512xf32>
      %21 = tpu.matmul %19, %20, %cst_21 {dimension_numbers = #tpu.dot_dimension_numbers<[1], [0], [0], [1], [0, 0, 1, 1], [], []>} : vector<128x128xbf16>, vector<128x512xbf16>, vector<128x512xf32> -> vector<128x512xf32>
      %22 = arith.addf %18, %21 : vector<128x512xf32>
      %c0_22 = arith.constant 0 : index
      %c0_23 = arith.constant 0 : index
      %23 = vector.load %arg9[%c0_22, %c0_23] : memref<1x512xf32, #tpu.memory_space<vmem>>, vector<1x512xf32>
      %24 = vector.broadcast %23 : vector<1x512xf32> to vector<128x512xf32>
      %25 = arith.addf %22, %24 : vector<128x512xf32>
      %26 = vector.extract_strided_slice %25 {offsets = [0, 0], sizes = [128, 128], strides = [1, 1]} : vector<128x512xf32> to vector<128x128xf32>
      %27 = arith.negf %26 : vector<128x128xf32>
      %28 = math.exp %27 : vector<128x128xf32>
      %cst_24 = arith.constant 1.000000e+00 : f32
      %29 = vector.broadcast %cst_24 : f32 to vector<128x128xf32>
      %30 = arith.addf %29, %28 : vector<128x128xf32>
      %31 = arith.divf %29, %30 : vector<128x128xf32>
      %32 = vector.extract_strided_slice %25 {offsets = [0, 128], sizes = [128, 128], strides = [1, 1]} : vector<128x512xf32> to vector<128x128xf32>
      %33 = arith.negf %32 : vector<128x128xf32>
      %34 = math.exp %33 : vector<128x128xf32>
      %cst_25 = arith.constant 1.000000e+00 : f32
      %35 = vector.broadcast %cst_25 : f32 to vector<128x128xf32>
      %36 = arith.addf %35, %34 : vector<128x128xf32>
      %37 = arith.divf %35, %36 : vector<128x128xf32>
      %38 = vector.extract_strided_slice %25 {offsets = [0, 256], sizes = [128, 128], strides = [1, 1]} : vector<128x512xf32> to vector<128x128xf32>
      %39 = math.tanh %38 : vector<128x128xf32>
      %40 = vector.extract_strided_slice %25 {offsets = [0, 384], sizes = [128, 128], strides = [1, 1]} : vector<128x512xf32> to vector<128x128xf32>
      %41 = arith.negf %40 : vector<128x128xf32>
      %42 = math.exp %41 : vector<128x128xf32>
      %cst_26 = arith.constant 1.000000e+00 : f32
      %43 = vector.broadcast %cst_26 : f32 to vector<128x128xf32>
      %44 = arith.addf %43, %42 : vector<128x128xf32>
      %45 = arith.divf %43, %44 : vector<128x128xf32>
      %46 = arith.mulf %37, %14 : vector<128x128xf32>
      %47 = arith.mulf %31, %39 : vector<128x128xf32>
      %48 = arith.addf %46, %47 : vector<128x128xf32>
      %49 = math.tanh %48 : vector<128x128xf32>
      %50 = arith.mulf %45, %49 : vector<128x128xf32>
      %c0_27 = arith.constant 0 : index
      %c0_28 = arith.constant 0 : index
      %51 = vector.load %arg2[%c0_27, %c0_28] : memref<128x1xf32, #tpu.memory_space<vmem>>, vector<128x1xf32>
      %cst_29 = arith.constant 5.000000e-01 : f32
      %52 = vector.broadcast %cst_29 : f32 to vector<128x1xf32>
      %53 = arith.cmpf ogt, %51, %52 : vector<128x1xf32>
      %54 = vector.shape_cast %53 : vector<128x1xi1> to vector<128x1xi1>
      %55 = vector.broadcast %54 : vector<128x1xi1> to vector<128x128xi1>
      %56 = arith.select %55, %13, %50 : vector<128x128xi1>, vector<128x128xf32>
      %57 = vector.shape_cast %53 : vector<128x1xi1> to vector<128x1xi1>
      %58 = vector.broadcast %57 : vector<128x1xi1> to vector<128x128xi1>
      %59 = arith.select %58, %14, %48 : vector<128x128xi1>, vector<128x128xf32>
      %c0_30 = arith.constant 0 : index
      %c0_31 = arith.constant 0 : index
      %60 = vector.load %arg10[%c0_30, %c0_31] : memref<128x128xf32, #tpu.memory_space<vmem>>, vector<128x128xf32>
      tpu.vector_store %arg10[%c0_30, %c0_31], %56 {strides = array<i32>} : memref<128x128xf32, #tpu.memory_space<vmem>>, vector<128x128xf32>,
      %c0_32 = arith.constant 0 : index
      %c0_33 = arith.constant 0 : index
      %61 = vector.load %arg11[%c0_32, %c0_33] : memref<128x128xf32, #tpu.memory_space<vmem>>, vector<128x128xf32>
      tpu.vector_store %arg11[%c0_32, %c0_33], %59 {strides = array<i32>} : memref<128x128xf32, #tpu.memory_space<vmem>>, vector<128x128xf32>,
      %62 = arith.truncf %56 : vector<128x128xf32> to vector<128x128xbf16>
      %c0_34 = arith.constant 0 : index
      %c0_35 = arith.constant 0 : index
      %63 = vector.load %arg12[%c0_34, %c0_35] : memref<128x128xbf16, #tpu.memory_space<vmem>>, vector<128x128xbf16>
      tpu.vector_store %arg12[%c0_34, %c0_35], %62 {strides = array<i32>} : memref<128x128xbf16, #tpu.memory_space<vmem>>, vector<128x128xbf16>,
    } else {
    }
    return
  }
  func.func @transform_0(%arg0: i32, %arg1: i32) -> (i32, i32) {
    %c0_i32 = arith.constant 0 : i32
    %c0_i32_0 = arith.constant 0 : i32
    return %arg0, %c0_i32 : i32, i32
  }
  func.func @transform_1(%arg0: i32, %arg1: i32) -> (i32, i32) {
    %c0_i32 = arith.constant 0 : i32
    return %arg0, %arg1 : i32, i32
  }
  func.func @transform_2(%arg0: i32, %arg1: i32) -> (i32, i32) {
    %c0_i32 = arith.constant 0 : i32
    %c0_i32_0 = arith.constant 0 : i32
    return %arg1, %c0_i32 : i32, i32
  }
  func.func @transform_3(%arg0: i32, %arg1: i32) -> (i32, i32) {
    %c0_i32 = arith.constant 0 : i32
    %c0_i32_0 = arith.constant 0 : i32
    return %arg0, %c0_i32 : i32, i32
  }
  func.func @transform_4(%arg0: i32, %arg1: i32) -> (i32, i32) {
    %c0_i32 = arith.constant 0 : i32
    %c0_i32_0 = arith.constant 0 : i32
    return %arg0, %c0_i32 : i32, i32
  }
  func.func @transform_5(%arg0: i32, %arg1: i32) -> (i32, i32) {
    %c0_i32 = arith.constant 0 : i32
    %c0_i32_0 = arith.constant 0 : i32
    %c0_i32_1 = arith.constant 0 : i32
    return %c0_i32, %c0_i32_0 : i32, i32
  }
  func.func @transform_6(%arg0: i32, %arg1: i32) -> (i32, i32) {
    %c0_i32 = arith.constant 0 : i32
    %c0_i32_0 = arith.constant 0 : i32
    %c0_i32_1 = arith.constant 0 : i32
    return %c0_i32, %c0_i32_0 : i32, i32
  }
  func.func @transform_7(%arg0: i32, %arg1: i32) -> (i32, i32) {
    %c0_i32 = arith.constant 0 : i32
    %c0_i32_0 = arith.constant 0 : i32
    %c0_i32_1 = arith.constant 0 : i32
    return %c0_i32, %c0_i32_0 : i32, i32
  }
  func.func @transform_8(%arg0: i32, %arg1: i32) -> (i32, i32) {
    %c0_i32 = arith.constant 0 : i32
    %c0_i32_0 = arith.constant 0 : i32
    return %arg0, %c0_i32 : i32, i32
  }
  func.func @transform_9(%arg0: i32, %arg1: i32) -> (i32, i32) {
    %c0_i32 = arith.constant 0 : i32
    %c0_i32_0 = arith.constant 0 : i32
    return %arg0, %c0_i32 : i32, i32
  }
  func.func @transform_10(%arg0: i32, %arg1: i32) -> (i32, i32) {
    %c0_i32 = arith.constant 0 : i32
    %c0_i32_0 = arith.constant 0 : i32
    return %arg0, %c0_i32 : i32, i32
  }
}

module attributes {stable_mosaic.version = 11 : i64} {
  func.func @_clause_update_kernel(%arg0: i32, %arg1: memref<128x1xf32, #tpu.memory_space<vmem>>, %arg2: memref<128x512xbf16, #tpu.memory_space<vmem>>, %arg3: memref<128x128xf32, #tpu.memory_space<vmem>>, %arg4: memref<128x128xf32, #tpu.memory_space<vmem>>, %arg5: memref<512x1024xbf16, #tpu.memory_space<vmem>>, %arg6: memref<128x1024xbf16, #tpu.memory_space<vmem>>, %arg7: memref<1x1024xf32, #tpu.memory_space<vmem>>, %arg8: memref<128x128xf32, #tpu.memory_space<vmem>>, %arg9: memref<128x128xf32, #tpu.memory_space<vmem>>, %arg10: memref<128x128xbf16, #tpu.memory_space<vmem>>) attributes {dimension_semantics = [#tpu.dimension_semantics<parallel>], iteration_bounds = array<i64: 1>, scalar_prefetch = 0 : i64, scratch_operands = 0 : i64, tpu.core_type = #tpu.core_type<tc>, window_params = [{transform_indices = @transform_0, window_bounds = array<i64: 128, 1>}, {transform_indices = @transform_1, window_bounds = array<i64: 128, 512>}, {transform_indices = @transform_2, window_bounds = array<i64: 128, 128>}, {transform_indices = @transform_3, window_bounds = array<i64: 128, 128>}, {pipeline_mode = #tpu.pipeline_mode<synchronous>, transform_indices = @transform_4, window_bounds = array<i64: 512, 1024>}, {pipeline_mode = #tpu.pipeline_mode<synchronous>, transform_indices = @transform_5, window_bounds = array<i64: 128, 1024>}, {pipeline_mode = #tpu.pipeline_mode<synchronous>, transform_indices = @transform_6, window_bounds = array<i64: 1, 1024>}, {transform_indices = @transform_7, window_bounds = array<i64: 128, 128>}, {transform_indices = @transform_8, window_bounds = array<i64: 128, 128>}, {transform_indices = @transform_9, window_bounds = array<i64: 128, 128>}]} {
    %c0 = arith.constant 0 : index
    %c0_0 = arith.constant 0 : index
    %0 = vector.load %arg2[%c0, %c0_0] : memref<128x512xbf16, #tpu.memory_space<vmem>>, vector<128x512xbf16>
    %c0_1 = arith.constant 0 : index
    %c0_2 = arith.constant 0 : index
    %1 = vector.load %arg3[%c0_1, %c0_2] : memref<128x128xf32, #tpu.memory_space<vmem>>, vector<128x128xf32>
    %c0_3 = arith.constant 0 : index
    %c0_4 = arith.constant 0 : index
    %2 = vector.load %arg4[%c0_3, %c0_4] : memref<128x128xf32, #tpu.memory_space<vmem>>, vector<128x128xf32>
    %c0_5 = arith.constant 0 : index
    %c0_6 = arith.constant 0 : index
    %3 = vector.load %arg5[%c0_5, %c0_6] : memref<512x1024xbf16, #tpu.memory_space<vmem>>, vector<512x1024xbf16>
    %cst = arith.constant dense<0.000000e+00> : vector<128x1024xf32>
    %4 = tpu.matmul %0, %3, %cst {dimension_numbers = #tpu.dot_dimension_numbers<[1], [0], [0], [1], [0, 0, 1, 1], [], []>} : vector<128x512xbf16>, vector<512x1024xbf16>, vector<128x1024xf32> -> vector<128x1024xf32>
    %5 = arith.truncf %1 : vector<128x128xf32> to vector<128x128xbf16>
    %c0_7 = arith.constant 0 : index
    %c0_8 = arith.constant 0 : index
    %6 = vector.load %arg6[%c0_7, %c0_8] : memref<128x1024xbf16, #tpu.memory_space<vmem>>, vector<128x1024xbf16>
    %cst_9 = arith.constant dense<0.000000e+00> : vector<128x1024xf32>
    %7 = tpu.matmul %5, %6, %cst_9 {dimension_numbers = #tpu.dot_dimension_numbers<[1], [0], [0], [1], [0, 0, 1, 1], [], []>} : vector<128x128xbf16>, vector<128x1024xbf16>, vector<128x1024xf32> -> vector<128x1024xf32>
    %8 = arith.addf %4, %7 : vector<128x1024xf32>
    %c0_10 = arith.constant 0 : index
    %c0_11 = arith.constant 0 : index
    %9 = vector.load %arg7[%c0_10, %c0_11] : memref<1x1024xf32, #tpu.memory_space<vmem>>, vector<1x1024xf32>
    %10 = vector.broadcast %9 : vector<1x1024xf32> to vector<128x1024xf32>
    %11 = arith.addf %8, %10 : vector<128x1024xf32>
    %c0_12 = arith.constant 0 : index
    %c0_13 = arith.constant 0 : index
    %12 = vector.load %arg1[%c0_12, %c0_13] : memref<128x1xf32, #tpu.memory_space<vmem>>, vector<128x1xf32>
    %cst_14 = arith.constant 5.000000e-01 : f32
    %13 = vector.broadcast %cst_14 : f32 to vector<128x1xf32>
    %14 = arith.cmpf ogt, %12, %13 : vector<128x1xf32>
    %15 = vector.extract_strided_slice %11 {offsets = [0, 0], sizes = [128, 512], strides = [1, 1]} : vector<128x1024xf32> to vector<128x512xf32>
    %16 = vector.extract_strided_slice %11 {offsets = [0, 512], sizes = [128, 512], strides = [1, 1]} : vector<128x1024xf32> to vector<128x512xf32>
    %17 = vector.shape_cast %14 : vector<128x1xi1> to vector<128x1xi1>
    %18 = vector.broadcast %17 : vector<128x1xi1> to vector<128x512xi1>
    %19 = arith.select %18, %15, %16 : vector<128x512xi1>, vector<128x512xf32>
    %20 = vector.extract_strided_slice %19 {offsets = [0, 0], sizes = [128, 128], strides = [1, 1]} : vector<128x512xf32> to vector<128x128xf32>
    %21 = arith.negf %20 : vector<128x128xf32>
    %22 = math.exp %21 : vector<128x128xf32>
    %cst_15 = arith.constant 1.000000e+00 : f32
    %23 = vector.broadcast %cst_15 : f32 to vector<128x128xf32>
    %24 = arith.addf %23, %22 : vector<128x128xf32>
    %25 = arith.divf %23, %24 : vector<128x128xf32>
    %26 = vector.extract_strided_slice %19 {offsets = [0, 128], sizes = [128, 128], strides = [1, 1]} : vector<128x512xf32> to vector<128x128xf32>
    %27 = arith.negf %26 : vector<128x128xf32>
    %28 = math.exp %27 : vector<128x128xf32>
    %cst_16 = arith.constant 1.000000e+00 : f32
    %29 = vector.broadcast %cst_16 : f32 to vector<128x128xf32>
    %30 = arith.addf %29, %28 : vector<128x128xf32>
    %31 = arith.divf %29, %30 : vector<128x128xf32>
    %32 = vector.extract_strided_slice %19 {offsets = [0, 256], sizes = [128, 128], strides = [1, 1]} : vector<128x512xf32> to vector<128x128xf32>
    %33 = math.tanh %32 : vector<128x128xf32>
    %34 = vector.extract_strided_slice %19 {offsets = [0, 384], sizes = [128, 128], strides = [1, 1]} : vector<128x512xf32> to vector<128x128xf32>
    %35 = arith.negf %34 : vector<128x128xf32>
    %36 = math.exp %35 : vector<128x128xf32>
    %cst_17 = arith.constant 1.000000e+00 : f32
    %37 = vector.broadcast %cst_17 : f32 to vector<128x128xf32>
    %38 = arith.addf %37, %36 : vector<128x128xf32>
    %39 = arith.divf %37, %38 : vector<128x128xf32>
    %40 = arith.mulf %31, %2 : vector<128x128xf32>
    %41 = arith.mulf %25, %33 : vector<128x128xf32>
    %42 = arith.addf %40, %41 : vector<128x128xf32>
    %43 = math.tanh %42 : vector<128x128xf32>
    %44 = arith.mulf %39, %43 : vector<128x128xf32>
    %c0_18 = arith.constant 0 : index
    %c0_19 = arith.constant 0 : index
    %45 = vector.load %arg8[%c0_18, %c0_19] : memref<128x128xf32, #tpu.memory_space<vmem>>, vector<128x128xf32>
    tpu.vector_store %arg8[%c0_18, %c0_19], %44 {strides = array<i32>} : memref<128x128xf32, #tpu.memory_space<vmem>>, vector<128x128xf32>,
    %c0_20 = arith.constant 0 : index
    %c0_21 = arith.constant 0 : index
    %46 = vector.load %arg9[%c0_20, %c0_21] : memref<128x128xf32, #tpu.memory_space<vmem>>, vector<128x128xf32>
    tpu.vector_store %arg9[%c0_20, %c0_21], %42 {strides = array<i32>} : memref<128x128xf32, #tpu.memory_space<vmem>>, vector<128x128xf32>,
    %47 = arith.truncf %44 : vector<128x128xf32> to vector<128x128xbf16>
    %c0_22 = arith.constant 0 : index
    %c0_23 = arith.constant 0 : index
    %48 = vector.load %arg10[%c0_22, %c0_23] : memref<128x128xbf16, #tpu.memory_space<vmem>>, vector<128x128xbf16>
    tpu.vector_store %arg10[%c0_22, %c0_23], %47 {strides = array<i32>} : memref<128x128xbf16, #tpu.memory_space<vmem>>, vector<128x128xbf16>,
    return
  }
  func.func @transform_0(%arg0: i32) -> (i32, i32) {
    %c0_i32 = arith.constant 0 : i32
    %c0_i32_0 = arith.constant 0 : i32
    return %arg0, %c0_i32 : i32, i32
  }
  func.func @transform_1(%arg0: i32) -> (i32, i32) {
    %c0_i32 = arith.constant 0 : i32
    %c0_i32_0 = arith.constant 0 : i32
    return %arg0, %c0_i32 : i32, i32
  }
  func.func @transform_2(%arg0: i32) -> (i32, i32) {
    %c0_i32 = arith.constant 0 : i32
    %c0_i32_0 = arith.constant 0 : i32
    return %arg0, %c0_i32 : i32, i32
  }
  func.func @transform_3(%arg0: i32) -> (i32, i32) {
    %c0_i32 = arith.constant 0 : i32
    %c0_i32_0 = arith.constant 0 : i32
    return %arg0, %c0_i32 : i32, i32
  }
  func.func @transform_4(%arg0: i32) -> (i32, i32) {
    %c0_i32 = arith.constant 0 : i32
    %c0_i32_0 = arith.constant 0 : i32
    %c0_i32_1 = arith.constant 0 : i32
    return %c0_i32, %c0_i32_0 : i32, i32
  }
  func.func @transform_5(%arg0: i32) -> (i32, i32) {
    %c0_i32 = arith.constant 0 : i32
    %c0_i32_0 = arith.constant 0 : i32
    %c0_i32_1 = arith.constant 0 : i32
    return %c0_i32, %c0_i32_0 : i32, i32
  }
  func.func @transform_6(%arg0: i32) -> (i32, i32) {
    %c0_i32 = arith.constant 0 : i32
    %c0_i32_0 = arith.constant 0 : i32
    %c0_i32_1 = arith.constant 0 : i32
    return %c0_i32, %c0_i32_0 : i32, i32
  }
  func.func @transform_7(%arg0: i32) -> (i32, i32) {
    %c0_i32 = arith.constant 0 : i32
    %c0_i32_0 = arith.constant 0 : i32
    return %arg0, %c0_i32 : i32, i32
  }
  func.func @transform_8(%arg0: i32) -> (i32, i32) {
    %c0_i32 = arith.constant 0 : i32
    %c0_i32_0 = arith.constant 0 : i32
    return %arg0, %c0_i32 : i32, i32
  }
  func.func @transform_9(%arg0: i32) -> (i32, i32) {
    %c0_i32 = arith.constant 0 : i32
    %c0_i32_0 = arith.constant 0 : i32
    return %arg0, %c0_i32 : i32, i32
  }
}

module attributes {stable_mosaic.version = 11 : i64} {
  func.func @_literal_update_kernel(%arg0: i32, %arg1: i32, %arg2: memref<128x1xf32, #tpu.memory_space<vmem>>, %arg3: memref<128x128xi8, #tpu.memory_space<vmem>>, %arg4: memref<128x128xbf16, #tpu.memory_space<vmem>>, %arg5: memref<128x128xf32, #tpu.memory_space<vmem>>, %arg6: memref<128x128xf32, #tpu.memory_space<vmem>>, %arg7: memref<128x512xbf16, #tpu.memory_space<vmem>>, %arg8: memref<128x512xbf16, #tpu.memory_space<vmem>>, %arg9: memref<1x512xf32, #tpu.memory_space<vmem>>, %arg10: memref<128x128xf32, #tpu.memory_space<vmem>>, %arg11: memref<128x128xf32, #tpu.memory_space<vmem>>, %arg12: memref<128x128xbf16, #tpu.memory_space<vmem>>, %arg13: memref<128x128xf32, #tpu.memory_space<vmem>>) attributes {dimension_semantics = [#tpu.dimension_semantics<parallel>, #tpu.dimension_semantics<arbitrary>], iteration_bounds = array<i64: 1, 1>, scalar_prefetch = 0 : i64, scratch_operands = 1 : i64, tpu.core_type = #tpu.core_type<tc>, window_params = [{transform_indices = @transform_0, window_bounds = array<i64: 128, 1>}, {transform_indices = @transform_1, window_bounds = array<i64: 128, 128>}, {transform_indices = @transform_2, window_bounds = array<i64: 128, 128>}, {transform_indices = @transform_3, window_bounds = array<i64: 128, 128>}, {transform_indices = @transform_4, window_bounds = array<i64: 128, 128>}, {pipeline_mode = #tpu.pipeline_mode<synchronous>, transform_indices = @transform_5, window_bounds = array<i64: 128, 512>}, {pipeline_mode = #tpu.pipeline_mode<synchronous>, transform_indices = @transform_6, window_bounds = array<i64: 128, 512>}, {pipeline_mode = #tpu.pipeline_mode<synchronous>, transform_indices = @transform_7, window_bounds = array<i64: 1, 512>}, {transform_indices = @transform_8, window_bounds = array<i64: 128, 128>}, {transform_indices = @transform_9, window_bounds = array<i64: 128, 128>}, {transform_indices = @transform_10, window_bounds = array<i64: 128, 128>}]} {
    %c0_i32 = arith.constant 0 : i32
    %0 = arith.cmpi eq, %arg1, %c0_i32 : i32
    %1 = arith.extui %0 : i1 to i32
    %c0_i32_0 = arith.constant 0 : i32
    %2 = arith.cmpi ne, %1, %c0_i32_0 : i32
    scf.if %2 {
      %cst_10 = arith.constant 0.000000e+00 : f32
      %13 = vector.broadcast %cst_10 : f32 to vector<128x128xf32>
      %c0_11 = arith.constant 0 : index
      %c0_12 = arith.constant 0 : index
      %14 = vector.load %arg13[%c0_11, %c0_12] : memref<128x128xf32, #tpu.memory_space<vmem>>, vector<128x128xf32>
      tpu.vector_store %arg13[%c0_11, %c0_12], %13 {strides = array<i32>} : memref<128x128xf32, #tpu.memory_space<vmem>>, vector<128x128xf32>,
    } else {
    }
    %c0 = arith.constant 0 : index
    %c0_1 = arith.constant 0 : index
    %3 = vector.load %arg3[%c0, %c0_1] : memref<128x128xi8, #tpu.memory_space<vmem>>, vector<128x128xi8>
    %4 = arith.sitofp %3 : vector<128x128xi8> to vector<128x128xbf16>
    %c0_2 = arith.constant 0 : index
    %c0_3 = arith.constant 0 : index
    %5 = vector.load %arg13[%c0_2, %c0_3] : memref<128x128xf32, #tpu.memory_space<vmem>>, vector<128x128xf32>
    %c0_4 = arith.constant 0 : index
    %c0_5 = arith.constant 0 : index
    %6 = vector.load %arg4[%c0_4, %c0_5] : memref<128x128xbf16, #tpu.memory_space<vmem>>, vector<128x128xbf16>
    %cst = arith.constant dense<0.000000e+00> : vector<128x128xf32>
    %7 = tpu.matmul %4, %6, %cst {dimension_numbers = #tpu.dot_dimension_numbers<[1], [0], [0], [1], [0, 0, 1, 1], [], []>} : vector<128x128xbf16>, vector<128x128xbf16>, vector<128x128xf32> -> vector<128x128xf32>
    %8 = arith.addf %5, %7 : vector<128x128xf32>
    %c0_6 = arith.constant 0 : index
    %c0_7 = arith.constant 0 : index
    %9 = vector.load %arg13[%c0_6, %c0_7] : memref<128x128xf32, #tpu.memory_space<vmem>>, vector<128x128xf32>
    tpu.vector_store %arg13[%c0_6, %c0_7], %8 {strides = array<i32>} : memref<128x128xf32, #tpu.memory_space<vmem>>, vector<128x128xf32>,
    %c0_i32_8 = arith.constant 0 : i32
    %10 = arith.cmpi eq, %arg1, %c0_i32_8 : i32
    %11 = arith.extui %10 : i1 to i32
    %c0_i32_9 = arith.constant 0 : i32
    %12 = arith.cmpi ne, %11, %c0_i32_9 : i32
    scf.if %12 {
      %c0_10 = arith.constant 0 : index
      %c0_11 = arith.constant 0 : index
      %13 = vector.load %arg5[%c0_10, %c0_11] : memref<128x128xf32, #tpu.memory_space<vmem>>, vector<128x128xf32>
      %c0_12 = arith.constant 0 : index
      %c0_13 = arith.constant 0 : index
      %14 = vector.load %arg6[%c0_12, %c0_13] : memref<128x128xf32, #tpu.memory_space<vmem>>, vector<128x128xf32>
      %c0_14 = arith.constant 0 : index
      %c0_15 = arith.constant 0 : index
      %15 = vector.load %arg13[%c0_14, %c0_15] : memref<128x128xf32, #tpu.memory_space<vmem>>, vector<128x128xf32>
      %16 = arith.truncf %15 : vector<128x128xf32> to vector<128x128xbf16>
      %c0_16 = arith.constant 0 : index
      %c0_17 = arith.constant 0 : index
      %17 = vector.load %arg7[%c0_16, %c0_17] : memref<128x512xbf16, #tpu.memory_space<vmem>>, vector<128x512xbf16>
      %cst_18 = arith.constant dense<0.000000e+00> : vector<128x512xf32>
      %18 = tpu.matmul %16, %17, %cst_18 {dimension_numbers = #tpu.dot_dimension_numbers<[1], [0], [0], [1], [0, 0, 1, 1], [], []>} : vector<128x128xbf16>, vector<128x512xbf16>, vector<128x512xf32> -> vector<128x512xf32>
      %19 = arith.truncf %13 : vector<128x128xf32> to vector<128x128xbf16>
      %c0_19 = arith.constant 0 : index
      %c0_20 = arith.constant 0 : index
      %20 = vector.load %arg8[%c0_19, %c0_20] : memref<128x512xbf16, #tpu.memory_space<vmem>>, vector<128x512xbf16>
      %cst_21 = arith.constant dense<0.000000e+00> : vector<128x512xf32>
      %21 = tpu.matmul %19, %20, %cst_21 {dimension_numbers = #tpu.dot_dimension_numbers<[1], [0], [0], [1], [0, 0, 1, 1], [], []>} : vector<128x128xbf16>, vector<128x512xbf16>, vector<128x512xf32> -> vector<128x512xf32>
      %22 = arith.addf %18, %21 : vector<128x512xf32>
      %c0_22 = arith.constant 0 : index
      %c0_23 = arith.constant 0 : index
      %23 = vector.load %arg9[%c0_22, %c0_23] : memref<1x512xf32, #tpu.memory_space<vmem>>, vector<1x512xf32>
      %24 = vector.broadcast %23 : vector<1x512xf32> to vector<128x512xf32>
      %25 = arith.addf %22, %24 : vector<128x512xf32>
      %26 = vector.extract_strided_slice %25 {offsets = [0, 0], sizes = [128, 128], strides = [1, 1]} : vector<128x512xf32> to vector<128x128xf32>
      %27 = arith.negf %26 : vector<128x128xf32>
      %28 = math.exp %27 : vector<128x128xf32>
      %cst_24 = arith.constant 1.000000e+00 : f32
      %29 = vector.broadcast %cst_24 : f32 to vector<128x128xf32>
      %30 = arith.addf %29, %28 : vector<128x128xf32>
      %31 = arith.divf %29, %30 : vector<128x128xf32>
      %32 = vector.extract_strided_slice %25 {offsets = [0, 128], sizes = [128, 128], strides = [1, 1]} : vector<128x512xf32> to vector<128x128xf32>
      %33 = arith.negf %32 : vector<128x128xf32>
      %34 = math.exp %33 : vector<128x128xf32>
      %cst_25 = arith.constant 1.000000e+00 : f32
      %35 = vector.broadcast %cst_25 : f32 to vector<128x128xf32>
      %36 = arith.addf %35, %34 : vector<128x128xf32>
      %37 = arith.divf %35, %36 : vector<128x128xf32>
      %38 = vector.extract_strided_slice %25 {offsets = [0, 256], sizes = [128, 128], strides = [1, 1]} : vector<128x512xf32> to vector<128x128xf32>
      %39 = math.tanh %38 : vector<128x128xf32>
      %40 = vector.extract_strided_slice %25 {offsets = [0, 384], sizes = [128, 128], strides = [1, 1]} : vector<128x512xf32> to vector<128x128xf32>
      %41 = arith.negf %40 : vector<128x128xf32>
      %42 = math.exp %41 : vector<128x128xf32>
      %cst_26 = arith.constant 1.000000e+00 : f32
      %43 = vector.broadcast %cst_26 : f32 to vector<128x128xf32>
      %44 = arith.addf %43, %42 : vector<128x128xf32>
      %45 = arith.divf %43, %44 : vector<128x128xf32>
      %46 = arith.mulf %37, %14 : vector<128x128xf32>
      %47 = arith.mulf %31, %39 : vector<128x128xf32>
      %48 = arith.addf %46, %47 : vector<128x128xf32>
      %49 = math.tanh %48 : vector<128x128xf32>
      %50 = arith.mulf %45, %49 : vector<128x128xf32>
      %c0_27 = arith.constant 0 : index
      %c0_28 = arith.constant 0 : index
      %51 = vector.load %arg2[%c0_27, %c0_28] : memref<128x1xf32, #tpu.memory_space<vmem>>, vector<128x1xf32>
      %cst_29 = arith.constant 5.000000e-01 : f32
      %52 = vector.broadcast %cst_29 : f32 to vector<128x1xf32>
      %53 = arith.cmpf ogt, %51, %52 : vector<128x1xf32>
      %54 = vector.shape_cast %53 : vector<128x1xi1> to vector<128x1xi1>
      %55 = vector.broadcast %54 : vector<128x1xi1> to vector<128x128xi1>
      %56 = arith.select %55, %13, %50 : vector<128x128xi1>, vector<128x128xf32>
      %57 = vector.shape_cast %53 : vector<128x1xi1> to vector<128x1xi1>
      %58 = vector.broadcast %57 : vector<128x1xi1> to vector<128x128xi1>
      %59 = arith.select %58, %14, %48 : vector<128x128xi1>, vector<128x128xf32>
      %c0_30 = arith.constant 0 : index
      %c0_31 = arith.constant 0 : index
      %60 = vector.load %arg10[%c0_30, %c0_31] : memref<128x128xf32, #tpu.memory_space<vmem>>, vector<128x128xf32>
      tpu.vector_store %arg10[%c0_30, %c0_31], %56 {strides = array<i32>} : memref<128x128xf32, #tpu.memory_space<vmem>>, vector<128x128xf32>,
      %c0_32 = arith.constant 0 : index
      %c0_33 = arith.constant 0 : index
      %61 = vector.load %arg11[%c0_32, %c0_33] : memref<128x128xf32, #tpu.memory_space<vmem>>, vector<128x128xf32>
      tpu.vector_store %arg11[%c0_32, %c0_33], %59 {strides = array<i32>} : memref<128x128xf32, #tpu.memory_space<vmem>>, vector<128x128xf32>,
      %62 = arith.truncf %56 : vector<128x128xf32> to vector<128x128xbf16>
      %c0_34 = arith.constant 0 : index
      %c0_35 = arith.constant 0 : index
      %63 = vector.load %arg12[%c0_34, %c0_35] : memref<128x128xbf16, #tpu.memory_space<vmem>>, vector<128x128xbf16>
      tpu.vector_store %arg12[%c0_34, %c0_35], %62 {strides = array<i32>} : memref<128x128xbf16, #tpu.memory_space<vmem>>, vector<128x128xbf16>,
    } else {
    }
    return
  }
  func.func @transform_0(%arg0: i32, %arg1: i32) -> (i32, i32) {
    %c0_i32 = arith.constant 0 : i32
    %c0_i32_0 = arith.constant 0 : i32
    return %arg0, %c0_i32 : i32, i32
  }
  func.func @transform_1(%arg0: i32, %arg1: i32) -> (i32, i32) {
    %c0_i32 = arith.constant 0 : i32
    return %arg0, %arg1 : i32, i32
  }
  func.func @transform_2(%arg0: i32, %arg1: i32) -> (i32, i32) {
    %c0_i32 = arith.constant 0 : i32
    %c0_i32_0 = arith.constant 0 : i32
    return %arg1, %c0_i32 : i32, i32
  }
  func.func @transform_3(%arg0: i32, %arg1: i32) -> (i32, i32) {
    %c0_i32 = arith.constant 0 : i32
    %c0_i32_0 = arith.constant 0 : i32
    return %arg0, %c0_i32 : i32, i32
  }
  func.func @transform_4(%arg0: i32, %arg1: i32) -> (i32, i32) {
    %c0_i32 = arith.constant 0 : i32
    %c0_i32_0 = arith.constant 0 : i32
    return %arg0, %c0_i32 : i32, i32
  }
  func.func @transform_5(%arg0: i32, %arg1: i32) -> (i32, i32) {
    %c0_i32 = arith.constant 0 : i32
    %c0_i32_0 = arith.constant 0 : i32
    %c0_i32_1 = arith.constant 0 : i32
    return %c0_i32, %c0_i32_0 : i32, i32
  }
  func.func @transform_6(%arg0: i32, %arg1: i32) -> (i32, i32) {
    %c0_i32 = arith.constant 0 : i32
    %c0_i32_0 = arith.constant 0 : i32
    %c0_i32_1 = arith.constant 0 : i32
    return %c0_i32, %c0_i32_0 : i32, i32
  }
  func.func @transform_7(%arg0: i32, %arg1: i32) -> (i32, i32) {
    %c0_i32 = arith.constant 0 : i32
    %c0_i32_0 = arith.constant 0 : i32
    %c0_i32_1 = arith.constant 0 : i32
    return %c0_i32, %c0_i32_0 : i32, i32
  }
  func.func @transform_8(%arg0: i32, %arg1: i32) -> (i32, i32) {
    %c0_i32 = arith.constant 0 : i32
    %c0_i32_0 = arith.constant 0 : i32
    return %arg0, %c0_i32 : i32, i32
  }
  func.func @transform_9(%arg0: i32, %arg1: i32) -> (i32, i32) {
    %c0_i32 = arith.constant 0 : i32
    %c0_i32_0 = arith.constant 0 : i32
    return %arg0, %c0_i32 : i32, i32
  }
  func.func @transform_10(%arg0: i32, %arg1: i32) -> (i32, i32) {
    %c0_i32 = arith.constant 0 : i32
    %c0_i32_0 = arith.constant 0 : i32
    return %arg0, %c0_i32 : i32, i32
  }
}

module attributes {stable_mosaic.version = 11 : i64} {
  func.func @_classifier_kernel(%arg0: i32, %arg1: memref<128x128xbf16, #tpu.memory_space<vmem>>, %arg2: memref<128x1024xbf16, #tpu.memory_space<vmem>>, %arg3: memref<1x1024xf32, #tpu.memory_space<vmem>>, %arg4: memref<128x1024xf32, #tpu.memory_space<vmem>>) attributes {dimension_semantics = [#tpu.dimension_semantics<parallel>], iteration_bounds = array<i64: 1>, scalar_prefetch = 0 : i64, scratch_operands = 0 : i64, tpu.core_type = #tpu.core_type<tc>, window_params = [{transform_indices = @transform_0, window_bounds = array<i64: 128, 128>}, {pipeline_mode = #tpu.pipeline_mode<synchronous>, transform_indices = @transform_1, window_bounds = array<i64: 128, 1024>}, {pipeline_mode = #tpu.pipeline_mode<synchronous>, transform_indices = @transform_2, window_bounds = array<i64: 1, 1024>}, {transform_indices = @transform_3, window_bounds = array<i64: 128, 1024>}]} {
    %c0 = arith.constant 0 : index
    %c0_0 = arith.constant 0 : index
    %0 = vector.load %arg1[%c0, %c0_0] : memref<128x128xbf16, #tpu.memory_space<vmem>>, vector<128x128xbf16>
    %c0_1 = arith.constant 0 : index
    %c0_2 = arith.constant 0 : index
    %1 = vector.load %arg2[%c0_1, %c0_2] : memref<128x1024xbf16, #tpu.memory_space<vmem>>, vector<128x1024xbf16>
    %cst = arith.constant dense<0.000000e+00> : vector<128x1024xf32>
    %2 = tpu.matmul %0, %1, %cst {dimension_numbers = #tpu.dot_dimension_numbers<[1], [0], [0], [1], [0, 0, 1, 1], [], []>} : vector<128x128xbf16>, vector<128x1024xbf16>, vector<128x1024xf32> -> vector<128x1024xf32>
    %c0_3 = arith.constant 0 : index
    %c0_4 = arith.constant 0 : index
    %3 = vector.load %arg3[%c0_3, %c0_4] : memref<1x1024xf32, #tpu.memory_space<vmem>>, vector<1x1024xf32>
    %4 = vector.broadcast %3 : vector<1x1024xf32> to vector<128x1024xf32>
    %5 = arith.addf %2, %4 : vector<128x1024xf32>
    %c0_5 = arith.constant 0 : index
    %c0_6 = arith.constant 0 : index
    %6 = vector.load %arg4[%c0_5, %c0_6] : memref<128x1024xf32, #tpu.memory_space<vmem>>, vector<128x1024xf32>
    tpu.vector_store %arg4[%c0_5, %c0_6], %5 {strides = array<i32>} : memref<128x1024xf32, #tpu.memory_space<vmem>>, vector<128x1024xf32>,
    return
  }
  func.func @transform_0(%arg0: i32) -> (i32, i32) {
    %c0_i32 = arith.constant 0 : i32
    %c0_i32_0 = arith.constant 0 : i32
    return %arg0, %c0_i32 : i32, i32
  }
  func.func @transform_1(%arg0: i32) -> (i32, i32) {
    %c0_i32 = arith.constant 0 : i32
    %c0_i32_0 = arith.constant 0 : i32
    %c0_i32_1 = arith.constant 0 : i32
    return %c0_i32, %c0_i32_0 : i32, i32
  }
  func.func @transform_2(%arg0: i32) -> (i32, i32) {
    %c0_i32 = arith.constant 0 : i32
    %c0_i32_0 = arith.constant 0 : i32
    %c0_i32_1 = arith.constant 0 : i32
    return %c0_i32, %c0_i32_0 : i32, i32
  }
  func.func @transform_3(%arg0: i32) -> (i32, i32) {
    %c0_i32 = arith.constant 0 : i32
    %c0_i32_0 = arith.constant 0 : i32
    return %arg0, %c0_i32 : i32, i32
  }
}

</mosaic_0001>

<bundles_post_ra>
// kernel: neurosat_forward.8
= control target key start
LH: loop header
LB: loop body
LE: loop exit
PB: predicated region body
PF: predicated region fallthrough
CT: control target
= control target key end

     0   :  { %v2621_v1 = vmov 0   ;;  %s3765_s2 = inlined_call_operand.vmem [shape: bf16[128,128], index: 2, kind: input, shape index: {}]   ;;  %s3766_s1 = inlined_call_operand.vmem [shape: s8[128,128], index: 1, kind: input, shape index: {}]   ;;  %s3767_s6 = inlined_call_operand.vmem [shape: bf16[128,512], index: 6, kind: input, shape index: {}]   ;;  %s3768_s5 = inlined_call_operand.vmem [shape: bf16[128,512], index: 5, kind: input, shape index: {}]   ;;  %s3769_s3 = inlined_call_operand.vmem [shape: f32[128,128], index: 3, kind: input, shape index: {}]   ;;  %s3770_s0 = inlined_call_operand.vmem [shape: f32[128,1], index: 0, kind: input, shape index: {}]   ;;  %s3771_s7 = inlined_call_operand.vmem [shape: f32[1,512], index: 7, kind: input, shape index: {}]   ;;  %s3772_s4 = inlined_call_operand.vmem [shape: f32[128,128], index: 4, kind: input, shape index: {}]   ;;  %s3773_s9 = inlined_call_operand.vmem [shape: f32[128,128], index: 9, kind: output, shape index: {1}]   ;;  %s3774_s8 = inlined_call_operand.vmem [shape: f32[128,128], index: 8, kind: output, shape index: {0}]   ;;  %s3775_s10 = inlined_call_operand.vmem [shape: bf16[128,128], index: 10, kind: output, shape index: {2}]  }
   0x1   :  { %v2245_v0 = vld [vmem:[%s3765_s2] sm:$0xff]   ;;  %597 = vmatprep.mubr.bf16.mxu1 %v2621_v1  ;;  %2243 = vset.pattern.permute.xlu0 %v2621_v1  ;;  %v2246_v2 = vld [vmem:[%s3765_s2 + $0x8] sm:$0xff]   ;;  %v2247_v3 = vld [vmem:[%s3765_s2 + $0x10] sm:$0xff]  }
   0x2   :  { %2244 = vset.pattern.permute.xlu1 %v2621_v1  ;;  %2130 = vmatprep.subr.bf16.mxu0 %v2245_v0  ;;  %v2248_v4 = vld [vmem:[%s3765_s2 + $0x18] sm:$0xff]   ;;  %v53_v5 = vld [vmem:[%s3766_s1] sm:$0xff]  ;;  %v2250_v13 = vld [vmem:[%s3765_s2 + $0x28] sm:$0xff]  }
   0x3   :  { %2131 = vmatpush3.bf16.msra.mxu0 %v2245_v0  ;;  %v57_v6 = vunpack.c.l.s8.bf16 %v53_v5  ;;  %v2253_v7 = vld [vmem:[%s3767_s6 + $0x4] ss:$16 sps:$4 sm:$0xff]   ;;  %v2255_v8 = vld [vmem:[%s3767_s6] ss:$16 sps:$4 sm:$0xff]   ;;  %v2252_v19 = vld [vmem:[%s3765_s2 + $0x38] sm:$0xff]   ;;  %v58_v25 = vunpack.c.h.s8.bf16 %v53_v5 }
   0x4   :  { %2132 = vmatprep.subr.bf16.mxu0 %v2246_v2  ;;  %v2249_v9 = vld [vmem:[%s3765_s2 + $0x20] sm:$0xff]   ;;  %565 = vmatprep.subr.bf16.mxu1 %v2253_v7  ;;  %v2251_v16 = vld [vmem:[%s3765_s2 + $0x30] sm:$0xff]   ;;  %v54_v22 = vld [vmem:[%s3766_s1 + $0x8] sm:$0xff] }
   0x5   :  { %2146 = vmatprep.mubr.bf16.mxu0 %v57_v6  ;;  %v2259_v10 = vld [vmem:[%s3767_s6 + $0x24] ss:$16 sps:$4 sm:$0xff]   ;;  %566 = vmatpush1.bf16.msra.mxu1 %v2255_v8  ;;  %v2261_v11 = vld [vmem:[%s3767_s6 + $0x20] ss:$16 sps:$4 sm:$0xff]   ;;  %v2258_v23 = vld [vmem:[%s3767_s6 + $0xc] ss:$16 sps:$4 sm:$0xff]   ;;  %v59_v27 = vunpack.c.l.s8.bf16 %v54_v22  ;;  %v60_v38 = vunpack.c.h.s8.bf16 %v54_v22 }
   0x6   :  { %567 = vmatprep.subr.bf16.mxu1 %v2259_v10  ;;  %v2265_v12 = vld [vmem:[%s3767_s6 + $0x44] ss:$16 sps:$4 sm:$0xff]   ;;  %v2267_v14 = vld [vmem:[%s3767_s6 + $0x40] ss:$16 sps:$4 sm:$0xff]   ;;  %v2256_v28 = vld [vmem:[%s3767_s6 + $0x8] ss:$16 sps:$4 sm:$0xff]  }
   0x7   :  { %2133 = vmatpush3.bf16.msra.mxu0 %v2246_v2  ;;  %v2271_v15 = vld [vmem:[%s3767_s6 + $0x64] ss:$16 sps:$4 sm:$0xff]   ;;  %v2273_v17 = vld [vmem:[%s3767_s6 + $0x60] ss:$16 sps:$4 sm:$0xff]   ;;  %v2264_v29 = vld [vmem:[%s3767_s6 + $0x2c] ss:$16 sps:$4 sm:$0xff]  }
   0x8   :  { %2134 = vmatprep.subr.bf16.mxu0 %v2247_v3  ;;  %v2277_v18 = vld [vmem:[%s3767_s6 + $0x84] ss:$16 sps:$4 sm:$0xff]   ;;  %v2279_v20 = vld [vmem:[%s3767_s6 + $0x80] ss:$16 sps:$4 sm:$0xff]   ;;  %v2262_v33 = vld [vmem:[%s3767_s6 + $0x28] ss:$16 sps:$4 sm:$0xff]  }
   0x9   :  { %568 = vmatpush1.bf16.msra.mxu1 %v2261_v11  ;;  %v2283_v21 = vld [vmem:[%s3767_s6 + $0xa4] ss:$16 sps:$4 sm:$0xff]   ;;  %v2285_v24 = vld [vmem:[%s3767_s6 + $0xa0] ss:$16 sps:$4 sm:$0xff]   ;;  %v2270_v34 = vld [vmem:[%s3767_s6 + $0x4c] ss:$16 sps:$4 sm:$0xff]  }
   0xa   :  { %569 = vmatprep.subr.bf16.mxu1 %v2265_v12  ;;  %v2289_v26 = vld [vmem:[%s3767_s6 + $0xc4] ss:$16 sps:$4 sm:$0xff]   ;;  %v2291_v30 = vld [vmem:[%s3767_s6 + $0xc0] ss:$16 sps:$4 sm:$0xff]   ;;  %v278_v37 = vld [vmem:[%s3769_s3 + $0x8] sm:$0xff] }
   0xb   :  { %2135 = vmatpush3.bf16.msra.mxu0 %v2247_v3  ;;  %v2295_v31 = vld [vmem:[%s3767_s6 + $0xe4] ss:$16 sps:$4 sm:$0xff]   ;;  %v2297_v35 = vld [vmem:[%s3767_s6 + $0xe0] ss:$16 sps:$4 sm:$0xff]   ;;  %v2268_v41 = vld [vmem:[%s3767_s6 + $0x48] ss:$16 sps:$4 sm:$0xff]  }
   0xc   :  { %2136 = vmatprep.subr.bf16.mxu0 %v2248_v4  ;;  %v55_v32 = vld [vmem:[%s3766_s1 + $0x10] sm:$0xff]  ;;  %v277_v36 = vld [vmem:[%s3769_s3] sm:$0xff]  ;;  %v2276_v42 = vld [vmem:[%s3767_s6 + $0x6c] ss:$16 sps:$4 sm:$0xff]  }
   0xd   :  { %570 = vmatpush1.bf16.msra.mxu1 %v2267_v14  ;;  %v2303_v39 = vld [vmem:[%s3768_s5 + $0x4] ss:$16 sps:$4 sm:$0xff]   ;;  %v61_v40 = vunpack.c.l.s8.bf16 %v55_v32  ;;  %v2791_v43 = vpack.c.bf16 %v278_v37, %v277_v36  ;;  %v2301_v44 = vld [vmem:[%s3768_s5] ss:$16 sps:$4 sm:$0xff]   ;;  %v56_v45 = vld [vmem:[%s3766_s1 + $0x18] sm:$0xff]  ;;  %v62_v52 = vunpack.c.h.s8.bf16 %v55_v32 }
   0xe   :  { %571 = vmatprep.subr.bf16.mxu1 %v2271_v15  ;;  %v2306_v46 = vld [vmem:[%s3768_s5 + $0x24] ss:$16 sps:$4 sm:$0xff]   ;;  %v2274_v47 = vld [vmem:[%s3767_s6 + $0x68] ss:$16 sps:$4 sm:$0xff]   ;;  %v2282_v48 = vld [vmem:[%s3767_s6 + $0x8c] ss:$16 sps:$4 sm:$0xff]   ;;  %v63_v54 = vunpack.c.l.s8.bf16 %v56_v45  ;;  %v64_v2 = vunpack.c.h.s8.bf16 %v56_v45 }
   0xf   :  { %2137 = vmatpush3.bf16.msra.mxu0 %v2248_v4  ;;  %v2304_v49 = vld [vmem:[%s3768_s5 + $0x20] ss:$16 sps:$4 sm:$0xff]   ;;  %v280_v51 = vld [vmem:[%s3769_s3 + $0x18] sm:$0xff]  ;;  %v2309_v53 = vld [vmem:[%s3768_s5 + $0x44] ss:$16 sps:$4 sm:$0xff]  }
  0x10   :  { %2138 = vmatprep.subr.bf16.mxu0 %v2249_v9  ;;  %v279_v50 = vld [vmem:[%s3769_s3 + $0x10] sm:$0xff]  ;;  %v2280_v55 = vld [vmem:[%s3767_s6 + $0x88] ss:$16 sps:$4 sm:$0xff]   ;;  %v2288_v56 = vld [vmem:[%s3767_s6 + $0xac] ss:$16 sps:$4 sm:$0xff]  }
  0x11   :  { %572 = vmatpush1.bf16.msra.mxu1 %v2273_v17  ;;  %v2828_v57 = vpack.c.bf16 %v280_v51, %v279_v50  ;;  %v2307_v58 = vld [vmem:[%s3768_s5 + $0x40] ss:$16 sps:$4 sm:$0xff]   ;;  %v2312_v59 = vld [vmem:[%s3768_s5 + $0x64] ss:$16 sps:$4 sm:$0xff]   ;;  %v2286_v60 = vld [vmem:[%s3767_s6 + $0xa8] ss:$16 sps:$4 sm:$0xff]  }
  0x12   :  { %573 = vmatprep.subr.bf16.mxu1 %v2277_v18  ;;  %v2294_v61 = vld [vmem:[%s3767_s6 + $0xcc] ss:$16 sps:$4 sm:$0xff]   ;;  %v281_v62 = vld [vmem:[%s3769_s3 + $0x20] sm:$0xff]  ;;  %v2292_v4 = vld [vmem:[%s3767_s6 + $0xc8] ss:$16 sps:$4 sm:$0xff]  }
  0x13   :  { %2139 = vmatpush3.bf16.msra.mxu0 %v2249_v9  ;;  %v282_v63 = vld [vmem:[%s3769_s3 + $0x28] sm:$0xff]  ;;  %v2310_v0 = vld [vmem:[%s3768_s5 + $0x60] ss:$16 sps:$4 sm:$0xff]   ;;  %v2315_v3 = vld [vmem:[%s3768_s5 + $0x84] ss:$16 sps:$4 sm:$0xff]  }
  0x14   :  { %2140 = vmatprep.subr.bf16.mxu0 %v2250_v13  ;;  %v2300_v5 = vld [vmem:[%s3767_s6 + $0xec] ss:$16 sps:$4 sm:$0xff]   ;;  %v367_v6 = vpack.c.bf16 %v282_v63, %v281_v62  ;;  %v2313_v7 = vld [vmem:[%s3768_s5 + $0x80] ss:$16 sps:$4 sm:$0xff]   ;;  %v2324_v8 = vld [vmem:[%s3768_s5 + $0xa4] ss:$16 sps:$4 sm:$0xff]  }
  0x15   :  { %574 = vmatpush1.bf16.msra.mxu1 %v2279_v20  ;;  %v2298_v9 = vld [vmem:[%s3767_s6 + $0xe8] ss:$16 sps:$4 sm:$0xff]   ;;  %v2318_v10 = vld [vmem:[%s3768_s5 + $0xc] ss:$16 sps:$4 sm:$0xff]   ;;  %v283_v11 = vld [vmem:[%s3769_s3 + $0x30] sm:$0xff] }
  0x16   :  { %575 = vmatprep.subr.bf16.mxu1 %v2283_v21  ;;  %v284_v12 = vld [vmem:[%s3769_s3 + $0x38] sm:$0xff]  ;;  %v2333_v14 = vld [vmem:[%s3768_s5 + $0xc4] ss:$16 sps:$4 sm:$0xff]   ;;  %v2331_v18 = vld [vmem:[%s3768_s5 + $0xc0] ss:$16 sps:$4 sm:$0xff]  }
  0x17   :  { %2141 = vmatpush3.bf16.msra.mxu0 %v2250_v13  ;;  %v2322_v13 = vld [vmem:[%s3768_s5 + $0xa0] ss:$16 sps:$4 sm:$0xff]   ;;  %v2891_v15 = vld [vmem:[%s3768_s5 + $0x8] ss:$16 sps:$4 sm:$0xff]   ;;  %v2896_v17 = vld [vmem:[%s3768_s5 + $0x2c] ss:$16 sps:$4 sm:$0xff]  }
  0x18   :  { %2142 = vmatprep.subr.bf16.mxu0 %v2251_v16  ;;  %v2910_v20 = vld [vmem:[%s3768_s5 + $0x28] ss:$16 sps:$4 sm:$0xff]   ;;  %v2916_v21 = vld [vmem:[%s3768_s5 + $0x4c] ss:$16 sps:$4 sm:$0xff]   ;;  %v285_v22 = vld [vmem:[%s3769_s3 + $0x40] sm:$0xff] }
  0x19   :  { %576 = vmatpush1.bf16.msra.mxu1 %v2285_v24  ;;  %v2340_v24 = vld [vmem:[%s3768_s5 + $0xe0] ss:$16 sps:$4 sm:$0xff]   ;;  %v2965_v32 = vld [vmem:[%s3768_s5 + $0x88] ss:$16 sps:$4 sm:$0xff]   ;;  %v2984_v36 = vld [vmem:[%s3768_s5 + $0xcc] ss:$16 sps:$4 sm:$0xff]  }
  0x1a   :  { %577 = vmatprep.subr.bf16.mxu1 %v2289_v26  ;;  %v289_v37 = vld [vmem:[%s3769_s3 + $0x60] sm:$0xff]  ;;  %v3021_v45 = vld [vmem:[%s3768_s5 + $0xe8] ss:$16 sps:$4 sm:$0xff]  }
  0x1b   :  { %2143 = vmatpush3.bf16.msra.mxu0 %v2251_v16  ;;  %v368_v16 = vpack.c.bf16 %v284_v12, %v283_v11 }
  0x1c   :  { %2144 = vmatprep.subr.bf16.mxu0 %v2252_v19 }
  0x1d   :  { %578 = vmatpush1.bf16.msra.mxu1 %v2291_v30  ;;  %v287_v30 = vld [vmem:[%s3769_s3 + $0x50] sm:$0xff] }
  0x1e   :  { %579 = vmatprep.subr.bf16.mxu1 %v2295_v31  ;;  %v288_v31 = vld [vmem:[%s3769_s3 + $0x58] sm:$0xff] }
  0x1f   :  { %2145 = vmatpush3.bf16.msra.mxu0 %v2252_v19  ;;  %v2342_v19 = vld [vmem:[%s3768_s5 + $0xe4] ss:$16 sps:$4 sm:$0xff]  }
  0x20   :  { %678 = vmatprep.subr.bf16.mxu0 %v2258_v23  ;;  %v286_v23 = vld [vmem:[%s3769_s3 + $0x48] sm:$0xff] }
  0x21   :  { %580 = vmatpush1.bf16.msra.mxu1 %v2297_v35  ;;  %v369_v26 = vpack.c.bf16 %v286_v23, %v285_v22  ;;  %v2978_v35 = vld [vmem:[%s3768_s5 + $0xa8] ss:$16 sps:$4 sm:$0xff]  }
  0x22   :  { %2147 = vmatmul.mubr.bf16.vlgmr.msra.gmra.mrb[0].mxu0 %v58_v25  ;;  %951 = vmatprep.subr.bf16.mxu1 %v2303_v39  ;;  %v2932_v25 = vld [vmem:[%s3768_s5 + $0x48] ss:$16 sps:$4 sm:$0xff]  }
  0x23   :  { %2150 = vmatprep.mubr.bf16.mxu0 %v59_v27  ;;  %679 = vmatpush1.bf16.msra.mxu0 %v2256_v28  ;;  %v2938_v27 = vld [vmem:[%s3768_s5 + $0x6c] ss:$16 sps:$4 sm:$0xff]   ;;  %v2946_v28 = vld [vmem:[%s3768_s5 + $0x68] ss:$16 sps:$4 sm:$0xff]  }
  0x24   :  { %680 = vmatprep.subr.bf16.mxu0 %v2264_v29  ;;  %598 = vmatmul.mubr.bf16.vlgmr.msra.gmra.mrb[0].mxu1 %v2791_v43  ;;  %v2952_v29 = vld [vmem:[%s3768_s5 + $0x8c] ss:$16 sps:$4 sm:$0xff]   ;;  %v2997_v39 = vld [vmem:[%s3768_s5 + $0xc8] ss:$16 sps:$4 sm:$0xff]  }
  0x25   :  { %952 = vmatpush1.bf16.msra.mxu1 %v2301_v44  ;;  %607 = vmatprep.mubr.bf16.mxu1 %v2621_v1  ;;  %v3016_v44 = vld [vmem:[%s3768_s5 + $0xec] ss:$16 sps:$4 sm:$0xff]  }
  0x26   :  { %953 = vmatprep.subr.bf16.mxu1 %v2306_v46  ;;  %v1647_v46 = vld [vmem:[%s3770_s0] sm:$0xff] }
  0x27   :  { %681 = vmatpush1.bf16.msra.mxu0 %v2262_v33  ;;  %v370_v33 = vpack.c.bf16 %v288_v31, %v287_v30  ;;  %vm1663_vm0 = vcmp.gt.f32.partialorder %v1647_v46, 0.5 }
  0x28   :  { %682 = vmatprep.subr.bf16.mxu0 %v2270_v34  ;;  %v2971_v34 = vld [vmem:[%s3768_s5 + $0xac] ss:$16 sps:$4 sm:$0xff]   ;;  %v1679_v50 = vsel %vm1663_vm0, 1, %v2621_v1 }
  0x29   :  { %954 = vmatpush1.bf16.msra.mxu1 %v2304_v49  ;;  %v1650_v49 = vld [vmem:[%s3770_s0 + $0x18] sm:$0xff]  ;;  %1696 = vperm.xlu0 %2243, %v1679_v50   ;;  %v1177_v50 = vld [vmem:[%s3771_s7] sm:$0xf] }
  0x2a   :  { %2151 = vmatmul.mubr.bf16.gmra.mrb[4].mxu0 %v60_v38  ;;  %955 = vmatprep.subr.bf16.mxu1 %v2309_v53  ;;  %v290_v38 = vld [vmem:[%s3769_s3 + $0x68] sm:$0xff]  ;;  %vm1666_vm3 = vcmp.gt.f32.partialorder %v1650_v49, 0.5 }
  0x2b   :  { %2154 = vmatprep.mubr.bf16.mxu0 %v61_v40  ;;  %683 = vmatpush1.bf16.msra.mxu0 %v2268_v41  ;;  %v371_v40 = vpack.c.bf16 %v290_v38, %v289_v37  ;;  %v291_v41 = vld [vmem:[%s3769_s3 + $0x70] sm:$0xff]  ;;  %v1652_v53 = vld [vmem:[%s3770_s0 + $0x28] sm:$0xff] }
  0x2c   :  { %684 = vmatprep.subr.bf16.mxu0 %v2276_v42  ;;  %608 = vmatmul.mubr.bf16.gmra.mrb[4].mxu1 %v2828_v57  ;;  %v292_v42 = vld [vmem:[%s3769_s3 + $0x78] sm:$0xff]  ;;  %vm1668_vm5 = vcmp.gt.f32.partialorder %v1652_v53, 0.5 }
  0x2d   :  { %617 = vmatprep.mubr.bf16.mxu1 %v2621_v1  ;;  %956 = vmatpush1.bf16.msra.mxu1 %v2307_v58 }
  0x2e   :  { %957 = vmatprep.subr.bf16.mxu1 %v2312_v59  ;;  %v1684_v59 = vsel %vm1668_vm5, 1, %v2621_v1 }
  0x2f   :  { %685 = vmatpush1.bf16.msra.mxu0 %v2274_v47  ;;  %v1648_v47 = vld [vmem:[%s3770_s0 + $0x8] sm:$0xff] }
  0x30   :  { %686 = vmatprep.subr.bf16.mxu0 %v2282_v48  ;;  %v1649_v48 = vld [vmem:[%s3770_s0 + $0x10] sm:$0xff]  ;;  %vm1664_vm1 = vcmp.gt.f32.partialorder %v1648_v47, 0.5  ;;  %v1179_v47 = vlaneseq }
  0x31   :  { %958 = vmatpush1.bf16.msra.mxu1 %v2310_v0  ;;  %vm1665_vm2 = vcmp.gt.f32.partialorder %v1649_v48, 0.5  ;;  %v1658_v0 = vld [vmem:[%s3770_s0 + $0x58] sm:$0xff] }
  0x32   :  { %2155 = vmatmul.mubr.bf16.gmra.mrb[8].mxu0 %v62_v52  ;;  %959 = vmatprep.subr.bf16.mxu1 %v2315_v3  ;;  %v1681_v51 = vsel %vm1665_vm2, 1, %v2621_v1  ;;  %v1651_v52 = vld [vmem:[%s3770_s0 + $0x20] sm:$0xff]  ;;  %vm1674_vm10 = vcmp.gt.f32.partialorder %v1658_v0, 0.5  ;;  %v1180_v48 = vshrl.u32 %v1179_v47, 7 }
  0x33   :  { %2158 = vmatprep.mubr.bf16.mxu0 %v63_v54  ;;  %687 = vmatpush1.bf16.msra.mxu0 %v2280_v55  ;;  %v1680_v54 = vsel %vm1664_vm1, 1, %v2621_v1  ;;  %v1682_v55 = vsel %vm1666_vm3, 1, %v2621_v1  ;;  %vm1667_vm4 = vcmp.gt.f32.partialorder %v1651_v52, 0.5 }
  0x34   :  { %688 = vmatprep.subr.bf16.mxu0 %v2288_v56  ;;  %618 = vmatmul.mubr.bf16.gmra.mrb[8].mxu1 %v367_v6  ;;  %v1653_v56 = vld [vmem:[%s3770_s0 + $0x30] sm:$0xff]  ;;  %v1683_v58 = vsel %vm1667_vm4, 1, %v2621_v1  ;;  %v1189_v49 = vsub.s32 2, %v1180_v48  ;;  %v1193_v52 = vsub.s32 3, %v1180_v48 }
  0x35   :  { %627 = vmatprep.mubr.bf16.mxu1 %v2621_v1  ;;  %960 = vmatpush1.bf16.msra.mxu1 %v2313_v7  ;;  %vm1669_vm6 = vcmp.gt.f32.partialorder %v1653_v56, 0.5  ;;  %v1690_v7 = vsel %vm1674_vm10, 1, %v2621_v1 }
  0x36   :  { %961 = vmatprep.subr.bf16.mxu1 %v2324_v8  ;;  %1702 = vperm.xlu1 %2244, %v1681_v51   ;;  %v1685_v62 = vsel %vm1669_vm6, 1, %v2621_v1  ;;  %v1185_v51 = vsub.s32 1, %v1180_v48  ;;  %v3144_v56 = vrot.slane %v1177_v50, %v1193_v52 }
  0x37   :  { %689 = vmatpush1.bf16.msra.mxu0 %v2286_v60  ;;  %1699 = vperm.xlu0 %2243, %v1680_v54   ;;  %v1655_v60 = vld [vmem:[%s3770_s0 + $0x40] sm:$0xff]  ;;  %v3140_v54 = vrot.slane %v1177_v50, %v1189_v49 }
  0x38   :  { %690 = vmatprep.subr.bf16.mxu0 %v2294_v61  ;;  %v1656_v61 = vld [vmem:[%s3770_s0 + $0x48] sm:$0xff]  ;;  %vm1671_vm8 = vcmp.gt.f32.partialorder %v1655_v60, 0.5 }
  0x39   :  { %962 = vmatpush1.bf16.msra.mxu1 %v2322_v13  ;;  %vm1672_vm9 = vcmp.gt.f32.partialorder %v1656_v61, 0.5  ;;  %v1687_v3 = vsel %vm1671_vm8, 1, %v2621_v1 }
  0x3a   :  { %2159 = vmatmul.mubr.bf16.gmra.mrb[12].mxu0 %v64_v2  ;;  %963 = vmatprep.subr.bf16.mxu1 %v2333_v14  ;;  %v1657_v2 = vld [vmem:[%s3770_s0 + $0x50] sm:$0xff] }
  0x3b   :  { %691 = vmatpush1.bf16.msra.mxu0 %v2292_v4  ;;  %710 = vmatprep.mubr.bf16.mxu0 %v2621_v1  ;;  %v1688_v4 = vsel %vm1672_vm9, 1, %v2621_v1  ;;  %vm1673_vm11 = vcmp.gt.f32.partialorder %v1657_v2, 0.5 }
  0x3c   :  { %692 = vmatprep.subr.bf16.mxu0 %v2300_v5  ;;  %628 = vmatmul.mubr.bf16.gmra.mrb[12].mxu1 %v368_v16  ;;  %v1660_v5 = vld [vmem:[%s3770_s0 + $0x68] sm:$0xff]  ;;  %v1689_v8 = vsel %vm1673_vm11, 1, %v2621_v1 }
  0x3d   :  { %637 = vmatprep.mubr.bf16.mxu1 %v2621_v1  ;;  %964 = vmatpush1.bf16.msra.mxu1 %v2331_v18  ;;  %vm1676_vm12 = vcmp.gt.f32.partialorder %v1660_v5, 0.5 }
  0x3e   :  { %965 = vmatprep.subr.bf16.mxu1 %v2342_v19  ;;  %1705 = vperm.xlu1 %2244, %v1682_v55   ;;  %v1692_v11 = vsel %vm1676_vm12, 1, %v2621_v1  ;;  %v3142_v55 = vrot.slane %v1177_v50, %v1185_v51 }
  0x3f   :  { %693 = vmatpush1.bf16.msra.mxu0 %v2298_v9  ;;  %1708 = vperm.xlu0 %2243, %v1683_v58   ;;  %v1662_v9 = vld [vmem:[%s3770_s0 + $0x78] sm:$0xff] }
  0x40   :  { %1064 = vmatprep.subr.bf16.mxu0 %v2318_v10  ;;  %vm1678_vm14 = vcmp.gt.f32.partialorder %v1662_v9, 0.5 }
  0x41   :  { %966 = vmatpush1.bf16.msra.mxu1 %v2340_v24  ;;  %v1694_v13 = vsel %vm1678_vm14, 1, %v2621_v1 }
  0x42   :  { %711 = vmatmul.mubr.bf16.vlgmr.msra.gmra.mrb[16].mxu0 %v2791_v43  ;;  %2162 = vmatprep.subr.bf16.mxu1 %v2318_v10  ;;  %v372_v43 = vpack.c.bf16 %v292_v42, %v291_v41  ;;  %v1661_v10 = vld [vmem:[%s3770_s0 + $0x70] sm:$0xff] }
  0x43   :  { %720 = vmatprep.mubr.bf16.mxu0 %v2621_v1  ;;  %1065 = vmatpush1.bf16.msra.mxu0 %v2891_v15  ;;  %vm1677_vm15 = vcmp.gt.f32.partialorder %v1661_v10, 0.5 }
  0x44   :  { %1066 = vmatprep.subr.bf16.mxu0 %v2896_v17  ;;  %638 = vmatmul.mubr.bf16.gmra.mrb[16].mxu1 %v369_v26  ;;  %v1693_v14 = vsel %vm1677_vm15, 1, %v2621_v1 }
  0x45   :  { %647 = vmatprep.mubr.bf16.mxu1 %v2621_v1  ;;  %1711 = vperm.xlu1 %2244, %v1684_v59  }
  0x46   :  { %1714 = vperm.xlu0 %2243, %v1685_v62  }
  0x47   :  { %1067 = vmatpush1.bf16.msra.mxu0 %v2910_v20 }
  0x48   :  { %1068 = vmatprep.subr.bf16.mxu0 %v2916_v21 }
  0x4a   :  { %721 = vmatmul.mubr.bf16.gmra.mrb[20].mxu0 %v2828_v57  ;;  %v1654_v57 = vld [vmem:[%s3770_s0 + $0x38] sm:$0xff]  ;;  %1720 = vperm.xlu0 %2243, %v1687_v3  }
  0x4b   :  { %730 = vmatprep.mubr.bf16.mxu0 %v2621_v1  ;;  %1069 = vmatpush1.bf16.msra.mxu0 %v2932_v25  ;;  %vm1670_vm7 = vcmp.gt.f32.partialorder %v1654_v57, 0.5 }
  0x4c   :  { %1070 = vmatprep.subr.bf16.mxu0 %v2938_v27  ;;  %648 = vmatmul.mubr.bf16.gmra.mrb[20].mxu1 %v370_v33  ;;  %v1686_v63 = vsel %vm1670_vm7, 1, %v2621_v1 }
  0x4d   :  { %657 = vmatprep.mubr.bf16.mxu1 %v2621_v1  ;;  %1717 = vperm.xlu1 %2244, %v1686_v63  }
  0x4e   :  { %1726 = vperm.xlu0 %2243, %v1689_v8  }
  0x4f   :  { %1071 = vmatpush1.bf16.msra.mxu0 %v2946_v28 }
  0x50   :  { %1072 = vmatprep.subr.bf16.mxu0 %v2952_v29 }
  0x51   :  { %1723 = vperm.xlu1 %2244, %v1688_v4  }
  0x52   :  { %731 = vmatmul.mubr.bf16.gmra.mrb[24].mxu0 %v367_v6  ;;  %v1659_v6 = vld [vmem:[%s3770_s0 + $0x60] sm:$0xff] }
  0x53   :  { %740 = vmatprep.mubr.bf16.mxu0 %v2621_v1  ;;  %1073 = vmatpush1.bf16.msra.mxu0 %v2965_v32  ;;  %vm1675_vm13 = vcmp.gt.f32.partialorder %v1659_v6, 0.5 }
  0x54   :  { %1074 = vmatprep.subr.bf16.mxu0 %v2971_v34  ;;  %658 = vmatmul.mubr.bf16.gmra.mrb[24].mxu1 %v371_v40  ;;  %v1691_v12 = vsel %vm1675_vm13, 1, %v2621_v1 }
  0x55   :  { %667 = vmatprep.mubr.bf16.mxu1 %v2621_v1  ;;  %1729 = vperm.xlu1 %2244, %v1690_v7  }
  0x56   :  { %1732 = vperm.xlu0 %2243, %v1691_v12  }
  0x57   :  { %1075 = vmatpush1.bf16.msra.mxu0 %v2978_v35 }
  0x58   :  { %1076 = vmatprep.subr.bf16.mxu0 %v2984_v36 }
  0x59   :  { %1735 = vperm.xlu1 %2244, %v1692_v11  }
  0x5a   :  { %741 = vmatmul.mubr.bf16.gmra.mrb[28].mxu0 %v368_v16  ;;  %1738 = vperm.xlu0 %2243, %v1693_v14  }
  0x5b   :  { %750 = vmatprep.mubr.bf16.mxu0 %v2621_v1  ;;  %1077 = vmatpush1.bf16.msra.mxu0 %v2997_v39 }
  0x5c   :  { %668 = vmatmul.mubr.bf16.gmra.mrb[28].mxu1 %v372_v43  ;;  %1078 = vmatprep.subr.bf16.mxu0 %v3016_v44 }
  0x5d   :  { %983 = vmatprep.mubr.bf16.mxu1 %v2621_v1  ;;  %1741 = vperm.xlu1 %2244, %v1694_v13  }
  0x5f   :  { %1079 = vmatpush1.bf16.msra.mxu0 %v3021_v45 }
  0x62   :  { %751 = vmatmul.mubr.bf16.gmra.mrb[32].mxu0 %v369_v26 }
  0x63   :  { %760 = vmatprep.mubr.bf16.mxu0 %v2621_v1 }
  0x6a   :  { %761 = vmatmul.mubr.bf16.gmra.mrb[36].mxu0 %v370_v33 }
  0x6b   :  { %770 = vmatprep.mubr.bf16.mxu0 %v2621_v1 }
  0x72   :  { %771 = vmatmul.mubr.bf16.gmra.mrb[40].mxu0 %v371_v40 }
  0x73   :  { %780 = vmatprep.mubr.bf16.mxu0 %v2621_v1 }
  0x7a   :  { %781 = vmatmul.mubr.bf16.gmra.mrb[44].mxu0 %v372_v43 }
  0x7b   :  { %1096 = vmatprep.mubr.bf16.mxu0 %v2621_v1 }
  0xf5   :  { %v2148_v16 = vpop.f32.mrb[0].mxu0 }
  0xf6   :  { %v179_v18 = vpop.f32.mrb[1].mxu0 }
  0xf7   :  { %v2149_v19 = vpop.f32.mrb[2].mxu0 }
  0xf8   :  { %v326_v22 = vpack.c.bf16 %v2149_v19, %v2148_v16  ;;  %v182_v23 = vpop.f32.mrb[3].mxu0 }
  0xf9   :  { %v325_v24 = vpack.c.bf16 %v182_v23, %v179_v18 }
  0xfb   :  { %984 = vmatmul.mubr.bf16.vlgmr.msra.gmra.mrb[0].mxu1 %v325_v24  ;;  %1097 = vmatmul.mubr.bf16.vlgmr.msra.gmra.mrb[16].mxu0 %v325_v24 }
  0xfc   :  { %2170 = vmatpush1.bf16.msra.mxu1 %v2891_v15  ;;  %993 = vmatprep.mubr.bf16.mxu1 %v2621_v1 }
  0xfd   :  { %v2152_v26 = vpop.f32.mrb[4].mxu0  ;;  %2163 = vmatprep.subr.bf16.mxu1 %v2896_v17  ;;  %1106 = vmatprep.mubr.bf16.mxu0 %v2621_v1 }
  0xfe   :  { %v195_v30 = vpop.f32.mrb[5].mxu0 }
  0xff   :  { %v2153_v31 = vpop.f32.mrb[6].mxu0 }
 0x100   :  { %2171 = vmatpush1.bf16.msra.mxu1 %v2910_v20  ;;  %v328_v33 = vpack.c.bf16 %v2153_v31, %v2152_v26  ;;  %v198_v37 = vpop.f32.mrb[7].mxu0 }
 0x101   :  { %v327_v38 = vpack.c.bf16 %v198_v37, %v195_v30  ;;  %2164 = vmatprep.subr.bf16.mxu1 %v2916_v21 }
 0x103   :  { %994 = vmatmul.mubr.bf16.gmra.mrb[4].mxu1 %v326_v22  ;;  %1107 = vmatmul.mubr.bf16.gmra.mrb[20].mxu0 %v326_v22 }
 0x104   :  { %1003 = vmatprep.mubr.bf16.mxu1 %v2621_v1  ;;  %1116 = vmatprep.mubr.bf16.mxu0 %v2621_v1 }
 0x105   :  { %2172 = vmatpush1.bf16.msra.mxu1 %v2932_v25  ;;  %v2156_v15 = vpop.f32.mrb[8].mxu0 }
 0x106   :  { %2165 = vmatprep.subr.bf16.mxu1 %v2938_v27  ;;  %v211_v17 = vpop.f32.mrb[9].mxu0 }
 0x107   :  { %v2157_v40 = vpop.f32.mrb[10].mxu0 }
 0x108   :  { %v330_v41 = vpack.c.bf16 %v2157_v40, %v2156_v15  ;;  %v214_v20 = vpop.f32.mrb[11].mxu0 }
 0x109   :  { %2173 = vmatpush1.bf16.msra.mxu1 %v2946_v28  ;;  %v329_v42 = vpack.c.bf16 %v214_v20, %v211_v17 }
 0x10a   :  { %2166 = vmatprep.subr.bf16.mxu1 %v2952_v29 }
 0x10b   :  { %1004 = vmatmul.mubr.bf16.gmra.mrb[8].mxu1 %v327_v38  ;;  %1117 = vmatmul.mubr.bf16.gmra.mrb[24].mxu0 %v327_v38 }
 0x10c   :  { %1013 = vmatprep.mubr.bf16.mxu1 %v2621_v1  ;;  %1126 = vmatprep.mubr.bf16.mxu0 %v2621_v1 }
 0x10d   :  { %2174 = vmatpush1.bf16.msra.mxu1 %v2965_v32  ;;  %v2160_v21 = vpop.f32.mrb[12].mxu0 }
 0x10e   :  { %2167 = vmatprep.subr.bf16.mxu1 %v2971_v34  ;;  %v227_v25 = vpop.f32.mrb[13].mxu0 }
 0x10f   :  { %v2161_v27 = vpop.f32.mrb[14].mxu0 }
 0x110   :  { %v332_v43 = vpack.c.bf16 %v2161_v27, %v2160_v21  ;;  %v230_v46 = vpop.f32.mrb[15].mxu0 }
 0x111   :  { %2175 = vmatpush1.bf16.msra.mxu1 %v2978_v35  ;;  %v331_v28 = vpack.c.bf16 %v230_v46, %v227_v25 }
 0x112   :  { %2168 = vmatprep.subr.bf16.mxu1 %v2984_v36 }
 0x113   :  { %1014 = vmatmul.mubr.bf16.gmra.mrb[12].mxu1 %v328_v33  ;;  %1127 = vmatmul.mubr.bf16.gmra.mrb[28].mxu0 %v328_v33 }
 0x114   :  { %1023 = vmatprep.mubr.bf16.mxu1 %v2621_v1  ;;  %1136 = vmatprep.mubr.bf16.mxu0 %v2621_v1 }
 0x115   :  { %2176 = vmatpush1.bf16.msra.mxu1 %v2997_v39 }
 0x116   :  { %2169 = vmatprep.subr.bf16.mxu1 %v3016_v44 }
 0x119   :  { %2177 = vmatpush1.bf16.msra.mxu1 %v3021_v45 }
 0x11b   :  { %1024 = vmatmul.mubr.bf16.gmra.mrb[16].mxu1 %v329_v42  ;;  %1137 = vmatmul.mubr.bf16.gmra.mrb[32].mxu0 %v329_v42 }
 0x11c   :  { %1033 = vmatprep.mubr.bf16.mxu1 %v2621_v1  ;;  %1146 = vmatprep.mubr.bf16.mxu0 %v2621_v1 }
 0x123   :  { %1034 = vmatmul.mubr.bf16.gmra.mrb[20].mxu1 %v330_v41  ;;  %1147 = vmatmul.mubr.bf16.gmra.mrb[36].mxu0 %v330_v41 }
 0x124   :  { %1043 = vmatprep.mubr.bf16.mxu1 %v2621_v1 }
 0x12b   :  { %1044 = vmatmul.mubr.bf16.gmra.mrb[24].mxu1 %v331_v28 }
 0x12c   :  { %1053 = vmatprep.mubr.bf16.mxu1 %v2621_v1 }
 0x133   :  { %1054 = vmatmul.mubr.bf16.gmra.mrb[28].mxu1 %v332_v43 }
 0x134   :  { %1156 = vmatprep.mubr.bf16.mxu1 %v2621_v1 }
 0x13b   :  { %1157 = vmatmul.mubr.bf16.vlgmr.msra.gmra.mrb[32].mxu1 %v331_v28 }
 0x13c   :  { %1166 = vmatprep.mubr.bf16.mxu1 %v2621_v1  ;;  %v1181_v1 = vsub.s32 0, %v1180_v48 }
 0x13e   :  { %v3138_v53 = vrot.slane %v1177_v50, %v1181_v1 }
 0x143   :  { %1167 = vmatmul.mubr.bf16.gmra.mrb[36].mxu1 %v332_v43 }
 0x145   :  { %v3119_v29 = vpop.f32.mrb[40].mxu0 }
 0x146   :  { %v3121_v32 = vpop.f32.mrb[41].mxu0 }
 0x147   :  { %v3123_v34 = vpop.f32.mrb[42].mxu0 }
 0x148   :  { %v3125_v35 = vpop.f32.mrb[43].mxu0 }
 0x14d   :  { %v3127_v36 = vpop.f32.mrb[44].mxu0 }
 0x14e   :  { %v3129_v39 = vpop.f32.mrb[45].mxu0 }
 0x14f   :  { %v3131_v44 = vpop.f32.mrb[46].mxu0 }
 0x150   :  { %v3133_v45 = vpop.f32.mrb[47].mxu0 }
 0x1ce   :  { %v985_v57 = vpop.f32.mrb[0].mxu1  ;;  %v1098_v58 = vpop.f32.mrb[16].mxu0 }
 0x1cf   :  { %v1199_v59 = vadd.f32 %v3138_v53, %v985_v57  ;;  %v1201_v60 = vadd.f32 %v3140_v54, %v1098_v58  ;;  %v987_v61 = vpop.f32.mrb[1].mxu1  ;;  %v1100_v62 = vpop.f32.mrb[17].mxu0 }
 0x1d0   :  { %v1200_v63 = vadd.f32 %v3142_v55, %v987_v61  ;;  %v1202_v0 = vadd.f32 %v3144_v56, %v1100_v62  ;;  %v989_v2 = vpop.f32.mrb[2].mxu1  ;;  %v1102_v3 = vpop.f32.mrb[18].mxu0 }
 0x1d1   :  { %v1987_v4 = vmul.f32 -1.442695, %v1199_v59  ;;  %2349 = vtanh.f32 %v1201_v60  ;;  %v1203_v5 = vadd.f32 %v3138_v53, %v989_v2  ;;  %v991_v6 = vpop.f32.mrb[3].mxu1  ;;  %v1104_v7 = vpop.f32.mrb[19].mxu0  ;;  %v1205_v13 = vadd.f32 %v3140_v54, %v1102_v3 }
 0x1d2   :  { %v2003_v8 = vmul.f32 -1.442695, %v1200_v63  ;;  %v2019_v9 = vmul.f32 -1.442695, %v1202_v0  ;;  %v1204_v10 = vadd.f32 %v3142_v55, %v991_v6  ;;  %v1206_v11 = vadd.f32 %v3144_v56, %v1104_v7 }
 0x1d3   :  { %2351 = vpow2.f32 %v1987_v4  ;;  %v1988_v12 = vmul.f32 -1.442695, %v1203_v5 }
 0x1d4   :  { %2353 = vpow2.f32 %v2003_v8  ;;  %v2004_v14 = vmul.f32 -1.442695, %v1204_v10  ;;  %v2020_v16 = vmul.f32 -1.442695, %v1206_v11  ;;  %v3169_v11 = vpop.permute.xlu0 %1696 }
 0x1d5   :  { %2355 = vpow2.f32 %v2019_v9  ;;  %vm1743_vm0 = vcmp.eq.s32.totalorder %v3169_v11, 1 }
 0x1d6   :  { %2357 = vpow2.f32 %v1988_v12  ;;  %v995_v18 = vpop.f32.mrb[4].mxu1  ;;  %v1108_v19 = vpop.f32.mrb[20].mxu0 }
 0x1d7   :  { %2359 = vtanh.f32 %v1205_v13  ;;  %v1207_v22 = vadd.f32 %v3138_v53, %v995_v18  ;;  %v1209_v23 = vadd.f32 %v3140_v54, %v1108_v19  ;;  %v997_v24 = vpop.f32.mrb[5].mxu1  ;;  %v1110_v26 = vpop.f32.mrb[21].mxu0 }
 0x1d8   :  { %2361 = vpow2.f32 %v2004_v14  ;;  %v1208_v30 = vadd.f32 %v3142_v55, %v997_v24  ;;  %v1210_v31 = vadd.f32 %v3144_v56, %v1110_v26  ;;  %v999_v33 = vpop.f32.mrb[6].mxu1  ;;  %v1112_v37 = vpop.f32.mrb[22].mxu0 }
 0x1d9   :  { %2363 = vpow2.f32 %v2020_v16  ;;  %v1989_v38 = vmul.f32 -1.442695, %v1207_v22  ;;  %v1211_v15 = vadd.f32 %v3138_v53, %v999_v33  ;;  %v1001_v17 = vpop.f32.mrb[7].mxu1  ;;  %v1114_v40 = vpop.f32.mrb[23].mxu0  ;;  %v1213_v25 = vadd.f32 %v3140_v54, %v1112_v37 }
 0x1da   :  { %2365 = vtanh.f32 %v1209_v23  ;;  %v2005_v41 = vmul.f32 -1.442695, %v1208_v30  ;;  %v2021_v20 = vmul.f32 -1.442695, %v1210_v31  ;;  %v1212_v27 = vadd.f32 %v3142_v55, %v1001_v17 }
 0x1db   :  { %v3159_v42 = vpop.eup %2349  ;;  %2367 = vpow2.f32 %v1989_v38  ;;  %v1990_v21 = vmul.f32 -1.442695, %v1211_v15  ;;  %v1214_v50 = vadd.f32 %v3144_v56, %v1114_v40 }
 0x1dc   :  { %2369 = vpow2.f32 %v2005_v41  ;;  %v2006_v59 = vmul.f32 -1.442695, %v1212_v27 }
 0x1dd   :  { %v2352_v43 = vpop.eup %2351  ;;  %2371 = vpow2.f32 %v2021_v20  ;;  %v2022_v6 = vmul.f32 -1.442695, %v1214_v50 }
 0x1de   :  { %v2354_v46 = vpop.eup %2353  ;;  %v1311_v28 = vadd.f32 1.0, %v2352_v43  ;;  %2373 = vpow2.f32 %v1990_v21  ;;  %v1005_v47 = vpop.f32.mrb[8].mxu1 }
 0x1df   :  { %v1118_v48 = vpop.f32.mrb[24].mxu0  ;;  %v2356_v1 = vpop.eup %2355  ;;  %v1407_v49 = vadd.f32 1.0, %v2354_v46  ;;  %2375 = vtanh.f32 %v1213_v25  ;;  %v1215_v9 = vadd.f32 %v3138_v53, %v1005_v47  ;;  %v293_v25 = vld [vmem:[%s3772_s4] sm:$0xff] }
 0x1e0   :  { %v1007_v51 = vpop.f32.mrb[9].mxu1  ;;  %v1120_v52 = vpop.f32.mrb[25].mxu0  ;;  %2377 = vrcp.f32 %v1311_v28  ;;  %v1519_v58 = vadd.f32 1.0, %v2356_v1  ;;  %v1217_v41 = vadd.f32 %v3140_v54, %v1118_v48 }
 0x1e1   :  { %v2358_v57 = vpop.eup %2357  ;;  %v1009_v60 = vpop.f32.mrb[10].mxu1  ;;  %2379 = vrcp.f32 %v1407_v49  ;;  %v1216_v14 = vadd.f32 %v3142_v55, %v1007_v51  ;;  %v1218_v23 = vadd.f32 %v3144_v56, %v1120_v52  ;;  %v1991_v33 = vmul.f32 -1.442695, %v1215_v9 }
 0x1e2   :  { %v1122_v61 = vpop.f32.mrb[26].mxu0  ;;  %v3164_v62 = vpop.eup %2359  ;;  %v1312_v63 = vadd.f32 1.0, %v2358_v57  ;;  %2381 = vrcp.f32 %v1519_v58  ;;  %v1219_v37 = vadd.f32 %v3138_v53, %v1009_v60 }
 0x1e3   :  { %v1011_v0 = vpop.f32.mrb[11].mxu1  ;;  %v1124_v2 = vpop.f32.mrb[27].mxu0  ;;  %v2007_v43 = vmul.f32 -1.442695, %v1216_v14  ;;  %v2023_v28 = vmul.f32 -1.442695, %v1218_v23  ;;  %v1221_v52 = vadd.f32 %v3140_v54, %v1122_v61 }
 0x1e4   :  { %v2362_v3 = vpop.eup %2361  ;;  %2383 = vrcp.f32 %v1312_v63  ;;  %v1220_v47 = vadd.f32 %v3142_v55, %v1011_v0  ;;  %v1992_v48 = vmul.f32 -1.442695, %v1219_v37  ;;  %v1222_v57 = vadd.f32 %v3144_v56, %v1124_v2  ;;  %v3199_v58 = vpop.permute.xlu0 %1699  ;;  %v295_v23 = vld [vmem:[%s3772_s4 + $0x10] sm:$0xff] }
 0x1e5   :  { %v2364_v4 = vpop.eup %2363  ;;  %v1408_v5 = vadd.f32 1.0, %v2362_v3  ;;  %2385 = vpow2.f32 %v2006_v59  ;;  %vm1744_vm1 = vcmp.eq.s32.totalorder %v3199_v58, 1 }
 0x1e6   :  { %v3166_v7 = vpop.eup %2365  ;;  %v1520_v8 = vadd.f32 1.0, %v2364_v4  ;;  %v1015_v16 = vpop.f32.mrb[12].mxu1  ;;  %v2008_v2 = vmul.f32 -1.442695, %v1220_v47 }
 0x1e7   :  { %v2368_v10 = vpop.eup %2367  ;;  %2387 = vrcp.f32 %v1408_v5  ;;  %v3172_v18 = vpop.f32.mrb[28].mxu0  ;;  %v1223_v60 = vadd.f32 %v3138_v53, %v1015_v16  ;;  %v2024_v16 = vmul.f32 -1.442695, %v1222_v57 }
 0x1e8   :  { %v2370_v12 = vpop.eup %2369  ;;  %2389 = vrcp.f32 %v1520_v8  ;;  %v1313_v13 = vadd.f32 1.0, %v2368_v10  ;;  %v1017_v24 = vpop.f32.mrb[13].mxu1 }
 0x1e9   :  { %v2372_v19 = vpop.eup %2371  ;;  %v1409_v22 = vadd.f32 1.0, %v2370_v12  ;;  %2391 = vpow2.f32 %v2022_v6  ;;  %v3175_v26 = vpop.f32.mrb[29].mxu0  ;;  %v1224_v9 = vadd.f32 %v3142_v55, %v1017_v24 }
 0x1ea   :  { %v2374_v30 = vpop.eup %2373  ;;  %2393 = vrcp.f32 %v1313_v13  ;;  %v1521_v31 = vadd.f32 1.0, %v2372_v19  ;;  %v3178_v38 = vpop.f32.mrb[14].mxu1  ;;  %v294_v13 = vld [vmem:[%s3772_s4 + $0x8] sm:$0xff] }
 0x1eb   :  { %v3180_v15 = vpop.f32.mrb[30].mxu0  ;;  %v3182_v17 = vpop.eup %2375  ;;  %2395 = vrcp.f32 %v1409_v22  ;;  %v1314_v40 = vadd.f32 1.0, %v2374_v30 }
 0x1ec   :  { %v3185_v20 = vpop.f32.mrb[15].mxu1  ;;  %v3187_v21 = vpop.f32.mrb[31].mxu0  ;;  %2397 = vrcp.f32 %v1521_v31  ;;  %v1993_v31 = vmul.f32 -1.442695, %v1223_v60 }
 0x1ed   :  { %v2378_v27 = vpop.eup %2377  ;;  %2399 = vrcp.f32 %v1314_v40  ;;  %v1225_v40 = vadd.f32 %v3140_v54, %v3172_v18 }
 0x1ee   :  { %v2380_v46 = vpop.eup %2379  ;;  %2401 = vpow2.f32 %v1991_v33  ;;  %v1583_v50 = vmul.f32 %v2378_v27, %v3159_v42  ;;  %v3204_v0 = vpop.f32.mrb[16].mxu1  ;;  %v1226_v33 = vadd.f32 %v3144_v56, %v3175_v26  ;;  %v2009_v27 = vmul.f32 -1.442695, %v1224_v9 }
 0x1ef   :  { %v3193_v1 = vpop.eup %2381  ;;  %v1567_v49 = vmul.f32 %v2380_v46, %v293_v25  ;;  %2403 = vtanh.f32 %v1217_v41  ;;  %v3206_v3 = vpop.f32.mrb[32].mxu0  ;;  %v1227_v26 = vadd.f32 %v3138_v53, %v3178_v38 }
 0x1f0   :  { %v2384_v51 = vpop.eup %2383  ;;  %2405 = vpow2.f32 %v2007_v43  ;;  %v3209_v5 = vpop.f32.mrb[17].mxu1 }
 0x1f1   :  { %v2386_v59 = vpop.eup %2385  ;;  %v3202_v63 = vadd.f32 %v1583_v50, %v1567_v49  ;;  %v1584_v42 = vmul.f32 %v2384_v51, %v3164_v62  ;;  %2407 = vpow2.f32 %v2023_v28  ;;  %v3211_v6 = vpop.f32.mrb[33].mxu0  ;;  %v2025_v49 = vmul.f32 -1.442695, %v1226_v33 }
 0x1f2   :  { %v2388_v4 = vpop.eup %2387  ;;  %v1410_v61 = vadd.f32 1.0, %v2386_v59  ;;  %2409 = vpow2.f32 %v1992_v48  ;;  %v3219_v12 = vpop.f32.mrb[18].mxu1 }
 0x1f3   :  { %v3213_v8 = vpop.eup %2389  ;;  %v1775_v10 = vsel %vm1743_vm0, %v293_v25, %v3202_v63  ;;  %v3221_v62 = vpop.f32.mrb[34].mxu0  ;;  %v1568_v41 = vmul.f32 %v2388_v4, %v294_v13 }
 0x1f4   :  { %v2392_v14 = vpop.eup %2391  ;;  %2411 = vrcp.f32 %v1410_v61  ;;  %1807 = vst [vmem:[%s3773_s9] sm:$0xff] %v1775_v10  ;;  %v3229_v19 = vpop.f32.mrb[19].mxu1 }
 0x1f5   :  { %v3231_v22 = vpop.f32.mrb[35].mxu0  ;;  %v2394_v24 = vpop.eup %2393  ;;  %v1522_v30 = vadd.f32 1.0, %v2392_v14  ;;  %2413 = vtanh.f32 %v1221_v52  ;;  %v3248_v48 = vadd.f32 %v1584_v42, %v1568_v41 }
 0x1f6   :  { %v2396_v37 = vpop.eup %2395  ;;  %2415 = vpow2.f32 %v2008_v2  ;;  %v1585_v46 = vmul.f32 %v2394_v24, %v3166_v7  ;;  %v3244_v28 = vpop.permute.xlu1 %1702 }
 0x1f7   :  { %v3241_v25 = vpop.eup %2397  ;;  %2417 = vrcp.f32 %v1522_v30  ;;  %v1569_v43 = vmul.f32 %v2396_v37, %v295_v23  ;;  %vm1745_vm2 = vcmp.eq.s32.totalorder %v3244_v28, 1  ;;  %v1035_v51 = vpop.f32.mrb[20].mxu1  ;;  %v1776_v38 = vsel %vm1744_vm1, %v294_v13, %v3248_v48 }
 0x1f8   :  { %v2400_v47 = vpop.eup %2399  ;;  %2419 = vpow2.f32 %v2024_v16  ;;  %v3253_v52 = vpop.f32.mrb[36].mxu0  ;;  %v3262_v60 = vadd.f32 %v3138_v53, %v1035_v51  ;;  %1808 = vst [vmem:[%s3773_s9 + $0x8] sm:$0xff] %v1776_v38  ;;  %v1228_v16 = vadd.f32 %v3142_v55, %v3185_v20  ;;  %v1994_v37 = vmul.f32 -1.442695, %v1227_v26 }
 0x1f9   :  { %v2402_v18 = vpop.eup %2401  ;;  %2421 = vpow2.f32 %v1993_v31  ;;  %v3251_v50 = vadd.f32 %v1585_v46, %v1569_v43  ;;  %v1586_v7 = vmul.f32 %v2400_v47, %v3182_v17  ;;  %v1037_v42 = vpop.f32.mrb[21].mxu1  ;;  %v1229_v43 = vadd.f32 %v3140_v54, %v3180_v15 }
 0x1fa   :  { %v3256_v57 = vpop.eup %2403  ;;  %v1315_v59 = vadd.f32 1.0, %v2402_v18  ;;  %2423 = vtanh.f32 %v1225_v40  ;;  %v3264_v4 = vpop.f32.mrb[37].mxu0  ;;  %v3273_v2 = vadd.f32 %v3142_v55, %v1037_v42  ;;  %v1230_v46 = vadd.f32 %v3144_v56, %v3187_v21 }
 0x1fb   :  { %v2406_v61 = vpop.eup %2405  ;;  %2425 = vpow2.f32 %v2009_v27  ;;  %v1777_v17 = vsel %vm1745_vm2, %v295_v23, %v3251_v50  ;;  %v1039_v9 = vpop.f32.mrb[22].mxu1  ;;  %v296_v23 = vld [vmem:[%s3772_s4 + $0x18] sm:$0xff]  ;;  %v2010_v51 = vmul.f32 -1.442695, %v1228_v16 }
 0x1fc   :  { %v3275_v10 = vpop.f32.mrb[38].mxu0  ;;  %v2408_v13 = vpop.eup %2407  ;;  %2427 = vrcp.f32 %v1315_v59  ;;  %v1411_v14 = vadd.f32 1.0, %v2406_v61  ;;  %1809 = vst [vmem:[%s3773_s9 + $0x10] sm:$0xff] %v1777_v17  ;;  %v3288_v40 = vadd.f32 %v3138_v53, %v1039_v9  ;;  %v2026_v61 = vmul.f32 -1.442695, %v1230_v46 }
 0x1fd   :  { %v1041_v24 = vpop.f32.mrb[23].mxu1  ;;  %v3285_v30 = vpop.f32.mrb[39].mxu0  ;;  %v1523_v33 = vadd.f32 1.0, %v2408_v13  ;;  %2429 = vpow2.f32 %v2025_v49  ;;  %v1231_v17 = vadd.f32 %v3138_v53, %v3204_v0 }
 0x1fe   :  { %v2410_v31 = vpop.eup %2409  ;;  %v3290_v41 = vpop.permute.xlu1 %1705  ;;  %2431 = vrcp.f32 %v1411_v14  ;;  %v3299_v26 = vadd.f32 %v3142_v55, %v1041_v24 }
 0x1ff   :  { %v2412_v20 = vpop.eup %2411  ;;  %v1316_v27 = vadd.f32 1.0, %v2410_v31  ;;  %2433 = vrcp.f32 %v1523_v33  ;;  %vm1746_vm3 = vcmp.eq.s32.totalorder %v3290_v41, 1  ;;  %v1045_v42 = vpop.f32.mrb[24].mxu1 }
 0x200   :  { %v3296_v47 = vpop.eup %2413  ;;  %v1570_v18 = vmul.f32 %v2412_v20, %v296_v23  ;;  %v3309_v9 = vadd.f32 %v3138_v53, %v1045_v42  ;;  %v1047_v13 = vpop.f32.mrb[25].mxu1 }
 0x201   :  { %v2416_v49 = vpop.eup %2415  ;;  %2435 = vrcp.f32 %v1316_v27  ;;  %v1049_v31 = vpop.f32.mrb[26].mxu1 }
 0x202   :  { %v3302_v59 = vpop.eup %2417  ;;  %v1412_v38 = vadd.f32 1.0, %v2416_v49  ;;  %2437 = vpow2.f32 %v1994_v37  ;;  %v3304_v15 = vadd.f32 %v1586_v7, %v1570_v18  ;;  %v3315_v7 = vadd.f32 %v3142_v55, %v1047_v13  ;;  %v1051_v20 = vpop.f32.mrb[27].mxu1 }
 0x203   :  { %v2420_v21 = vpop.eup %2419  ;;  %2439 = vtanh.f32 %v1229_v43  ;;  %v3323_v0 = vadd.f32 %v3138_v53, %v1049_v31  ;;  %v3328_v43 = vadd.f32 %v3142_v55, %v1051_v20  ;;  %v1234_v49 = vadd.f32 %v3144_v56, %v3211_v6  ;;  %v3337_v42 = vpop.permute.xlu0 %1708 }
 0x204   :  { %v2422_v14 = vpop.eup %2421  ;;  %2441 = vrcp.f32 %v1412_v38  ;;  %v1524_v16 = vadd.f32 1.0, %v2420_v21  ;;  %v1778_v24 = vsel %vm1746_vm3, %v296_v23, %v3304_v15  ;;  %v1232_v23 = vadd.f32 %v3142_v55, %v3209_v5  ;;  %v297_v38 = vld [vmem:[%s3772_s4 + $0x20] sm:$0xff] }
 0x205   :  { %v3317_v33 = vpop.eup %2423  ;;  %v1317_v37 = vadd.f32 1.0, %v2422_v14  ;;  %2443 = vpow2.f32 %v2010_v51  ;;  %1810 = vst [vmem:[%s3773_s9 + $0x18] sm:$0xff] %v1778_v24  ;;  %v1235_v51 = vadd.f32 %v3138_v53, %v3219_v12  ;;  %v1995_v5 = vmul.f32 -1.442695, %v1231_v17 }
 0x206   :  { %v2426_v27 = vpop.eup %2425  ;;  %2445 = vrcp.f32 %v1524_v16  ;;  %v1233_v6 = vadd.f32 %v3140_v54, %v3206_v3  ;;  %v2011_v12 = vmul.f32 -1.442695, %v1232_v23  ;;  %vm1747_vm4 = vcmp.eq.s32.totalorder %v3337_v42, 1 }
 0x207   :  { %v2428_v46 = vpop.eup %2427  ;;  %2447 = vrcp.f32 %v1317_v37  ;;  %v1413_v18 = vadd.f32 1.0, %v2426_v27  ;;  %v1055_v37 = vpop.f32.mrb[28].mxu1  ;;  %v1996_v17 = vmul.f32 -1.442695, %v1235_v51  ;;  %v2015_v28 = vmul.f32 -1.442695, %v3315_v7 }
 0x208   :  { %v2430_v21 = vpop.eup %2429  ;;  %2449 = vpow2.f32 %v2026_v61  ;;  %v1587_v13 = vmul.f32 %v2428_v46, %v3256_v57  ;;  %v2027_v61 = vmul.f32 -1.442695, %v1234_v49  ;;  %v3347_v57 = vadd.f32 %v3138_v53, %v1055_v37  ;;  %v1057_v27 = vpop.f32.mrb[29].mxu1 }
 0x209   :  { %v2432_v14 = vpop.eup %2431  ;;  %2451 = vrcp.f32 %v1413_v18  ;;  %v1525_v16 = vadd.f32 1.0, %v2430_v21  ;;  %v3356_v18 = vadd.f32 %v3142_v55, %v1057_v27  ;;  %v1059_v21 = vpop.f32.mrb[30].mxu1  ;;  %v299_v27 = vld [vmem:[%s3772_s4 + $0x30] sm:$0xff]  ;;  %v2000_v7 = vmul.f32 -1.442695, %v3323_v0 }
 0x20a   :  { %v3342_v24 = vpop.eup %2433  ;;  %2453 = vtanh.f32 %v3202_v63  ;;  %v1571_v31 = vmul.f32 %v2432_v14, %v297_v38  ;;  %v298_v63 = vld [vmem:[%s3772_s4 + $0x28] sm:$0xff]  ;;  %v1236_v14 = vadd.f32 %v3142_v55, %v3229_v19  ;;  %v1237_v19 = vadd.f32 %v3140_v54, %v3221_v62 }
 0x20b   :  { %v2436_v20 = vpop.eup %2435  ;;  %2455 = vrcp.f32 %v1525_v16  ;;  %v1061_v16 = vpop.f32.mrb[31].mxu1  ;;  %v2001_v0 = vmul.f32 -1.442695, %v3347_v57  ;;  %v2608_v57 = vld [vmem:[%s3769_s3 + $0x18] sm:$0xff] }
 0x20c   :  { %v2438_v46 = vpop.eup %2437  ;;  %2457 = vpow2.f32 %v1995_v5  ;;  %v3349_v3 = vadd.f32 %v1587_v13, %v1571_v31  ;;  %v1588_v23 = vmul.f32 %v2436_v20, %v3296_v47  ;;  %v3362_v5 = vpop.permute.xlu1 %1711  ;;  %v3365_v13 = vadd.f32 %v3138_v53, %v1059_v21 }
 0x20d   :  { %v3358_v49 = vpop.eup %2439  ;;  %v1318_v51 = vadd.f32 1.0, %v2438_v46  ;;  %2459 = vtanh.f32 %v1233_v6  ;;  %v1238_v47 = vadd.f32 %v3144_v56, %v3231_v22  ;;  %v3373_v6 = vadd.f32 %v3142_v55, %v1061_v16  ;;  %v3389_v16 = vpop.permute.xlu0 %1714 }
 0x20e   :  { %v2442_v31 = vpop.eup %2441  ;;  %2461 = vpow2.f32 %v2011_v12  ;;  %v1779_v37 = vsel %vm1747_vm4, %v297_v38, %v3349_v3  ;;  %vm1748_vm5 = vcmp.eq.s32.totalorder %v3362_v5, 1  ;;  %v2012_v46 = vmul.f32 -1.442695, %v1236_v14 }
 0x20f   :  { %v2444_v20 = vpop.eup %2443  ;;  %2463 = vrcp.f32 %v1318_v51  ;;  %1811 = vst [vmem:[%s3773_s9 + $0x20] sm:$0xff] %v1779_v37  ;;  %v1572_v53 = vmul.f32 %v2442_v31, %v298_v63  ;;  %v2028_v21 = vmul.f32 -1.442695, %v1238_v47  ;;  %v1158_v31 = vpop.f32.mrb[32].mxu1  ;;  %vm1749_vm6 = vcmp.eq.s32.totalorder %v3389_v16, 1 }
 0x210   :  { %v3380_v12 = vpop.eup %2445  ;;  %v1414_v22 = vadd.f32 1.0, %v2444_v20  ;;  %2465 = vpow2.f32 %v2027_v61  ;;  %v1160_v20 = vpop.f32.mrb[33].mxu1 }
 0x211   :  { %v2448_v38 = vpop.eup %2447  ;;  %2467 = vpow2.f32 %v1996_v17  ;;  %v3383_v55 = vadd.f32 %v1588_v23, %v1572_v53  ;;  %v3395_v23 = vadd.f32 %v1158_v31, %v3119_v29  ;;  %v3402_v14 = vadd.f32 %v1160_v20, %v3121_v32  ;;  %v1162_v47 = vpop.f32.mrb[34].mxu1 }
 0x212   :  { %v2450_v62 = vpop.eup %2449  ;;  %2469 = vrcp.f32 %v1414_v22  ;;  %v1589_v51 = vmul.f32 %v2448_v38, %v3317_v33  ;;  %v3409_v29 = vadd.f32 %v1162_v47, %v3123_v34  ;;  %v1997_v38 = vmul.f32 -1.442695, %v3262_v60 }
 0x213   :  { %v2452_v61 = vpop.eup %2451  ;;  %v1526_v37 = vadd.f32 1.0, %v2450_v62  ;;  %2471 = vtanh.f32 %v1237_v19  ;;  %v1780_v17 = vsel %vm1748_vm5, %v298_v63, %v3383_v55  ;;  %v1242_v60 = vadd.f32 %v3144_v56, %v3264_v4 }
 0x214   :  { %v2454_v53 = vpop.eup %2453  ;;  %2473 = vtanh.f32 %v3248_v48  ;;  %1812 = vst [vmem:[%s3773_s9 + $0x28] sm:$0xff] %v1780_v17  ;;  %v1573_v33 = vmul.f32 %v2452_v61, %v299_v27  ;;  %v1164_v48 = vpop.f32.mrb[35].mxu1  ;;  %v1249_v42 = vadd.f32 %v3140_v54, %v3395_v23 }
 0x215   :  { %v3404_v19 = vpop.eup %2455  ;;  %2475 = vrcp.f32 %v1526_v37  ;;  %v1631_v63 = vmul.f32 %v2454_v53, %v3193_v1  ;;  %v3415_v32 = vadd.f32 %v1164_v48, %v3125_v35  ;;  %v2605_v1 = vld [vmem:[%s3769_s3] sm:$0xff]  ;;  %v1241_v35 = vadd.f32 %v3140_v54, %v3253_v52  ;;  %v3446_v53 = vpop.permute.xlu1 %1717 }
 0x216   :  { %v2458_v22 = vpop.eup %2457  ;;  %2477 = vpow2.f32 %v2012_v46  ;;  %v3412_v62 = vadd.f32 %v1589_v51, %v1573_v33  ;;  %v1168_v4 = vpop.f32.mrb[36].mxu1  ;;  %vm1750_vm7 = vcmp.eq.s32.totalorder %v3446_v53, 1 }
 0x217   :  { %v3417_v31 = vpop.eup %2459  ;;  %v3424_v34 = vsel %vm1743_vm0, %v2605_v1, %v1631_v63  ;;  %v1319_v61 = vadd.f32 1.0, %v2458_v22  ;;  %2479 = vpow2.f32 %v2028_v21  ;;  %v3449_v33 = vadd.f32 %v1168_v4, %v3127_v36  ;;  %v1170_v47 = vpop.f32.mrb[37].mxu1 }
 0x218   :  { %v2462_v46 = vpop.eup %2461  ;;  %1791 = vst [vmem:[%s3774_s8] sm:$0xff] %v3424_v34  ;;  %2481 = vtanh.f32 %v3251_v50  ;;  %v1781_v11 = vsel %vm1749_vm6, %v299_v27, %v3412_v62  ;;  %v300_v50 = vld [vmem:[%s3772_s4 + $0x38] sm:$0xff]  ;;  %v2013_v27 = vmul.f32 -1.442695, %v3273_v2  ;;  %v2029_v22 = vmul.f32 -1.442695, %v1242_v60 }
 0x219   :  { %v2464_v51 = vpop.eup %2463  ;;  %2483 = vrcp.f32 %v1319_v61  ;;  %v1415_v21 = vadd.f32 1.0, %v2462_v46  ;;  %1813 = vst [vmem:[%s3773_s9 + $0x30] sm:$0xff] %v1781_v11  ;;  %v1998_v61 = vmul.f32 -1.442695, %v3288_v40 }
 0x21a   :  { %v2466_v37 = vpop.eup %2465  ;;  %2485 = vpow2.f32 %v1997_v38  ;;  %v1590_v52 = vmul.f32 %v2464_v51, %v3358_v49  ;;  %v3452_v38 = vadd.f32 %v1170_v47, %v3129_v39  ;;  %v1172_v49 = vpop.f32.mrb[38].mxu1  ;;  %v1245_v51 = vadd.f32 %v3140_v54, %v3275_v10  ;;  %v2606_v10 = vld [vmem:[%s3769_s3 + $0x8] sm:$0xff] }
 0x21b   :  { %v2468_v17 = vpop.eup %2467  ;;  %2487 = vrcp.f32 %v1415_v21  ;;  %v1527_v20 = vadd.f32 1.0, %v2466_v37  ;;  %v3456_v2 = vadd.f32 %v1172_v49, %v3131_v44  ;;  %v1174_v11 = vpop.f32.mrb[39].mxu1  ;;  %v1246_v21 = vadd.f32 %v3144_v56, %v3285_v30 }
 0x21c   :  { %v2470_v63 = vpop.eup %2469  ;;  %v1320_v48 = vadd.f32 1.0, %v2468_v17  ;;  %2489 = vtanh.f32 %v1241_v35  ;;  %v3462_v39 = vadd.f32 %v1174_v11, %v3133_v45  ;;  %v1258_v16 = vadd.f32 %v3144_v56, %v3452_v38 }
 0x21d   :  { %v2472_v1 = vpop.eup %2471  ;;  %2491 = vrcp.f32 %v1527_v20  ;;  %v1574_v46 = vmul.f32 %v2470_v63, %v300_v50  ;;  %v2014_v20 = vmul.f32 -1.442695, %v3299_v26  ;;  %v3495_v63 = vpop.permute.xlu0 %1720  ;;  %v1261_v38 = vadd.f32 %v3140_v54, %v3456_v2 }
 0x21e   :  { %v2474_v36 = vpop.eup %2473  ;;  %2493 = vrcp.f32 %v1320_v48  ;;  %vm1751_vm8 = vcmp.eq.s32.totalorder %v3495_v63, 1 }
 0x21f   :  { %v3464_v35 = vpop.eup %2475  ;;  %v1632_v60 = vmul.f32 %v2474_v36, %v3213_v8  ;;  %2495 = vpow2.f32 %v2013_v27  ;;  %v3467_v40 = vadd.f32 %v1590_v52, %v1574_v46 }
 0x220   :  { %v2478_v44 = vpop.eup %2477  ;;  %2497 = vpow2.f32 %v2029_v22 }
 0x221   :  { %v2480_v37 = vpop.eup %2479  ;;  %v1760_v45 = vsel %vm1744_vm1, %v2606_v10, %v1632_v60  ;;  %v1416_v4 = vadd.f32 1.0, %v2478_v44  ;;  %2499 = vpow2.f32 %v1998_v61  ;;  %v1782_v8 = vsel %vm1750_vm7, %v300_v50, %v3467_v40  ;;  %v301_v50 = vld [vmem:[%s3772_s4 + $0x40] sm:$0xff] }
 0x222   :  { %v2482_v52 = vpop.eup %2481  ;;  %1792 = vst [vmem:[%s3774_s8 + $0x8] sm:$0xff] %v1760_v45  ;;  %v2070_v30 = vpack.c.bf16 %v1760_v45, %v3424_v34  ;;  %v1528_v17 = vadd.f32 1.0, %v2480_v37  ;;  %2501 = vtanh.f32 %v1245_v51  ;;  %1814 = vst [vmem:[%s3773_s9 + $0x38] sm:$0xff] %v1782_v8  ;;  %v2030_v34 = vmul.f32 -1.442695, %v1246_v21 }
 0x223   :  { %v2484_v58 = vpop.eup %2483  ;;  %2503 = vrcp.f32 %v1416_v4  ;;  %v1633_v27 = vmul.f32 %v2482_v52, %v3241_v25  ;;  %v2607_v25 = vld [vmem:[%s3769_s3 + $0x10] sm:$0xff]  ;;  %v1999_v61 = vmul.f32 -1.442695, %v3309_v9  ;;  %v3527_v4 = vpop.permute.xlu1 %1723  ;;  %v2016_v52 = vmul.f32 -1.442695, %v3328_v43 }
 0x224   :  { %v2486_v47 = vpop.eup %2485  ;;  %2071 = vst [vmem:[%s3775_s10] sm:$0xff] %v2070_v30   ;;  %2505 = vrcp.f32 %v1528_v17  ;;  %v1591_v26 = vmul.f32 %v2484_v58, %v3417_v31  ;;  %vm1752_vm9 = vcmp.eq.s32.totalorder %v3527_v4, 1  ;;  %v307_v4 = vld [vmem:[%s3772_s4 + $0x70] sm:$0xff] }
 0x225   :  { %v2488_v48 = vpop.eup %2487  ;;  %v3502_v22 = vsel %vm1745_vm2, %v2607_v25, %v1633_v27  ;;  %v1321_v49 = vadd.f32 1.0, %v2486_v47  ;;  %2507 = vtanh.f32 %v3304_v15 }
 0x226   :  { %v2490_v46 = vpop.eup %2489  ;;  %1793 = vst [vmem:[%s3774_s8 + $0x10] sm:$0xff] %v3502_v22  ;;  %2509 = vpow2.f32 %v2014_v20  ;;  %v1575_v31 = vmul.f32 %v2488_v48, %v301_v50 }
 0x227   :  { %v3510_v11 = vpop.eup %2491  ;;  %2511 = vrcp.f32 %v1321_v49 }
 0x228   :  { %v2494_v36 = vpop.eup %2493  ;;  %2513 = vpow2.f32 %v2030_v34  ;;  %v3514_v15 = vadd.f32 %v1591_v26, %v1575_v31 }
 0x229   :  { %v2496_v9 = vpop.eup %2495  ;;  %2515 = vpow2.f32 %v1999_v61  ;;  %v1592_v51 = vmul.f32 %v2494_v36, %v2472_v1  ;;  %v302_v1 = vld [vmem:[%s3772_s4 + $0x48] sm:$0xff]  ;;  %v2017_v61 = vmul.f32 -1.442695, %v3356_v18 }
 0x22a   :  { %v2498_v60 = vpop.eup %2497  ;;  %v1417_v44 = vadd.f32 1.0, %v2496_v9  ;;  %2517 = vtanh.f32 %v3349_v3  ;;  %v1783_v21 = vsel %vm1751_vm8, %v301_v50, %v3514_v15 }
 0x22b   :  { %v2500_v37 = vpop.eup %2499  ;;  %v1529_v10 = vadd.f32 1.0, %v2498_v60  ;;  %2519 = vpow2.f32 %v2015_v28  ;;  %1815 = vst [vmem:[%s3773_s9 + $0x40] sm:$0xff] %v1783_v21 }
 0x22c   :  { %v2502_v45 = vpop.eup %2501  ;;  %2521 = vrcp.f32 %v1417_v44  ;;  %v1322_v3 = vadd.f32 1.0, %v2500_v37  ;;  %v2018_v44 = vmul.f32 -1.442695, %v3373_v6  ;;  %v3571_v37 = vpop.permute.xlu0 %1726 }
 0x22d   :  { %v2504_v8 = vpop.eup %2503  ;;  %2523 = vrcp.f32 %v1529_v10  ;;  %vm1753_vm10 = vcmp.eq.s32.totalorder %v3571_v37, 1 }
 0x22e   :  { %v3530_v30 = vpop.eup %2505  ;;  %2525 = vrcp.f32 %v1322_v3  ;;  %v1576_v17 = vmul.f32 %v2504_v8, %v302_v1 }
 0x22f   :  { %v2508_v20 = vpop.eup %2507  ;;  %2527 = vpow2.f32 %v2000_v7 }
 0x230   :  { %v2510_v58 = vpop.eup %2509  ;;  %v1634_v27 = vmul.f32 %v2508_v20, %v3302_v59  ;;  %2529 = vtanh.f32 %v3383_v55  ;;  %v3536_v50 = vadd.f32 %v1592_v51, %v1576_v17 }
 0x231   :  { %v2512_v47 = vpop.eup %2511  ;;  %v1418_v34 = vadd.f32 1.0, %v2510_v58  ;;  %2531 = vpow2.f32 %v2016_v52 }
 0x232   :  { %v2514_v43 = vpop.eup %2513  ;;  %v1762_v26 = vsel %vm1746_vm3, %v2608_v57, %v1634_v27  ;;  %2533 = vpow2.f32 %v2001_v0  ;;  %v1784_v59 = vsel %vm1752_vm9, %v302_v1, %v3536_v50  ;;  %v1593_v48 = vmul.f32 %v2512_v47, %v2490_v46  ;;  %v303_v46 = vld [vmem:[%s3772_s4 + $0x50] sm:$0xff] }
 0x233   :  { %v2516_v55 = vpop.eup %2515  ;;  %1794 = vst [vmem:[%s3774_s8 + $0x18] sm:$0xff] %v1762_v26  ;;  %v2075_v25 = vpack.c.bf16 %v1762_v26, %v3502_v22  ;;  %2535 = vrcp.f32 %v1418_v34  ;;  %v1530_v49 = vadd.f32 1.0, %v2514_v43  ;;  %1816 = vst [vmem:[%s3773_s9 + $0x48] sm:$0xff] %v1784_v59  ;;  %v2002_v22 = vmul.f32 -1.442695, %v3365_v13  ;;  %v3606_v26 = vpop.permute.xlu1 %1729 }
 0x234   :  { %v2518_v41 = vpop.eup %2517  ;;  %v1323_v31 = vadd.f32 1.0, %v2516_v55  ;;  %2537 = vtanh.f32 %v3412_v62  ;;  %v2609_v62 = vld [vmem:[%s3769_s3 + $0x20] sm:$0xff]  ;;  %v1250_v13 = vadd.f32 %v3144_v56, %v3402_v14  ;;  %v304_v14 = vld [vmem:[%s3772_s4 + $0x58] sm:$0xff]  ;;  %v1254_v27 = vadd.f32 %v3144_v56, %v3415_v32 }
 0x235   :  { %v2520_v28 = vpop.eup %2519  ;;  %2107 = vst [vmem:[%s3775_s10 + $0x8] sm:$0xff] %v2075_v25   ;;  %2539 = vrcp.f32 %v1530_v49  ;;  %v1635_v18 = vmul.f32 %v2518_v41, %v3342_v24  ;;  %v1253_v43 = vadd.f32 %v3140_v54, %v3409_v29  ;;  %vm1754_vm11 = vcmp.eq.s32.totalorder %v3606_v26, 1  ;;  %v2611_v29 = vld [vmem:[%s3769_s3 + $0x30] sm:$0xff] }
 0x236   :  { %v2522_v36 = vpop.eup %2521  ;;  %2541 = vrcp.f32 %v1323_v31  ;;  %v1419_v9 = vadd.f32 1.0, %v2520_v28  ;;  %v2031_v17 = vmul.f32 -1.442695, %v1250_v13  ;;  %v2616_v26 = vld [vmem:[%s3769_s3 + $0x50] sm:$0xff] }
 0x237   :  { %v3563_v51 = vpop.eup %2523  ;;  %v1763_v60 = vsel %vm1747_vm4, %v2609_v62, %v1635_v18  ;;  %2543 = vpow2.f32 %v2017_v61  ;;  %v1577_v21 = vmul.f32 %v2522_v36, %v303_v46 }
 0x238   :  { %v2526_v24 = vpop.eup %2525  ;;  %1795 = vst [vmem:[%s3774_s8 + $0x20] sm:$0xff] %v1763_v60  ;;  %2545 = vrcp.f32 %v1419_v9  ;;  %v1257_v9 = vadd.f32 %v3140_v54, %v3449_v33 }
 0x239   :  { %v2528_v10 = vpop.eup %2527  ;;  %2547 = vpow2.f32 %v2002_v22  ;;  %v1594_v6 = vmul.f32 %v2526_v24, %v2502_v45  ;;  %v3581_v7 = vadd.f32 %v1593_v48, %v1577_v21  ;;  %v305_v22 = vld [vmem:[%s3772_s4 + $0x60] sm:$0xff]  ;;  %v1262_v21 = vadd.f32 %v3144_v56, %v3462_v39  ;;  %v306_v56 = vld [vmem:[%s3772_s4 + $0x68] sm:$0xff]  ;;  %v3657_v39 = vpop.permute.xlu0 %1732 }
 0x23a   :  { %v2530_v1 = vpop.eup %2529  ;;  %v1324_v3 = vadd.f32 1.0, %v2528_v10  ;;  %2549 = vtanh.f32 %v3467_v40  ;;  %vm1755_vm12 = vcmp.eq.s32.totalorder %v3657_v39, 1 }
 0x23b   :  { %v2532_v8 = vpop.eup %2531  ;;  %v1636_v52 = vmul.f32 %v2530_v1, %v3380_v12  ;;  %2551 = vpow2.f32 %v2018_v44  ;;  %v1785_v0 = vsel %vm1753_vm10, %v303_v46, %v3581_v7  ;;  %v2610_v12 = vld [vmem:[%s3769_s3 + $0x28] sm:$0xff]  ;;  %v2033_v44 = vmul.f32 -1.442695, %v1258_v16 }
 0x23c   :  { %v2534_v23 = vpop.eup %2533  ;;  %2553 = vrcp.f32 %v1324_v3  ;;  %v1420_v45 = vadd.f32 1.0, %v2532_v8  ;;  %1817 = vst [vmem:[%s3773_s9 + $0x50] sm:$0xff] %v1785_v0 }
 0x23d   :  { %v2536_v40 = vpop.eup %2535  ;;  %v1764_v20 = vsel %vm1748_vm5, %v2610_v12, %v1636_v52  ;;  %v1325_v58 = vadd.f32 1.0, %v2534_v23  ;;  %2555 = vtanh.f32 %v1249_v42 }
 0x23e   :  { %v2538_v47 = vpop.eup %2537  ;;  %1796 = vst [vmem:[%s3774_s8 + $0x28] sm:$0xff] %v1764_v20  ;;  %v2080_v34 = vpack.c.bf16 %v1764_v20, %v1763_v60  ;;  %2557 = vrcp.f32 %v1420_v45  ;;  %v1578_v57 = vmul.f32 %v2536_v40, %v304_v14  ;;  %v2612_v60 = vld [vmem:[%s3769_s3 + $0x38] sm:$0xff]  ;;  %v3675_v20 = vpop.permute.xlu1 %1735 }
 0x23f   :  { %v3608_v5 = vpop.eup %2539  ;;  %2559 = vrcp.f32 %v1325_v58  ;;  %v1637_v59 = vmul.f32 %v2538_v47, %v3404_v19  ;;  %v2032_v19 = vmul.f32 -1.442695, %v1254_v27  ;;  %v2614_v58 = vld [vmem:[%s3769_s3 + $0x48] sm:$0xff]  ;;  %vm1756_vm13 = vcmp.eq.s32.totalorder %v3675_v20, 1 }
 0x240   :  { %v2542_v32 = vpop.eup %2541  ;;  %2108 = vst [vmem:[%s3775_s10 + $0x10] sm:$0xff] %v2080_v34   ;;  %2561 = vtanh.f32 %v3514_v15  ;;  %v1610_v48 = vadd.f32 %v1594_v6, %v1578_v57 }
 0x241   :  { %v2544_v55 = vpop.eup %2543  ;;  %v1765_v25 = vsel %vm1749_vm6, %v2611_v29, %v1637_v59  ;;  %2563 = vpow2.f32 %v2031_v17 }
 0x242   :  { %v2546_v49 = vpop.eup %2545  ;;  %1797 = vst [vmem:[%s3774_s8 + $0x30] sm:$0xff] %v1765_v25  ;;  %v1421_v61 = vadd.f32 1.0, %v2544_v55  ;;  %2565 = vtanh.f32 %v1253_v43  ;;  %v1786_v15 = vsel %vm1754_vm11, %v304_v14, %v1610_v48  ;;  %v2613_v14 = vld [vmem:[%s3769_s3 + $0x40] sm:$0xff]  ;;  %v2615_v55 = vld [vmem:[%s3769_s3 + $0x58] sm:$0xff] }
 0x243   :  { %v2548_v41 = vpop.eup %2547  ;;  %2567 = vtanh.f32 %v3536_v50  ;;  %1818 = vst [vmem:[%s3773_s9 + $0x58] sm:$0xff] %v1786_v15  ;;  %v1579_v54 = vmul.f32 %v2546_v49, %v305_v22  ;;  %v1739_v15 = vpop.permute.xlu0 %1738 }
 0x244   :  { %v2550_v31 = vpop.eup %2549  ;;  %2569 = vrcp.f32 %v1421_v61  ;;  %v1326_v46 = vadd.f32 1.0, %v2548_v41  ;;  %vm1757_vm14 = vcmp.eq.s32.totalorder %v1739_v15, 1 }
 0x245   :  { %v2552_v28 = vpop.eup %2551  ;;  %v1638_v18 = vmul.f32 %v2550_v31, %v3464_v35  ;;  %2571 = vpow2.f32 %v2032_v19 }
 0x246   :  { %v2554_v36 = vpop.eup %2553  ;;  %2573 = vrcp.f32 %v1326_v46  ;;  %v1422_v50 = vadd.f32 1.0, %v2552_v28 }
 0x247   :  { %v2556_v62 = vpop.eup %2555  ;;  %v1766_v35 = vsel %vm1750_vm7, %v2612_v60, %v1638_v18  ;;  %2575 = vtanh.f32 %v1610_v48 }
 0x248   :  { %v2558_v24 = vpop.eup %2557  ;;  %1798 = vst [vmem:[%s3774_s8 + $0x38] sm:$0xff] %v1766_v35  ;;  %v2085_v33 = vpack.c.bf16 %v1766_v35, %v1765_v25  ;;  %2577 = vrcp.f32 %v1422_v50  ;;  %v1595_v2 = vmul.f32 %v2556_v62, %v2542_v32  ;;  %v308_v25 = vld [vmem:[%s3772_s4 + $0x78] sm:$0xff] }
 0x249   :  { %v2560_v13 = vpop.eup %2559  ;;  %2579 = vtanh.f32 %v3581_v7  ;;  %v2034_v7 = vmul.f32 -1.442695, %v1262_v21  ;;  %v1580_v23 = vmul.f32 %v2558_v24, %v306_v56 }
 0x24a   :  { %v2562_v10 = vpop.eup %2561  ;;  %2109 = vst [vmem:[%s3775_s10 + $0x18] sm:$0xff] %v2085_v33   ;;  %2581 = vtanh.f32 %v1257_v9  ;;  %v1611_v53 = vadd.f32 %v1595_v2, %v1579_v54  ;;  %v2618_v2 = vld [vmem:[%s3769_s3 + $0x68] sm:$0xff] }
 0x24b   :  { %v2564_v42 = vpop.eup %2563  ;;  %v1639_v6 = vmul.f32 %v2562_v10, %v3510_v11  ;;  %2583 = vpow2.f32 %v2033_v44  ;;  %v2617_v44 = vld [vmem:[%s3769_s3 + $0x60] sm:$0xff] }
 0x24c   :  { %v2566_v1 = vpop.eup %2565  ;;  %v1531_v3 = vadd.f32 1.0, %v2564_v42  ;;  %2585 = vtanh.f32 %v1261_v38  ;;  %v1787_v8 = vsel %vm1755_vm12, %v305_v22, %v1611_v53  ;;  %v1742_v22 = vpop.permute.xlu1 %1741 }
 0x24d   :  { %v2568_v52 = vpop.eup %2567  ;;  %v1767_v0 = vsel %vm1751_vm8, %v2613_v14, %v1639_v6  ;;  %v1596_v11 = vmul.f32 %v2566_v1, %v2554_v36  ;;  %2587 = vtanh.f32 %v1611_v53  ;;  %1819 = vst [vmem:[%s3773_s9 + $0x60] sm:$0xff] %v1787_v8  ;;  %vm1758_vm15 = vcmp.eq.s32.totalorder %v1742_v22, 1  ;;  %v2620_v8 = vld [vmem:[%s3769_s3 + $0x78] sm:$0xff] }
 0x24e   :  { %v2570_v45 = vpop.eup %2569  ;;  %1799 = vst [vmem:[%s3774_s8 + $0x40] sm:$0xff] %v1767_v0  ;;  %2589 = vrcp.f32 %v1531_v3  ;;  %v1640_v17 = vmul.f32 %v2568_v52, %v3530_v30 }
 0x24f   :  { %v2572_v40 = vpop.eup %2571  ;;  %v1612_v12 = vadd.f32 %v1596_v11, %v1580_v23  ;;  %2591 = vpow2.f32 %v2034_v7  ;;  %v1581_v49 = vmul.f32 %v2570_v45, %v307_v4  ;;  %v2619_v7 = vld [vmem:[%s3769_s3 + $0x70] sm:$0xff] }
 0x250   :  { %v2574_v63 = vpop.eup %2573  ;;  %v1768_v27 = vsel %vm1752_vm9, %v2614_v58, %v1640_v17  ;;  %v1532_v47 = vadd.f32 1.0, %v2572_v40 }
 0x251   :  { %v2576_v34 = vpop.eup %2575  ;;  %1800 = vst [vmem:[%s3774_s8 + $0x48] sm:$0xff] %v1768_v27  ;;  %v2090_v30 = vpack.c.bf16 %v1768_v27, %v1767_v0  ;;  %2593 = vtanh.f32 %v1612_v12  ;;  %v1788_v43 = vsel %vm1756_vm13, %v306_v56, %v1612_v12 }
 0x252   :  { %v2578_v57 = vpop.eup %2577  ;;  %2595 = vrcp.f32 %v1532_v47  ;;  %v1642_v59 = vmul.f32 %v2576_v34, %v3608_v5  ;;  %1820 = vst [vmem:[%s3773_s9 + $0x68] sm:$0xff] %v1788_v43 }
 0x253   :  { %v2580_v32 = vpop.eup %2579  ;;  %2110 = vst [vmem:[%s3775_s10 + $0x20] sm:$0xff] %v2090_v30   ;;  %v1582_v28 = vmul.f32 %v2578_v57, %v308_v25 }
 0x254   :  { %v2582_v48 = vpop.eup %2581  ;;  %v1770_v5 = vsel %vm1754_vm11, %v2615_v55, %v1642_v59  ;;  %v1641_v29 = vmul.f32 %v2580_v32, %v3563_v51 }
 0x255   :  { %v2584_v19 = vpop.eup %2583  ;;  %1802 = vst [vmem:[%s3774_s8 + $0x58] sm:$0xff] %v1770_v5  ;;  %v1597_v61 = vmul.f32 %v2582_v48, %v2560_v13 }
 0x256   :  { %v2586_v41 = vpop.eup %2585  ;;  %v1769_v51 = vsel %vm1753_vm10, %v2616_v26, %v1641_v29  ;;  %v1533_v16 = vadd.f32 1.0, %v2584_v19 }
 0x257   :  { %v2588_v31 = vpop.eup %2587  ;;  %1801 = vst [vmem:[%s3774_s8 + $0x50] sm:$0xff] %v1769_v51  ;;  %v2095_v46 = vpack.c.bf16 %v1770_v5, %v1769_v51  ;;  %v1598_v18 = vmul.f32 %v2586_v41, %v2574_v63  ;;  %v1613_v36 = vadd.f32 %v1597_v61, %v1581_v49 }
 0x258   :  { %v2590_v50 = vpop.eup %2589  ;;  %2597 = vrcp.f32 %v1533_v16 }
 0x259   :  { %v2592_v9 = vpop.eup %2591  ;;  %2111 = vst [vmem:[%s3775_s10 + $0x28] sm:$0xff] %v2095_v46   ;;  %v1643_v37 = vmul.f32 %v2590_v50, %v2588_v31  ;;  %v1614_v38 = vadd.f32 %v1598_v18, %v1582_v28  ;;  %2599 = vtanh.f32 %v1613_v36  ;;  %v1789_v62 = vsel %vm1757_vm14, %v307_v4, %v1613_v36 }
 0x25a   :  { %v1534_v60 = vadd.f32 1.0, %v2592_v9  ;;  %1821 = vst [vmem:[%s3773_s9 + $0x70] sm:$0xff] %v1789_v62 }
 0x25b   :  { %v2594_v35 = vpop.eup %2593  ;;  %v1771_v21 = vsel %vm1755_vm12, %v2617_v44, %v1643_v37  ;;  %2601 = vtanh.f32 %v1614_v38  ;;  %v1790_v24 = vsel %vm1758_vm15, %v308_v25, %v1614_v38 }
 0x25c   :  { %v2596_v33 = vpop.eup %2595  ;;  %1803 = vst [vmem:[%s3774_s8 + $0x60] sm:$0xff] %v1771_v21  ;;  %2603 = vrcp.f32 %v1534_v60  ;;  %1822 = vst [vmem:[%s3773_s9 + $0x78] sm:$0xff] %v1790_v24 }
 0x25d   :  { %v1644_v54 = vmul.f32 %v2596_v33, %v2594_v35 }
 0x25f   :  { %v1772_v13 = vsel %vm1756_vm13, %v2618_v2, %v1644_v54 }
 0x260   :  { %1804 = vst [vmem:[%s3774_s8 + $0x68] sm:$0xff] %v1772_v13  ;;  %v2100_v10 = vpack.c.bf16 %v1772_v13, %v1771_v21 }
 0x262   :  { %v2598_v56 = vpop.eup %2597  ;;  %2112 = vst [vmem:[%s3775_s10 + $0x30] sm:$0xff] %v2100_v10  }
 0x263   :  { %v2600_v53 = vpop.eup %2599 }
 0x264   :  { %v1645_v39 = vmul.f32 %v2600_v53, %v2598_v56 }
 0x265   :  { %v2602_v42 = vpop.eup %2601 }
 0x266   :  { %v2604_v6 = vpop.eup %2603  ;;  %v1773_v1 = vsel %vm1757_vm14, %v2619_v7, %v1645_v39 }
 0x267   :  { %v1646_v3 = vmul.f32 %v2604_v6, %v2602_v42  ;;  %1805 = vst [vmem:[%s3774_s8 + $0x70] sm:$0xff] %v1773_v1 }
 0x269   :  { %v1774_v52 = vsel %vm1758_vm15, %v2620_v8, %v1646_v3 }
 0x26a   :  { %1806 = vst [vmem:[%s3774_s8 + $0x78] sm:$0xff] %v1774_v52  ;;  %v2105_v14 = vpack.c.bf16 %v1774_v52, %v1773_v1 }
 0x26c   :  { %2113 = vst [vmem:[%s3775_s10 + $0x38] sm:$0xff] %v2105_v14  }

// kernel: neurosat_forward.10
= control target key start
LH: loop header
LB: loop body
LE: loop exit
PB: predicated region body
PF: predicated region fallthrough
CT: control target
= control target key end

     0   :  { %v2661_v2 = vmov 0   ;;  %s3776_s0 = inlined_call_operand.vmem [shape: f32[128,1], index: 0, kind: input, shape index: {}]   ;;  %s3777_s1 = inlined_call_operand.vmem [shape: s8[128,128], index: 1, kind: input, shape index: {}]   ;;  %s3778_s2 = inlined_call_operand.vmem [shape: bf16[128,128], index: 2, kind: input, shape index: {}]   ;;  %s3779_s3 = inlined_call_operand.vmem [shape: f32[128,128], index: 3, kind: input, shape index: {}]   ;;  %s3780_s4 = inlined_call_operand.vmem [shape: f32[128,128], index: 4, kind: input, shape index: {}]   ;;  %s3781_s5 = inlined_call_operand.vmem [shape: bf16[128,512], index: 5, kind: input, shape index: {}]   ;;  %s3782_s6 = inlined_call_operand.vmem [shape: bf16[128,512], index: 6, kind: input, shape index: {}]   ;;  %s3783_s7 = inlined_call_operand.vmem [shape: f32[1,512], index: 7, kind: input, shape index: {}]   ;;  %s3784_s8 = inlined_call_operand.vmem [shape: f32[128,128], index: 8, kind: output, shape index: {0}]   ;;  %s3785_s9 = inlined_call_operand.hbm [shape: f32[128,128], index: 9, kind: output, shape index: {1}]   ;;  %s3786_s10 = inlined_call_operand.vmem [shape: bf16[128,128], index: 10, kind: output, shape index: {2}]  }
   0x1   :  { %v2261_v0 = vld [vmem:[%s3778_s2] sm:$0xff]   ;;  %v2262_v1 = vld [vmem:[%s3778_s2 + $0x8] sm:$0xff]   ;;  %598 = vmatprep.mubr.bf16.mxu1 %v2661_v2  ;;  %2259 = vset.pattern.permute.xlu0 %v2661_v2  ;;  %v2263_v3 = vld [vmem:[%s3778_s2 + $0x10] sm:$0xff]  }
   0x2   :  { %2143 = vmatprep.subr.bf16.mxu0 %v2261_v0  ;;  %2260 = vset.pattern.permute.xlu1 %v2661_v2  ;;  %v2264_v4 = vld [vmem:[%s3778_s2 + $0x18] sm:$0xff]   ;;  %v54_v5 = vld [vmem:[%s3777_s1] sm:$0xff]  ;;  %v2266_v13 = vld [vmem:[%s3778_s2 + $0x28] sm:$0xff]  }
   0x3   :  { %2144 = vmatpush3.bf16.msra.mxu0 %v2261_v0  ;;  %v58_v6 = vunpack.c.l.s8.bf16 %v54_v5  ;;  %v2269_v7 = vld [vmem:[%s3782_s6 + $0x4] ss:$16 sps:$4 sm:$0xff]   ;;  %v2271_v8 = vld [vmem:[%s3782_s6] ss:$16 sps:$4 sm:$0xff]   ;;  %v2268_v19 = vld [vmem:[%s3778_s2 + $0x38] sm:$0xff]   ;;  %v59_v25 = vunpack.c.h.s8.bf16 %v54_v5 }
   0x4   :  { %2145 = vmatprep.subr.bf16.mxu0 %v2262_v1  ;;  %v2265_v9 = vld [vmem:[%s3778_s2 + $0x20] sm:$0xff]   ;;  %566 = vmatprep.subr.bf16.mxu1 %v2269_v7  ;;  %v2267_v16 = vld [vmem:[%s3778_s2 + $0x30] sm:$0xff]   ;;  %v55_v22 = vld [vmem:[%s3777_s1 + $0x8] sm:$0xff] }
   0x5   :  { %2159 = vmatprep.mubr.bf16.mxu0 %v58_v6  ;;  %v2275_v10 = vld [vmem:[%s3782_s6 + $0x24] ss:$16 sps:$4 sm:$0xff]   ;;  %567 = vmatpush1.bf16.msra.mxu1 %v2271_v8  ;;  %v2277_v11 = vld [vmem:[%s3782_s6 + $0x20] ss:$16 sps:$4 sm:$0xff]   ;;  %v2274_v23 = vld [vmem:[%s3782_s6 + $0xc] ss:$16 sps:$4 sm:$0xff]   ;;  %v60_v27 = vunpack.c.l.s8.bf16 %v55_v22  ;;  %v61_v38 = vunpack.c.h.s8.bf16 %v55_v22 }
   0x6   :  { %568 = vmatprep.subr.bf16.mxu1 %v2275_v10  ;;  %v2281_v12 = vld [vmem:[%s3782_s6 + $0x44] ss:$16 sps:$4 sm:$0xff]   ;;  %v2283_v14 = vld [vmem:[%s3782_s6 + $0x40] ss:$16 sps:$4 sm:$0xff]   ;;  %v2272_v28 = vld [vmem:[%s3782_s6 + $0x8] ss:$16 sps:$4 sm:$0xff]  }
   0x7   :  { %2146 = vmatpush3.bf16.msra.mxu0 %v2262_v1  ;;  %v2287_v15 = vld [vmem:[%s3782_s6 + $0x64] ss:$16 sps:$4 sm:$0xff]   ;;  %v2289_v17 = vld [vmem:[%s3782_s6 + $0x60] ss:$16 sps:$4 sm:$0xff]   ;;  %v2280_v29 = vld [vmem:[%s3782_s6 + $0x2c] ss:$16 sps:$4 sm:$0xff]  }
   0x8   :  { %2147 = vmatprep.subr.bf16.mxu0 %v2263_v3  ;;  %v2293_v18 = vld [vmem:[%s3782_s6 + $0x84] ss:$16 sps:$4 sm:$0xff]   ;;  %v2295_v20 = vld [vmem:[%s3782_s6 + $0x80] ss:$16 sps:$4 sm:$0xff]   ;;  %v2278_v33 = vld [vmem:[%s3782_s6 + $0x28] ss:$16 sps:$4 sm:$0xff]  }
   0x9   :  { %569 = vmatpush1.bf16.msra.mxu1 %v2277_v11  ;;  %v2299_v21 = vld [vmem:[%s3782_s6 + $0xa4] ss:$16 sps:$4 sm:$0xff]   ;;  %v2301_v24 = vld [vmem:[%s3782_s6 + $0xa0] ss:$16 sps:$4 sm:$0xff]   ;;  %v2286_v34 = vld [vmem:[%s3782_s6 + $0x4c] ss:$16 sps:$4 sm:$0xff]  }
   0xa   :  { %570 = vmatprep.subr.bf16.mxu1 %v2281_v12  ;;  %v2305_v26 = vld [vmem:[%s3782_s6 + $0xc4] ss:$16 sps:$4 sm:$0xff]   ;;  %v2307_v30 = vld [vmem:[%s3782_s6 + $0xc0] ss:$16 sps:$4 sm:$0xff]   ;;  %v279_v37 = vld [vmem:[%s3779_s3 + $0x8] sm:$0xff] }
   0xb   :  { %2148 = vmatpush3.bf16.msra.mxu0 %v2263_v3  ;;  %v2311_v31 = vld [vmem:[%s3782_s6 + $0xe4] ss:$16 sps:$4 sm:$0xff]   ;;  %v2313_v35 = vld [vmem:[%s3782_s6 + $0xe0] ss:$16 sps:$4 sm:$0xff]   ;;  %v2284_v41 = vld [vmem:[%s3782_s6 + $0x48] ss:$16 sps:$4 sm:$0xff]  }
   0xc   :  { %2149 = vmatprep.subr.bf16.mxu0 %v2264_v4  ;;  %v56_v32 = vld [vmem:[%s3777_s1 + $0x10] sm:$0xff]  ;;  %v278_v36 = vld [vmem:[%s3779_s3] sm:$0xff]  ;;  %v2292_v42 = vld [vmem:[%s3782_s6 + $0x6c] ss:$16 sps:$4 sm:$0xff]  }
   0xd   :  { %571 = vmatpush1.bf16.msra.mxu1 %v2283_v14  ;;  %v2319_v39 = vld [vmem:[%s3781_s5 + $0x4] ss:$16 sps:$4 sm:$0xff]   ;;  %v62_v40 = vunpack.c.l.s8.bf16 %v56_v32  ;;  %v2834_v43 = vpack.c.bf16 %v279_v37, %v278_v36  ;;  %v2317_v44 = vld [vmem:[%s3781_s5] ss:$16 sps:$4 sm:$0xff]   ;;  %v57_v45 = vld [vmem:[%s3777_s1 + $0x18] sm:$0xff]  ;;  %v63_v52 = vunpack.c.h.s8.bf16 %v56_v32 }
   0xe   :  { %572 = vmatprep.subr.bf16.mxu1 %v2287_v15  ;;  %v2322_v46 = vld [vmem:[%s3781_s5 + $0x24] ss:$16 sps:$4 sm:$0xff]   ;;  %v2290_v47 = vld [vmem:[%s3782_s6 + $0x68] ss:$16 sps:$4 sm:$0xff]   ;;  %v2298_v48 = vld [vmem:[%s3782_s6 + $0x8c] ss:$16 sps:$4 sm:$0xff]   ;;  %v64_v54 = vunpack.c.l.s8.bf16 %v57_v45  ;;  %v65_v1 = vunpack.c.h.s8.bf16 %v57_v45 }
   0xf   :  { %2150 = vmatpush3.bf16.msra.mxu0 %v2264_v4  ;;  %v2320_v49 = vld [vmem:[%s3781_s5 + $0x20] ss:$16 sps:$4 sm:$0xff]   ;;  %v281_v51 = vld [vmem:[%s3779_s3 + $0x18] sm:$0xff]  ;;  %v2325_v53 = vld [vmem:[%s3781_s5 + $0x44] ss:$16 sps:$4 sm:$0xff]  }
  0x10   :  { %2151 = vmatprep.subr.bf16.mxu0 %v2265_v9  ;;  %v280_v50 = vld [vmem:[%s3779_s3 + $0x10] sm:$0xff]  ;;  %v2296_v55 = vld [vmem:[%s3782_s6 + $0x88] ss:$16 sps:$4 sm:$0xff]   ;;  %v2304_v56 = vld [vmem:[%s3782_s6 + $0xac] ss:$16 sps:$4 sm:$0xff]  }
  0x11   :  { %573 = vmatpush1.bf16.msra.mxu1 %v2289_v17  ;;  %v2871_v57 = vpack.c.bf16 %v281_v51, %v280_v50  ;;  %v2323_v58 = vld [vmem:[%s3781_s5 + $0x40] ss:$16 sps:$4 sm:$0xff]   ;;  %v2328_v59 = vld [vmem:[%s3781_s5 + $0x64] ss:$16 sps:$4 sm:$0xff]   ;;  %v2302_v60 = vld [vmem:[%s3782_s6 + $0xa8] ss:$16 sps:$4 sm:$0xff]  }
  0x12   :  { %574 = vmatprep.subr.bf16.mxu1 %v2293_v18  ;;  %v2310_v61 = vld [vmem:[%s3782_s6 + $0xcc] ss:$16 sps:$4 sm:$0xff]   ;;  %v282_v62 = vld [vmem:[%s3779_s3 + $0x20] sm:$0xff]  ;;  %v2308_v4 = vld [vmem:[%s3782_s6 + $0xc8] ss:$16 sps:$4 sm:$0xff]  }
  0x13   :  { %2152 = vmatpush3.bf16.msra.mxu0 %v2265_v9  ;;  %v283_v63 = vld [vmem:[%s3779_s3 + $0x28] sm:$0xff]  ;;  %v2326_v0 = vld [vmem:[%s3781_s5 + $0x60] ss:$16 sps:$4 sm:$0xff]   ;;  %v2331_v3 = vld [vmem:[%s3781_s5 + $0x84] ss:$16 sps:$4 sm:$0xff]  }
  0x14   :  { %2153 = vmatprep.subr.bf16.mxu0 %v2266_v13  ;;  %v2316_v5 = vld [vmem:[%s3782_s6 + $0xec] ss:$16 sps:$4 sm:$0xff]   ;;  %v2905_v6 = vpack.c.bf16 %v283_v63, %v282_v62 }
  0x15   :  { %575 = vmatpush1.bf16.msra.mxu1 %v2295_v20 }
  0x16   :  { %576 = vmatprep.subr.bf16.mxu1 %v2299_v21 }
  0x17   :  { %2154 = vmatpush3.bf16.msra.mxu0 %v2266_v13 }
  0x18   :  { %2155 = vmatprep.subr.bf16.mxu0 %v2267_v16 }
  0x19   :  { %577 = vmatpush1.bf16.msra.mxu1 %v2301_v24 }
  0x1a   :  { %578 = vmatprep.subr.bf16.mxu1 %v2305_v26 }
  0x1b   :  { %2156 = vmatpush3.bf16.msra.mxu0 %v2267_v16 }
  0x1c   :  { %2157 = vmatprep.subr.bf16.mxu0 %v2268_v19 }
  0x1d   :  { %579 = vmatpush1.bf16.msra.mxu1 %v2307_v30 }
  0x1e   :  { %580 = vmatprep.subr.bf16.mxu1 %v2311_v31 }
  0x1f   :  { %2158 = vmatpush3.bf16.msra.mxu0 %v2268_v19 }
  0x20   :  { %679 = vmatprep.subr.bf16.mxu0 %v2274_v23 }
  0x21   :  { %581 = vmatpush1.bf16.msra.mxu1 %v2313_v35 }
  0x22   :  { %2160 = vmatmul.mubr.bf16.vlgmr.msra.gmra.mrb[0].mxu0 %v59_v25  ;;  %952 = vmatprep.subr.bf16.mxu1 %v2319_v39 }
  0x23   :  { %2163 = vmatprep.mubr.bf16.mxu0 %v60_v27  ;;  %680 = vmatpush1.bf16.msra.mxu0 %v2272_v28 }
  0x24   :  { %681 = vmatprep.subr.bf16.mxu0 %v2280_v29  ;;  %599 = vmatmul.mubr.bf16.vlgmr.msra.gmra.mrb[0].mxu1 %v2834_v43 }
  0x25   :  { %953 = vmatpush1.bf16.msra.mxu1 %v2317_v44  ;;  %608 = vmatprep.mubr.bf16.mxu1 %v2661_v2 }
  0x26   :  { %954 = vmatprep.subr.bf16.mxu1 %v2322_v46 }
  0x27   :  { %682 = vmatpush1.bf16.msra.mxu0 %v2278_v33 }
  0x28   :  { %683 = vmatprep.subr.bf16.mxu0 %v2286_v34 }
  0x29   :  { %955 = vmatpush1.bf16.msra.mxu1 %v2320_v49 }
  0x2a   :  { %2164 = vmatmul.mubr.bf16.gmra.mrb[4].mxu0 %v61_v38  ;;  %956 = vmatprep.subr.bf16.mxu1 %v2325_v53 }
  0x2b   :  { %2167 = vmatprep.mubr.bf16.mxu0 %v62_v40  ;;  %684 = vmatpush1.bf16.msra.mxu0 %v2284_v41 }
  0x2c   :  { %685 = vmatprep.subr.bf16.mxu0 %v2292_v42  ;;  %609 = vmatmul.mubr.bf16.gmra.mrb[4].mxu1 %v2871_v57 }
  0x2d   :  { %618 = vmatprep.mubr.bf16.mxu1 %v2661_v2  ;;  %957 = vmatpush1.bf16.msra.mxu1 %v2323_v58 }
  0x2e   :  { %958 = vmatprep.subr.bf16.mxu1 %v2328_v59 }
  0x2f   :  { %686 = vmatpush1.bf16.msra.mxu0 %v2290_v47 }
  0x30   :  { %687 = vmatprep.subr.bf16.mxu0 %v2298_v48 }
  0x32   :  { %2168 = vmatmul.mubr.bf16.gmra.mrb[8].mxu0 %v63_v52 }
  0x33   :  { %2171 = vmatprep.mubr.bf16.mxu0 %v64_v54  ;;  %688 = vmatpush1.bf16.msra.mxu0 %v2296_v55 }
  0x34   :  { %689 = vmatprep.subr.bf16.mxu0 %v2304_v56 }
  0x37   :  { %690 = vmatpush1.bf16.msra.mxu0 %v2302_v60 }
  0x38   :  { %691 = vmatprep.subr.bf16.mxu0 %v2310_v61 }
  0x39   :  { %16 = vsyncpa [#allocation4], 0  ;;  %959 = vmatpush1.bf16.msra.mxu1 %v2326_v0  ;;  %v2329_v7 = vld [vmem:[%s3781_s5 + $0x80] ss:$16 sps:$4 sm:$0xff]   ;;  %v2340_v8 = vld [vmem:[%s3781_s5 + $0xa4] ss:$16 sps:$4 sm:$0xff]  }
  0x3a   :  { %2172 = vmatmul.mubr.bf16.gmra.mrb[12].mxu0 %v65_v1  ;;  %960 = vmatprep.subr.bf16.mxu1 %v2331_v3  ;;  %v2314_v9 = vld [vmem:[%s3782_s6 + $0xe8] ss:$16 sps:$4 sm:$0xff]   ;;  %v2334_v10 = vld [vmem:[%s3781_s5 + $0xc] ss:$16 sps:$4 sm:$0xff]   ;;  %v284_v11 = vld [vmem:[%s3779_s3 + $0x30] sm:$0xff]  ;;  %s2662_s17 = smov [#allocation3]  }
  0x3b   :  { %692 = vmatpush1.bf16.msra.mxu0 %v2308_v4  ;;  %711 = vmatprep.mubr.bf16.mxu0 %v2661_v2  ;;  %v285_v12 = vld [vmem:[%s3779_s3 + $0x38] sm:$0xff]  ;;  %v2338_v13 = vld [vmem:[%s3781_s5 + $0xa0] ss:$16 sps:$4 sm:$0xff]   ;;  %v2349_v14 = vld [vmem:[%s3781_s5 + $0xc4] ss:$16 sps:$4 sm:$0xff]   ;;  %s1911_s18 = sshll.u32 %s2662_s17, 4  ;;  %s1912_s18 = int_to_ptr.vmem [resolvable:$true] %s1911_s18 }
  0x3c   :  { %693 = vmatprep.subr.bf16.mxu0 %v2316_v5  ;;  %619 = vmatmul.mubr.bf16.gmra.mrb[8].mxu1 %v2905_v6  ;;  %v2937_v15 = vld [vmem:[%s3781_s5 + $0x8] ss:$16 sps:$4 sm:$0xff]   ;;  %v369_v16 = vpack.c.bf16 %v285_v12, %v284_v11  ;;  %v2942_v17 = vld [vmem:[%s3781_s5 + $0x2c] ss:$16 sps:$4 sm:$0xff]   ;;  %v2347_v18 = vld [vmem:[%s3781_s5 + $0xc0] ss:$16 sps:$4 sm:$0xff]   ;;  %p2642_p1 = scmp.lt.s32.totalorder %s1912_s18, %s1912_s18 }
  0x3d   :  { %628 = vmatprep.mubr.bf16.mxu1 %v2661_v2  ;;  %961 = vmatpush1.bf16.msra.mxu1 %v2329_v7  ;;  %v2358_v19 = vld [vmem:[%s3781_s5 + $0xe4] ss:$16 sps:$4 sm:$0xff]   ;;  %v2956_v20 = vld [vmem:[%s3781_s5 + $0x28] ss:$16 sps:$4 sm:$0xff]   ;;  %v2962_v21 = vld [vmem:[%s3781_s5 + $0x4c] ss:$16 sps:$4 sm:$0xff]  }
  0x3e   :  { %962 = vmatprep.subr.bf16.mxu1 %v2340_v8  ;;  %v286_v22 = vld [vmem:[%s3779_s3 + $0x40] sm:$0xff]  ;;  %v287_v23 = vld [vmem:[%s3779_s3 + $0x48] sm:$0xff]  ;;  %v288_v30 = vld [vmem:[%s3779_s3 + $0x50] sm:$0xff]  ;;  %s2637_s25 = scalar_lea.vmem %s1912_s18, 2048 }
  0x3f   :  { %694 = vmatpush1.bf16.msra.mxu0 %v2314_v9  ;;  %v2356_v24 = vld [vmem:[%s3781_s5 + $0xe0] ss:$16 sps:$4 sm:$0xff]   ;;  %v2978_v25 = vld [vmem:[%s3781_s5 + $0x48] ss:$16 sps:$4 sm:$0xff]   ;;  %v370_v26 = vpack.c.bf16 %v287_v23, %v286_v22  ;;  %v2984_v27 = vld [vmem:[%s3781_s5 + $0x6c] ss:$16 sps:$4 sm:$0xff]   ;;  %p2638_p0 = scmp.ne.s32.totalorder %s1912_s18, %s2637_s25  ;;  %p2643_p2 = scmp.lt.s32.totalorder %s2637_s25, %s2637_s25 }
  0x40   :  { %1065 = vmatprep.subr.bf16.mxu0 %v2334_v10  ;;  %v2992_v28 = vld [vmem:[%s3781_s5 + $0x68] ss:$16 sps:$4 sm:$0xff]   ;;  %v2998_v29 = vld [vmem:[%s3781_s5 + $0x8c] ss:$16 sps:$4 sm:$0xff]   ;;  %v290_v37 = vld [vmem:[%s3779_s3 + $0x60] sm:$0xff] }
  0x41   :  { %963 = vmatpush1.bf16.msra.mxu1 %v2338_v13  ;;  %v289_v31 = vld [vmem:[%s3779_s3 + $0x58] sm:$0xff]  ;;  %v291_v38 = vld [vmem:[%s3779_s3 + $0x68] sm:$0xff]  ;;  %v292_v41 = vld [vmem:[%s3779_s3 + $0x70] sm:$0xff]  ;;  %p2644_p3 = por %p2643_p2, %p2642_p1 }
  0x42   :  { %712 = vmatmul.mubr.bf16.vlgmr.msra.gmra.mrb[16].mxu0 %v2834_v43  ;;  %964 = vmatprep.subr.bf16.mxu1 %v2349_v14  ;;  %v3011_v32 = vld [vmem:[%s3781_s5 + $0x88] ss:$16 sps:$4 sm:$0xff]   ;;  %v371_v33 = vpack.c.bf16 %v289_v31, %v288_v30  ;;  %v3017_v34 = vld [vmem:[%s3781_s5 + $0xac] ss:$16 sps:$4 sm:$0xff]   ;;  %v372_v40 = vpack.c.bf16 %v291_v38, %v290_v37  ;;  %v1648_v46 = vld [vmem:[%s3776_s0] sm:$0xff] }
  0x43   :  { %721 = vmatprep.mubr.bf16.mxu0 %v2661_v2  ;;  %1066 = vmatpush1.bf16.msra.mxu0 %v2937_v15  ;;  %v3025_v35 = vld [vmem:[%s3781_s5 + $0xa8] ss:$16 sps:$4 sm:$0xff]   ;;  %v3031_v36 = vld [vmem:[%s3781_s5 + $0xcc] ss:$16 sps:$4 sm:$0xff]   ;;  %v1650_v48 = vld [vmem:[%s3776_s0 + $0x10] sm:$0xff]  ;;  %vm1664_vm0 = vcmp.gt.f32.partialorder %v1648_v46, 0.5  ;;  %p2645_p4 = pnand %p2644_p3, %p2638_p0 }
  0x44   :  { %629 = vmatmul.mubr.bf16.gmra.mrb[12].mxu1 %v369_v16  ;;  %1067 = vmatprep.subr.bf16.mxu0 %v2942_v17  ;;  %v3044_v39 = vld [vmem:[%s3781_s5 + $0xc8] ss:$16 sps:$4 sm:$0xff]   ;;  %v3063_v44 = vld [vmem:[%s3781_s5 + $0xec] ss:$16 sps:$4 sm:$0xff]   ;;  %vm1666_vm2 = vcmp.gt.f32.partialorder %v1650_v48, 0.5  ;;  %v1680_v50 = vsel %vm1664_vm0, 1, %v2661_v2 }
  0x45   :  { %638 = vmatprep.mubr.bf16.mxu1 %v2661_v2  ;;  %965 = vmatpush1.bf16.msra.mxu1 %v2347_v18  ;;  %v293_v42 = vld [vmem:[%s3779_s3 + $0x78] sm:$0xff]  ;;  %v1649_v47 = vld [vmem:[%s3776_s0 + $0x8] sm:$0xff]  ;;  %v1682_v51 = vsel %vm1666_vm2, 1, %v2661_v2  ;;  %v1652_v52 = vld [vmem:[%s3776_s0 + $0x20] sm:$0xff] }
  0x46   :  { %966 = vmatprep.subr.bf16.mxu1 %v2358_v19  ;;  %v373_v43 = vpack.c.bf16 %v293_v42, %v292_v41  ;;  %v3068_v45 = vld [vmem:[%s3781_s5 + $0xe8] ss:$16 sps:$4 sm:$0xff]   ;;  %vm1665_vm1 = vcmp.gt.f32.partialorder %v1649_v47, 0.5  ;;  %1697 = vperm.xlu0 %2259, %v1680_v50   ;;  %vm1668_vm4 = vcmp.gt.f32.partialorder %v1652_v52, 0.5  ;;  %v1654_v56 = vld [vmem:[%s3776_s0 + $0x30] sm:$0xff]  ;;  %v1656_v60 = vld [vmem:[%s3776_s0 + $0x40] sm:$0xff]  ;;  %v1180_v47 = vlaneseq }
  0x47   :  { %1068 = vmatpush1.bf16.msra.mxu0 %v2956_v20  ;;  %v1651_v49 = vld [vmem:[%s3776_s0 + $0x18] sm:$0xff]  ;;  %v1653_v53 = vld [vmem:[%s3776_s0 + $0x28] sm:$0xff]  ;;  %1703 = vperm.xlu1 %2260, %v1682_v51   ;;  %v1681_v54 = vsel %vm1665_vm1, 1, %v2661_v2  ;;  %v1684_v58 = vsel %vm1668_vm4, 1, %v2661_v2  ;;  %vm1670_vm6 = vcmp.gt.f32.partialorder %v1654_v56, 0.5  ;;  %vm1672_vm8 = vcmp.gt.f32.partialorder %v1656_v60, 0.5 }
  0x48   :  { %1069 = vmatprep.subr.bf16.mxu0 %v2962_v21  ;;  %vm1667_vm3 = vcmp.gt.f32.partialorder %v1651_v49, 0.5  ;;  %vm1669_vm5 = vcmp.gt.f32.partialorder %v1653_v53, 0.5  ;;  %v1657_v61 = vld [vmem:[%s3776_s0 + $0x48] sm:$0xff]  ;;  %v1686_v62 = vsel %vm1670_vm6, 1, %v2661_v2  ;;  %v1659_v0 = vld [vmem:[%s3776_s0 + $0x58] sm:$0xff]  ;;  %v1658_v1 = vld [vmem:[%s3776_s0 + $0x50] sm:$0xff] }
  0x49   :  { %967 = vmatpush1.bf16.msra.mxu1 %v2356_v24  ;;  %v1683_v55 = vsel %vm1667_vm3, 1, %v2661_v2  ;;  %v1685_v59 = vsel %vm1669_vm5, 1, %v2661_v2  ;;  %vm1673_vm9 = vcmp.gt.f32.partialorder %v1657_v61, 0.5  ;;  %v1688_v3 = vsel %vm1672_vm8, 1, %v2661_v2  ;;  %v1661_v5 = vld [vmem:[%s3776_s0 + $0x68] sm:$0xff]  ;;  %v1663_v9 = vld [vmem:[%s3776_s0 + $0x78] sm:$0xff] }
  0x4a   :  { %722 = vmatmul.mubr.bf16.gmra.mrb[20].mxu0 %v2871_v57  ;;  %2175 = vmatprep.subr.bf16.mxu1 %v2334_v10  ;;  %v1655_v57 = vld [vmem:[%s3776_s0 + $0x38] sm:$0xff]  ;;  %v1689_v4 = vsel %vm1673_vm9, 1, %v2661_v2  ;;  %vm1675_vm10 = vcmp.gt.f32.partialorder %v1659_v0, 0.5  ;;  %vm1674_vm11 = vcmp.gt.f32.partialorder %v1658_v1, 0.5  ;;  %vm1677_vm12 = vcmp.gt.f32.partialorder %v1661_v5, 0.5  ;;  %v1662_v10 = vld [vmem:[%s3776_s0 + $0x70] sm:$0xff] }
  0x4b   :  { %731 = vmatprep.mubr.bf16.mxu0 %v2661_v2  ;;  %1070 = vmatpush1.bf16.msra.mxu0 %v2978_v25  ;;  %vm1671_vm7 = vcmp.gt.f32.partialorder %v1655_v57, 0.5  ;;  %v1691_v7 = vsel %vm1675_vm10, 1, %v2661_v2  ;;  %v1690_v8 = vsel %vm1674_vm11, 1, %v2661_v2  ;;  %v1693_v11 = vsel %vm1677_vm12, 1, %v2661_v2  ;;  %v1178_v50 = vld [vmem:[%s3783_s7] sm:$0xf] }
  0x4c   :  { %639 = vmatmul.mubr.bf16.gmra.mrb[16].mxu1 %v370_v26  ;;  %1071 = vmatprep.subr.bf16.mxu0 %v2984_v27  ;;  %v1687_v63 = vsel %vm1671_vm7, 1, %v2661_v2  ;;  %vm1679_vm14 = vcmp.gt.f32.partialorder %v1663_v9, 0.5  ;;  %vm1678_vm15 = vcmp.gt.f32.partialorder %v1662_v10, 0.5  ;;  %v1181_v48 = vshrl.u32 %v1180_v47, 7 }
  0x4d   :  { %648 = vmatprep.mubr.bf16.mxu1 %v2661_v2  ;;  %1700 = vperm.xlu0 %2259, %v1681_v54   ;;  %v1695_v13 = vsel %vm1679_vm14, 1, %v2661_v2  ;;  %v1694_v14 = vsel %vm1678_vm15, 1, %v2661_v2 }
  0x4e   :  { %1706 = vperm.xlu1 %2260, %v1683_v55   ;;  %v1190_v49 = vsub.s32 2, %v1181_v48  ;;  %v1186_v51 = vsub.s32 1, %v1181_v48  ;;  %v1194_v52 = vsub.s32 3, %v1181_v48 }
  0x4f   :  { %1072 = vmatpush1.bf16.msra.mxu0 %v2992_v28 }
  0x50   :  { %1073 = vmatprep.subr.bf16.mxu0 %v2998_v29  ;;  %v3187_v54 = vrot.slane %v1178_v50, %v1190_v49  ;;  %v3189_v55 = vrot.slane %v1178_v50, %v1186_v51  ;;  %v3191_v56 = vrot.slane %v1178_v50, %v1194_v52 }
  0x51   :  { %1709 = vperm.xlu0 %2259, %v1684_v58  }
  0x52   :  { %732 = vmatmul.mubr.bf16.gmra.mrb[24].mxu0 %v2905_v6  ;;  %1712 = vperm.xlu1 %2260, %v1685_v59   ;;  %v1660_v6 = vld [vmem:[%s3776_s0 + $0x60] sm:$0xff] }
  0x53   :  { %741 = vmatprep.mubr.bf16.mxu0 %v2661_v2  ;;  %1074 = vmatpush1.bf16.msra.mxu0 %v3011_v32  ;;  %vm1676_vm13 = vcmp.gt.f32.partialorder %v1660_v6, 0.5 }
  0x54   :  { %649 = vmatmul.mubr.bf16.gmra.mrb[20].mxu1 %v371_v33  ;;  %1075 = vmatprep.subr.bf16.mxu0 %v3017_v34  ;;  %v1692_v12 = vsel %vm1676_vm13, 1, %v2661_v2 }
  0x55   :  { %658 = vmatprep.mubr.bf16.mxu1 %v2661_v2  ;;  %1715 = vperm.xlu0 %2259, %v1686_v62  }
  0x56   :  { %1718 = vperm.xlu1 %2260, %v1687_v63  }
  0x57   :  { %1076 = vmatpush1.bf16.msra.mxu0 %v3025_v35 }
  0x58   :  { %1077 = vmatprep.subr.bf16.mxu0 %v3031_v36 }
  0x59   :  { %1721 = vperm.xlu0 %2259, %v1688_v3  }
  0x5a   :  { %742 = vmatmul.mubr.bf16.gmra.mrb[28].mxu0 %v369_v16  ;;  %1724 = vperm.xlu1 %2260, %v1689_v4  }
  0x5b   :  { %751 = vmatprep.mubr.bf16.mxu0 %v2661_v2  ;;  %1078 = vmatpush1.bf16.msra.mxu0 %v3044_v39 }
  0x5c   :  { %659 = vmatmul.mubr.bf16.gmra.mrb[24].mxu1 %v372_v40  ;;  %1079 = vmatprep.subr.bf16.mxu0 %v3063_v44 }
  0x5d   :  { %668 = vmatprep.mubr.bf16.mxu1 %v2661_v2  ;;  %1727 = vperm.xlu0 %2259, %v1690_v8  }
  0x5e   :  { %1730 = vperm.xlu1 %2260, %v1691_v7  }
  0x5f   :  { %1080 = vmatpush1.bf16.msra.mxu0 %v3068_v45 }
  0x61   :  { %1733 = vperm.xlu0 %2259, %v1692_v12  }
  0x62   :  { %752 = vmatmul.mubr.bf16.gmra.mrb[32].mxu0 %v370_v26  ;;  %1736 = vperm.xlu1 %2260, %v1693_v11  }
  0x63   :  { %761 = vmatprep.mubr.bf16.mxu0 %v2661_v2 }
  0x64   :  { %669 = vmatmul.mubr.bf16.gmra.mrb[28].mxu1 %v373_v43 }
  0x65   :  { %984 = vmatprep.mubr.bf16.mxu1 %v2661_v2  ;;  %1739 = vperm.xlu0 %2259, %v1694_v14  }
  0x66   :  { %1742 = vperm.xlu1 %2260, %v1695_v13  }
  0x6a   :  { %762 = vmatmul.mubr.bf16.gmra.mrb[36].mxu0 %v371_v33 }
  0x6b   :  { %771 = vmatprep.mubr.bf16.mxu0 %v2661_v2 }
  0x72   :  { %772 = vmatmul.mubr.bf16.gmra.mrb[40].mxu0 %v372_v40 }
  0x73   :  { %781 = vmatprep.mubr.bf16.mxu0 %v2661_v2 }
  0x7a   :  { %782 = vmatmul.mubr.bf16.gmra.mrb[44].mxu0 %v373_v43 }
  0x7b   :  { %1097 = vmatprep.mubr.bf16.mxu0 %v2661_v2 }
  0xf5   :  { %v2161_v16 = vpop.f32.mrb[0].mxu0 }
  0xf6   :  { %v180_v18 = vpop.f32.mrb[1].mxu0 }
  0xf7   :  { %v2162_v19 = vpop.f32.mrb[2].mxu0 }
  0xf8   :  { %v327_v22 = vpack.c.bf16 %v2162_v19, %v2161_v16  ;;  %v183_v23 = vpop.f32.mrb[3].mxu0 }
  0xf9   :  { %v326_v24 = vpack.c.bf16 %v183_v23, %v180_v18 }
  0xfb   :  { %985 = vmatmul.mubr.bf16.vlgmr.msra.gmra.mrb[0].mxu1 %v326_v24  ;;  %1098 = vmatmul.mubr.bf16.vlgmr.msra.gmra.mrb[16].mxu0 %v326_v24 }
  0xfc   :  { %2183 = vmatpush1.bf16.msra.mxu1 %v2937_v15  ;;  %994 = vmatprep.mubr.bf16.mxu1 %v2661_v2 }
  0xfd   :  { %v2165_v26 = vpop.f32.mrb[4].mxu0  ;;  %2176 = vmatprep.subr.bf16.mxu1 %v2942_v17  ;;  %1107 = vmatprep.mubr.bf16.mxu0 %v2661_v2 }
  0xfe   :  { %v196_v30 = vpop.f32.mrb[5].mxu0 }
  0xff   :  { %v2166_v31 = vpop.f32.mrb[6].mxu0 }
 0x100   :  { %2184 = vmatpush1.bf16.msra.mxu1 %v2956_v20  ;;  %v329_v33 = vpack.c.bf16 %v2166_v31, %v2165_v26  ;;  %v199_v37 = vpop.f32.mrb[7].mxu0 }
 0x101   :  { %v328_v38 = vpack.c.bf16 %v199_v37, %v196_v30  ;;  %2177 = vmatprep.subr.bf16.mxu1 %v2962_v21 }
 0x103   :  { %995 = vmatmul.mubr.bf16.gmra.mrb[4].mxu1 %v327_v22  ;;  %1108 = vmatmul.mubr.bf16.gmra.mrb[20].mxu0 %v327_v22 }
 0x104   :  { %1004 = vmatprep.mubr.bf16.mxu1 %v2661_v2  ;;  %1117 = vmatprep.mubr.bf16.mxu0 %v2661_v2 }
 0x105   :  { %2185 = vmatpush1.bf16.msra.mxu1 %v2978_v25  ;;  %v2169_v15 = vpop.f32.mrb[8].mxu0 }
 0x106   :  { %2178 = vmatprep.subr.bf16.mxu1 %v2984_v27  ;;  %v212_v17 = vpop.f32.mrb[9].mxu0 }
 0x107   :  { %v2170_v40 = vpop.f32.mrb[10].mxu0 }
 0x108   :  { %v331_v41 = vpack.c.bf16 %v2170_v40, %v2169_v15  ;;  %v215_v20 = vpop.f32.mrb[11].mxu0 }
 0x109   :  { %2186 = vmatpush1.bf16.msra.mxu1 %v2992_v28  ;;  %v330_v42 = vpack.c.bf16 %v215_v20, %v212_v17 }
 0x10a   :  { %2179 = vmatprep.subr.bf16.mxu1 %v2998_v29 }
 0x10b   :  { %1005 = vmatmul.mubr.bf16.gmra.mrb[8].mxu1 %v328_v38  ;;  %1118 = vmatmul.mubr.bf16.gmra.mrb[24].mxu0 %v328_v38 }
 0x10c   :  { %1014 = vmatprep.mubr.bf16.mxu1 %v2661_v2  ;;  %1127 = vmatprep.mubr.bf16.mxu0 %v2661_v2 }
 0x10d   :  { %2187 = vmatpush1.bf16.msra.mxu1 %v3011_v32  ;;  %v2173_v21 = vpop.f32.mrb[12].mxu0 }
 0x10e   :  { %2180 = vmatprep.subr.bf16.mxu1 %v3017_v34  ;;  %v228_v25 = vpop.f32.mrb[13].mxu0 }
 0x10f   :  { %v2174_v27 = vpop.f32.mrb[14].mxu0 }
 0x110   :  { %v333_v43 = vpack.c.bf16 %v2174_v27, %v2173_v21  ;;  %v231_v46 = vpop.f32.mrb[15].mxu0 }
 0x111   :  { %2188 = vmatpush1.bf16.msra.mxu1 %v3025_v35  ;;  %v332_v28 = vpack.c.bf16 %v231_v46, %v228_v25 }
 0x112   :  { %2181 = vmatprep.subr.bf16.mxu1 %v3031_v36 }
 0x113   :  { %1015 = vmatmul.mubr.bf16.gmra.mrb[12].mxu1 %v329_v33  ;;  %1128 = vmatmul.mubr.bf16.gmra.mrb[28].mxu0 %v329_v33 }
 0x114   :  { %1024 = vmatprep.mubr.bf16.mxu1 %v2661_v2  ;;  %1137 = vmatprep.mubr.bf16.mxu0 %v2661_v2 }
 0x115   :  { %2189 = vmatpush1.bf16.msra.mxu1 %v3044_v39 }
 0x116   :  { %2182 = vmatprep.subr.bf16.mxu1 %v3063_v44 }
 0x119   :  { %2190 = vmatpush1.bf16.msra.mxu1 %v3068_v45 }
 0x11b   :  { %1025 = vmatmul.mubr.bf16.gmra.mrb[16].mxu1 %v330_v42  ;;  %1138 = vmatmul.mubr.bf16.gmra.mrb[32].mxu0 %v330_v42 }
 0x11c   :  { %1034 = vmatprep.mubr.bf16.mxu1 %v2661_v2  ;;  %1147 = vmatprep.mubr.bf16.mxu0 %v2661_v2 }
 0x123   :  { %1035 = vmatmul.mubr.bf16.gmra.mrb[20].mxu1 %v331_v41  ;;  %1148 = vmatmul.mubr.bf16.gmra.mrb[36].mxu0 %v331_v41 }
 0x124   :  { %1044 = vmatprep.mubr.bf16.mxu1 %v2661_v2 }
 0x12b   :  { %1045 = vmatmul.mubr.bf16.gmra.mrb[24].mxu1 %v332_v28 }
 0x12c   :  { %1054 = vmatprep.mubr.bf16.mxu1 %v2661_v2 }
 0x133   :  { %1055 = vmatmul.mubr.bf16.gmra.mrb[28].mxu1 %v333_v43 }
 0x134   :  { %1157 = vmatprep.mubr.bf16.mxu1 %v2661_v2 }
 0x13b   :  { %1158 = vmatmul.mubr.bf16.vlgmr.msra.gmra.mrb[32].mxu1 %v332_v28 }
 0x13c   :  { %1167 = vmatprep.mubr.bf16.mxu1 %v2661_v2  ;;  %v1182_v2 = vsub.s32 0, %v1181_v48 }
 0x13e   :  { %v3185_v53 = vrot.slane %v1178_v50, %v1182_v2 }
 0x143   :  { %1168 = vmatmul.mubr.bf16.gmra.mrb[36].mxu1 %v333_v43 }
 0x145   :  { %v3166_v29 = vpop.f32.mrb[40].mxu0 }
 0x146   :  { %v3168_v32 = vpop.f32.mrb[41].mxu0 }
 0x147   :  { %v3170_v34 = vpop.f32.mrb[42].mxu0 }
 0x148   :  { %v3172_v35 = vpop.f32.mrb[43].mxu0 }
 0x14d   :  { %v3174_v36 = vpop.f32.mrb[44].mxu0 }
 0x14e   :  { %v3176_v39 = vpop.f32.mrb[45].mxu0 }
 0x14f   :  { %v3178_v44 = vpop.f32.mrb[46].mxu0 }
 0x150   :  { %v3180_v45 = vpop.f32.mrb[47].mxu0 }
 0x1ce   :  { %v986_v57 = vpop.f32.mrb[0].mxu1  ;;  %v1099_v58 = vpop.f32.mrb[16].mxu0 }
 0x1cf   :  { %v1200_v59 = vadd.f32 %v3185_v53, %v986_v57  ;;  %v1202_v60 = vadd.f32 %v3187_v54, %v1099_v58  ;;  %v988_v61 = vpop.f32.mrb[1].mxu1  ;;  %v1101_v62 = vpop.f32.mrb[17].mxu0 }
 0x1d0   :  { %v1201_v63 = vadd.f32 %v3189_v55, %v988_v61  ;;  %v1203_v0 = vadd.f32 %v3191_v56, %v1101_v62  ;;  %v990_v1 = vpop.f32.mrb[2].mxu1  ;;  %v1103_v3 = vpop.f32.mrb[18].mxu0 }
 0x1d1   :  { %v2000_v4 = vmul.f32 -1.442695, %v1200_v59  ;;  %2365 = vtanh.f32 %v1202_v60  ;;  %v1204_v5 = vadd.f32 %v3185_v53, %v990_v1  ;;  %v992_v6 = vpop.f32.mrb[3].mxu1  ;;  %v1105_v7 = vpop.f32.mrb[19].mxu0  ;;  %v1206_v13 = vadd.f32 %v3187_v54, %v1103_v3 }
 0x1d2   :  { %v2016_v8 = vmul.f32 -1.442695, %v1201_v63  ;;  %v2032_v9 = vmul.f32 -1.442695, %v1203_v0  ;;  %v1205_v10 = vadd.f32 %v3189_v55, %v992_v6  ;;  %v1207_v11 = vadd.f32 %v3191_v56, %v1105_v7 }
 0x1d3   :  { %2367 = vpow2.f32 %v2000_v4  ;;  %v2001_v12 = vmul.f32 -1.442695, %v1204_v5 }
 0x1d4   :  { %2369 = vpow2.f32 %v2016_v8  ;;  %v2017_v14 = vmul.f32 -1.442695, %v1205_v10  ;;  %v2033_v16 = vmul.f32 -1.442695, %v1207_v11  ;;  %v3216_v11 = vpop.permute.xlu0 %1697 }
 0x1d5   :  { %2371 = vpow2.f32 %v2032_v9  ;;  %vm1744_vm0 = vcmp.eq.s32.totalorder %v3216_v11, 1 }
 0x1d6   :  { %2373 = vpow2.f32 %v2001_v12  ;;  %v996_v18 = vpop.f32.mrb[4].mxu1  ;;  %v1109_v19 = vpop.f32.mrb[20].mxu0 }
 0x1d7   :  { %2375 = vtanh.f32 %v1206_v13  ;;  %v1208_v22 = vadd.f32 %v3185_v53, %v996_v18  ;;  %v1210_v23 = vadd.f32 %v3187_v54, %v1109_v19  ;;  %v998_v24 = vpop.f32.mrb[5].mxu1  ;;  %v1111_v26 = vpop.f32.mrb[21].mxu0 }
 0x1d8   :  { %2377 = vpow2.f32 %v2017_v14  ;;  %v1209_v30 = vadd.f32 %v3189_v55, %v998_v24  ;;  %v1211_v31 = vadd.f32 %v3191_v56, %v1111_v26  ;;  %v1000_v33 = vpop.f32.mrb[6].mxu1  ;;  %v1113_v37 = vpop.f32.mrb[22].mxu0 }
 0x1d9   :  { %2379 = vpow2.f32 %v2033_v16  ;;  %v2002_v38 = vmul.f32 -1.442695, %v1208_v22  ;;  %v1212_v15 = vadd.f32 %v3185_v53, %v1000_v33  ;;  %v1002_v17 = vpop.f32.mrb[7].mxu1  ;;  %v1115_v40 = vpop.f32.mrb[23].mxu0  ;;  %v1214_v25 = vadd.f32 %v3187_v54, %v1113_v37 }
 0x1da   :  { %2381 = vtanh.f32 %v1210_v23  ;;  %v2018_v41 = vmul.f32 -1.442695, %v1209_v30  ;;  %v2034_v20 = vmul.f32 -1.442695, %v1211_v31  ;;  %v1213_v27 = vadd.f32 %v3189_v55, %v1002_v17 }
 0x1db   :  { %v3206_v42 = vpop.eup %2365  ;;  %2383 = vpow2.f32 %v2002_v38  ;;  %v2003_v21 = vmul.f32 -1.442695, %v1212_v15  ;;  %v1215_v50 = vadd.f32 %v3191_v56, %v1115_v40 }
 0x1dc   :  { %2385 = vpow2.f32 %v2018_v41  ;;  %v2019_v59 = vmul.f32 -1.442695, %v1213_v27 }
 0x1dd   :  { %v2368_v43 = vpop.eup %2367  ;;  %2387 = vpow2.f32 %v2034_v20  ;;  %v2035_v6 = vmul.f32 -1.442695, %v1215_v50 }
 0x1de   :  { %v2370_v46 = vpop.eup %2369  ;;  %v1312_v28 = vadd.f32 1.0, %v2368_v43  ;;  %2389 = vpow2.f32 %v2003_v21  ;;  %v1006_v47 = vpop.f32.mrb[8].mxu1 }
 0x1df   :  { %v1119_v48 = vpop.f32.mrb[24].mxu0  ;;  %v2372_v2 = vpop.eup %2371  ;;  %v1408_v49 = vadd.f32 1.0, %v2370_v46  ;;  %2391 = vtanh.f32 %v1214_v25  ;;  %v1216_v9 = vadd.f32 %v3185_v53, %v1006_v47  ;;  %v294_v25 = vld [vmem:[%s3780_s4] sm:$0xff] }
 0x1e0   :  { %v1008_v51 = vpop.f32.mrb[9].mxu1  ;;  %v1121_v52 = vpop.f32.mrb[25].mxu0  ;;  %2393 = vrcp.f32 %v1312_v28  ;;  %v1520_v58 = vadd.f32 1.0, %v2372_v2  ;;  %v1218_v41 = vadd.f32 %v3187_v54, %v1119_v48 }
 0x1e1   :  { %v2374_v57 = vpop.eup %2373  ;;  %v1010_v60 = vpop.f32.mrb[10].mxu1  ;;  %2395 = vrcp.f32 %v1408_v49  ;;  %v1217_v14 = vadd.f32 %v3189_v55, %v1008_v51  ;;  %v1219_v23 = vadd.f32 %v3191_v56, %v1121_v52  ;;  %v2004_v33 = vmul.f32 -1.442695, %v1216_v9 }
 0x1e2   :  { %v1123_v61 = vpop.f32.mrb[26].mxu0  ;;  %v3211_v62 = vpop.eup %2375  ;;  %v1313_v63 = vadd.f32 1.0, %v2374_v57  ;;  %2397 = vrcp.f32 %v1520_v58  ;;  %v1220_v37 = vadd.f32 %v3185_v53, %v1010_v60 }
 0x1e3   :  { %v1012_v0 = vpop.f32.mrb[11].mxu1  ;;  %v1125_v1 = vpop.f32.mrb[27].mxu0  ;;  %v2020_v43 = vmul.f32 -1.442695, %v1217_v14  ;;  %v2036_v28 = vmul.f32 -1.442695, %v1219_v23  ;;  %v1222_v52 = vadd.f32 %v3187_v54, %v1123_v61 }
 0x1e4   :  { %v2378_v3 = vpop.eup %2377  ;;  %2399 = vrcp.f32 %v1313_v63  ;;  %v1221_v47 = vadd.f32 %v3189_v55, %v1012_v0  ;;  %v2005_v48 = vmul.f32 -1.442695, %v1220_v37  ;;  %v1223_v57 = vadd.f32 %v3191_v56, %v1125_v1  ;;  %v3246_v58 = vpop.permute.xlu0 %1700 }
 0x1e5   :  { %v2380_v4 = vpop.eup %2379  ;;  %v1409_v5 = vadd.f32 1.0, %v2378_v3  ;;  %2401 = vpow2.f32 %v2019_v59  ;;  %vm1745_vm1 = vcmp.eq.s32.totalorder %v3246_v58, 1 }
 0x1e6   :  { %v3213_v7 = vpop.eup %2381  ;;  %v1521_v8 = vadd.f32 1.0, %v2380_v4  ;;  %v1016_v16 = vpop.f32.mrb[12].mxu1 }
 0x1e7   :  { %v2384_v10 = vpop.eup %2383  ;;  %2403 = vrcp.f32 %v1409_v5  ;;  %v3219_v18 = vpop.f32.mrb[28].mxu0  ;;  %v1224_v60 = vadd.f32 %v3185_v53, %v1016_v16  ;;  %v2021_v5 = vmul.f32 -1.442695, %v1221_v47  ;;  %v2037_v16 = vmul.f32 -1.442695, %v1223_v57 }
 0x1e8   :  { %v2386_v12 = vpop.eup %2385  ;;  %2405 = vrcp.f32 %v1521_v8  ;;  %v1314_v13 = vadd.f32 1.0, %v2384_v10  ;;  %v1018_v24 = vpop.f32.mrb[13].mxu1 }
 0x1e9   :  { %v2388_v19 = vpop.eup %2387  ;;  %v1410_v22 = vadd.f32 1.0, %v2386_v12  ;;  %2407 = vpow2.f32 %v2035_v6  ;;  %v3222_v26 = vpop.f32.mrb[29].mxu0  ;;  %v1225_v10 = vadd.f32 %v3189_v55, %v1018_v24  ;;  %v296_v24 = vld [vmem:[%s3780_s4 + $0x10] sm:$0xff] }
 0x1ea   :  { %v2390_v30 = vpop.eup %2389  ;;  %2409 = vrcp.f32 %v1314_v13  ;;  %v1522_v31 = vadd.f32 1.0, %v2388_v19  ;;  %v3225_v38 = vpop.f32.mrb[14].mxu1  ;;  %v1227_v37 = vadd.f32 %v3191_v56, %v3222_v26 }
 0x1eb   :  { %v3227_v15 = vpop.f32.mrb[30].mxu0  ;;  %v3229_v17 = vpop.eup %2391  ;;  %2411 = vrcp.f32 %v1410_v22  ;;  %v1315_v40 = vadd.f32 1.0, %v2390_v30 }
 0x1ec   :  { %v3232_v20 = vpop.f32.mrb[15].mxu1  ;;  %v3234_v21 = vpop.f32.mrb[31].mxu0  ;;  %2413 = vrcp.f32 %v1522_v31 }
 0x1ed   :  { %v2394_v27 = vpop.eup %2393  ;;  %2415 = vrcp.f32 %v1315_v40 }
 0x1ee   :  { %v2396_v46 = vpop.eup %2395  ;;  %2417 = vpow2.f32 %v2004_v33  ;;  %v1584_v50 = vmul.f32 %v2394_v27, %v3206_v42  ;;  %v3251_v0 = vpop.f32.mrb[16].mxu1  ;;  %v295_v42 = vld [vmem:[%s3780_s4 + $0x8] sm:$0xff]  ;;  %v2006_v33 = vmul.f32 -1.442695, %v1224_v60 }
 0x1ef   :  { %v3240_v2 = vpop.eup %2397  ;;  %v1568_v49 = vmul.f32 %v2396_v46, %v294_v25  ;;  %2419 = vtanh.f32 %v1218_v41  ;;  %v3253_v3 = vpop.f32.mrb[32].mxu0  ;;  %v1226_v41 = vadd.f32 %v3187_v54, %v3219_v18 }
 0x1f0   :  { %v2400_v51 = vpop.eup %2399  ;;  %2421 = vpow2.f32 %v2020_v43  ;;  %v3259_v6 = vpop.f32.mrb[17].mxu1  ;;  %v2022_v43 = vmul.f32 -1.442695, %v1225_v10 }
 0x1f1   :  { %v2402_v59 = vpop.eup %2401  ;;  %v3249_v63 = vadd.f32 %v1584_v50, %v1568_v49  ;;  %v1585_v61 = vmul.f32 %v2400_v51, %v3211_v62  ;;  %2423 = vpow2.f32 %v2036_v28  ;;  %v3261_v8 = vpop.f32.mrb[33].mxu0  ;;  %v2038_v49 = vmul.f32 -1.442695, %v1227_v37 }
 0x1f2   :  { %v2404_v1 = vpop.eup %2403  ;;  %v1411_v4 = vadd.f32 1.0, %v2402_v59  ;;  %2425 = vpow2.f32 %v2005_v48  ;;  %v3269_v13 = vpop.f32.mrb[18].mxu1  ;;  %v1228_v50 = vadd.f32 %v3185_v53, %v3225_v38 }
 0x1f3   :  { %v3263_v9 = vpop.eup %2405  ;;  %v1776_v12 = vsel %vm1744_vm0, %v294_v25, %v3249_v63  ;;  %v3271_v62 = vpop.f32.mrb[34].mxu0  ;;  %v1569_v19 = vmul.f32 %v2404_v1, %v295_v42 }
 0x1f4   :  { %v2408_v14 = vpop.eup %2407  ;;  %2427 = vrcp.f32 %v1411_v4  ;;  %1808 = vst [vmem:[#allocation3] sm:$0xff] %v1776_v12  ;;  %v3274_v22 = vpop.f32.mrb[19].mxu1 }
 0x1f5   :  { %v3276_v23 = vpop.f32.mrb[35].mxu0  ;;  %v2410_v30 = vpop.eup %2409  ;;  %v1523_v31 = vadd.f32 1.0, %v2408_v14  ;;  %2429 = vtanh.f32 %v1222_v52  ;;  %v3285_v25 = vadd.f32 %v1585_v61, %v1569_v19  ;;  %v1229_v14 = vadd.f32 %v3189_v55, %v3232_v20  ;;  %v297_v19 = vld [vmem:[%s3780_s4 + $0x18] sm:$0xff] }
 0x1f6   :  { %v2412_v40 = vpop.eup %2411  ;;  %2431 = vpow2.f32 %v2021_v5  ;;  %v3289_v46 = vpop.permute.xlu1 %1703  ;;  %v1586_v48 = vmul.f32 %v2410_v30, %v3213_v7 }
 0x1f7   :  { %v3287_v27 = vpop.eup %2413  ;;  %2433 = vrcp.f32 %v1523_v31  ;;  %v1570_v28 = vmul.f32 %v2412_v40, %v296_v24  ;;  %v1777_v26 = vsel %vm1745_vm1, %v295_v42, %v3285_v25  ;;  %vm1746_vm2 = vcmp.eq.s32.totalorder %v3289_v46, 1  ;;  %v1036_v51 = vpop.f32.mrb[20].mxu1 }
 0x1f8   :  { %v2416_v47 = vpop.eup %2415  ;;  %2435 = vpow2.f32 %v2037_v16  ;;  %1809 = vst [vmem:[#allocation3 + $0x8] sm:$0xff] %v1777_v26  ;;  %v3298_v52 = vpop.f32.mrb[36].mxu0  ;;  %v3306_v7 = vadd.f32 %v3185_v53, %v1036_v51  ;;  %v2007_v40 = vmul.f32 -1.442695, %v1228_v50 }
 0x1f9   :  { %v2418_v18 = vpop.eup %2417  ;;  %2437 = vpow2.f32 %v2006_v33  ;;  %v1587_v57 = vmul.f32 %v2416_v47, %v3229_v17  ;;  %v3303_v42 = vadd.f32 %v1586_v48, %v1570_v28  ;;  %v1038_v61 = vpop.f32.mrb[21].mxu1  ;;  %v1231_v28 = vadd.f32 %v3191_v56, %v3234_v21 }
 0x1fa   :  { %v3301_v59 = vpop.eup %2419  ;;  %v1316_v60 = vadd.f32 1.0, %v2418_v18  ;;  %2439 = vtanh.f32 %v1226_v41  ;;  %v3308_v1 = vpop.f32.mrb[37].mxu0  ;;  %v3311_v38 = vadd.f32 %v3189_v55, %v1038_v61  ;;  %v1230_v41 = vadd.f32 %v3187_v54, %v3227_v15 }
 0x1fb   :  { %v2422_v4 = vpop.eup %2421  ;;  %2441 = vpow2.f32 %v2022_v43  ;;  %v1040_v5 = vpop.f32.mrb[22].mxu1  ;;  %v1778_v16 = vsel %vm1746_vm2, %v296_v24, %v3303_v42 }
 0x1fc   :  { %v3313_v10 = vpop.f32.mrb[38].mxu0  ;;  %v2424_v17 = vpop.eup %2423  ;;  %2443 = vrcp.f32 %v1316_v60  ;;  %v1412_v12 = vadd.f32 1.0, %v2422_v4  ;;  %1810 = vst [vmem:[#allocation3 + $0x10] sm:$0xff] %v1778_v16  ;;  %v3332_v47 = vadd.f32 %v3185_v53, %v1040_v5  ;;  %v2039_v4 = vmul.f32 -1.442695, %v1231_v28 }
 0x1fd   :  { %v1042_v30 = vpop.f32.mrb[23].mxu1  ;;  %v3323_v31 = vpop.f32.mrb[39].mxu0  ;;  %v1524_v37 = vadd.f32 1.0, %v2424_v17  ;;  %2445 = vpow2.f32 %v2038_v49  ;;  %v2023_v49 = vmul.f32 -1.442695, %v1229_v14  ;;  %v1232_v5 = vadd.f32 %v3185_v53, %v3251_v0 }
 0x1fe   :  { %v2426_v33 = vpop.eup %2425  ;;  %v3327_v20 = vpop.permute.xlu1 %1706  ;;  %2447 = vrcp.f32 %v1412_v12  ;;  %v3337_v18 = vadd.f32 %v3189_v55, %v1042_v30  ;;  %v1247_v58 = vadd.f32 %v3191_v56, %v3323_v31 }
 0x1ff   :  { %v2428_v43 = vpop.eup %2427  ;;  %v1317_v24 = vadd.f32 1.0, %v2426_v33  ;;  %2449 = vrcp.f32 %v1524_v37  ;;  %vm1747_vm3 = vcmp.eq.s32.totalorder %v3327_v20, 1  ;;  %v1046_v60 = vpop.f32.mrb[24].mxu1 }
 0x200   :  { %v3334_v26 = vpop.eup %2429  ;;  %v1571_v48 = vmul.f32 %v2428_v43, %v297_v19  ;;  %v3347_v17 = vadd.f32 %v3185_v53, %v1046_v60  ;;  %v1048_v12 = vpop.f32.mrb[25].mxu1 }
 0x201   :  { %v2432_v15 = vpop.eup %2431  ;;  %2451 = vrcp.f32 %v1317_v24  ;;  %v1050_v33 = vpop.f32.mrb[26].mxu1  ;;  %v1233_v24 = vadd.f32 %v3189_v55, %v3259_v6 }
 0x202   :  { %v3340_v50 = vpop.eup %2433  ;;  %v1413_v51 = vadd.f32 1.0, %v2432_v15  ;;  %2453 = vpow2.f32 %v2007_v40  ;;  %v3342_v21 = vadd.f32 %v1587_v57, %v1571_v48  ;;  %v3353_v57 = vadd.f32 %v3189_v55, %v1048_v12 }
 0x203   :  { %v2436_v61 = vpop.eup %2435  ;;  %2455 = vtanh.f32 %v1230_v41  ;;  %v3358_v0 = vadd.f32 %v3185_v53, %v1050_v33  ;;  %v1052_v41 = vpop.f32.mrb[27].mxu1  ;;  %v1235_v15 = vadd.f32 %v3191_v56, %v3261_v8  ;;  %v2024_v8 = vmul.f32 -1.442695, %v1233_v24 }
 0x204   :  { %v2438_v14 = vpop.eup %2437  ;;  %2457 = vrcp.f32 %v1413_v51  ;;  %v1525_v16 = vadd.f32 1.0, %v2436_v61  ;;  %v1779_v30 = vsel %vm1747_vm3, %v297_v19, %v3342_v21  ;;  %v3363_v19 = vadd.f32 %v3189_v55, %v1052_v41  ;;  %v298_v51 = vld [vmem:[%s3780_s4 + $0x20] sm:$0xff] }
 0x205   :  { %v3355_v37 = vpop.eup %2439  ;;  %v1318_v40 = vadd.f32 1.0, %v2438_v14  ;;  %2459 = vpow2.f32 %v2023_v49  ;;  %1811 = vst [vmem:[#allocation3 + $0x18] sm:$0xff] %v1779_v30  ;;  %v3367_v49 = vpop.permute.xlu0 %1709  ;;  %v2008_v61 = vmul.f32 -1.442695, %v1232_v5 }
 0x206   :  { %v2442_v43 = vpop.eup %2441  ;;  %2461 = vrcp.f32 %v1525_v16  ;;  %v1234_v16 = vadd.f32 %v3187_v54, %v3253_v3  ;;  %vm1748_vm4 = vcmp.eq.s32.totalorder %v3367_v49, 1 }
 0x207   :  { %v2444_v28 = vpop.eup %2443  ;;  %2463 = vrcp.f32 %v1318_v40  ;;  %v1414_v48 = vadd.f32 1.0, %v2442_v43  ;;  %v1056_v40 = vpop.f32.mrb[28].mxu1 }
 0x208   :  { %v2446_v60 = vpop.eup %2445  ;;  %2465 = vpow2.f32 %v2039_v4  ;;  %v1588_v6 = vmul.f32 %v2444_v28, %v3301_v59  ;;  %v2040_v4 = vmul.f32 -1.442695, %v1235_v15  ;;  %v1236_v59 = vadd.f32 %v3185_v53, %v3269_v13  ;;  %v1058_v43 = vpop.f32.mrb[29].mxu1 }
 0x209   :  { %v2448_v12 = vpop.eup %2447  ;;  %2467 = vrcp.f32 %v1414_v48  ;;  %v1526_v14 = vadd.f32 1.0, %v2446_v60  ;;  %v3382_v5 = vadd.f32 %v3185_v53, %v1056_v40  ;;  %v3391_v48 = vadd.f32 %v3189_v55, %v1058_v43  ;;  %v1060_v15 = vpop.f32.mrb[30].mxu1 }
 0x20a   :  { %v3375_v30 = vpop.eup %2449  ;;  %2469 = vtanh.f32 %v3249_v63  ;;  %v1572_v33 = vmul.f32 %v2448_v12, %v298_v51  ;;  %v299_v63 = vld [vmem:[%s3780_s4 + $0x28] sm:$0xff]  ;;  %v1237_v12 = vadd.f32 %v3189_v55, %v3274_v22  ;;  %v2009_v22 = vmul.f32 -1.442695, %v1236_v59 }
 0x20b   :  { %v2452_v41 = vpop.eup %2451  ;;  %2471 = vrcp.f32 %v1526_v14  ;;  %v1062_v14 = vpop.f32.mrb[31].mxu1 }
 0x20c   :  { %v2454_v3 = vpop.eup %2453  ;;  %2473 = vpow2.f32 %v2008_v61  ;;  %v3384_v28 = vadd.f32 %v1588_v6, %v1572_v33  ;;  %v1589_v24 = vmul.f32 %v2452_v41, %v3334_v26  ;;  %v3397_v61 = vpop.permute.xlu1 %1712  ;;  %v3400_v6 = vadd.f32 %v3185_v53, %v1060_v15 }
 0x20d   :  { %v3393_v60 = vpop.eup %2455  ;;  %v1319_v13 = vadd.f32 1.0, %v2454_v3  ;;  %2475 = vtanh.f32 %v1234_v16  ;;  %v1239_v26 = vadd.f32 %v3191_v56, %v3276_v23  ;;  %v3408_v16 = vadd.f32 %v3189_v55, %v1062_v14  ;;  %v300_v55 = vld [vmem:[%s3780_s4 + $0x30] sm:$0xff]  ;;  %v3421_v14 = vpop.permute.xlu0 %1715 }
 0x20e   :  { %v2458_v33 = vpop.eup %2457  ;;  %2477 = vpow2.f32 %v2024_v8  ;;  %v1780_v40 = vsel %vm1748_vm4, %v298_v51, %v3384_v28  ;;  %v1238_v8 = vadd.f32 %v3187_v54, %v3271_v62  ;;  %vm1749_vm5 = vcmp.eq.s32.totalorder %v3397_v61, 1  ;;  %v1159_v62 = vpop.f32.mrb[32].mxu1 }
 0x20f   :  { %v2460_v41 = vpop.eup %2459  ;;  %2479 = vrcp.f32 %v1319_v13  ;;  %1812 = vst [vmem:[#allocation3 + $0x20] sm:$0xff] %v1780_v40  ;;  %v1573_v43 = vmul.f32 %v2458_v33, %v299_v63  ;;  %v2025_v15 = vmul.f32 -1.442695, %v1237_v12  ;;  %v2041_v13 = vmul.f32 -1.442695, %v1239_v26 }
 0x210   :  { %v3410_v53 = vpop.eup %2461  ;;  %v1415_v3 = vadd.f32 1.0, %v2460_v41  ;;  %2481 = vpow2.f32 %v2040_v4  ;;  %v1161_v41 = vpop.f32.mrb[33].mxu1  ;;  %vm1750_vm6 = vcmp.eq.s32.totalorder %v3421_v14, 1 }
 0x211   :  { %v2464_v23 = vpop.eup %2463  ;;  %2483 = vtanh.f32 %v3285_v25  ;;  %v3416_v51 = vadd.f32 %v1589_v24, %v1573_v43  ;;  %v3428_v24 = vadd.f32 %v1159_v62, %v3166_v29  ;;  %v3431_v26 = vadd.f32 %v1161_v41, %v3168_v32 }
 0x212   :  { %v2466_v59 = vpop.eup %2465  ;;  %2485 = vrcp.f32 %v1415_v3  ;;  %v1590_v4 = vmul.f32 %v2464_v23, %v3355_v37  ;;  %v1163_v37 = vpop.f32.mrb[34].mxu1 }
 0x213   :  { %v2468_v33 = vpop.eup %2467  ;;  %v1527_v40 = vadd.f32 1.0, %v2466_v59  ;;  %2487 = vpow2.f32 %v2009_v22  ;;  %v1781_v25 = vsel %vm1749_vm5, %v299_v63, %v3416_v51  ;;  %v3438_v63 = vadd.f32 %v1163_v37, %v3170_v34  ;;  %v1165_v29 = vpop.f32.mrb[35].mxu1 }
 0x214   :  { %v2470_v43 = vpop.eup %2469  ;;  %2489 = vtanh.f32 %v1238_v8  ;;  %1813 = vst [vmem:[#allocation3 + $0x28] sm:$0xff] %v1781_v25  ;;  %v1574_v12 = vmul.f32 %v2468_v33, %v300_v55  ;;  %v2010_v8 = vmul.f32 -1.442695, %v3306_v7  ;;  %v3444_v32 = vadd.f32 %v1165_v29, %v3172_v35  ;;  %v3465_v25 = vpop.permute.xlu1 %1718 }
 0x215   :  { %v3433_v3 = vpop.eup %2471  ;;  %2491 = vrcp.f32 %v1527_v40  ;;  %v1632_v22 = vmul.f32 %v2470_v43, %v3240_v2  ;;  %v2621_v2 = vld [vmem:[%s3779_s3] sm:$0xff]  ;;  %v1242_v35 = vadd.f32 %v3187_v54, %v3298_v52  ;;  %vm1751_vm7 = vcmp.eq.s32.totalorder %v3465_v25, 1 }
 0x216   :  { %v2474_v23 = vpop.eup %2473  ;;  %2493 = vpow2.f32 %v2025_v15  ;;  %v3441_v59 = vadd.f32 %v1590_v4, %v1574_v12  ;;  %v1243_v15 = vadd.f32 %v3191_v56, %v3308_v1  ;;  %v2026_v1 = vmul.f32 -1.442695, %v3311_v38  ;;  %v1169_v41 = vpop.f32.mrb[36].mxu1  ;;  %v306_v25 = vld [vmem:[%s3780_s4 + $0x60] sm:$0xff] }
 0x217   :  { %v3446_v62 = vpop.eup %2475  ;;  %v1760_v34 = vsel %vm1744_vm0, %v2621_v2, %v1632_v22  ;;  %v1320_v33 = vadd.f32 1.0, %v2474_v23  ;;  %2495 = vpow2.f32 %v2041_v13  ;;  %v3472_v37 = vadd.f32 %v1169_v41, %v3174_v36  ;;  %v1171_v22 = vpop.f32.mrb[37].mxu1 }
 0x218   :  { %v2478_v7 = vpop.eup %2477  ;;  %1792 = vst [vmem:[%s3784_s8] sm:$0xff] %v1760_v34  ;;  %2497 = vtanh.f32 %v3303_v42  ;;  %v1782_v11 = vsel %vm1750_vm6, %v300_v55, %v3441_v59  ;;  %v301_v42 = vld [vmem:[%s3780_s4 + $0x38] sm:$0xff]  ;;  %v2042_v12 = vmul.f32 -1.442695, %v1243_v15  ;;  %v3476_v23 = vadd.f32 %v1171_v22, %v3176_v39  ;;  %v3516_v22 = vpop.permute.xlu0 %1721 }
 0x219   :  { %v2480_v4 = vpop.eup %2479  ;;  %2499 = vrcp.f32 %v1320_v33  ;;  %v1416_v13 = vadd.f32 1.0, %v2478_v7  ;;  %1814 = vst [vmem:[#allocation3 + $0x30] sm:$0xff] %v1782_v11  ;;  %vm1752_vm8 = vcmp.eq.s32.totalorder %v3516_v22, 1  ;;  %v1251_v49 = vadd.f32 %v3191_v56, %v3431_v26  ;;  %v307_v22 = vld [vmem:[%s3780_s4 + $0x68] sm:$0xff] }
 0x21a   :  { %v2482_v40 = vpop.eup %2481  ;;  %2501 = vpow2.f32 %v2010_v8  ;;  %v1591_v52 = vmul.f32 %v2480_v4, %v3393_v60  ;;  %v1173_v8 = vpop.f32.mrb[38].mxu1 }
 0x21b   :  { %v2484_v43 = vpop.eup %2483  ;;  %2503 = vrcp.f32 %v1416_v13  ;;  %v1528_v55 = vadd.f32 1.0, %v2482_v40  ;;  %v3480_v33 = vadd.f32 %v1173_v8, %v3178_v44  ;;  %v1175_v15 = vpop.f32.mrb[39].mxu1  ;;  %v2044_v61 = vmul.f32 -1.442695, %v1251_v49 }
 0x21c   :  { %v2486_v29 = vpop.eup %2485  ;;  %v1633_v38 = vmul.f32 %v2484_v43, %v3263_v9  ;;  %2505 = vtanh.f32 %v1242_v35  ;;  %v2622_v9 = vld [vmem:[%s3779_s3 + $0x8] sm:$0xff]  ;;  %v2011_v35 = vmul.f32 -1.442695, %v3332_v47  ;;  %v3500_v40 = vadd.f32 %v1175_v15, %v3180_v45 }
 0x21d   :  { %v2488_v2 = vpop.eup %2487  ;;  %2507 = vrcp.f32 %v1528_v55  ;;  %v1575_v60 = vmul.f32 %v2486_v29, %v301_v42  ;;  %v2027_v45 = vmul.f32 -1.442695, %v3337_v18  ;;  %v2623_v18 = vld [vmem:[%s3779_s3 + $0x10] sm:$0xff] }
 0x21e   :  { %v3482_v36 = vpop.eup %2489  ;;  %v1761_v39 = vsel %vm1745_vm1, %v2622_v9, %v1633_v38  ;;  %v1321_v7 = vadd.f32 1.0, %v2488_v2  ;;  %2509 = vpow2.f32 %v2026_v1  ;;  %v2012_v2 = vmul.f32 -1.442695, %v3347_v17 }
 0x21f   :  { %v3490_v11 = vpop.eup %2491  ;;  %1793 = vst [vmem:[%s3784_s8 + $0x8] sm:$0xff] %v1761_v39  ;;  %v2083_v44 = vpack.c.bf16 %v1761_v39, %v1760_v34  ;;  %2511 = vpow2.f32 %v2042_v12  ;;  %v3495_v4 = vadd.f32 %v1591_v52, %v1575_v60  ;;  %v1246_v34 = vadd.f32 %v3187_v54, %v3313_v10 }
 0x220   :  { %v2494_v13 = vpop.eup %2493  ;;  %2513 = vrcp.f32 %v1321_v7  ;;  %v2043_v10 = vmul.f32 -1.442695, %v1247_v58  ;;  %v2028_v7 = vmul.f32 -1.442695, %v3353_v57  ;;  %v303_v58 = vld [vmem:[%s3780_s4 + $0x48] sm:$0xff] }
 0x221   :  { %v2496_v1 = vpop.eup %2495  ;;  %2084 = vst [vmem:[%s3786_s10] sm:$0xff] %v2083_v44   ;;  %v1417_v47 = vadd.f32 1.0, %v2494_v13  ;;  %2515 = vtanh.f32 %v3342_v21  ;;  %v1783_v52 = vsel %vm1751_vm7, %v301_v42, %v3495_v4  ;;  %v302_v21 = vld [vmem:[%s3780_s4 + $0x40] sm:$0xff] }
 0x222   :  { %v2498_v41 = vpop.eup %2497  ;;  %v1529_v31 = vadd.f32 1.0, %v2496_v1  ;;  %2517 = vpow2.f32 %v2011_v35  ;;  %1815 = vst [vmem:[#allocation3 + $0x38] sm:$0xff] %v1783_v52 }
 0x223   :  { %v2500_v43 = vpop.eup %2499  ;;  %2519 = vrcp.f32 %v1417_v47  ;;  %v1634_v55 = vmul.f32 %v2498_v41, %v3287_v27 }
 0x224   :  { %v2502_v12 = vpop.eup %2501  ;;  %2521 = vrcp.f32 %v1529_v31  ;;  %v1592_v42 = vmul.f32 %v2500_v43, %v3446_v62  ;;  %v2029_v31 = vmul.f32 -1.442695, %v3363_v19  ;;  %v2624_v43 = vld [vmem:[%s3779_s3 + $0x18] sm:$0xff] }
 0x225   :  { %v2504_v29 = vpop.eup %2503  ;;  %v1762_v38 = vsel %vm1746_vm2, %v2623_v18, %v1634_v55  ;;  %v1322_v27 = vadd.f32 1.0, %v2502_v12  ;;  %2523 = vtanh.f32 %v1246_v34  ;;  %v3544_v34 = vpop.permute.xlu1 %1724 }
 0x226   :  { %v2506_v8 = vpop.eup %2505  ;;  %1794 = vst [vmem:[%s3784_s8 + $0x10] sm:$0xff] %v1762_v38  ;;  %2525 = vpow2.f32 %v2027_v45  ;;  %v1576_v60 = vmul.f32 %v2504_v29, %v302_v21  ;;  %vm1753_vm9 = vcmp.eq.s32.totalorder %v3544_v34, 1 }
 0x227   :  { %v3528_v62 = vpop.eup %2507  ;;  %2527 = vrcp.f32 %v1322_v27  ;;  %v304_v27 = vld [vmem:[%s3780_s4 + $0x50] sm:$0xff] }
 0x228   :  { %v2510_v15 = vpop.eup %2509  ;;  %2529 = vpow2.f32 %v2043_v10  ;;  %v3531_v46 = vadd.f32 %v1592_v42, %v1576_v60  ;;  %v2030_v42 = vmul.f32 -1.442695, %v3391_v48 }
 0x229   :  { %v2512_v9 = vpop.eup %2511  ;;  %v1418_v39 = vadd.f32 1.0, %v2510_v15  ;;  %2531 = vtanh.f32 %v3384_v28  ;;  %v2013_v28 = vmul.f32 -1.442695, %v3358_v0  ;;  %v2015_v15 = vmul.f32 -1.442695, %v3400_v6 }
 0x22a   :  { %v2514_v35 = vpop.eup %2513  ;;  %v1530_v44 = vadd.f32 1.0, %v2512_v9  ;;  %2533 = vpow2.f32 %v2012_v2  ;;  %v1784_v17 = vsel %vm1752_vm8, %v302_v21, %v3531_v46  ;;  %v2014_v21 = vmul.f32 -1.442695, %v3382_v5 }
 0x22b   :  { %v2516_v13 = vpop.eup %2515  ;;  %2535 = vrcp.f32 %v1418_v39  ;;  %1816 = vst [vmem:[#allocation3 + $0x40] sm:$0xff] %v1784_v17  ;;  %v1593_v1 = vmul.f32 %v2514_v35, %v3482_v36  ;;  %v2031_v6 = vmul.f32 -1.442695, %v3408_v16 }
 0x22c   :  { %v2518_v47 = vpop.eup %2517  ;;  %2537 = vrcp.f32 %v1530_v44  ;;  %v1635_v57 = vmul.f32 %v2516_v13, %v3340_v50 }
 0x22d   :  { %v2520_v52 = vpop.eup %2519  ;;  %v1323_v41 = vadd.f32 1.0, %v2518_v47  ;;  %2539 = vpow2.f32 %v2028_v7  ;;  %v3582_v7 = vpop.permute.xlu0 %1727 }
 0x22e   :  { %v3547_v45 = vpop.eup %2521  ;;  %v1763_v36 = vsel %vm1747_vm3, %v2624_v43, %v1635_v57  ;;  %2541 = vtanh.f32 %v3416_v51  ;;  %v1577_v50 = vmul.f32 %v2520_v52, %v303_v58  ;;  %vm1754_vm10 = vcmp.eq.s32.totalorder %v3582_v7, 1 }
 0x22f   :  { %v2524_v0 = vpop.eup %2523  ;;  %1795 = vst [vmem:[%s3784_s8 + $0x18] sm:$0xff] %v1763_v36  ;;  %v2088_v55 = vpack.c.bf16 %v1763_v36, %v1762_v38  ;;  %2543 = vrcp.f32 %v1323_v41  ;;  %v305_v41 = vld [vmem:[%s3780_s4 + $0x58] sm:$0xff] }
 0x230   :  { %v2526_v19 = vpop.eup %2525  ;;  %2545 = vpow2.f32 %v2013_v28  ;;  %v3560_v12 = vadd.f32 %v1593_v1, %v1577_v50 }
 0x231   :  { %v2528_v20 = vpop.eup %2527  ;;  %2120 = vst [vmem:[%s3786_s10 + $0x8] sm:$0xff] %v2088_v55   ;;  %v1419_v51 = vadd.f32 1.0, %v2526_v19  ;;  %2547 = vpow2.f32 %v2029_v31  ;;  %v3618_v19 = vpop.permute.xlu1 %1730 }
 0x232   :  { %v2530_v10 = vpop.eup %2529  ;;  %2549 = vtanh.f32 %v3441_v59  ;;  %v1785_v29 = vsel %vm1753_vm9, %v303_v58, %v3560_v12  ;;  %v1594_v18 = vmul.f32 %v2528_v20, %v2506_v8  ;;  %v2625_v8 = vld [vmem:[%s3779_s3 + $0x20] sm:$0xff]  ;;  %vm1755_vm11 = vcmp.eq.s32.totalorder %v3618_v19, 1  ;;  %v2632_v19 = vld [vmem:[%s3779_s3 + $0x50] sm:$0xff] }
 0x233   :  { %v2532_v5 = vpop.eup %2531  ;;  %2551 = vrcp.f32 %v1419_v51  ;;  %v1531_v38 = vadd.f32 1.0, %v2530_v10  ;;  %1817 = vst [vmem:[#allocation3 + $0x48] sm:$0xff] %v1785_v29  ;;  %v1254_v10 = vadd.f32 %v3187_v54, %v3438_v63 }
 0x234   :  { %v2534_v2 = vpop.eup %2533  ;;  %v1636_v60 = vmul.f32 %v2532_v5, %v3375_v30  ;;  %2553 = vpow2.f32 %v2014_v21 }
 0x235   :  { %v2536_v59 = vpop.eup %2535  ;;  %2555 = vrcp.f32 %v1531_v38  ;;  %v1324_v48 = vadd.f32 1.0, %v2534_v2 }
 0x236   :  { %v3575_v9 = vpop.eup %2537  ;;  %v1764_v39 = vsel %vm1748_vm4, %v2625_v8, %v1636_v60  ;;  %2557 = vpow2.f32 %v2030_v42  ;;  %v1578_v35 = vmul.f32 %v2536_v59, %v304_v27  ;;  %v1259_v60 = vadd.f32 %v3191_v56, %v3476_v23 }
 0x237   :  { %v2540_v30 = vpop.eup %2539  ;;  %1796 = vst [vmem:[%s3784_s8 + $0x20] sm:$0xff] %v1764_v39  ;;  %2559 = vrcp.f32 %v1324_v48 }
 0x238   :  { %v2542_v44 = vpop.eup %2541  ;;  %v1420_v17 = vadd.f32 1.0, %v2540_v30  ;;  %2561 = vtanh.f32 %v3495_v4  ;;  %v3592_v13 = vadd.f32 %v1594_v18, %v1578_v35  ;;  %v2626_v4 = vld [vmem:[%s3779_s3 + $0x28] sm:$0xff] }
 0x239   :  { %v2544_v58 = vpop.eup %2543  ;;  %v1637_v1 = vmul.f32 %v2542_v44, %v3410_v53  ;;  %2563 = vpow2.f32 %v2015_v15  ;;  %v1250_v53 = vadd.f32 %v3187_v54, %v3428_v24  ;;  %v1255_v24 = vadd.f32 %v3191_v56, %v3444_v32  ;;  %v2628_v15 = vld [vmem:[%s3779_s3 + $0x38] sm:$0xff] }
 0x23a   :  { %v2546_v47 = vpop.eup %2545  ;;  %2565 = vrcp.f32 %v1420_v17  ;;  %v1595_v57 = vmul.f32 %v2544_v58, %v2524_v0  ;;  %v1786_v16 = vsel %vm1754_vm10, %v304_v27, %v3592_v13  ;;  %v1263_v44 = vadd.f32 %v3191_v56, %v3500_v40 }
 0x23b   :  { %v2548_v28 = vpop.eup %2547  ;;  %v1765_v26 = vsel %vm1749_vm5, %v2626_v4, %v1637_v1  ;;  %v1325_v52 = vadd.f32 1.0, %v2546_v47  ;;  %2567 = vpow2.f32 %v2031_v6  ;;  %1818 = vst [vmem:[#allocation3 + $0x50] sm:$0xff] %v1786_v16  ;;  %v2045_v5 = vmul.f32 -1.442695, %v1255_v24  ;;  %v3672_v16 = vpop.permute.xlu0 %1733 }
 0x23c   :  { %v2550_v31 = vpop.eup %2549  ;;  %1797 = vst [vmem:[%s3784_s8 + $0x28] sm:$0xff] %v1765_v26  ;;  %v2093_v43 = vpack.c.bf16 %v1765_v26, %v1764_v39  ;;  %v1421_v36 = vadd.f32 1.0, %v2548_v28  ;;  %2569 = vtanh.f32 %v3531_v46  ;;  %v2627_v46 = vld [vmem:[%s3779_s3 + $0x30] sm:$0xff]  ;;  %v1258_v39 = vadd.f32 %v3187_v54, %v3472_v37  ;;  %v3686_v24 = vpop.permute.xlu1 %1736 }
 0x23d   :  { %v2552_v50 = vpop.eup %2551  ;;  %2571 = vrcp.f32 %v1325_v52  ;;  %v1638_v0 = vmul.f32 %v2550_v31, %v3433_v3  ;;  %v2046_v6 = vmul.f32 -1.442695, %v1259_v60  ;;  %v1262_v37 = vadd.f32 %v3187_v54, %v3480_v33 }
 0x23e   :  { %v2554_v55 = vpop.eup %2553  ;;  %2121 = vst [vmem:[%s3786_s10 + $0x10] sm:$0xff] %v2093_v43   ;;  %2573 = vrcp.f32 %v1421_v36  ;;  %v1579_v21 = vmul.f32 %v2552_v50, %v305_v41  ;;  %v2047_v33 = vmul.f32 -1.442695, %v1263_v44  ;;  %vm1756_vm12 = vcmp.eq.s32.totalorder %v3672_v16, 1 }
 0x23f   :  { %v3620_v20 = vpop.eup %2555  ;;  %v1766_v3 = vsel %vm1750_vm6, %v2627_v46, %v1638_v0  ;;  %v1326_v51 = vadd.f32 1.0, %v2554_v55  ;;  %2575 = vtanh.f32 %v1250_v53  ;;  %vm1757_vm13 = vcmp.eq.s32.totalorder %v3686_v24, 1  ;;  %v308_v46 = vld [vmem:[%s3780_s4 + $0x70] sm:$0xff] }
 0x240   :  { %v2558_v32 = vpop.eup %2557  ;;  %1798 = vst [vmem:[%s3784_s8 + $0x30] sm:$0xff] %v1766_v3  ;;  %2577 = vpow2.f32 %v2044_v61  ;;  %v1611_v42 = vadd.f32 %v1595_v57, %v1579_v21 }
 0x241   :  { %v2560_v29 = vpop.eup %2559  ;;  %2579 = vrcp.f32 %v1326_v51  ;;  %v1422_v18 = vadd.f32 1.0, %v2558_v32 }
 0x242   :  { %v2562_v14 = vpop.eup %2561  ;;  %2581 = vtanh.f32 %v3560_v12  ;;  %v1787_v38 = vsel %vm1755_vm11, %v305_v41, %v1611_v42  ;;  %v2630_v41 = vld [vmem:[%s3779_s3 + $0x48] sm:$0xff] }
 0x243   :  { %v2564_v27 = vpop.eup %2563  ;;  %2583 = vrcp.f32 %v1422_v18  ;;  %v1639_v2 = vmul.f32 %v2562_v14, %v3490_v11  ;;  %1819 = vst [vmem:[#allocation3 + $0x58] sm:$0xff] %v1787_v38 }
 0x244   :  { %v2566_v63 = vpop.eup %2565  ;;  %v1327_v59 = vadd.f32 1.0, %v2564_v27  ;;  %2585 = vtanh.f32 %v1254_v10  ;;  %v2631_v10 = vld [vmem:[%s3779_s3 + $0x58] sm:$0xff] }
 0x245   :  { %v2568_v48 = vpop.eup %2567  ;;  %v1767_v12 = vsel %vm1751_vm7, %v2628_v15, %v1639_v2  ;;  %2587 = vpow2.f32 %v2045_v5  ;;  %v1580_v40 = vmul.f32 %v2566_v63, %v306_v25  ;;  %v3710_v5 = vpop.permute.xlu0 %1739 }
 0x246   :  { %v2570_v8 = vpop.eup %2569  ;;  %1799 = vst [vmem:[%s3784_s8 + $0x38] sm:$0xff] %v1767_v12  ;;  %v2098_v11 = vpack.c.bf16 %v1767_v12, %v1766_v3  ;;  %2589 = vrcp.f32 %v1327_v59  ;;  %v1423_v23 = vadd.f32 1.0, %v2568_v48  ;;  %v1743_v59 = vpop.permute.xlu1 %1742  ;;  %vm1758_vm14 = vcmp.eq.s32.totalorder %v3710_v5, 1 }
 0x247   :  { %v2572_v35 = vpop.eup %2571  ;;  %v1640_v30 = vmul.f32 %v2570_v8, %v3528_v62  ;;  %2591 = vtanh.f32 %v1611_v42  ;;  %v2629_v62 = vld [vmem:[%s3779_s3 + $0x40] sm:$0xff]  ;;  %vm1759_vm15 = vcmp.eq.s32.totalorder %v1743_v59, 1 }
 0x248   :  { %v2574_v17 = vpop.eup %2573  ;;  %2122 = vst [vmem:[%s3786_s10 + $0x18] sm:$0xff] %v2098_v11   ;;  %2593 = vrcp.f32 %v1423_v23 }
 0x249   :  { %v2576_v49 = vpop.eup %2575  ;;  %v1768_v58 = vsel %vm1752_vm8, %v2629_v62, %v1640_v30  ;;  %2595 = vtanh.f32 %v3592_v13  ;;  %v1581_v43 = vmul.f32 %v2574_v17, %v307_v22  ;;  %v2633_v30 = vld [vmem:[%s3779_s3 + $0x60] sm:$0xff] }
 0x24a   :  { %v2578_v56 = vpop.eup %2577  ;;  %1800 = vst [vmem:[%s3784_s8 + $0x40] sm:$0xff] %v1768_v58  ;;  %2597 = vtanh.f32 %v1258_v39  ;;  %v1596_v1 = vmul.f32 %v2576_v49, %v2560_v29  ;;  %v309_v29 = vld [vmem:[%s3780_s4 + $0x78] sm:$0xff] }
 0x24b   :  { %v2580_v47 = vpop.eup %2579  ;;  %v1532_v54 = vadd.f32 1.0, %v2578_v56  ;;  %2599 = vpow2.f32 %v2046_v6 }
 0x24c   :  { %v2582_v57 = vpop.eup %2581  ;;  %v1612_v13 = vadd.f32 %v1596_v1, %v1580_v40  ;;  %2601 = vtanh.f32 %v1262_v37 }
 0x24d   :  { %v2584_v28 = vpop.eup %2583  ;;  %2603 = vrcp.f32 %v1532_v54  ;;  %v1641_v4 = vmul.f32 %v2582_v57, %v3547_v45 }
 0x24e   :  { %v2586_v26 = vpop.eup %2585  ;;  %2605 = vtanh.f32 %v1612_v13  ;;  %v1788_v52 = vsel %vm1756_vm12, %v306_v25, %v1612_v13  ;;  %v1582_v14 = vmul.f32 %v2584_v28, %v308_v46 }
 0x24f   :  { %v2588_v53 = vpop.eup %2587  ;;  %v1769_v31 = vsel %vm1753_vm9, %v2630_v41, %v1641_v4  ;;  %v1597_v36 = vmul.f32 %v2586_v26, %v2572_v35  ;;  %1820 = vst [vmem:[#allocation3 + $0x60] sm:$0xff] %v1788_v52  ;;  %2607 = vpow2.f32 %v2047_v33 }
 0x250   :  { %v2590_v45 = vpop.eup %2589  ;;  %1801 = vst [vmem:[%s3784_s8 + $0x48] sm:$0xff] %v1769_v31  ;;  %v2103_v61 = vpack.c.bf16 %v1769_v31, %v1768_v58  ;;  %v1533_v50 = vadd.f32 1.0, %v2588_v53 }
 0x251   :  { %v2592_v0 = vpop.eup %2591  ;;  %v1613_v55 = vadd.f32 %v1597_v36, %v1581_v43 }
 0x252   :  { %v2594_v21 = vpop.eup %2593  ;;  %2123 = vst [vmem:[%s3786_s10 + $0x20] sm:$0xff] %v2103_v61   ;;  %2609 = vrcp.f32 %v1533_v50  ;;  %v1643_v34 = vmul.f32 %v2592_v0, %v3620_v20 }
 0x253   :  { %v2596_v3 = vpop.eup %2595  ;;  %2611 = vtanh.f32 %v1613_v55  ;;  %v1789_v51 = vsel %vm1757_vm13, %v307_v22, %v1613_v55  ;;  %v1583_v48 = vmul.f32 %v2594_v21, %v309_v29 }
 0x254   :  { %v2598_v32 = vpop.eup %2597  ;;  %v1771_v42 = vsel %vm1755_vm11, %v2631_v10, %v1643_v34  ;;  %v1642_v20 = vmul.f32 %v2596_v3, %v3575_v9  ;;  %1821 = vst [vmem:[#allocation3 + $0x68] sm:$0xff] %v1789_v51 }
 0x255   :  { %v2600_v18 = vpop.eup %2599  ;;  %1803 = vst [vmem:[%s3784_s8 + $0x58] sm:$0xff] %v1771_v42  ;;  %v1598_v38 = vmul.f32 %v2598_v32, %v2580_v47 }
 0x256   :  { %v2602_v27 = vpop.eup %2601  ;;  %v1770_v9 = vsel %vm1754_vm10, %v2632_v19, %v1642_v20  ;;  %v1534_v2 = vadd.f32 1.0, %v2600_v18 }
 0x257   :  { %v2604_v60 = vpop.eup %2603  ;;  %1802 = vst [vmem:[%s3784_s8 + $0x50] sm:$0xff] %v1770_v9  ;;  %v2108_v63 = vpack.c.bf16 %v1771_v42, %v1770_v9  ;;  %v1599_v15 = vmul.f32 %v2602_v27, %v2590_v45  ;;  %v1614_v12 = vadd.f32 %v1598_v38, %v1582_v14 }
 0x258   :  { %v2606_v8 = vpop.eup %2605  ;;  %2613 = vrcp.f32 %v1534_v2 }
 0x259   :  { %v2608_v11 = vpop.eup %2607  ;;  %2124 = vst [vmem:[%s3786_s10 + $0x28] sm:$0xff] %v2108_v63   ;;  %v1644_v7 = vmul.f32 %v2606_v8, %v2604_v60  ;;  %v1615_v23 = vadd.f32 %v1599_v15, %v1583_v48  ;;  %2615 = vtanh.f32 %v1614_v12  ;;  %v1790_v39 = vsel %vm1758_vm14, %v308_v46, %v1614_v12 }
 0x25a   :  { %v1535_v35 = vadd.f32 1.0, %v2608_v11  ;;  %1822 = vst [vmem:[#allocation3 + $0x70] sm:$0xff] %v1790_v39 }
 0x25b   :  { %v1772_v6 = vsel %vm1756_vm12, %v2633_v30, %v1644_v7  ;;  %2617 = vtanh.f32 %v1615_v23  ;;  %v1791_v25 = vsel %vm1759_vm15, %v309_v29, %v1615_v23 }
 0x25c   :  { %v2610_v44 = vpop.eup %2609  ;;  %1804 = vst [vmem:[%s3784_s8 + $0x60] sm:$0xff] %v1772_v6  ;;  %2619 = vrcp.f32 %v1535_v35  ;;  %1823 = vst [vmem:[#allocation3 + $0x78] sm:$0xff] %v1791_v25 }
 0x25d   :  { %v2612_v17 = vpop.eup %2611 }
 0x25e   :  { %2648 = shalt.err (!%p2645_p4)
}
 0x25f   :  { %s2649_s5 = scalar_lea.hbm %s3785_s9, 2048 }
 0x260   :  { %p2650_p5 = scmp.ne.s32.totalorder %s3785_s9, %s2649_s5  ;;  %p2653_p6 = scmp.lt.u32.totalorder %s2649_s5, %s3785_s9 }
 0x262   :  { %p2655_p7 = pnand %p2653_p6, %p2650_p5 }
 0x264   :  { %2658 = shalt.err (!%p2655_p7)
}
 0x265   :  { %s2663_s30 = smov 128   ;;  %s2664_s11 = smov 8   ;;  %v1645_v37 = vmul.f32 %v2612_v17, %v2610_v44  ;;  %v2634_v49 = vld [vmem:[%s3779_s3 + $0x68] sm:$0xff]  ;;  %v2614_v56 = vpop.eup %2613  ;;  %v2635_v33 = vld [vmem:[%s3779_s3 + $0x70] sm:$0xff]  ;;  %v2636_v16 = vld [vmem:[%s3779_s3 + $0x78] sm:$0xff] }
 0x266   :  { %1917 = dma.vmem_to_hbm [thread:$0]  %s1912_s18, 2048, %s3785_s9, [#allocation4], %s2663_s30, %s2663_s30, %s2664_s11   ;;  %v2616_v40 = vpop.eup %2615 }
 0x267   :  { %v1773_v62 = vsel %vm1757_vm13, %v2634_v49, %v1645_v37  ;;  %v1646_v1 = vmul.f32 %v2616_v40, %v2614_v56  ;;  %v2618_v47 = vpop.eup %2617 }
 0x268   :  { %1805 = vst [vmem:[%s3784_s8 + $0x68] sm:$0xff] %v1773_v62  ;;  %v2113_v58 = vpack.c.bf16 %v1773_v62, %v1772_v6  ;;  %v2620_v54 = vpop.eup %2619 }
 0x269   :  { %v1774_v57 = vsel %vm1758_vm14, %v2635_v33, %v1646_v1  ;;  %v1647_v22 = vmul.f32 %v2620_v54, %v2618_v47 }
 0x26a   :  { %2125 = vst [vmem:[%s3786_s10 + $0x30] sm:$0xff] %v2113_v58   ;;  %1806 = vst [vmem:[%s3784_s8 + $0x70] sm:$0xff] %v1774_v57 }
 0x26b   :  { %v1775_v13 = vsel %vm1759_vm15, %v2636_v16, %v1647_v22 }
 0x26c   :  { %1807 = vst [vmem:[%s3784_s8 + $0x78] sm:$0xff] %v1775_v13  ;;  %v2118_v28 = vpack.c.bf16 %v1775_v13, %v1774_v57 }
 0x26e   :  { %2126 = vst [vmem:[%s3786_s10 + $0x38] sm:$0xff] %v2118_v28  }
 0x26f   :  { %2659 = dma.done.wait [#allocation4], 2048  }
 0x270   :  { %2660 = vsyncadd [#allocation4], 4294965248 }
 0x271   :  { %1927 = vsyncpa [#allocation4], 1 }

// kernel: neurosat_forward.7
= control target key start
LH: loop header
LB: loop body
LE: loop exit
PB: predicated region body
PF: predicated region fallthrough
CT: control target
= control target key end

     0   :  { %v5443_v3 = vmov 0   ;;  %s7910_s5 = inlined_call_operand.vmem [shape: bf16[128,1024], index: 5, kind: input, shape index: {}]   ;;  %s7911_s2 = inlined_call_operand.vmem [shape: f32[128,128], index: 2, kind: input, shape index: {}]   ;;  %s7912_s1 = inlined_call_operand.vmem [shape: bf16[128,512], index: 1, kind: input, shape index: {}]   ;;  %s7913_s4 = inlined_call_operand.vmem [shape: bf16[512,1024], index: 4, kind: input, shape index: {}]   ;;  %s7914_s0 = inlined_call_operand.vmem [shape: f32[128,1], index: 0, kind: input, shape index: {}]   ;;  %s7915_s6 = inlined_call_operand.vmem [shape: f32[1,1024], index: 6, kind: input, shape index: {}]   ;;  %s7916_s3 = inlined_call_operand.vmem [shape: f32[128,128], index: 3, kind: input, shape index: {}]   ;;  %s7917_s8 = inlined_call_operand.vmem [shape: f32[128,128], index: 8, kind: output, shape index: {1}]   ;;  %s7918_s7 = inlined_call_operand.vmem [shape: f32[128,128], index: 7, kind: output, shape index: {0}]   ;;  %s7919_s9 = inlined_call_operand.vmem [shape: bf16[128,128], index: 9, kind: output, shape index: {2}]  }
   0x1   :  { %v358_v0 = vld [vmem:[%s7910_s5] sm:$0xff]  ;;  %v359_v2 = vld [vmem:[%s7910_s5 + $0x8] sm:$0xff]  ;;  %774 = vmatprep.mubr.bf16.mxu0 %v5443_v3  ;;  %887 = vmatprep.mubr.bf16.mxu1 %v5443_v3  ;;  %v360_v63 = vld [vmem:[%s7910_s5 + $0x10] sm:$0xff] }
   0x2   :  { %v362_v1 = vld [vmem:[%s7910_s5 + $0x20] sm:$0xff]  ;;  %v363_v5 = vld [vmem:[%s7910_s5 + $0x28] sm:$0xff]  ;;  %5128 = vset.pattern.permute.xlu0 %v5443_v3  ;;  %5129 = vset.pattern.permute.xlu1 %v5443_v3 }
   0x3   :  { %v4393_v4 = vcombine.high %v358_v0, %v362_v1  ;;  %v4392_v6 = vcombine.low %v358_v0, %v362_v1  ;;  %v366_v7 = vld [vmem:[%s7910_s5 + $0x40] sm:$0xff]  ;;  %v4395_v9 = vcombine.high %v359_v2, %v363_v5  ;;  %v4394_v10 = vcombine.low %v359_v2, %v363_v5  ;;  %v367_v12 = vld [vmem:[%s7910_s5 + $0x48] sm:$0xff]  ;;  %v364_v0 = vld [vmem:[%s7910_s5 + $0x30] sm:$0xff] }
   0x4   :  { %v370_v8 = vld [vmem:[%s7910_s5 + $0x60] sm:$0xff]  ;;  %v371_v13 = vld [vmem:[%s7910_s5 + $0x68] sm:$0xff]  ;;  %v361_v1 = vld [vmem:[%s7910_s5 + $0x18] sm:$0xff] }
   0x5   :  { %v4401_v11 = vcombine.high %v366_v7, %v370_v8  ;;  %v374_v14 = vld [vmem:[%s7910_s5 + $0x80] sm:$0xff]  ;;  %742 = vmatprep.subr.bf16.mxu0 %v4393_v4  ;;  %v4403_v15 = vcombine.high %v367_v12, %v371_v13  ;;  %v375_v17 = vld [vmem:[%s7910_s5 + $0x88] sm:$0xff]  ;;  %855 = vmatprep.subr.bf16.mxu1 %v4395_v9  ;;  %v4400_v19 = vcombine.low %v366_v7, %v370_v8  ;;  %v365_v2 = vld [vmem:[%s7910_s5 + $0x38] sm:$0xff] }
   0x6   :  { %v378_v16 = vld [vmem:[%s7910_s5 + $0xa0] sm:$0xff]  ;;  %v379_v18 = vld [vmem:[%s7910_s5 + $0xa8] sm:$0xff]  ;;  %743 = vmatpush1.bf16.msra.mxu0 %v4392_v6  ;;  %856 = vmatpush1.bf16.msra.mxu1 %v4394_v10  ;;  %v4402_v20 = vcombine.low %v367_v12, %v371_v13  ;;  %v4397_v8 = vcombine.high %v360_v63, %v364_v0  ;;  %v4399_v9 = vcombine.high %v361_v1, %v365_v2  ;;  %v372_v12 = vld [vmem:[%s7910_s5 + $0x70] sm:$0xff] }
   0x7   :  { %744 = vmatprep.subr.bf16.mxu0 %v4401_v11  ;;  %v4409_v21 = vcombine.high %v374_v14, %v378_v16  ;;  %857 = vmatprep.subr.bf16.mxu1 %v4403_v15  ;;  %v4411_v22 = vcombine.high %v375_v17, %v379_v18  ;;  %v382_v23 = vld [vmem:[%s7910_s5 + $0xc0] sm:$0xff]  ;;  %v383_v25 = vld [vmem:[%s7910_s5 + $0xc8] sm:$0xff]  ;;  %v4408_v27 = vcombine.low %v374_v14, %v378_v16  ;;  %v368_v11 = vld [vmem:[%s7910_s5 + $0x50] sm:$0xff] }
   0x8   :  { %v386_v24 = vld [vmem:[%s7910_s5 + $0xe0] sm:$0xff]  ;;  %v387_v26 = vld [vmem:[%s7910_s5 + $0xe8] sm:$0xff]  ;;  %v4410_v28 = vcombine.low %v375_v17, %v379_v18  ;;  %v4396_v13 = vcombine.low %v360_v63, %v364_v0  ;;  %v369_v14 = vld [vmem:[%s7910_s5 + $0x58] sm:$0xff]  ;;  %v4405_v16 = vcombine.high %v368_v11, %v372_v12  ;;  %v4398_v17 = vcombine.low %v361_v1, %v365_v2 }
   0x9   :  { %v4417_v29 = vcombine.high %v382_v23, %v386_v24  ;;  %v4419_v30 = vcombine.high %v383_v25, %v387_v26  ;;  %v390_v31 = vld [vmem:[%s7910_s5 + $0x100] sm:$0xff]  ;;  %v391_v33 = vld [vmem:[%s7910_s5 + $0x108] sm:$0xff]  ;;  %v4416_v35 = vcombine.low %v382_v23, %v386_v24  ;;  %v4418_v36 = vcombine.low %v383_v25, %v387_v26  ;;  %v373_v15 = vld [vmem:[%s7910_s5 + $0x78] sm:$0xff] }
   0xa   :  { %745 = vmatpush1.bf16.msra.mxu0 %v4400_v19  ;;  %858 = vmatpush1.bf16.msra.mxu1 %v4402_v20  ;;  %v394_v32 = vld [vmem:[%s7910_s5 + $0x120] sm:$0xff]  ;;  %v395_v34 = vld [vmem:[%s7910_s5 + $0x128] sm:$0xff]  ;;  %v376_v18 = vld [vmem:[%s7910_s5 + $0x90] sm:$0xff]  ;;  %v4404_v23 = vcombine.low %v368_v11, %v372_v12 }
   0xb   :  { %746 = vmatprep.subr.bf16.mxu0 %v4409_v21  ;;  %859 = vmatprep.subr.bf16.mxu1 %v4411_v22  ;;  %v4425_v37 = vcombine.high %v390_v31, %v394_v32  ;;  %v4427_v38 = vcombine.high %v391_v33, %v395_v34  ;;  %v398_v39 = vld [vmem:[%s7910_s5 + $0x140] sm:$0xff]  ;;  %v399_v41 = vld [vmem:[%s7910_s5 + $0x148] sm:$0xff]  ;;  %v4424_v43 = vcombine.low %v390_v31, %v394_v32  ;;  %v380_v19 = vld [vmem:[%s7910_s5 + $0xb0] sm:$0xff] }
   0xc   :  { %v402_v40 = vld [vmem:[%s7910_s5 + $0x160] sm:$0xff]  ;;  %v403_v42 = vld [vmem:[%s7910_s5 + $0x168] sm:$0xff]  ;;  %v4426_v44 = vcombine.low %v391_v33, %v395_v34  ;;  %v64_v20 = vld [vmem:[%s7911_s2 + $0x10] sm:$0xff]  ;;  %v4407_v21 = vcombine.high %v369_v14, %v373_v15  ;;  %v4413_v26 = vcombine.high %v376_v18, %v380_v19  ;;  %v4412_v34 = vcombine.low %v376_v18, %v380_v19 }
   0xd   :  { %v4433_v45 = vcombine.high %v398_v39, %v402_v40  ;;  %v4435_v46 = vcombine.high %v399_v41, %v403_v42  ;;  %v406_v47 = vld [vmem:[%s7910_s5 + $0x180] sm:$0xff]  ;;  %v407_v49 = vld [vmem:[%s7910_s5 + $0x188] sm:$0xff]  ;;  %v4432_v51 = vcombine.low %v398_v39, %v402_v40  ;;  %v4434_v52 = vcombine.low %v399_v41, %v403_v42  ;;  %v65_v22 = vld [vmem:[%s7911_s2 + $0x18] sm:$0xff] }
   0xe   :  { %747 = vmatpush1.bf16.msra.mxu0 %v4408_v27  ;;  %860 = vmatpush1.bf16.msra.mxu1 %v4410_v28  ;;  %v410_v48 = vld [vmem:[%s7910_s5 + $0x1a0] sm:$0xff]  ;;  %v411_v50 = vld [vmem:[%s7910_s5 + $0x1a8] sm:$0xff]  ;;  %v377_v24 = vld [vmem:[%s7910_s5 + $0x98] sm:$0xff]  ;;  %v4406_v27 = vcombine.low %v369_v14, %v373_v15  ;;  %v5648_v28 = vpack.c.bf16 %v65_v22, %v64_v20 }
   0xf   :  { %748 = vmatprep.subr.bf16.mxu0 %v4417_v29  ;;  %861 = vmatprep.subr.bf16.mxu1 %v4419_v30  ;;  %v4441_v53 = vcombine.high %v406_v47, %v410_v48  ;;  %v4443_v54 = vcombine.high %v407_v49, %v411_v50  ;;  %v414_v55 = vld [vmem:[%s7910_s5 + $0x1c0] sm:$0xff]  ;;  %v415_v57 = vld [vmem:[%s7910_s5 + $0x1c8] sm:$0xff]  ;;  %v4440_v59 = vcombine.low %v406_v47, %v410_v48  ;;  %v381_v25 = vld [vmem:[%s7910_s5 + $0xb8] sm:$0xff] }
  0x10   :  { %v418_v56 = vld [vmem:[%s7910_s5 + $0x1e0] sm:$0xff]  ;;  %v419_v58 = vld [vmem:[%s7910_s5 + $0x1e8] sm:$0xff]  ;;  %v4442_v60 = vcombine.low %v407_v49, %v411_v50  ;;  %v384_v29 = vld [vmem:[%s7910_s5 + $0xd0] sm:$0xff]  ;;  %v4415_v31 = vcombine.high %v377_v24, %v381_v25 }
  0x11   :  { %v4449_v61 = vcombine.high %v414_v55, %v418_v56  ;;  %v4451_v62 = vcombine.high %v415_v57, %v419_v58  ;;  %v4448_v4 = vcombine.low %v414_v55, %v418_v56  ;;  %v62_v5 = vld [vmem:[%s7911_s2] sm:$0xff]  ;;  %v63_v6 = vld [vmem:[%s7911_s2 + $0x8] sm:$0xff]  ;;  %v4450_v7 = vcombine.low %v415_v57, %v419_v58  ;;  %v388_v30 = vld [vmem:[%s7910_s5 + $0xf0] sm:$0xff] }
  0x12   :  { %749 = vmatpush1.bf16.msra.mxu0 %v4416_v35  ;;  %862 = vmatpush1.bf16.msra.mxu1 %v4418_v36  ;;  %v5612_v10 = vpack.c.bf16 %v63_v6, %v62_v5  ;;  %v385_v32 = vld [vmem:[%s7910_s5 + $0xd8] sm:$0xff]  ;;  %v4421_v35 = vcombine.high %v384_v29, %v388_v30  ;;  %v4414_v36 = vcombine.low %v377_v24, %v381_v25  ;;  %v396_v39 = vld [vmem:[%s7910_s5 + $0x130] sm:$0xff]  ;;  %v67_v41 = vld [vmem:[%s7911_s2 + $0x28] sm:$0xff] }
  0x13   :  { %750 = vmatprep.subr.bf16.mxu0 %v4425_v37  ;;  %863 = vmatprep.subr.bf16.mxu1 %v4427_v38  ;;  %v389_v33 = vld [vmem:[%s7910_s5 + $0xf8] sm:$0xff]  ;;  %v66_v37 = vld [vmem:[%s7911_s2 + $0x20] sm:$0xff]  ;;  %v392_v38 = vld [vmem:[%s7910_s5 + $0x110] sm:$0xff] }
  0x14   :  { %v4423_v40 = vcombine.high %v385_v32, %v389_v33  ;;  %v393_v42 = vld [vmem:[%s7910_s5 + $0x118] sm:$0xff]  ;;  %v5684_v47 = vpack.c.bf16 %v67_v41, %v66_v37  ;;  %v400_v48 = vld [vmem:[%s7910_s5 + $0x150] sm:$0xff]  ;;  %v70_v11 = vld [vmem:[%s7911_s2 + $0x40] sm:$0xff] }
  0x15   :  { %v404_v49 = vld [vmem:[%s7910_s5 + $0x170] sm:$0xff]  ;;  %v69_v55 = vld [vmem:[%s7911_s2 + $0x38] sm:$0xff]  ;;  %v71_v12 = vld [vmem:[%s7911_s2 + $0x48] sm:$0xff] }
  0x16   :  { %751 = vmatpush1.bf16.msra.mxu0 %v4424_v43  ;;  %864 = vmatpush1.bf16.msra.mxu1 %v4426_v44  ;;  %v397_v43 = vld [vmem:[%s7910_s5 + $0x138] sm:$0xff]  ;;  %v4420_v44 = vcombine.low %v384_v29, %v388_v30  ;;  %v4437_v56 = vcombine.high %v400_v48, %v404_v49  ;;  %v408_v58 = vld [vmem:[%s7910_s5 + $0x190] sm:$0xff]  ;;  %v4436_v63 = vcombine.low %v400_v48, %v404_v49  ;;  %v95_v18 = vld [vmem:[%s7913_s4 + $0x8] sm:$0xff] }
  0x17   :  { %752 = vmatprep.subr.bf16.mxu0 %v4433_v45  ;;  %865 = vmatprep.subr.bf16.mxu1 %v4435_v46  ;;  %v4429_v45 = vcombine.high %v392_v38, %v396_v39  ;;  %v4422_v46 = vcombine.low %v385_v32, %v389_v33  ;;  %v4431_v50 = vcombine.high %v393_v42, %v397_v43  ;;  %v420_v5 = vld [vmem:[%s7910_s5 + $0x1f0] sm:$0xff]  ;;  %v99_v19 = vld [vmem:[%s7913_s4 + $0x28] sm:$0xff]  ;;  %v74_v29 = vld [vmem:[%s7911_s2 + $0x60] sm:$0xff] }
  0x18   :  { %v4430_v57 = vcombine.low %v393_v42, %v397_v43  ;;  %v4491_v24 = vcombine.high %v95_v18, %v99_v19  ;;  %v72_v25 = vld [vmem:[%s7911_s2 + $0x50] sm:$0xff]  ;;  %v75_v30 = vld [vmem:[%s7911_s2 + $0x68] sm:$0xff]  ;;  %v77_v33 = vld [vmem:[%s7911_s2 + $0x78] sm:$0xff] }
  0x19   :  { %v76_v32 = vld [vmem:[%s7911_s2 + $0x70] sm:$0xff]  ;;  %v103_v37 = vld [vmem:[%s7913_s4 + $0x48] sm:$0xff]  ;;  %v110_v43 = vld [vmem:[%s7913_s4 + $0x80] sm:$0xff] }
  0x1a   :  { %753 = vmatpush1.bf16.msra.mxu0 %v4432_v51  ;;  %866 = vmatpush1.bf16.msra.mxu1 %v4434_v52  ;;  %v401_v51 = vld [vmem:[%s7910_s5 + $0x158] sm:$0xff] }
  0x1b   :  { %754 = vmatprep.subr.bf16.mxu0 %v4441_v53  ;;  %867 = vmatprep.subr.bf16.mxu1 %v4443_v54  ;;  %v405_v52 = vld [vmem:[%s7910_s5 + $0x178] sm:$0xff]  ;;  %v4428_v53 = vcombine.low %v392_v38, %v396_v39  ;;  %v68_v54 = vld [vmem:[%s7911_s2 + $0x30] sm:$0xff]  ;;  %v107_v38 = vld [vmem:[%s7913_s4 + $0x68] sm:$0xff] }
  0x1c   :  { %v4438_v1 = vcombine.low %v401_v51, %v405_v52  ;;  %v5720_v2 = vpack.c.bf16 %v69_v55, %v68_v54  ;;  %v4499_v42 = vcombine.high %v103_v37, %v107_v38  ;;  %v4498_v49 = vcombine.low %v103_v37, %v107_v38  ;;  %v123_v54 = vld [vmem:[%s7913_s4 + $0xe8] sm:$0xff] }
  0x1e   :  { %755 = vmatpush1.bf16.msra.mxu0 %v4440_v59  ;;  %868 = vmatpush1.bf16.msra.mxu1 %v4442_v60  ;;  %v412_v59 = vld [vmem:[%s7910_s5 + $0x1b0] sm:$0xff]  ;;  %v4439_v60 = vcombine.high %v401_v51, %v405_v52  ;;  %v118_v52 = vld [vmem:[%s7913_s4 + $0xc0] sm:$0xff] }
  0x1f   :  { %756 = vmatprep.subr.bf16.mxu0 %v4449_v61  ;;  %869 = vmatprep.subr.bf16.mxu1 %v4451_v62  ;;  %v409_v61 = vld [vmem:[%s7910_s5 + $0x198] sm:$0xff]  ;;  %v4445_v0 = vcombine.high %v408_v58, %v412_v59 }
  0x20   :  { %v413_v62 = vld [vmem:[%s7910_s5 + $0x1b8] sm:$0xff] }
  0x21   :  { %v4447_v6 = vcombine.high %v409_v61, %v413_v62  ;;  %v4446_v14 = vcombine.low %v409_v61, %v413_v62  ;;  %v127_v61 = vld [vmem:[%s7913_s4 + $0x108] sm:$0xff] }
  0x22   :  { %757 = vmatpush1.bf16.msra.mxu0 %v4448_v4  ;;  %870 = vmatpush1.bf16.msra.mxu1 %v4450_v7  ;;  %v416_v4 = vld [vmem:[%s7910_s5 + $0x1d0] sm:$0xff]  ;;  %v417_v7 = vld [vmem:[%s7910_s5 + $0x1d8] sm:$0xff]  ;;  %v131_v62 = vld [vmem:[%s7913_s4 + $0x128] sm:$0xff] }
  0x23   :  { %968 = vmatprep.subr.bf16.mxu0 %v4397_v8  ;;  %1081 = vmatprep.subr.bf16.mxu1 %v4399_v9  ;;  %v421_v8 = vld [vmem:[%s7910_s5 + $0x1f8] sm:$0xff]  ;;  %v4444_v9 = vcombine.low %v408_v58, %v412_v59  ;;  %v4452_v20 = vcombine.low %v416_v4, %v420_v5  ;;  %v126_v59 = vld [vmem:[%s7913_s4 + $0x100] sm:$0xff] }
  0x24   :  { %v4455_v15 = vcombine.high %v417_v7, %v421_v8 }
  0x25   :  { %775 = vmatmul.mubr.bf16.vlgmr.msra.gmra.mrb[0].mxu0 %v5612_v10  ;;  %888 = vmatmul.mubr.bf16.vlgmr.msra.gmra.mrb[0].mxu1 %v5612_v10 }
  0x26   :  { %969 = vmatpush1.bf16.msra.mxu0 %v4396_v13  ;;  %784 = vmatprep.mubr.bf16.mxu0 %v5443_v3  ;;  %v4453_v13 = vcombine.high %v416_v4, %v420_v5  ;;  %v4523_v4 = vcombine.high %v127_v61, %v131_v62  ;;  %v134_v5 = vld [vmem:[%s7913_s4 + $0x140] sm:$0xff] }
  0x27   :  { %897 = vmatprep.mubr.bf16.mxu1 %v5443_v3  ;;  %970 = vmatprep.subr.bf16.mxu0 %v4405_v16  ;;  %v94_v16 = vld [vmem:[%s7913_s4] sm:$0xff] }
  0x28   :  { %1082 = vmatpush1.bf16.msra.mxu1 %v4398_v17  ;;  %v98_v17 = vld [vmem:[%s7913_s4 + $0x20] sm:$0xff] }
  0x29   :  { %1083 = vmatprep.subr.bf16.mxu1 %v4407_v21  ;;  %v4454_v21 = vcombine.low %v417_v7, %v421_v8  ;;  %v4489_v22 = vcombine.high %v94_v16, %v98_v17  ;;  %v4488_v39 = vcombine.low %v94_v16, %v98_v17  ;;  %v139_v7 = vld [vmem:[%s7913_s4 + $0x168] sm:$0xff] }
  0x2a   :  { %971 = vmatpush1.bf16.msra.mxu0 %v4404_v23  ;;  %v5756_v23 = vpack.c.bf16 %v71_v12, %v70_v11  ;;  %v147_v16 = vld [vmem:[%s7913_s4 + $0x1a8] sm:$0xff] }
  0x2b   :  { %972 = vmatprep.subr.bf16.mxu0 %v4413_v26  ;;  %v73_v26 = vld [vmem:[%s7911_s2 + $0x58] sm:$0xff] }
  0x2c   :  { %1084 = vmatpush1.bf16.msra.mxu1 %v4406_v27  ;;  %v5768_v27 = vpack.c.bf16 %v73_v26, %v72_v25 }
  0x2d   :  { %785 = vmatmul.mubr.bf16.gmra.mrb[4].mxu0 %v5648_v28  ;;  %1085 = vmatprep.subr.bf16.mxu1 %v4415_v31  ;;  %v5780_v31 = vpack.c.bf16 %v75_v30, %v74_v29 }
  0x2e   :  { %898 = vmatmul.mubr.bf16.gmra.mrb[4].mxu1 %v5648_v28  ;;  %794 = vmatprep.mubr.bf16.mxu0 %v5443_v3 }
  0x2f   :  { %907 = vmatprep.mubr.bf16.mxu1 %v5443_v3  ;;  %973 = vmatpush1.bf16.msra.mxu0 %v4412_v34  ;;  %v5792_v34 = vpack.c.bf16 %v77_v33, %v76_v32  ;;  %v158_v32 = vld [vmem:[%s7913_s4 + $0x200] sm:$0xff] }
  0x30   :  { %974 = vmatprep.subr.bf16.mxu0 %v4421_v35  ;;  %1086 = vmatpush1.bf16.msra.mxu1 %v4414_v36  ;;  %v102_v35 = vld [vmem:[%s7913_s4 + $0x40] sm:$0xff] }
  0x31   :  { %1087 = vmatprep.subr.bf16.mxu1 %v4423_v40  ;;  %v106_v36 = vld [vmem:[%s7913_s4 + $0x60] sm:$0xff]  ;;  %v4490_v40 = vcombine.low %v95_v18, %v99_v19 }
  0x32   :  { %v4497_v41 = vcombine.high %v102_v35, %v106_v36  ;;  %v4496_v48 = vcombine.low %v102_v35, %v106_v36  ;;  %v162_v33 = vld [vmem:[%s7913_s4 + $0x220] sm:$0xff]  ;;  %v159_v35 = vld [vmem:[%s7913_s4 + $0x208] sm:$0xff] }
  0x33   :  { %975 = vmatpush1.bf16.msra.mxu0 %v4420_v44  ;;  %v114_v44 = vld [vmem:[%s7913_s4 + $0xa0] sm:$0xff]  ;;  %v163_v36 = vld [vmem:[%s7913_s4 + $0x228] sm:$0xff] }
  0x34   :  { %976 = vmatprep.subr.bf16.mxu0 %v4429_v45  ;;  %1088 = vmatpush1.bf16.msra.mxu1 %v4422_v46  ;;  %v111_v45 = vld [vmem:[%s7913_s4 + $0x88] sm:$0xff]  ;;  %v4504_v55 = vcombine.low %v110_v43, %v114_v44 }
  0x35   :  { %795 = vmatmul.mubr.bf16.gmra.mrb[8].mxu0 %v5684_v47  ;;  %1089 = vmatprep.subr.bf16.mxu1 %v4431_v50  ;;  %v115_v46 = vld [vmem:[%s7913_s4 + $0xa8] sm:$0xff]  ;;  %v4505_v50 = vcombine.high %v110_v43, %v114_v44  ;;  %v4552_v44 = vcombine.low %v158_v32, %v162_v33 }
  0x36   :  { %908 = vmatmul.mubr.bf16.gmra.mrb[8].mxu1 %v5684_v47  ;;  %804 = vmatprep.mubr.bf16.mxu0 %v5443_v3  ;;  %v4507_v51 = vcombine.high %v111_v45, %v115_v46  ;;  %v171_v43 = vld [vmem:[%s7913_s4 + $0x268] sm:$0xff] }
  0x37   :  { %917 = vmatprep.mubr.bf16.mxu1 %v5443_v3  ;;  %977 = vmatpush1.bf16.msra.mxu0 %v4428_v53  ;;  %v122_v53 = vld [vmem:[%s7913_s4 + $0xe0] sm:$0xff] }
  0x38   :  { %978 = vmatprep.subr.bf16.mxu0 %v4437_v56  ;;  %1090 = vmatpush1.bf16.msra.mxu1 %v4430_v57  ;;  %v4506_v56 = vcombine.low %v111_v45, %v115_v46  ;;  %v4513_v57 = vcombine.high %v118_v52, %v122_v53  ;;  %v4554_v45 = vcombine.low %v159_v35, %v163_v36 }
  0x39   :  { %1091 = vmatprep.subr.bf16.mxu1 %v4439_v60  ;;  %v130_v60 = vld [vmem:[%s7913_s4 + $0x120] sm:$0xff] }
  0x3a   :  { %v4520_v8 = vcombine.low %v126_v59, %v130_v60 }
  0x3b   :  { %979 = vmatpush1.bf16.msra.mxu0 %v4436_v63  ;;  %v4512_v63 = vcombine.low %v118_v52, %v122_v53  ;;  %v179_v52 = vld [vmem:[%s7913_s4 + $0x2a8] sm:$0xff] }
  0x3c   :  { %980 = vmatprep.subr.bf16.mxu0 %v4445_v0  ;;  %1092 = vmatpush1.bf16.msra.mxu1 %v4438_v1  ;;  %v4521_v1 = vcombine.high %v126_v59, %v130_v60 }
  0x3d   :  { %805 = vmatmul.mubr.bf16.gmra.mrb[12].mxu0 %v5720_v2  ;;  %1093 = vmatprep.subr.bf16.mxu1 %v4447_v6  ;;  %v138_v6 = vld [vmem:[%s7913_s4 + $0x160] sm:$0xff] }
  0x3e   :  { %918 = vmatmul.mubr.bf16.gmra.mrb[12].mxu1 %v5720_v2  ;;  %814 = vmatprep.mubr.bf16.mxu0 %v5443_v3  ;;  %v4529_v11 = vcombine.high %v134_v5, %v138_v6  ;;  %v4528_v17 = vcombine.low %v134_v5, %v138_v6 }
  0x3f   :  { %927 = vmatprep.mubr.bf16.mxu1 %v5443_v3  ;;  %981 = vmatpush1.bf16.msra.mxu0 %v4444_v9  ;;  %v4522_v9 = vcombine.low %v127_v61, %v131_v62 }
  0x40   :  { %982 = vmatprep.subr.bf16.mxu0 %v4453_v13  ;;  %1094 = vmatpush1.bf16.msra.mxu1 %v4446_v14  ;;  %v142_v13 = vld [vmem:[%s7913_s4 + $0x180] sm:$0xff] }
  0x41   :  { %1095 = vmatprep.subr.bf16.mxu1 %v4455_v15  ;;  %v146_v14 = vld [vmem:[%s7913_s4 + $0x1a0] sm:$0xff]  ;;  %v143_v15 = vld [vmem:[%s7913_s4 + $0x188] sm:$0xff] }
  0x42   :  { %v4537_v19 = vcombine.high %v142_v13, %v146_v14  ;;  %v4536_v25 = vcombine.low %v142_v13, %v146_v14  ;;  %v4538_v26 = vcombine.low %v143_v15, %v147_v16 }
  0x43   :  { %983 = vmatpush1.bf16.msra.mxu0 %v4452_v20  ;;  %v4539_v20 = vcombine.high %v143_v15, %v147_v16  ;;  %v206_v16 = vld [vmem:[%s7913_s4 + $0x380] sm:$0xff] }
  0x44   :  { %1096 = vmatpush1.bf16.msra.mxu1 %v4454_v21  ;;  %2634 = vmatprep.subr.bf16.mxu0 %v4489_v22  ;;  %v150_v21 = vld [vmem:[%s7913_s4 + $0x1c0] sm:$0xff] }
  0x45   :  { %815 = vmatmul.mubr.bf16.gmra.mrb[16].mxu0 %v5756_v23  ;;  %2860 = vmatprep.subr.bf16.mxu1 %v4491_v24  ;;  %v154_v22 = vld [vmem:[%s7913_s4 + $0x1e0] sm:$0xff]  ;;  %v155_v24 = vld [vmem:[%s7913_s4 + $0x1e8] sm:$0xff] }
  0x46   :  { %928 = vmatmul.mubr.bf16.gmra.mrb[16].mxu1 %v5756_v23  ;;  %824 = vmatprep.mubr.bf16.mxu0 %v5443_v3  ;;  %v4545_v29 = vcombine.high %v150_v21, %v154_v22  ;;  %v4544_v37 = vcombine.low %v150_v21, %v154_v22 }
  0x47   :  { %937 = vmatprep.mubr.bf16.mxu1 %v5443_v3 }
  0x4d   :  { %825 = vmatmul.mubr.bf16.gmra.mrb[20].mxu0 %v5768_v27 }
  0x4e   :  { %938 = vmatmul.mubr.bf16.gmra.mrb[20].mxu1 %v5768_v27  ;;  %834 = vmatprep.mubr.bf16.mxu0 %v5443_v3 }
  0x4f   :  { %947 = vmatprep.mubr.bf16.mxu1 %v5443_v3 }
  0x55   :  { %835 = vmatmul.mubr.bf16.gmra.mrb[24].mxu0 %v5780_v31 }
  0x56   :  { %948 = vmatmul.mubr.bf16.gmra.mrb[24].mxu1 %v5780_v31  ;;  %844 = vmatprep.mubr.bf16.mxu0 %v5443_v3 }
  0x57   :  { %957 = vmatprep.mubr.bf16.mxu1 %v5443_v3 }
  0x5d   :  { %845 = vmatmul.mubr.bf16.gmra.mrb[28].mxu0 %v5792_v34 }
  0x5e   :  { %958 = vmatmul.mubr.bf16.gmra.mrb[28].mxu1 %v5792_v34  ;;  %1000 = vmatprep.mubr.bf16.mxu0 %v5443_v3 }
  0x5f   :  { %1113 = vmatprep.mubr.bf16.mxu1 %v5443_v3 }
  0x65   :  { %1001 = vmatmul.mubr.bf16.vlgmr.msra.gmra.mrb[32].mxu0 %v5612_v10 }
  0x66   :  { %1114 = vmatmul.mubr.bf16.vlgmr.msra.gmra.mrb[32].mxu1 %v5612_v10  ;;  %2635 = vmatpush1.bf16.msra.mxu0 %v4488_v39  ;;  %v119_v10 = vld [vmem:[%s7913_s4 + $0xc8] sm:$0xff]  ;;  %v4553_v39 = vcombine.high %v158_v32, %v162_v33 }
  0x67   :  { %2861 = vmatpush1.bf16.msra.mxu1 %v4490_v40  ;;  %2636 = vmatprep.subr.bf16.mxu0 %v4497_v41  ;;  %v4515_v58 = vcombine.high %v119_v10, %v123_v54  ;;  %v4514_v0 = vcombine.low %v119_v10, %v123_v54  ;;  %v4555_v40 = vcombine.high %v159_v35, %v163_v36  ;;  %v166_v41 = vld [vmem:[%s7913_s4 + $0x240] sm:$0xff] }
  0x68   :  { %2862 = vmatprep.subr.bf16.mxu1 %v4499_v42  ;;  %1010 = vmatprep.mubr.bf16.mxu0 %v5443_v3  ;;  %v170_v42 = vld [vmem:[%s7913_s4 + $0x260] sm:$0xff] }
  0x69   :  { %1123 = vmatprep.mubr.bf16.mxu1 %v5443_v3  ;;  %v4561_v46 = vcombine.high %v166_v41, %v170_v42  ;;  %v4560_v53 = vcombine.low %v166_v41, %v170_v42  ;;  %v6009_v35 = vld [vmem:[%s7912_s1 + $0x4] ss:$16 sps:$4 sm:$0xff]  }
  0x6a   :  { %2637 = vmatpush1.bf16.msra.mxu0 %v4496_v48  ;;  %v222_v36 = vld [vmem:[%s7913_s4 + $0x400] sm:$0xff] }
  0x6b   :  { %2863 = vmatpush1.bf16.msra.mxu1 %v4498_v49  ;;  %2638 = vmatprep.subr.bf16.mxu0 %v4505_v50  ;;  %v174_v49 = vld [vmem:[%s7913_s4 + $0x280] sm:$0xff] }
  0x6c   :  { %2864 = vmatprep.subr.bf16.mxu1 %v4507_v51  ;;  %v178_v50 = vld [vmem:[%s7913_s4 + $0x2a0] sm:$0xff]  ;;  %v175_v51 = vld [vmem:[%s7913_s4 + $0x288] sm:$0xff] }
  0x6d   :  { %1011 = vmatmul.mubr.bf16.gmra.mrb[36].mxu0 %v5648_v28  ;;  %v4569_v54 = vcombine.high %v174_v49, %v178_v50  ;;  %v4568_v59 = vcombine.low %v174_v49, %v178_v50  ;;  %v4570_v60 = vcombine.low %v175_v51, %v179_v52 }
  0x6e   :  { %1124 = vmatmul.mubr.bf16.gmra.mrb[36].mxu1 %v5648_v28  ;;  %2639 = vmatpush1.bf16.msra.mxu0 %v4504_v55  ;;  %v135_v28 = vld [vmem:[%s7913_s4 + $0x148] sm:$0xff]  ;;  %v4571_v55 = vcombine.high %v175_v51, %v179_v52  ;;  %v6047_v52 = vld [vmem:[%s7912_s1 + $0x24] ss:$16 sps:$4 sm:$0xff]  }
  0x6f   :  { %2865 = vmatpush1.bf16.msra.mxu1 %v4506_v56  ;;  %2640 = vmatprep.subr.bf16.mxu0 %v4513_v57  ;;  %v4531_v12 = vcombine.high %v135_v28, %v139_v7  ;;  %v4530_v18 = vcombine.low %v135_v28, %v139_v7  ;;  %v182_v56 = vld [vmem:[%s7913_s4 + $0x2c0] sm:$0xff] }
  0x70   :  { %2866 = vmatprep.subr.bf16.mxu1 %v4515_v58  ;;  %1020 = vmatprep.mubr.bf16.mxu0 %v5443_v3  ;;  %v186_v57 = vld [vmem:[%s7913_s4 + $0x2e0] sm:$0xff]  ;;  %v187_v58 = vld [vmem:[%s7913_s4 + $0x2e8] sm:$0xff] }
  0x71   :  { %1133 = vmatprep.mubr.bf16.mxu1 %v5443_v3  ;;  %v4577_v61 = vcombine.high %v182_v56, %v186_v57  ;;  %v4576_v5 = vcombine.low %v182_v56, %v186_v57 }
  0x72   :  { %2641 = vmatpush1.bf16.msra.mxu0 %v4512_v63  ;;  %v190_v63 = vld [vmem:[%s7913_s4 + $0x300] sm:$0xff] }
  0x73   :  { %2867 = vmatpush1.bf16.msra.mxu1 %v4514_v0  ;;  %2642 = vmatprep.subr.bf16.mxu0 %v4521_v1  ;;  %v194_v0 = vld [vmem:[%s7913_s4 + $0x320] sm:$0xff]  ;;  %v191_v1 = vld [vmem:[%s7913_s4 + $0x308] sm:$0xff] }
  0x74   :  { %2868 = vmatprep.subr.bf16.mxu1 %v4523_v4  ;;  %v195_v4 = vld [vmem:[%s7913_s4 + $0x328] sm:$0xff]  ;;  %v4585_v28 = vcombine.high %v190_v63, %v194_v0 }
  0x75   :  { %1021 = vmatmul.mubr.bf16.gmra.mrb[40].mxu0 %v5684_v47  ;;  %v4587_v7 = vcombine.high %v191_v1, %v195_v4  ;;  %v4586_v13 = vcombine.low %v191_v1, %v195_v4 }
  0x76   :  { %1134 = vmatmul.mubr.bf16.gmra.mrb[40].mxu1 %v5684_v47  ;;  %2643 = vmatpush1.bf16.msra.mxu0 %v4520_v8  ;;  %v151_v47 = vld [vmem:[%s7913_s4 + $0x1c8] sm:$0xff]  ;;  %v198_v8 = vld [vmem:[%s7913_s4 + $0x340] sm:$0xff] }
  0x77   :  { %2869 = vmatpush1.bf16.msra.mxu1 %v4522_v9  ;;  %2644 = vmatprep.subr.bf16.mxu0 %v4529_v11  ;;  %v4547_v30 = vcombine.high %v151_v47, %v155_v24  ;;  %v4546_v38 = vcombine.low %v151_v47, %v155_v24  ;;  %v202_v9 = vld [vmem:[%s7913_s4 + $0x360] sm:$0xff]  ;;  %v203_v11 = vld [vmem:[%s7913_s4 + $0x368] sm:$0xff] }
  0x78   :  { %2870 = vmatprep.subr.bf16.mxu1 %v4531_v12  ;;  %1030 = vmatprep.mubr.bf16.mxu0 %v5443_v3  ;;  %v4584_v12 = vcombine.low %v190_v63, %v194_v0  ;;  %v4593_v14 = vcombine.high %v198_v8, %v202_v9  ;;  %v214_v24 = vld [vmem:[%s7913_s4 + $0x3c0] sm:$0xff]  ;;  %v251_v63 = vld [vmem:[%s7913_s4 + $0x4e8] sm:$0xff] }
  0x79   :  { %1143 = vmatprep.mubr.bf16.mxu1 %v5443_v3 }
  0x7a   :  { %2645 = vmatpush1.bf16.msra.mxu0 %v4528_v17  ;;  %v210_v17 = vld [vmem:[%s7913_s4 + $0x3a0] sm:$0xff] }
  0x7b   :  { %2871 = vmatpush1.bf16.msra.mxu1 %v4530_v18  ;;  %2646 = vmatprep.subr.bf16.mxu0 %v4537_v19  ;;  %v207_v18 = vld [vmem:[%s7913_s4 + $0x388] sm:$0xff]  ;;  %v4601_v22 = vcombine.high %v206_v16, %v210_v17 }
  0x7c   :  { %2872 = vmatprep.subr.bf16.mxu1 %v4539_v20  ;;  %v211_v19 = vld [vmem:[%s7913_s4 + $0x3a8] sm:$0xff]  ;;  %v4592_v20 = vcombine.low %v198_v8, %v202_v9 }
  0x7d   :  { %1031 = vmatmul.mubr.bf16.gmra.mrb[44].mxu0 %v5720_v2  ;;  %v4603_v47 = vcombine.high %v207_v18, %v211_v19  ;;  %v255_v8 = vld [vmem:[%s7913_s4 + $0x508] sm:$0xff] }
  0x7e   :  { %1144 = vmatmul.mubr.bf16.gmra.mrb[44].mxu1 %v5720_v2  ;;  %2647 = vmatpush1.bf16.msra.mxu0 %v4536_v25  ;;  %v167_v2 = vld [vmem:[%s7913_s4 + $0x248] sm:$0xff]  ;;  %v218_v25 = vld [vmem:[%s7913_s4 + $0x3e0] sm:$0xff] }
  0x7f   :  { %2873 = vmatpush1.bf16.msra.mxu1 %v4538_v26  ;;  %2648 = vmatprep.subr.bf16.mxu0 %v4545_v29  ;;  %v4563_v48 = vcombine.high %v167_v2, %v171_v43  ;;  %v4562_v10 = vcombine.low %v167_v2, %v171_v43  ;;  %v219_v26 = vld [vmem:[%s7913_s4 + $0x3e8] sm:$0xff]  ;;  %v4600_v29 = vcombine.low %v206_v16, %v210_v17  ;;  %v230_v43 = vld [vmem:[%s7913_s4 + $0x440] sm:$0xff] }
  0x80   :  { %2874 = vmatprep.subr.bf16.mxu1 %v4547_v30  ;;  %1040 = vmatprep.mubr.bf16.mxu0 %v5443_v3  ;;  %v4602_v30 = vcombine.low %v207_v18, %v211_v19  ;;  %v4609_v32 = vcombine.high %v214_v24, %v218_v25  ;;  %v259_v9 = vld [vmem:[%s7913_s4 + $0x528] sm:$0xff]  ;;  %v6112_v16 = vld [vmem:[%s7912_s1 + $0x40] ss:$16 sps:$4 sm:$0xff]  }
  0x81   :  { %1153 = vmatprep.mubr.bf16.mxu1 %v5443_v3  ;;  %v263_v17 = vld [vmem:[%s7913_s4 + $0x548] sm:$0xff] }
  0x82   :  { %2649 = vmatpush1.bf16.msra.mxu0 %v4544_v37  ;;  %v226_v37 = vld [vmem:[%s7913_s4 + $0x420] sm:$0xff]  ;;  %v267_v18 = vld [vmem:[%s7913_s4 + $0x568] sm:$0xff] }
  0x83   :  { %2875 = vmatpush1.bf16.msra.mxu1 %v4546_v38  ;;  %2650 = vmatprep.subr.bf16.mxu0 %v4553_v39  ;;  %v223_v38 = vld [vmem:[%s7913_s4 + $0x408] sm:$0xff]  ;;  %v4617_v42 = vcombine.high %v222_v36, %v226_v37 }
  0x84   :  { %2876 = vmatprep.subr.bf16.mxu1 %v4555_v40  ;;  %v227_v39 = vld [vmem:[%s7913_s4 + $0x428] sm:$0xff]  ;;  %v4608_v40 = vcombine.low %v214_v24, %v218_v25  ;;  %v270_v24 = vld [vmem:[%s7913_s4 + $0x580] sm:$0xff] }
  0x85   :  { %1041 = vmatmul.mubr.bf16.gmra.mrb[48].mxu0 %v5756_v23  ;;  %v4619_v2 = vcombine.high %v223_v38, %v227_v39  ;;  %v4618_v49 = vcombine.low %v223_v38, %v227_v39  ;;  %v274_v25 = vld [vmem:[%s7913_s4 + $0x5a0] sm:$0xff]  ;;  %v279_v39 = vld [vmem:[%s7913_s4 + $0x5c8] sm:$0xff] }
  0x86   :  { %1154 = vmatmul.mubr.bf16.gmra.mrb[48].mxu1 %v5756_v23  ;;  %2651 = vmatpush1.bf16.msra.mxu0 %v4552_v44  ;;  %v183_v23 = vld [vmem:[%s7913_s4 + $0x2c8] sm:$0xff]  ;;  %v234_v44 = vld [vmem:[%s7913_s4 + $0x460] sm:$0xff] }
  0x87   :  { %2877 = vmatpush1.bf16.msra.mxu1 %v4554_v45  ;;  %2652 = vmatprep.subr.bf16.mxu0 %v4561_v46  ;;  %v4579_v62 = vcombine.high %v183_v23, %v187_v58  ;;  %v4578_v6 = vcombine.low %v183_v23, %v187_v58  ;;  %v231_v45 = vld [vmem:[%s7913_s4 + $0x448] sm:$0xff]  ;;  %v4625_v50 = vcombine.high %v230_v43, %v234_v44  ;;  %v6150_v38 = vld [vmem:[%s7912_s1 + $0x60] ss:$16 sps:$4 sm:$0xff]  }
  0x88   :  { %2878 = vmatprep.subr.bf16.mxu1 %v4563_v48  ;;  %1050 = vmatprep.mubr.bf16.mxu0 %v5443_v3  ;;  %v235_v46 = vld [vmem:[%s7913_s4 + $0x468] sm:$0xff]  ;;  %v4616_v48 = vcombine.low %v222_v36, %v226_v37  ;;  %v4624_v56 = vcombine.low %v230_v43, %v234_v44  ;;  %v278_v36 = vld [vmem:[%s7913_s4 + $0x5c0] sm:$0xff] }
  0x89   :  { %1163 = vmatprep.mubr.bf16.mxu1 %v5443_v3  ;;  %v4627_v51 = vcombine.high %v231_v45, %v235_v46  ;;  %v4626_v57 = vcombine.low %v231_v45, %v235_v46  ;;  %v282_v37 = vld [vmem:[%s7913_s4 + $0x5e0] sm:$0xff] }
  0x8a   :  { %2653 = vmatpush1.bf16.msra.mxu0 %v4560_v53  ;;  %v238_v53 = vld [vmem:[%s7913_s4 + $0x480] sm:$0xff] }
  0x8b   :  { %2879 = vmatpush1.bf16.msra.mxu1 %v4562_v10  ;;  %2654 = vmatprep.subr.bf16.mxu0 %v4569_v54  ;;  %v242_v10 = vld [vmem:[%s7913_s4 + $0x4a0] sm:$0xff]  ;;  %v239_v54 = vld [vmem:[%s7913_s4 + $0x488] sm:$0xff] }
  0x8c   :  { %2880 = vmatprep.subr.bf16.mxu1 %v4571_v55  ;;  %v243_v55 = vld [vmem:[%s7913_s4 + $0x4a8] sm:$0xff]  ;;  %v4633_v23 = vcombine.high %v238_v53, %v242_v10  ;;  %v4632_v0 = vcombine.low %v238_v53, %v242_v10  ;;  %v6161_v44 = vld [vmem:[%s7912_s1 + $0x84] ss:$16 sps:$4 sm:$0xff]  }
  0x8d   :  { %1051 = vmatmul.mubr.bf16.gmra.mrb[52].mxu0 %v5768_v27  ;;  %v4635_v58 = vcombine.high %v239_v54, %v243_v55  ;;  %v4634_v1 = vcombine.low %v239_v54, %v243_v55  ;;  %v286_v45 = vld [vmem:[%s7913_s4 + $0x600] sm:$0xff] }
  0x8e   :  { %1164 = vmatmul.mubr.bf16.gmra.mrb[52].mxu1 %v5768_v27  ;;  %2655 = vmatpush1.bf16.msra.mxu0 %v4568_v59  ;;  %v199_v27 = vld [vmem:[%s7913_s4 + $0x348] sm:$0xff]  ;;  %v246_v59 = vld [vmem:[%s7913_s4 + $0x4c0] sm:$0xff] }
  0x8f   :  { %2881 = vmatpush1.bf16.msra.mxu1 %v4570_v60  ;;  %2656 = vmatprep.subr.bf16.mxu0 %v4577_v61  ;;  %v4595_v15 = vcombine.high %v199_v27, %v203_v11  ;;  %v4594_v21 = vcombine.low %v199_v27, %v203_v11  ;;  %v250_v60 = vld [vmem:[%s7913_s4 + $0x4e0] sm:$0xff] }
  0x90   :  { %2882 = vmatprep.subr.bf16.mxu1 %v4579_v62  ;;  %1060 = vmatprep.mubr.bf16.mxu0 %v5443_v3  ;;  %v6074_v61 = vld [vmem:[%s7912_s1 + $0x20] ss:$16 sps:$4 sm:$0xff]   ;;  %v247_v62 = vld [vmem:[%s7913_s4 + $0x4c8] sm:$0xff]  ;;  %v4641_v4 = vcombine.high %v246_v59, %v250_v60  ;;  %v4640_v27 = vcombine.low %v246_v59, %v250_v60 }
  0x91   :  { %1173 = vmatprep.mubr.bf16.mxu1 %v5443_v3  ;;  %v4642_v11 = vcombine.low %v247_v62, %v251_v63  ;;  %v290_v46 = vld [vmem:[%s7913_s4 + $0x620] sm:$0xff] }
  0x92   :  { %2657 = vmatpush1.bf16.msra.mxu0 %v4576_v5  ;;  %v4643_v5 = vcombine.high %v247_v62, %v251_v63  ;;  %v4681_v53 = vcombine.high %v286_v45, %v290_v46  ;;  %v294_v54 = vld [vmem:[%s7913_s4 + $0x640] sm:$0xff] }
  0x93   :  { %2883 = vmatpush1.bf16.msra.mxu1 %v4578_v6  ;;  %2658 = vmatprep.subr.bf16.mxu0 %v4585_v28  ;;  %v6085_v6 = vld [vmem:[%s7912_s1 + $0x44] ss:$16 sps:$4 sm:$0xff]  }
  0x94   :  { %2884 = vmatprep.subr.bf16.mxu1 %v4587_v7  ;;  %v254_v28 = vld [vmem:[%s7913_s4 + $0x500] sm:$0xff] }
  0x95   :  { %1061 = vmatmul.mubr.bf16.gmra.mrb[56].mxu0 %v5780_v31  ;;  %v258_v7 = vld [vmem:[%s7913_s4 + $0x520] sm:$0xff] }
  0x96   :  { %1174 = vmatmul.mubr.bf16.gmra.mrb[56].mxu1 %v5780_v31  ;;  %2659 = vmatpush1.bf16.msra.mxu0 %v4584_v12  ;;  %v215_v31 = vld [vmem:[%s7913_s4 + $0x3c8] sm:$0xff]  ;;  %v4649_v12 = vcombine.high %v254_v28, %v258_v7  ;;  %v4648_v19 = vcombine.low %v254_v28, %v258_v7  ;;  %v298_v55 = vld [vmem:[%s7913_s4 + $0x660] sm:$0xff] }
  0x97   :  { %2885 = vmatpush1.bf16.msra.mxu1 %v4586_v13  ;;  %2660 = vmatprep.subr.bf16.mxu0 %v4593_v14  ;;  %v4611_v33 = vcombine.high %v215_v31, %v219_v26  ;;  %v4610_v41 = vcombine.low %v215_v31, %v219_v26  ;;  %v4651_v13 = vcombine.high %v255_v8, %v259_v9  ;;  %v262_v14 = vld [vmem:[%s7913_s4 + $0x540] sm:$0xff]  ;;  %v271_v31 = vld [vmem:[%s7913_s4 + $0x588] sm:$0xff] }
  0x98   :  { %2886 = vmatprep.subr.bf16.mxu1 %v4595_v15  ;;  %1070 = vmatprep.mubr.bf16.mxu0 %v5443_v3  ;;  %v266_v15 = vld [vmem:[%s7913_s4 + $0x560] sm:$0xff]  ;;  %v275_v26 = vld [vmem:[%s7913_s4 + $0x5a8] sm:$0xff]  ;;  %v4689_v60 = vcombine.high %v294_v54, %v298_v55  ;;  %v4688_v28 = vcombine.low %v294_v54, %v298_v55 }
  0x99   :  { %1183 = vmatprep.mubr.bf16.mxu1 %v5443_v3  ;;  %v6199_v63 = vld [vmem:[%s7912_s1 + $0xa4] ss:$16 sps:$4 sm:$0xff]  }
  0x9a   :  { %2661 = vmatpush1.bf16.msra.mxu0 %v4592_v20  ;;  %v4650_v20 = vcombine.low %v255_v8, %v259_v9  ;;  %v342_v54 = vld [vmem:[%s7913_s4 + $0x7c0] sm:$0xff] }
  0x9b   :  { %2887 = vmatpush1.bf16.msra.mxu1 %v4594_v21  ;;  %2662 = vmatprep.subr.bf16.mxu0 %v4601_v22  ;;  %v4657_v21 = vcombine.high %v262_v14, %v266_v15  ;;  %v4659_v22 = vcombine.high %v263_v17, %v267_v18  ;;  %v346_v55 = vld [vmem:[%s7913_s4 + $0x7e0] sm:$0xff] }
  0x9c   :  { %2888 = vmatprep.subr.bf16.mxu1 %v4603_v47  ;;  %v6123_v47 = vld [vmem:[%s7912_s1 + $0x64] ss:$16 sps:$4 sm:$0xff]  }
  0x9d   :  { %1071 = vmatmul.mubr.bf16.gmra.mrb[60].mxu0 %v5792_v34 }
  0x9e   :  { %1184 = vmatmul.mubr.bf16.gmra.mrb[60].mxu1 %v5792_v34  ;;  %2663 = vmatpush1.bf16.msra.mxu0 %v4600_v29  ;;  %v6035_v34 = vld [vmem:[%s7912_s1] ss:$16 sps:$4 sm:$0xff]   ;;  %v4656_v29 = vcombine.low %v262_v14, %v266_v15  ;;  %v315_v14 = vld [vmem:[%s7913_s4 + $0x6e8] sm:$0xff] }
  0x9f   :  { %2889 = vmatpush1.bf16.msra.mxu1 %v4602_v30  ;;  %2664 = vmatprep.subr.bf16.mxu0 %v4609_v32  ;;  %v4658_v30 = vcombine.low %v263_v17, %v267_v18  ;;  %v4665_v32 = vcombine.high %v270_v24, %v274_v25 }
  0xa0   :  { %2890 = vmatprep.subr.bf16.mxu1 %v4611_v33  ;;  %2666 = vmatprep.mubr.bf16.mxu0 %v6009_v35  ;;  %v4667_v33 = vcombine.high %v271_v31, %v275_v26 }
  0xa1   :  { %2892 = vmatprep.mubr.bf16.mxu1 %v6009_v35 }
  0xa2   :  { %2665 = vmatpush1.bf16.msra.mxu0 %v4608_v40  ;;  %v283_v40 = vld [vmem:[%s7913_s4 + $0x5e8] sm:$0xff] }
  0xa3   :  { %2891 = vmatpush1.bf16.msra.mxu1 %v4610_v41  ;;  %2747 = vmatprep.subr.bf16.mxu0 %v4617_v42  ;;  %v4664_v41 = vcombine.low %v270_v24, %v274_v25  ;;  %v4666_v42 = vcombine.low %v271_v31, %v275_v26  ;;  %v4675_v43 = vcombine.high %v279_v39, %v283_v40  ;;  %v319_v24 = vld [vmem:[%s7913_s4 + $0x708] sm:$0xff] }
  0xa4   :  { %2973 = vmatprep.subr.bf16.mxu1 %v4619_v2  ;;  %v4673_v2 = vcombine.high %v278_v36, %v282_v37  ;;  %v323_v25 = vld [vmem:[%s7913_s4 + $0x728] sm:$0xff] }
  0xa5   :  { %2667 = vmatmul.mubr.bf16.vlgmr.msra.gmra.mrb[0].mxu0 %v6035_v34 }
  0xa6   :  { %2893 = vmatmul.mubr.bf16.vlgmr.msra.gmra.mrb[0].mxu1 %v6035_v34  ;;  %2748 = vmatpush1.bf16.msra.mxu0 %v4616_v48  ;;  %v287_v48 = vld [vmem:[%s7913_s4 + $0x608] sm:$0xff] }
  0xa7   :  { %2974 = vmatpush1.bf16.msra.mxu1 %v4618_v49  ;;  %2749 = vmatprep.subr.bf16.mxu0 %v4625_v50  ;;  %v291_v49 = vld [vmem:[%s7913_s4 + $0x628] sm:$0xff]  ;;  %v4672_v50 = vcombine.low %v278_v36, %v282_v37  ;;  %v5150_v36 = vld [vmem:[%s7912_s1 + $0xc0] ss:$16 sps:$4 sm:$0xff]  }
  0xa8   :  { %2975 = vmatprep.subr.bf16.mxu1 %v4627_v51  ;;  %2676 = vmatprep.mubr.bf16.mxu0 %v6047_v52  ;;  %v4674_v51 = vcombine.low %v279_v39, %v283_v40  ;;  %v4683_v10 = vcombine.high %v287_v48, %v291_v49  ;;  %v4682_v59 = vcombine.low %v287_v48, %v291_v49  ;;  %v327_v37 = vld [vmem:[%s7913_s4 + $0x748] sm:$0xff] }
  0xa9   :  { %2902 = vmatprep.mubr.bf16.mxu1 %v6047_v52  ;;  %v331_v39 = vld [vmem:[%s7913_s4 + $0x768] sm:$0xff] }
  0xaa   :  { %2750 = vmatpush1.bf16.msra.mxu0 %v4624_v56  ;;  %v6188_v56 = vld [vmem:[%s7912_s1 + $0x80] ss:$16 sps:$4 sm:$0xff]   ;;  %v335_v48 = vld [vmem:[%s7913_s4 + $0x788] sm:$0xff] }
  0xab   :  { %2976 = vmatpush1.bf16.msra.mxu1 %v4626_v57  ;;  %2751 = vmatprep.subr.bf16.mxu0 %v4633_v23  ;;  %v295_v57 = vld [vmem:[%s7913_s4 + $0x648] sm:$0xff] }
  0xac   :  { %2977 = vmatprep.subr.bf16.mxu1 %v4635_v58  ;;  %v299_v23 = vld [vmem:[%s7913_s4 + $0x668] sm:$0xff]  ;;  %v4680_v58 = vcombine.low %v286_v45, %v290_v46  ;;  %v334_v45 = vld [vmem:[%s7913_s4 + $0x780] sm:$0xff] }
  0xad   :  { %2677 = vmatmul.mubr.bf16.gmra.mrb[4].mxu0 %v6074_v61  ;;  %v4691_v62 = vcombine.high %v295_v57, %v299_v23  ;;  %v4690_v7 = vcombine.low %v295_v57, %v299_v23  ;;  %v338_v46 = vld [vmem:[%s7913_s4 + $0x7a0] sm:$0xff]  ;;  %v339_v49 = vld [vmem:[%s7913_s4 + $0x7a8] sm:$0xff] }
  0xae   :  { %2903 = vmatmul.mubr.bf16.gmra.mrb[4].mxu1 %v6074_v61  ;;  %2752 = vmatpush1.bf16.msra.mxu0 %v4632_v0  ;;  %v302_v0 = vld [vmem:[%s7913_s4 + $0x680] sm:$0xff]  ;;  %v343_v23 = vld [vmem:[%s7913_s4 + $0x7c8] sm:$0xff] }
  0xaf   :  { %2978 = vmatpush1.bf16.msra.mxu1 %v4634_v1  ;;  %2753 = vmatprep.subr.bf16.mxu0 %v4641_v4  ;;  %v306_v1 = vld [vmem:[%s7913_s4 + $0x6a0] sm:$0xff]  ;;  %v303_v4 = vld [vmem:[%s7913_s4 + $0x688] sm:$0xff] }
  0xb0   :  { %2979 = vmatprep.subr.bf16.mxu1 %v4643_v5  ;;  %2686 = vmatprep.mubr.bf16.mxu0 %v6085_v6  ;;  %v307_v5 = vld [vmem:[%s7913_s4 + $0x6a8] sm:$0xff]  ;;  %v4697_v8 = vcombine.high %v302_v0, %v306_v1  ;;  %v4696_v15 = vcombine.low %v302_v0, %v306_v1  ;;  %v5153_v57 = vld [vmem:[%s7912_s1 + $0xe0] ss:$16 sps:$4 sm:$0xff]  }
  0xb1   :  { %2912 = vmatprep.mubr.bf16.mxu1 %v6085_v6  ;;  %v4699_v9 = vcombine.high %v303_v4, %v307_v5  ;;  %v4698_v17 = vcombine.low %v303_v4, %v307_v5  ;;  %v5156_v1 = vld [vmem:[%s7912_s1 + $0xc] ss:$16 sps:$4 sm:$0xff]   ;;  %v96_v4 = vld [vmem:[%s7913_s4 + $0x10] sm:$0xff] }
  0xb2   :  { %2754 = vmatpush1.bf16.msra.mxu0 %v4640_v27  ;;  %v310_v27 = vld [vmem:[%s7913_s4 + $0x6c0] sm:$0xff]  ;;  %v100_v5 = vld [vmem:[%s7913_s4 + $0x30] sm:$0xff] }
  0xb3   :  { %2980 = vmatpush1.bf16.msra.mxu1 %v4642_v11  ;;  %2755 = vmatprep.subr.bf16.mxu0 %v4649_v12  ;;  %v314_v11 = vld [vmem:[%s7913_s4 + $0x6e0] sm:$0xff] }
  0xb4   :  { %2981 = vmatprep.subr.bf16.mxu1 %v4651_v13  ;;  %v5147_v12 = vld [vmem:[%s7912_s1 + $0xa0] ss:$16 sps:$4 sm:$0xff]   ;;  %v311_v13 = vld [vmem:[%s7913_s4 + $0x6c8] sm:$0xff]  ;;  %v4705_v18 = vcombine.high %v310_v27, %v314_v11  ;;  %v4704_v31 = vcombine.low %v310_v27, %v314_v11  ;;  %v4493_v27 = vcombine.high %v96_v4, %v100_v5 }
  0xb5   :  { %2687 = vmatmul.mubr.bf16.gmra.mrb[8].mxu0 %v6112_v16  ;;  %v4706_v26 = vcombine.low %v311_v13, %v315_v14 }
  0xb6   :  { %2913 = vmatmul.mubr.bf16.gmra.mrb[8].mxu1 %v6112_v16  ;;  %2756 = vmatpush1.bf16.msra.mxu0 %v4648_v19  ;;  %v4707_v19 = vcombine.high %v311_v13, %v315_v14  ;;  %v108_v13 = vld [vmem:[%s7913_s4 + $0x70] sm:$0xff]  ;;  %v5154_v14 = vld [vmem:[%s7912_s1 + $0x8] ss:$16 sps:$4 sm:$0xff]  }
  0xb7   :  { %2982 = vmatpush1.bf16.msra.mxu1 %v4650_v20  ;;  %2757 = vmatprep.subr.bf16.mxu0 %v4657_v21  ;;  %v5148_v20 = vld [vmem:[%s7912_s1 + $0xc4] ss:$16 sps:$4 sm:$0xff]  }
  0xb8   :  { %2983 = vmatprep.subr.bf16.mxu1 %v4659_v22  ;;  %2696 = vmatprep.mubr.bf16.mxu0 %v6123_v47  ;;  %v318_v21 = vld [vmem:[%s7913_s4 + $0x700] sm:$0xff] }
  0xb9   :  { %2922 = vmatprep.mubr.bf16.mxu1 %v6123_v47  ;;  %v322_v22 = vld [vmem:[%s7913_s4 + $0x720] sm:$0xff] }
  0xba   :  { %2758 = vmatpush1.bf16.msra.mxu0 %v4656_v29  ;;  %v4713_v29 = vcombine.high %v318_v21, %v322_v22  ;;  %v4712_v40 = vcombine.low %v318_v21, %v322_v22  ;;  %v5157_v22 = vld [vmem:[%s7912_s1 + $0x2c] ss:$16 sps:$4 sm:$0xff]  }
  0xbb   :  { %2984 = vmatpush1.bf16.msra.mxu1 %v4658_v30  ;;  %2759 = vmatprep.subr.bf16.mxu0 %v4665_v32  ;;  %v4715_v30 = vcombine.high %v319_v24, %v323_v25  ;;  %v326_v32 = vld [vmem:[%s7913_s4 + $0x740] sm:$0xff] }
  0xbc   :  { %2985 = vmatprep.subr.bf16.mxu1 %v4667_v33  ;;  %v330_v33 = vld [vmem:[%s7913_s4 + $0x760] sm:$0xff] }
  0xbd   :  { %2697 = vmatmul.mubr.bf16.gmra.mrb[12].mxu0 %v6150_v38 }
  0xbe   :  { %2923 = vmatmul.mubr.bf16.gmra.mrb[12].mxu1 %v6150_v38  ;;  %2760 = vmatpush1.bf16.msra.mxu0 %v4664_v41  ;;  %v4714_v41 = vcombine.low %v319_v24, %v323_v25  ;;  %v112_v24 = vld [vmem:[%s7913_s4 + $0x90] sm:$0xff] }
  0xbf   :  { %2986 = vmatpush1.bf16.msra.mxu1 %v4666_v42  ;;  %2761 = vmatprep.subr.bf16.mxu0 %v4673_v2  ;;  %v4721_v42 = vcombine.high %v326_v32, %v330_v33  ;;  %v4723_v2 = vcombine.high %v327_v37, %v331_v39  ;;  %v116_v25 = vld [vmem:[%s7913_s4 + $0xb0] sm:$0xff] }
  0xc0   :  { %2987 = vmatprep.subr.bf16.mxu1 %v4675_v43  ;;  %2706 = vmatprep.mubr.bf16.mxu0 %v6161_v44  ;;  %v5151_v43 = vld [vmem:[%s7912_s1 + $0xe4] ss:$16 sps:$4 sm:$0xff]  }
  0xc1   :  { %2932 = vmatprep.mubr.bf16.mxu1 %v6161_v44 }
  0xc2   :  { %2762 = vmatpush1.bf16.msra.mxu0 %v4672_v50  ;;  %v4720_v50 = vcombine.low %v326_v32, %v330_v33  ;;  %v4509_v32 = vcombine.high %v112_v24, %v116_v25 }
  0xc3   :  { %2988 = vmatpush1.bf16.msra.mxu1 %v4674_v51  ;;  %2763 = vmatprep.subr.bf16.mxu0 %v4681_v53  ;;  %v4722_v51 = vcombine.low %v327_v37, %v331_v39  ;;  %v4729_v53 = vcombine.high %v334_v45, %v338_v46  ;;  %v124_v37 = vld [vmem:[%s7913_s4 + $0xf0] sm:$0xff]  ;;  %v6346_v39 = vld [vmem:[%s7912_s1 + $0x28] ss:$16 sps:$4 sm:$0xff]  }
  0xc4   :  { %2989 = vmatprep.subr.bf16.mxu1 %v4683_v10  ;;  %v4731_v10 = vcombine.high %v335_v48, %v339_v49 }
  0xc5   :  { %2707 = vmatmul.mubr.bf16.gmra.mrb[16].mxu0 %v6188_v56 }
  0xc6   :  { %2933 = vmatmul.mubr.bf16.gmra.mrb[16].mxu1 %v6188_v56  ;;  %2764 = vmatpush1.bf16.msra.mxu0 %v4680_v58  ;;  %v347_v58 = vld [vmem:[%s7913_s4 + $0x7e8] sm:$0xff] }
  0xc7   :  { %2990 = vmatpush1.bf16.msra.mxu1 %v4682_v59  ;;  %2765 = vmatprep.subr.bf16.mxu0 %v4689_v60  ;;  %v4728_v59 = vcombine.low %v334_v45, %v338_v46  ;;  %v4730_v60 = vcombine.low %v335_v48, %v339_v49  ;;  %v4739_v0 = vcombine.high %v343_v23, %v347_v58  ;;  %v6357_v46 = vld [vmem:[%s7912_s1 + $0x4c] ss:$16 sps:$4 sm:$0xff]   ;;  %v128_v48 = vld [vmem:[%s7913_s4 + $0x110] sm:$0xff] }
  0xc8   :  { %2991 = vmatprep.subr.bf16.mxu1 %v4691_v62  ;;  %2716 = vmatprep.mubr.bf16.mxu0 %v6199_v63  ;;  %v4737_v62 = vcombine.high %v342_v54, %v346_v55  ;;  %v132_v49 = vld [vmem:[%s7913_s4 + $0x130] sm:$0xff] }
  0xc9   :  { %2942 = vmatprep.mubr.bf16.mxu1 %v6199_v63 }
  0xca   :  { %2766 = vmatpush1.bf16.msra.mxu0 %v4688_v28  ;;  %v97_v28 = vld [vmem:[%s7913_s4 + $0x18] sm:$0xff] }
  0xcb   :  { %2992 = vmatpush1.bf16.msra.mxu1 %v4690_v7  ;;  %2767 = vmatprep.subr.bf16.mxu0 %v4697_v8  ;;  %v101_v7 = vld [vmem:[%s7913_s4 + $0x38] sm:$0xff]  ;;  %v4736_v8 = vcombine.low %v342_v54, %v346_v55  ;;  %v4525_v54 = vcombine.high %v128_v48, %v132_v49 }
  0xcc   :  { %2993 = vmatprep.subr.bf16.mxu1 %v4699_v9  ;;  %v4738_v9 = vcombine.low %v343_v23, %v347_v58  ;;  %v4495_v11 = vcombine.high %v97_v28, %v101_v7  ;;  %v140_v23 = vld [vmem:[%s7913_s4 + $0x170] sm:$0xff]  ;;  %v6384_v58 = vld [vmem:[%s7912_s1 + $0x48] ss:$16 sps:$4 sm:$0xff]  }
  0xcd   :  { %2717 = vmatmul.mubr.bf16.gmra.mrb[20].mxu0 %v5147_v12 }
  0xce   :  { %2943 = vmatmul.mubr.bf16.gmra.mrb[20].mxu1 %v5147_v12  ;;  %2768 = vmatpush1.bf16.msra.mxu0 %v4696_v15  ;;  %v104_v12 = vld [vmem:[%s7913_s4 + $0x50] sm:$0xff]  ;;  %v105_v15 = vld [vmem:[%s7913_s4 + $0x58] sm:$0xff] }
  0xcf   :  { %2994 = vmatpush1.bf16.msra.mxu1 %v4698_v17  ;;  %2769 = vmatprep.subr.bf16.mxu0 %v4705_v18  ;;  %v109_v17 = vld [vmem:[%s7913_s4 + $0x78] sm:$0xff]  ;;  %v4492_v18 = vcombine.low %v96_v4, %v100_v5 }
  0xd0   :  { %2995 = vmatprep.subr.bf16.mxu1 %v4707_v19  ;;  %2726 = vmatprep.mubr.bf16.mxu0 %v5148_v20  ;;  %v4494_v19 = vcombine.low %v97_v28, %v101_v7  ;;  %v4503_v21 = vcombine.high %v105_v15, %v109_v17  ;;  %v6395_v5 = vld [vmem:[%s7912_s1 + $0x6c] ss:$16 sps:$4 sm:$0xff]   ;;  %v144_v28 = vld [vmem:[%s7913_s4 + $0x190] sm:$0xff] }
  0xd1   :  { %2952 = vmatprep.mubr.bf16.mxu1 %v5148_v20  ;;  %v4501_v20 = vcombine.high %v104_v12, %v108_v13  ;;  %v148_v7 = vld [vmem:[%s7913_s4 + $0x1b0] sm:$0xff] }
  0xd2   :  { %2770 = vmatpush1.bf16.msra.mxu0 %v4704_v31  ;;  %v113_v31 = vld [vmem:[%s7913_s4 + $0x98] sm:$0xff] }
  0xd3   :  { %2996 = vmatpush1.bf16.msra.mxu1 %v4706_v26  ;;  %2771 = vmatprep.subr.bf16.mxu0 %v4713_v29  ;;  %v117_v26 = vld [vmem:[%s7913_s4 + $0xb8] sm:$0xff]  ;;  %v4500_v29 = vcombine.low %v104_v12, %v108_v13  ;;  %v4541_v12 = vcombine.high %v144_v28, %v148_v7 }
  0xd4   :  { %2997 = vmatprep.subr.bf16.mxu1 %v4715_v30  ;;  %v4502_v30 = vcombine.low %v105_v15, %v109_v17  ;;  %v4511_v33 = vcombine.high %v113_v31, %v117_v26  ;;  %v156_v15 = vld [vmem:[%s7913_s4 + $0x1f0] sm:$0xff]  ;;  %v6422_v17 = vld [vmem:[%s7912_s1 + $0x68] ss:$16 sps:$4 sm:$0xff]  }
  0xd5   :  { %2727 = vmatmul.mubr.bf16.gmra.mrb[24].mxu0 %v5150_v36 }
  0xd6   :  { %2953 = vmatmul.mubr.bf16.gmra.mrb[24].mxu1 %v5150_v36  ;;  %2772 = vmatpush1.bf16.msra.mxu0 %v4712_v40  ;;  %v120_v36 = vld [vmem:[%s7913_s4 + $0xd0] sm:$0xff]  ;;  %v121_v40 = vld [vmem:[%s7913_s4 + $0xd8] sm:$0xff] }
  0xd7   :  { %2998 = vmatpush1.bf16.msra.mxu1 %v4714_v41  ;;  %2773 = vmatprep.subr.bf16.mxu0 %v4721_v42  ;;  %v125_v41 = vld [vmem:[%s7913_s4 + $0xf8] sm:$0xff]  ;;  %v4508_v42 = vcombine.low %v112_v24, %v116_v25 }
  0xd8   :  { %2999 = vmatprep.subr.bf16.mxu1 %v4723_v2  ;;  %2736 = vmatprep.mubr.bf16.mxu0 %v5151_v43  ;;  %v4510_v2 = vcombine.low %v113_v31, %v117_v26  ;;  %v4519_v45 = vcombine.high %v121_v40, %v125_v41  ;;  %v6433_v25 = vld [vmem:[%s7912_s1 + $0x8c] ss:$16 sps:$4 sm:$0xff]   ;;  %v160_v31 = vld [vmem:[%s7913_s4 + $0x210] sm:$0xff] }
  0xd9   :  { %2962 = vmatprep.mubr.bf16.mxu1 %v5151_v43  ;;  %v4517_v43 = vcombine.high %v120_v36, %v124_v37  ;;  %v164_v26 = vld [vmem:[%s7913_s4 + $0x230] sm:$0xff] }
  0xda   :  { %2774 = vmatpush1.bf16.msra.mxu0 %v4720_v50  ;;  %v129_v50 = vld [vmem:[%s7913_s4 + $0x118] sm:$0xff] }
  0xdb   :  { %3000 = vmatpush1.bf16.msra.mxu1 %v4722_v51  ;;  %2775 = vmatprep.subr.bf16.mxu0 %v4729_v53  ;;  %v133_v51 = vld [vmem:[%s7913_s4 + $0x138] sm:$0xff]  ;;  %v4516_v53 = vcombine.low %v120_v36, %v124_v37  ;;  %v4557_v36 = vcombine.high %v160_v31, %v164_v26 }
  0xdc   :  { %3001 = vmatprep.subr.bf16.mxu1 %v4731_v10  ;;  %v4518_v10 = vcombine.low %v121_v40, %v125_v41  ;;  %v4527_v55 = vcombine.high %v129_v50, %v133_v51  ;;  %v168_v40 = vld [vmem:[%s7913_s4 + $0x250] sm:$0xff] }
  0xdd   :  { %2737 = vmatmul.mubr.bf16.gmra.mrb[28].mxu0 %v5153_v57  ;;  %v172_v41 = vld [vmem:[%s7913_s4 + $0x270] sm:$0xff] }
  0xde   :  { %2963 = vmatmul.mubr.bf16.gmra.mrb[28].mxu1 %v5153_v57  ;;  %2776 = vmatpush1.bf16.msra.mxu0 %v4728_v59  ;;  %v136_v57 = vld [vmem:[%s7913_s4 + $0x150] sm:$0xff]  ;;  %v137_v59 = vld [vmem:[%s7913_s4 + $0x158] sm:$0xff] }
  0xdf   :  { %3002 = vmatpush1.bf16.msra.mxu1 %v4730_v60  ;;  %2777 = vmatprep.subr.bf16.mxu0 %v4737_v62  ;;  %v141_v60 = vld [vmem:[%s7913_s4 + $0x178] sm:$0xff]  ;;  %v4524_v62 = vcombine.low %v128_v48, %v132_v49  ;;  %v4565_v49 = vcombine.high %v168_v40, %v172_v41 }
  0xe0   :  { %3003 = vmatprep.subr.bf16.mxu1 %v4739_v0  ;;  %2779 = vmatprep.mubr.bf16.mxu0 %v5156_v1  ;;  %v4526_v0 = vcombine.low %v129_v50, %v133_v51  ;;  %v4535_v4 = vcombine.high %v137_v59, %v141_v60  ;;  %v6471_v51 = vld [vmem:[%s7912_s1 + $0xac] ss:$16 sps:$4 sm:$0xff]  }
  0xe1   :  { %3005 = vmatprep.mubr.bf16.mxu1 %v5156_v1  ;;  %v4533_v1 = vcombine.high %v136_v57, %v140_v23 }
  0xe2   :  { %2778 = vmatpush1.bf16.msra.mxu0 %v4736_v8  ;;  %v145_v8 = vld [vmem:[%s7913_s4 + $0x198] sm:$0xff] }
  0xe3   :  { %3004 = vmatpush1.bf16.msra.mxu1 %v4738_v9  ;;  %3086 = vmatprep.subr.bf16.mxu0 %v4493_v27  ;;  %v149_v9 = vld [vmem:[%s7913_s4 + $0x1b8] sm:$0xff]  ;;  %v4532_v27 = vcombine.low %v136_v57, %v140_v23  ;;  %v4564_v57 = vcombine.low %v168_v40, %v172_v41  ;;  %v208_v40 = vld [vmem:[%s7913_s4 + $0x390] sm:$0xff] }
  0xe4   :  { %3312 = vmatprep.subr.bf16.mxu1 %v4495_v11  ;;  %v4534_v11 = vcombine.low %v137_v59, %v141_v60  ;;  %v4543_v13 = vcombine.high %v145_v8, %v149_v9  ;;  %v212_v41 = vld [vmem:[%s7913_s4 + $0x3b0] sm:$0xff] }
  0xe5   :  { %2780 = vmatmul.mubr.bf16.vlgmr.msra.gmra.mrb[0].mxu0 %v5154_v14 }
  0xe6   :  { %3006 = vmatmul.mubr.bf16.vlgmr.msra.gmra.mrb[0].mxu1 %v5154_v14  ;;  %3087 = vmatpush1.bf16.msra.mxu0 %v4492_v18  ;;  %v152_v14 = vld [vmem:[%s7913_s4 + $0x1d0] sm:$0xff]  ;;  %v153_v18 = vld [vmem:[%s7913_s4 + $0x1d8] sm:$0xff] }
  0xe7   :  { %3313 = vmatpush1.bf16.msra.mxu1 %v4494_v19  ;;  %3088 = vmatprep.subr.bf16.mxu0 %v4501_v20  ;;  %v157_v19 = vld [vmem:[%s7913_s4 + $0x1f8] sm:$0xff]  ;;  %v4540_v20 = vcombine.low %v144_v28, %v148_v7 }
  0xe8   :  { %3314 = vmatprep.subr.bf16.mxu1 %v4503_v21  ;;  %2789 = vmatprep.mubr.bf16.mxu0 %v5157_v22  ;;  %v4542_v21 = vcombine.low %v145_v8, %v149_v9  ;;  %v4551_v24 = vcombine.high %v153_v18, %v157_v19  ;;  %v189_v28 = vld [vmem:[%s7913_s4 + $0x2f8] sm:$0xff] }
  0xe9   :  { %3015 = vmatprep.mubr.bf16.mxu1 %v5157_v22  ;;  %v4549_v22 = vcombine.high %v152_v14, %v156_v15 }
  0xea   :  { %3089 = vmatpush1.bf16.msra.mxu0 %v4500_v29  ;;  %v161_v29 = vld [vmem:[%s7913_s4 + $0x218] sm:$0xff] }
  0xeb   :  { %3315 = vmatpush1.bf16.msra.mxu1 %v4502_v30  ;;  %3090 = vmatprep.subr.bf16.mxu0 %v4509_v32  ;;  %v165_v30 = vld [vmem:[%s7913_s4 + $0x238] sm:$0xff]  ;;  %v4548_v32 = vcombine.low %v152_v14, %v156_v15 }
  0xec   :  { %3316 = vmatprep.subr.bf16.mxu1 %v4511_v33  ;;  %v4550_v33 = vcombine.low %v153_v18, %v157_v19  ;;  %v4559_v37 = vcombine.high %v161_v29, %v165_v30  ;;  %v4558_v48 = vcombine.low %v161_v29, %v165_v30  ;;  %v193_v14 = vld [vmem:[%s7913_s4 + $0x318] sm:$0xff] }
  0xed   :  { %2790 = vmatmul.mubr.bf16.gmra.mrb[4].mxu0 %v6346_v39  ;;  %v197_v15 = vld [vmem:[%s7913_s4 + $0x338] sm:$0xff] }
  0xee   :  { %3016 = vmatmul.mubr.bf16.gmra.mrb[4].mxu1 %v6346_v39  ;;  %3091 = vmatpush1.bf16.msra.mxu0 %v4508_v42  ;;  %v6460_v42 = vld [vmem:[%s7912_s1 + $0x88] ss:$16 sps:$4 sm:$0xff]  }
  0xef   :  { %3317 = vmatpush1.bf16.msra.mxu1 %v4510_v2  ;;  %3092 = vmatprep.subr.bf16.mxu0 %v4517_v43  ;;  %v169_v2 = vld [vmem:[%s7913_s4 + $0x258] sm:$0xff] }
  0xf0   :  { %3318 = vmatprep.subr.bf16.mxu1 %v4519_v45  ;;  %2799 = vmatprep.mubr.bf16.mxu0 %v6357_v46  ;;  %v173_v43 = vld [vmem:[%s7913_s4 + $0x278] sm:$0xff]  ;;  %v4556_v45 = vcombine.low %v160_v31, %v164_v26 }
  0xf1   :  { %3025 = vmatprep.mubr.bf16.mxu1 %v6357_v46  ;;  %v4567_v50 = vcombine.high %v169_v2, %v173_v43  ;;  %v4566_v23 = vcombine.low %v169_v2, %v173_v43  ;;  %v6536_v31 = vld [vmem:[%s7912_s1 + $0xc8] ss:$16 sps:$4 sm:$0xff]  }
  0xf2   :  { %3093 = vmatpush1.bf16.msra.mxu0 %v4516_v53  ;;  %v176_v53 = vld [vmem:[%s7913_s4 + $0x290] sm:$0xff]  ;;  %v201_v26 = vld [vmem:[%s7913_s4 + $0x358] sm:$0xff] }
  0xf3   :  { %3319 = vmatpush1.bf16.msra.mxu1 %v4518_v10  ;;  %3094 = vmatprep.subr.bf16.mxu0 %v4525_v54  ;;  %v180_v10 = vld [vmem:[%s7913_s4 + $0x2b0] sm:$0xff]  ;;  %v177_v54 = vld [vmem:[%s7913_s4 + $0x298] sm:$0xff] }
  0xf4   :  { %3320 = vmatprep.subr.bf16.mxu1 %v4527_v55  ;;  %v181_v55 = vld [vmem:[%s7913_s4 + $0x2b8] sm:$0xff]  ;;  %v4573_v59 = vcombine.high %v176_v53, %v180_v10  ;;  %v4572_v7 = vcombine.low %v176_v53, %v180_v10  ;;  %v216_v53 = vld [vmem:[%s7913_s4 + $0x3d0] sm:$0xff] }
  0xf5   :  { %2800 = vmatmul.mubr.bf16.gmra.mrb[8].mxu0 %v6384_v58  ;;  %v4575_v60 = vcombine.high %v177_v54, %v181_v55  ;;  %v4574_v8 = vcombine.low %v177_v54, %v181_v55  ;;  %v205_v29 = vld [vmem:[%s7913_s4 + $0x378] sm:$0xff]  ;;  %v220_v10 = vld [vmem:[%s7913_s4 + $0x3f0] sm:$0xff] }
  0xf6   :  { %3026 = vmatmul.mubr.bf16.gmra.mrb[8].mxu1 %v6384_v58  ;;  %3095 = vmatpush1.bf16.msra.mxu0 %v4524_v62  ;;  %v184_v62 = vld [vmem:[%s7913_s4 + $0x2d0] sm:$0xff]  ;;  %v209_v2 = vld [vmem:[%s7913_s4 + $0x398] sm:$0xff] }
  0xf7   :  { %3321 = vmatpush1.bf16.msra.mxu1 %v4526_v0  ;;  %3096 = vmatprep.subr.bf16.mxu0 %v4533_v1  ;;  %v188_v0 = vld [vmem:[%s7913_s4 + $0x2f0] sm:$0xff]  ;;  %v6498_v1 = vld [vmem:[%s7912_s1 + $0xa8] ss:$16 sps:$4 sm:$0xff]  }
  0xf8   :  { %3322 = vmatprep.subr.bf16.mxu1 %v4535_v4  ;;  %2809 = vmatprep.mubr.bf16.mxu0 %v6395_v5  ;;  %v185_v4 = vld [vmem:[%s7913_s4 + $0x2d8] sm:$0xff]  ;;  %v4581_v9 = vcombine.high %v184_v62, %v188_v0  ;;  %v4580_v18 = vcombine.low %v184_v62, %v188_v0  ;;  %v224_v0 = vld [vmem:[%s7913_s4 + $0x410] sm:$0xff] }
  0xf9   :  { %3035 = vmatprep.mubr.bf16.mxu1 %v6395_v5  ;;  %v4582_v19 = vcombine.low %v185_v4, %v189_v28  ;;  %v213_v43 = vld [vmem:[%s7913_s4 + $0x3b8] sm:$0xff] }
  0xfa   :  { %3097 = vmatpush1.bf16.msra.mxu0 %v4532_v27  ;;  %v4583_v27 = vcombine.high %v185_v4, %v189_v28  ;;  %v6574_v54 = vld [vmem:[%s7912_s1 + $0xe8] ss:$16 sps:$4 sm:$0xff]   ;;  %v228_v4 = vld [vmem:[%s7913_s4 + $0x430] sm:$0xff] }
  0xfb   :  { %3323 = vmatpush1.bf16.msra.mxu1 %v4534_v11  ;;  %3098 = vmatprep.subr.bf16.mxu0 %v4541_v12  ;;  %v6509_v11 = vld [vmem:[%s7912_s1 + $0xcc] ss:$16 sps:$4 sm:$0xff]   ;;  %v192_v12 = vld [vmem:[%s7913_s4 + $0x310] sm:$0xff] }
  0xfc   :  { %3324 = vmatprep.subr.bf16.mxu1 %v4543_v13  ;;  %v196_v13 = vld [vmem:[%s7913_s4 + $0x330] sm:$0xff]  ;;  %v217_v55 = vld [vmem:[%s7913_s4 + $0x3d8] sm:$0xff] }
  0xfd   :  { %2810 = vmatmul.mubr.bf16.gmra.mrb[12].mxu0 %v6422_v17  ;;  %v4588_v30 = vcombine.low %v192_v12, %v196_v13  ;;  %v225_v28 = vld [vmem:[%s7913_s4 + $0x418] sm:$0xff] }
  0xfe   :  { %3036 = vmatmul.mubr.bf16.gmra.mrb[12].mxu1 %v6422_v17  ;;  %3099 = vmatpush1.bf16.msra.mxu0 %v4540_v20  ;;  %v4589_v20 = vcombine.high %v192_v12, %v196_v13  ;;  %v232_v13 = vld [vmem:[%s7913_s4 + $0x450] sm:$0xff] }
  0xff   :  { %3325 = vmatpush1.bf16.msra.mxu1 %v4542_v21  ;;  %3100 = vmatprep.subr.bf16.mxu0 %v4549_v22  ;;  %v4591_v21 = vcombine.high %v193_v14, %v197_v15  ;;  %v200_v22 = vld [vmem:[%s7913_s4 + $0x350] sm:$0xff] }
 0x100   :  { %3326 = vmatprep.subr.bf16.mxu1 %v4551_v24  ;;  %2819 = vmatprep.mubr.bf16.mxu0 %v6433_v25  ;;  %v204_v24 = vld [vmem:[%s7913_s4 + $0x370] sm:$0xff] }
 0x101   :  { %3045 = vmatprep.mubr.bf16.mxu1 %v6433_v25 }
 0x102   :  { %3101 = vmatpush1.bf16.msra.mxu0 %v4548_v32  ;;  %v4590_v32 = vcombine.low %v193_v14, %v197_v15  ;;  %v236_v14 = vld [vmem:[%s7913_s4 + $0x470] sm:$0xff]  ;;  %v233_v15 = vld [vmem:[%s7913_s4 + $0x458] sm:$0xff] }
 0x103   :  { %3327 = vmatpush1.bf16.msra.mxu1 %v4550_v33  ;;  %3102 = vmatprep.subr.bf16.mxu0 %v4557_v36  ;;  %v4597_v33 = vcombine.high %v200_v22, %v204_v24  ;;  %v4599_v36 = vcombine.high %v201_v26, %v205_v29 }
 0x104   :  { %3328 = vmatprep.subr.bf16.mxu1 %v4559_v37  ;;  %v6547_v37 = vld [vmem:[%s7912_s1 + $0xec] ss:$16 sps:$4 sm:$0xff]  }
 0x105   :  { %2820 = vmatmul.mubr.bf16.gmra.mrb[16].mxu0 %v6460_v42 }
 0x106   :  { %3046 = vmatmul.mubr.bf16.gmra.mrb[16].mxu1 %v6460_v42  ;;  %3103 = vmatpush1.bf16.msra.mxu0 %v4556_v45  ;;  %v4596_v45 = vcombine.low %v200_v22, %v204_v24  ;;  %v244_v24 = vld [vmem:[%s7913_s4 + $0x4b0] sm:$0xff] }
 0x107   :  { %3329 = vmatpush1.bf16.msra.mxu1 %v4558_v48  ;;  %3104 = vmatprep.subr.bf16.mxu0 %v4565_v49  ;;  %v4598_v48 = vcombine.low %v201_v26, %v205_v29  ;;  %v4605_v49 = vcombine.high %v208_v40, %v212_v41  ;;  %v241_v26 = vld [vmem:[%s7913_s4 + $0x498] sm:$0xff] }
 0x108   :  { %3330 = vmatprep.subr.bf16.mxu1 %v4567_v50  ;;  %2829 = vmatprep.mubr.bf16.mxu0 %v6471_v51  ;;  %v4607_v50 = vcombine.high %v209_v2, %v213_v43  ;;  %v245_v29 = vld [vmem:[%s7913_s4 + $0x4b8] sm:$0xff] }
 0x109   :  { %3055 = vmatprep.mubr.bf16.mxu1 %v6471_v51 }
 0x10a   :  { %3105 = vmatpush1.bf16.msra.mxu0 %v4564_v57  ;;  %v221_v57 = vld [vmem:[%s7913_s4 + $0x3f8] sm:$0xff] }
 0x10b   :  { %3331 = vmatpush1.bf16.msra.mxu1 %v4566_v23  ;;  %3106 = vmatprep.subr.bf16.mxu0 %v4573_v59  ;;  %v4604_v23 = vcombine.low %v208_v40, %v212_v41  ;;  %v4606_v59 = vcombine.low %v209_v2, %v213_v43  ;;  %v4615_v62 = vcombine.high %v217_v55, %v221_v57  ;;  %v248_v40 = vld [vmem:[%s7913_s4 + $0x4d0] sm:$0xff]  ;;  %v253_v2 = vld [vmem:[%s7913_s4 + $0x4f8] sm:$0xff] }
 0x10c   :  { %3332 = vmatprep.subr.bf16.mxu1 %v4575_v60  ;;  %v4613_v60 = vcombine.high %v216_v53, %v220_v10  ;;  %v252_v41 = vld [vmem:[%s7913_s4 + $0x4f0] sm:$0xff] }
 0x10d   :  { %2830 = vmatmul.mubr.bf16.gmra.mrb[20].mxu0 %v6498_v1 }
 0x10e   :  { %3056 = vmatmul.mubr.bf16.gmra.mrb[20].mxu1 %v6498_v1  ;;  %3107 = vmatpush1.bf16.msra.mxu0 %v4572_v7  ;;  %v229_v7 = vld [vmem:[%s7913_s4 + $0x438] sm:$0xff] }
 0x10f   :  { %3333 = vmatpush1.bf16.msra.mxu1 %v4574_v8  ;;  %3108 = vmatprep.subr.bf16.mxu0 %v4581_v9  ;;  %v4612_v8 = vcombine.low %v216_v53, %v220_v10  ;;  %v4614_v9 = vcombine.low %v217_v55, %v221_v57  ;;  %v4623_v12 = vcombine.high %v225_v28, %v229_v7  ;;  %v257_v53 = vld [vmem:[%s7913_s4 + $0x518] sm:$0xff] }
 0x110   :  { %3334 = vmatprep.subr.bf16.mxu1 %v4583_v27  ;;  %2839 = vmatprep.mubr.bf16.mxu0 %v6509_v11  ;;  %v4621_v27 = vcombine.high %v224_v0, %v228_v4  ;;  %v261_v10 = vld [vmem:[%s7913_s4 + $0x538] sm:$0xff]  ;;  %v4644_v55 = vcombine.low %v248_v40, %v252_v41 }
 0x111   :  { %3065 = vmatprep.mubr.bf16.mxu1 %v6509_v11 }
 0x112   :  { %3109 = vmatpush1.bf16.msra.mxu0 %v4580_v18  ;;  %v237_v18 = vld [vmem:[%s7913_s4 + $0x478] sm:$0xff] }
 0x113   :  { %3335 = vmatpush1.bf16.msra.mxu1 %v4582_v19  ;;  %3110 = vmatprep.subr.bf16.mxu0 %v4589_v20  ;;  %v4620_v19 = vcombine.low %v224_v0, %v228_v4  ;;  %v4622_v20 = vcombine.low %v225_v28, %v229_v7  ;;  %v4631_v22 = vcombine.high %v233_v15, %v237_v18  ;;  %v269_v0 = vld [vmem:[%s7913_s4 + $0x578] sm:$0xff] }
 0x114   :  { %3336 = vmatprep.subr.bf16.mxu1 %v4591_v21  ;;  %v4629_v21 = vcombine.high %v232_v13, %v236_v14  ;;  %v4654_v28 = vcombine.low %v257_v53, %v261_v10 }
 0x115   :  { %2840 = vmatmul.mubr.bf16.gmra.mrb[24].mxu0 %v6536_v31 }
 0x116   :  { %3066 = vmatmul.mubr.bf16.gmra.mrb[24].mxu1 %v6536_v31  ;;  %3111 = vmatpush1.bf16.msra.mxu0 %v4588_v30  ;;  %v4628_v30 = vcombine.low %v232_v13, %v236_v14  ;;  %v3708_v14 = vld [vmem:[%s7914_s0] sm:$0xff] }
 0x117   :  { %3337 = vmatpush1.bf16.msra.mxu1 %v4590_v32  ;;  %3112 = vmatprep.subr.bf16.mxu0 %v4597_v33  ;;  %v4630_v32 = vcombine.low %v233_v15, %v237_v18  ;;  %vm3724_vm0 = vcmp.gt.f32.partialorder %v3708_v14, 0.5  ;;  %v316_v14 = vld [vmem:[%s7913_s4 + $0x6f0] sm:$0xff] }
 0x118   :  { %3338 = vmatprep.subr.bf16.mxu1 %v4599_v36  ;;  %2849 = vmatprep.mubr.bf16.mxu0 %v6547_v37  ;;  %v4639_v36 = vcombine.high %v241_v26, %v245_v29 }
 0x119   :  { %3075 = vmatprep.mubr.bf16.mxu1 %v6547_v37 }
 0x11a   :  { %3113 = vmatpush1.bf16.msra.mxu0 %v4596_v45  ;;  %v4638_v45 = vcombine.low %v241_v26, %v245_v29  ;;  %v3709_v26 = vld [vmem:[%s7914_s0 + $0x8] sm:$0xff] }
 0x11b   :  { %3339 = vmatpush1.bf16.msra.mxu1 %v4598_v48  ;;  %3114 = vmatprep.subr.bf16.mxu0 %v4605_v49  ;;  %v4645_v48 = vcombine.high %v248_v40, %v252_v41  ;;  %vm3725_vm1 = vcmp.gt.f32.partialorder %v3709_v26, 0.5  ;;  %v289_v41 = vld [vmem:[%s7913_s4 + $0x618] sm:$0xff]  ;;  %v320_v26 = vld [vmem:[%s7913_s4 + $0x710] sm:$0xff] }
 0x11c   :  { %3340 = vmatprep.subr.bf16.mxu1 %v4607_v50  ;;  %v260_v50 = vld [vmem:[%s7913_s4 + $0x530] sm:$0xff]  ;;  %v3741_v40 = vsel %vm3725_vm1, 1, %v5443_v3 }
 0x11d   :  { %2850 = vmatmul.mubr.bf16.gmra.mrb[28].mxu0 %v6574_v54 }
 0x11e   :  { %3076 = vmatmul.mubr.bf16.gmra.mrb[28].mxu1 %v6574_v54  ;;  %3115 = vmatpush1.bf16.msra.mxu0 %v4604_v23 }
 0x11f   :  { %3341 = vmatpush1.bf16.msra.mxu1 %v4606_v59  ;;  %3116 = vmatprep.subr.bf16.mxu0 %v4613_v60  ;;  %v4655_v59 = vcombine.high %v257_v53, %v261_v10  ;;  %v264_v60 = vld [vmem:[%s7913_s4 + $0x550] sm:$0xff]  ;;  %v297_v53 = vld [vmem:[%s7913_s4 + $0x658] sm:$0xff] }
 0x120   :  { %3342 = vmatprep.subr.bf16.mxu1 %v4615_v62  ;;  %3118 = vmatprep.mubr.bf16.mxu0 %v6009_v35  ;;  %v268_v62 = vld [vmem:[%s7913_s4 + $0x570] sm:$0xff]  ;;  %v301_v10 = vld [vmem:[%s7913_s4 + $0x678] sm:$0xff] }
 0x121   :  { %3344 = vmatprep.mubr.bf16.mxu1 %v6009_v35  ;;  %v240_v35 = vld [vmem:[%s7913_s4 + $0x490] sm:$0xff]  ;;  %v4661_v7 = vcombine.high %v264_v60, %v268_v62  ;;  %v4660_v13 = vcombine.low %v264_v60, %v268_v62  ;;  %v3712_v60 = vld [vmem:[%s7914_s0 + $0x20] sm:$0xff]  ;;  %v4695_v62 = vcombine.high %v297_v53, %v301_v10 }
 0x122   :  { %3117 = vmatpush1.bf16.msra.mxu0 %v4612_v8  ;;  %v4637_v33 = vcombine.high %v240_v35, %v244_v24  ;;  %v4636_v43 = vcombine.low %v240_v35, %v244_v24  ;;  %v285_v35 = vld [vmem:[%s7913_s4 + $0x5f8] sm:$0xff]  ;;  %vm3728_vm5 = vcmp.gt.f32.partialorder %v3712_v60, 0.5  ;;  %v340_v60 = vld [vmem:[%s7913_s4 + $0x7b0] sm:$0xff] }
 0x123   :  { %3343 = vmatpush1.bf16.msra.mxu1 %v4614_v9  ;;  %3199 = vmatprep.subr.bf16.mxu0 %v4621_v27  ;;  %v276_v9 = vld [vmem:[%s7913_s4 + $0x5b0] sm:$0xff]  ;;  %v273_v27 = vld [vmem:[%s7913_s4 + $0x598] sm:$0xff] }
 0x124   :  { %3425 = vmatprep.subr.bf16.mxu1 %v4623_v12  ;;  %v277_v12 = vld [vmem:[%s7913_s4 + $0x5b8] sm:$0xff] }
 0x125   :  { %3119 = vmatmul.mubr.bf16.vlgmr.msra.gmra.mrb[32].mxu0 %v6035_v34  ;;  %v4670_v29 = vcombine.low %v273_v27, %v277_v12 }
 0x126   :  { %3345 = vmatmul.mubr.bf16.vlgmr.msra.gmra.mrb[32].mxu1 %v6035_v34  ;;  %3200 = vmatpush1.bf16.msra.mxu0 %v4620_v19  ;;  %v249_v34 = vld [vmem:[%s7913_s4 + $0x4d8] sm:$0xff]  ;;  %v4671_v19 = vcombine.high %v273_v27, %v277_v12  ;;  %v3744_v27 = vsel %vm3728_vm5, 1, %v5443_v3 }
 0x127   :  { %3426 = vmatpush1.bf16.msra.mxu1 %v4622_v20  ;;  %3201 = vmatprep.subr.bf16.mxu0 %v4629_v21  ;;  %v4647_v49 = vcombine.high %v249_v34, %v253_v2  ;;  %v4646_v57 = vcombine.low %v249_v34, %v253_v2  ;;  %v280_v20 = vld [vmem:[%s7913_s4 + $0x5d0] sm:$0xff]  ;;  %v3740_v21 = vsel %vm3724_vm0, 1, %v5443_v3  ;;  %v293_v34 = vld [vmem:[%s7913_s4 + $0x638] sm:$0xff] }
 0x128   :  { %3427 = vmatprep.subr.bf16.mxu1 %v4631_v22  ;;  %3128 = vmatprep.mubr.bf16.mxu0 %v6047_v52  ;;  %v281_v22 = vld [vmem:[%s7913_s4 + $0x5d8] sm:$0xff] }
 0x129   :  { %3354 = vmatprep.mubr.bf16.mxu1 %v6047_v52  ;;  %v256_v52 = vld [vmem:[%s7913_s4 + $0x510] sm:$0xff]  ;;  %3757 = vperm.xlu0 %5128, %v3740_v21   ;;  %v3715_v12 = vld [vmem:[%s7914_s0 + $0x38] sm:$0xff] }
 0x12a   :  { %3202 = vmatpush1.bf16.msra.mxu0 %v4628_v30  ;;  %v4653_v23 = vcombine.high %v256_v52, %v260_v50  ;;  %v4652_v4 = vcombine.low %v256_v52, %v260_v50  ;;  %v4687_v52 = vcombine.high %v289_v41, %v293_v34  ;;  %v300_v50 = vld [vmem:[%s7913_s4 + $0x670] sm:$0xff]  ;;  %vm3731_vm6 = vcmp.gt.f32.partialorder %v3715_v12, 0.5 }
 0x12b   :  { %3428 = vmatpush1.bf16.msra.mxu1 %v4630_v32  ;;  %3203 = vmatprep.subr.bf16.mxu0 %v4637_v33  ;;  %v4679_v32 = vcombine.high %v281_v22, %v285_v35  ;;  %v288_v33 = vld [vmem:[%s7913_s4 + $0x610] sm:$0xff] }
 0x12c   :  { %3429 = vmatprep.subr.bf16.mxu1 %v4639_v36  ;;  %v292_v36 = vld [vmem:[%s7913_s4 + $0x630] sm:$0xff] }
 0x12d   :  { %3129 = vmatmul.mubr.bf16.gmra.mrb[36].mxu0 %v6074_v61  ;;  %3760 = vperm.xlu0 %5128, %v3741_v40  }
 0x12e   :  { %3355 = vmatmul.mubr.bf16.gmra.mrb[36].mxu1 %v6074_v61  ;;  %3204 = vmatpush1.bf16.msra.mxu0 %v4636_v43  ;;  %v265_v61 = vld [vmem:[%s7913_s4 + $0x558] sm:$0xff] }
 0x12f   :  { %3430 = vmatpush1.bf16.msra.mxu1 %v4638_v45  ;;  %3205 = vmatprep.subr.bf16.mxu0 %v4645_v48  ;;  %v4663_v8 = vcombine.high %v265_v61, %v269_v0  ;;  %v4662_v15 = vcombine.low %v265_v61, %v269_v0  ;;  %v4678_v45 = vcombine.low %v281_v22, %v285_v35  ;;  %v304_v61 = vld [vmem:[%s7913_s4 + $0x690] sm:$0xff]  ;;  %v3717_v35 = vld [vmem:[%s7914_s0 + $0x48] sm:$0xff] }
 0x130   :  { %3431 = vmatprep.subr.bf16.mxu1 %v4647_v49  ;;  %3138 = vmatprep.mubr.bf16.mxu0 %v6085_v6  ;;  %v4685_v48 = vcombine.high %v288_v33, %v292_v36  ;;  %v3711_v49 = vld [vmem:[%s7914_s0 + $0x18] sm:$0xff]  ;;  %v308_v0 = vld [vmem:[%s7913_s4 + $0x6b0] sm:$0xff]  ;;  %vm3733_vm8 = vcmp.gt.f32.partialorder %v3717_v35, 0.5 }
 0x131   :  { %3364 = vmatprep.mubr.bf16.mxu1 %v6085_v6  ;;  %v272_v6 = vld [vmem:[%s7913_s4 + $0x590] sm:$0xff]  ;;  %vm3727_vm3 = vcmp.gt.f32.partialorder %v3711_v49, 0.5  ;;  %3769 = vperm.xlu0 %5128, %v3744_v27  }
 0x132   :  { %3206 = vmatpush1.bf16.msra.mxu0 %v4644_v55  ;;  %v4669_v18 = vcombine.high %v272_v6, %v276_v9  ;;  %v4668_v24 = vcombine.low %v272_v6, %v276_v9  ;;  %v4684_v55 = vcombine.low %v288_v33, %v292_v36  ;;  %v4694_v6 = vcombine.low %v297_v53, %v301_v10  ;;  %v325_v33 = vld [vmem:[%s7913_s4 + $0x738] sm:$0xff]  ;;  %v332_v49 = vld [vmem:[%s7913_s4 + $0x770] sm:$0xff] }
 0x133   :  { %3432 = vmatpush1.bf16.msra.mxu1 %v4646_v57  ;;  %3207 = vmatprep.subr.bf16.mxu0 %v4653_v23  ;;  %v3743_v57 = vsel %vm3727_vm3, 1, %v5443_v3  ;;  %v4686_v23 = vcombine.low %v289_v41, %v293_v34  ;;  %v4701_v9 = vcombine.high %v304_v61, %v308_v0  ;;  %v3718_v53 = vld [vmem:[%s7914_s0 + $0x50] sm:$0xff] }
 0x134   :  { %3433 = vmatprep.subr.bf16.mxu1 %v4655_v59  ;;  %vm3734_vm11 = vcmp.gt.f32.partialorder %v3718_v53, 0.5  ;;  %v5438_v27 = vld [vmem:[%s7912_s1 + $0xe4] ss:$16 sps:$4 sm:$0xff]   ;;  %v3540_v53 = vlaneseq }
 0x135   :  { %3139 = vmatmul.mubr.bf16.gmra.mrb[40].mxu0 %v6112_v16  ;;  %v3722_v35 = vld [vmem:[%s7914_s0 + $0x70] sm:$0xff] }
 0x136   :  { %3365 = vmatmul.mubr.bf16.gmra.mrb[40].mxu1 %v6112_v16  ;;  %3208 = vmatpush1.bf16.msra.mxu0 %v4652_v4  ;;  %v284_v16 = vld [vmem:[%s7913_s4 + $0x5f0] sm:$0xff]  ;;  %v305_v4 = vld [vmem:[%s7913_s4 + $0x698] sm:$0xff]  ;;  %vm3738_vm15 = vcmp.gt.f32.partialorder %v3722_v35, 0.5 }
 0x137   :  { %3434 = vmatpush1.bf16.msra.mxu1 %v4654_v28  ;;  %3209 = vmatprep.subr.bf16.mxu0 %v4661_v7  ;;  %v4677_v30 = vcombine.high %v280_v20, %v284_v16  ;;  %v4676_v2 = vcombine.low %v280_v20, %v284_v16  ;;  %v309_v28 = vld [vmem:[%s7913_s4 + $0x6b8] sm:$0xff]  ;;  %v4700_v20 = vcombine.low %v304_v61, %v308_v0  ;;  %v3747_v16 = vsel %vm3731_vm6, 1, %v5443_v3  ;;  %v5437_v61 = vld [vmem:[%s7912_s1 + $0xc0] ss:$16 sps:$4 sm:$0xff]  }
 0x138   :  { %3435 = vmatprep.subr.bf16.mxu1 %v4663_v8  ;;  %3148 = vmatprep.mubr.bf16.mxu0 %v6123_v47  ;;  %v4702_v21 = vcombine.low %v305_v4, %v309_v28  ;;  %v337_v0 = vld [vmem:[%s7913_s4 + $0x798] sm:$0xff] }
 0x139   :  { %3374 = vmatprep.mubr.bf16.mxu1 %v6123_v47  ;;  %v3710_v47 = vld [vmem:[%s7914_s0 + $0x10] sm:$0xff] }
 0x13a   :  { %3210 = vmatpush1.bf16.msra.mxu0 %v4660_v13  ;;  %vm3726_vm2 = vcmp.gt.f32.partialorder %v3710_v47, 0.5  ;;  %v4703_v13 = vcombine.high %v305_v4, %v309_v28  ;;  %v5435_v47 = vld [vmem:[%s7912_s1 + $0xa0] ss:$16 sps:$4 sm:$0xff]   ;;  %v341_v4 = vld [vmem:[%s7913_s4 + $0x7b8] sm:$0xff] }
 0x13b   :  { %3436 = vmatpush1.bf16.msra.mxu1 %v4662_v15  ;;  %3211 = vmatprep.subr.bf16.mxu0 %v4669_v18  ;;  %v3742_v43 = vsel %vm3726_vm2, 1, %v5443_v3  ;;  %v3714_v15 = vld [vmem:[%s7914_s0 + $0x30] sm:$0xff]  ;;  %v4735_v12 = vcombine.high %v337_v0, %v341_v4 }
 0x13c   :  { %3437 = vmatprep.subr.bf16.mxu1 %v4671_v19  ;;  %3763 = vperm.xlu1 %5129, %v3742_v43   ;;  %v5434_v18 = vld [vmem:[%s7912_s1 + $0xa4] ss:$16 sps:$4 sm:$0xff]   ;;  %v317_v19 = vld [vmem:[%s7913_s4 + $0x6f8] sm:$0xff]  ;;  %vm3730_vm7 = vcmp.gt.f32.partialorder %v3714_v15, 0.5 }
 0x13d   :  { %3149 = vmatmul.mubr.bf16.gmra.mrb[44].mxu0 %v6150_v38  ;;  %v3746_v40 = vsel %vm3730_vm7, 1, %v5443_v3  ;;  %v5436_v43 = vld [vmem:[%s7912_s1 + $0xc4] ss:$16 sps:$4 sm:$0xff]   ;;  %v345_v15 = vld [vmem:[%s7913_s4 + $0x7d8] sm:$0xff] }
 0x13e   :  { %3375 = vmatmul.mubr.bf16.gmra.mrb[44].mxu1 %v6150_v38  ;;  %3212 = vmatpush1.bf16.msra.mxu0 %v4668_v24  ;;  %v296_v38 = vld [vmem:[%s7913_s4 + $0x650] sm:$0xff] }
 0x13f   :  { %3438 = vmatpush1.bf16.msra.mxu1 %v4670_v29  ;;  %3213 = vmatprep.subr.bf16.mxu0 %v4677_v30  ;;  %v4693_v59 = vcombine.high %v296_v38, %v300_v50  ;;  %v4692_v7 = vcombine.low %v296_v38, %v300_v50  ;;  %v324_v29 = vld [vmem:[%s7913_s4 + $0x730] sm:$0xff]  ;;  %v3716_v30 = vld [vmem:[%s7914_s0 + $0x40] sm:$0xff]  ;;  %v329_v38 = vld [vmem:[%s7913_s4 + $0x758] sm:$0xff] }
 0x140   :  { %3439 = vmatprep.subr.bf16.mxu1 %v4679_v32  ;;  %3158 = vmatprep.mubr.bf16.mxu0 %v6161_v44  ;;  %v321_v32 = vld [vmem:[%s7913_s4 + $0x718] sm:$0xff]  ;;  %v4717_v34 = vcombine.high %v320_v26, %v324_v29  ;;  %vm3732_vm9 = vcmp.gt.f32.partialorder %v3716_v30, 0.5  ;;  %v4716_v10 = vcombine.low %v320_v26, %v324_v29 }
 0x141   :  { %3384 = vmatprep.mubr.bf16.mxu1 %v6161_v44  ;;  %v3713_v44 = vld [vmem:[%s7914_s0 + $0x28] sm:$0xff]  ;;  %3766 = vperm.xlu1 %5129, %v3743_v57   ;;  %v333_v50 = vld [vmem:[%s7913_s4 + $0x778] sm:$0xff]  ;;  %v4718_v57 = vcombine.low %v321_v32, %v325_v33 }
 0x142   :  { %3214 = vmatpush1.bf16.msra.mxu0 %v4676_v2  ;;  %vm3729_vm4 = vcmp.gt.f32.partialorder %v3713_v44, 0.5  ;;  %v3749_v2 = vsel %vm3733_vm8, 1, %v5443_v3  ;;  %3775 = vperm.xlu0 %5128, %v3746_v40   ;;  %v336_v44 = vld [vmem:[%s7913_s4 + $0x790] sm:$0xff]  ;;  %v5442_v40 = vld [vmem:[%s7912_s1 + $0x2c] ss:$16 sps:$4 sm:$0xff]  }
 0x143   :  { %3440 = vmatpush1.bf16.msra.mxu1 %v4678_v45  ;;  %3215 = vmatprep.subr.bf16.mxu0 %v4685_v48  ;;  %v3745_v8 = vsel %vm3729_vm4, 1, %v5443_v3  ;;  %v4719_v45 = vcombine.high %v321_v32, %v325_v33  ;;  %v328_v48 = vld [vmem:[%s7913_s4 + $0x750] sm:$0xff]  ;;  %v5440_v32 = vld [vmem:[%s7912_s1 + $0xc] ss:$16 sps:$4 sm:$0xff]   ;;  %v3754_v33 = vsel %vm3738_vm15, 1, %v5443_v3 }
 0x144   :  { %3441 = vmatprep.subr.bf16.mxu1 %v4687_v52  ;;  %v3719_v52 = vld [vmem:[%s7914_s0 + $0x58] sm:$0xff]  ;;  %v4724_v28 = vcombine.low %v328_v48, %v332_v49 }
 0x145   :  { %3159 = vmatmul.mubr.bf16.gmra.mrb[48].mxu0 %v6188_v56  ;;  %3772 = vperm.xlu1 %5129, %v3745_v8   ;;  %vm3735_vm10 = vcmp.gt.f32.partialorder %v3719_v52, 0.5  ;;  %v4726_v8 = vcombine.low %v329_v38, %v333_v50 }
 0x146   :  { %3385 = vmatmul.mubr.bf16.gmra.mrb[48].mxu1 %v6188_v56  ;;  %3216 = vmatpush1.bf16.msra.mxu0 %v4684_v55  ;;  %v312_v56 = vld [vmem:[%s7913_s4 + $0x6d0] sm:$0xff]  ;;  %v3748_v55 = vsel %vm3732_vm9, 1, %v5443_v3 }
 0x147   :  { %3442 = vmatpush1.bf16.msra.mxu1 %v4686_v23  ;;  %3217 = vmatprep.subr.bf16.mxu0 %v4693_v59  ;;  %v4709_v22 = vcombine.high %v312_v56, %v316_v14  ;;  %v4708_v36 = vcombine.low %v312_v56, %v316_v14  ;;  %v4725_v23 = vcombine.high %v328_v48, %v332_v49  ;;  %v348_v56 = vld [vmem:[%s7913_s4 + $0x7f0] sm:$0xff]  ;;  %v3720_v14 = vld [vmem:[%s7914_s0 + $0x60] sm:$0xff] }
 0x148   :  { %3443 = vmatprep.subr.bf16.mxu1 %v4695_v62  ;;  %3168 = vmatprep.mubr.bf16.mxu0 %v6199_v63  ;;  %v313_v63 = vld [vmem:[%s7913_s4 + $0x6d8] sm:$0xff]  ;;  %v4727_v59 = vcombine.high %v329_v38, %v333_v50  ;;  %v3721_v62 = vld [vmem:[%s7914_s0 + $0x68] sm:$0xff]  ;;  %vm3736_vm13 = vcmp.gt.f32.partialorder %v3720_v14, 0.5 }
 0x149   :  { %3394 = vmatprep.mubr.bf16.mxu1 %v5434_v18  ;;  %v4711_v24 = vcombine.high %v313_v63, %v317_v19  ;;  %3778 = vperm.xlu1 %5129, %v3747_v16   ;;  %v4710_v41 = vcombine.low %v313_v63, %v317_v19  ;;  %vm3737_vm12 = vcmp.gt.f32.partialorder %v3721_v62, 0.5  ;;  %v349_v18 = vld [vmem:[%s7913_s4 + $0x7f8] sm:$0xff]  ;;  %v4732_v19 = vcombine.low %v336_v44, %v340_v60 }
 0x14a   :  { %3218 = vmatpush1.bf16.msra.mxu0 %v4692_v7  ;;  %3781 = vperm.xlu0 %5128, %v3748_v55   ;;  %v3751_v7 = vsel %vm3735_vm10, 1, %v5443_v3  ;;  %v3723_v63 = vld [vmem:[%s7914_s0 + $0x78] sm:$0xff]  ;;  %v4734_v16 = vcombine.low %v337_v0, %v341_v4  ;;  %v3752_v29 = vsel %vm3736_vm13, 1, %v5443_v3  ;;  %v4742_v30 = vcombine.low %v345_v15, %v349_v18  ;;  %v6987_v4 = vld [vmem:[%s7915_s6] sm:$0xff] }
 0x14b   :  { %3444 = vmatpush1.bf16.msra.mxu1 %v4694_v6  ;;  %3219 = vmatprep.subr.bf16.mxu0 %v4701_v9  ;;  %v4733_v6 = vcombine.high %v336_v44, %v340_v60  ;;  %v3750_v9 = vsel %vm3734_vm11, 1, %v5443_v3  ;;  %vm3739_vm14 = vcmp.gt.f32.partialorder %v3723_v63, 0.5  ;;  %v6967_v55 = vshrl.u32 %v3540_v53, 7 }
 0x14c   :  { %3445 = vmatprep.subr.bf16.mxu1 %v4703_v13  ;;  %v344_v13 = vld [vmem:[%s7913_s4 + $0x7d0] sm:$0xff] }
 0x14d   :  { %3169 = vmatmul.mubr.bf16.gmra.mrb[52].mxu0 %v5435_v47  ;;  %3784 = vperm.xlu1 %5129, %v3749_v2   ;;  %v4740_v26 = vcombine.low %v344_v13, %v348_v56  ;;  %v3542_v0 = vsub.s32 0, %v6967_v55 }
 0x14e   :  { %3395 = vmatmul.mubr.bf16.gmra.mrb[52].mxu1 %v5435_v47  ;;  %3220 = vmatpush1.bf16.msra.mxu0 %v4700_v20  ;;  %v3753_v20 = vsel %vm3737_vm12, 1, %v5443_v3  ;;  %v3755_v47 = vsel %vm3739_vm14, 1, %v5443_v3 }
 0x14f   :  { %3446 = vmatpush1.bf16.msra.mxu1 %v4702_v21  ;;  %3221 = vmatprep.subr.bf16.mxu0 %v4709_v22  ;;  %v4741_v21 = vcombine.high %v344_v13, %v348_v56  ;;  %v4743_v22 = vcombine.high %v345_v15, %v349_v18 }
 0x150   :  { %3447 = vmatprep.subr.bf16.mxu1 %v4711_v24  ;;  %3178 = vmatprep.mubr.bf16.mxu0 %v5436_v43  ;;  %v5439_v24 = vld [vmem:[%s7912_s1 + $0xe0] ss:$16 sps:$4 sm:$0xff]  }
 0x151   :  { %3404 = vmatprep.mubr.bf16.mxu1 %v5436_v43  ;;  %3790 = vperm.xlu1 %5129, %v3751_v7   ;;  %v3546_v7 = vsub.s32 1, %v6967_v55 }
 0x152   :  { %3222 = vmatpush1.bf16.msra.mxu0 %v4708_v36  ;;  %3787 = vperm.xlu0 %5128, %v3750_v9   ;;  %v5441_v36 = vld [vmem:[%s7912_s1 + $0x8] ss:$16 sps:$4 sm:$0xff]   ;;  %v6995_v9 = vrot.slane %v6987_v4, %v3542_v0 }
 0x153   :  { %3448 = vmatpush1.bf16.msra.mxu1 %v4710_v41  ;;  %3223 = vmatprep.subr.bf16.mxu0 %v4717_v34  ;;  %v7005_v56 = vrot.slane %v6987_v4, %v3546_v7 }
 0x154   :  { %3449 = vmatprep.subr.bf16.mxu1 %v4719_v45 }
 0x155   :  { %3179 = vmatmul.mubr.bf16.gmra.mrb[56].mxu0 %v5437_v61  ;;  %3796 = vperm.xlu1 %5129, %v3753_v20  }
 0x156   :  { %3405 = vmatmul.mubr.bf16.gmra.mrb[56].mxu1 %v5437_v61  ;;  %3224 = vmatpush1.bf16.msra.mxu0 %v4716_v10 }
 0x157   :  { %3450 = vmatpush1.bf16.msra.mxu1 %v4718_v57  ;;  %3225 = vmatprep.subr.bf16.mxu0 %v4725_v23 }
 0x158   :  { %3451 = vmatprep.subr.bf16.mxu1 %v4727_v59  ;;  %3188 = vmatprep.mubr.bf16.mxu0 %v5438_v27 }
 0x159   :  { %3414 = vmatprep.mubr.bf16.mxu1 %v5438_v27  ;;  %3793 = vperm.xlu0 %5128, %v3752_v29  }
 0x15a   :  { %3226 = vmatpush1.bf16.msra.mxu0 %v4724_v28  ;;  %3802 = vperm.xlu1 %5129, %v3755_v47   ;;  %v3550_v28 = vsub.s32 2, %v6967_v55 }
 0x15b   :  { %3452 = vmatpush1.bf16.msra.mxu1 %v4726_v8  ;;  %3227 = vmatprep.subr.bf16.mxu0 %v4733_v6  ;;  %v3554_v8 = vsub.s32 3, %v6967_v55 }
 0x15c   :  { %3453 = vmatprep.subr.bf16.mxu1 %v4735_v12  ;;  %v7002_v13 = vrot.slane %v6987_v4, %v3550_v28 }
 0x15d   :  { %3189 = vmatmul.mubr.bf16.gmra.mrb[60].mxu0 %v5439_v24  ;;  %3799 = vperm.xlu0 %5128, %v3754_v33   ;;  %v7010_v18 = vrot.slane %v6987_v4, %v3554_v8 }
 0x15e   :  { %3415 = vmatmul.mubr.bf16.gmra.mrb[60].mxu1 %v5439_v24  ;;  %3228 = vmatpush1.bf16.msra.mxu0 %v4732_v19 }
 0x15f   :  { %3454 = vmatpush1.bf16.msra.mxu1 %v4734_v16  ;;  %3229 = vmatprep.subr.bf16.mxu0 %v4741_v21 }
 0x160   :  { %3455 = vmatprep.subr.bf16.mxu1 %v4743_v22  ;;  %3231 = vmatprep.mubr.bf16.mxu0 %v5440_v32 }
 0x161   :  { %3457 = vmatprep.mubr.bf16.mxu1 %v5440_v32 }
 0x162   :  { %3230 = vmatpush1.bf16.msra.mxu0 %v4740_v26 }
 0x163   :  { %3456 = vmatpush1.bf16.msra.mxu1 %v4742_v30 }
 0x165   :  { %3232 = vmatmul.mubr.bf16.vlgmr.msra.gmra.mrb[32].mxu0 %v5441_v36 }
 0x166   :  { %3458 = vmatmul.mubr.bf16.vlgmr.msra.gmra.mrb[32].mxu1 %v5441_v36  ;;  %3241 = vmatprep.mubr.bf16.mxu0 %v5442_v40 }
 0x167   :  { %3467 = vmatprep.mubr.bf16.mxu1 %v5442_v40 }
 0x16d   :  { %3242 = vmatmul.mubr.bf16.gmra.mrb[36].mxu0 %v6346_v39 }
 0x16e   :  { %3468 = vmatmul.mubr.bf16.gmra.mrb[36].mxu1 %v6346_v39  ;;  %3251 = vmatprep.mubr.bf16.mxu0 %v6357_v46 }
 0x16f   :  { %3477 = vmatprep.mubr.bf16.mxu1 %v6357_v46 }
 0x175   :  { %3252 = vmatmul.mubr.bf16.gmra.mrb[40].mxu0 %v6384_v58 }
 0x176   :  { %3478 = vmatmul.mubr.bf16.gmra.mrb[40].mxu1 %v6384_v58  ;;  %3261 = vmatprep.mubr.bf16.mxu0 %v6395_v5 }
 0x177   :  { %3487 = vmatprep.mubr.bf16.mxu1 %v6395_v5 }
 0x17d   :  { %3262 = vmatmul.mubr.bf16.gmra.mrb[44].mxu0 %v6422_v17 }
 0x17e   :  { %3488 = vmatmul.mubr.bf16.gmra.mrb[44].mxu1 %v6422_v17  ;;  %3271 = vmatprep.mubr.bf16.mxu0 %v6433_v25 }
 0x17f   :  { %3497 = vmatprep.mubr.bf16.mxu1 %v6433_v25 }
 0x185   :  { %3272 = vmatmul.mubr.bf16.gmra.mrb[48].mxu0 %v6460_v42 }
 0x186   :  { %3498 = vmatmul.mubr.bf16.gmra.mrb[48].mxu1 %v6460_v42  ;;  %3281 = vmatprep.mubr.bf16.mxu0 %v6471_v51 }
 0x187   :  { %3507 = vmatprep.mubr.bf16.mxu1 %v6471_v51 }
 0x18d   :  { %3282 = vmatmul.mubr.bf16.gmra.mrb[52].mxu0 %v6498_v1 }
 0x18e   :  { %3508 = vmatmul.mubr.bf16.gmra.mrb[52].mxu1 %v6498_v1  ;;  %3291 = vmatprep.mubr.bf16.mxu0 %v6509_v11 }
 0x18f   :  { %3517 = vmatprep.mubr.bf16.mxu1 %v6509_v11 }
 0x195   :  { %3292 = vmatmul.mubr.bf16.gmra.mrb[56].mxu0 %v6536_v31 }
 0x196   :  { %3518 = vmatmul.mubr.bf16.gmra.mrb[56].mxu1 %v6536_v31  ;;  %3301 = vmatprep.mubr.bf16.mxu0 %v6547_v37 }
 0x197   :  { %3527 = vmatprep.mubr.bf16.mxu1 %v6547_v37 }
 0x19d   :  { %3302 = vmatmul.mubr.bf16.gmra.mrb[60].mxu0 %v6574_v54 }
 0x19e   :  { %3528 = vmatmul.mubr.bf16.gmra.mrb[60].mxu1 %v6574_v54 }
 0x1b8   :  { %v6917_v3 = vpop.f32.mrb[0].mxu0 }
 0x1b9   :  { %v6919_v39 = vpop.f32.mrb[0].mxu1  ;;  %v6921_v46 = vpop.f32.mrb[1].mxu0 }
 0x1ba   :  { %v6923_v58 = vpop.f32.mrb[1].mxu1  ;;  %v6925_v5 = vpop.f32.mrb[2].mxu0 }
 0x1bb   :  { %v6927_v17 = vpop.f32.mrb[2].mxu1  ;;  %v6929_v25 = vpop.f32.mrb[3].mxu0 }
 0x1bc   :  { %v6931_v42 = vpop.f32.mrb[3].mxu1 }
 0x1c0   :  { %v6933_v51 = vpop.f32.mrb[4].mxu0 }
 0x1c1   :  { %v6935_v1 = vpop.f32.mrb[4].mxu1  ;;  %v6937_v11 = vpop.f32.mrb[5].mxu0 }
 0x1c2   :  { %v6939_v31 = vpop.f32.mrb[5].mxu1  ;;  %v6941_v37 = vpop.f32.mrb[6].mxu0 }
 0x1c3   :  { %v6943_v54 = vpop.f32.mrb[6].mxu1  ;;  %v6945_v41 = vpop.f32.mrb[7].mxu0 }
 0x1c4   :  { %v6947_v34 = vpop.f32.mrb[7].mxu1 }
 0x1c8   :  { %v6949_v2 = vpop.f32.mrb[8].mxu0 }
 0x1c9   :  { %v6951_v43 = vpop.f32.mrb[8].mxu1  ;;  %v6953_v45 = vpop.f32.mrb[9].mxu0 }
 0x1ca   :  { %v6955_v48 = vpop.f32.mrb[9].mxu1  ;;  %v6957_v49 = vpop.f32.mrb[10].mxu0 }
 0x1cb   :  { %v6959_v52 = vpop.f32.mrb[10].mxu1  ;;  %v6961_v38 = vpop.f32.mrb[11].mxu0 }
 0x1cc   :  { %v6963_v50 = vpop.f32.mrb[11].mxu1 }
 0x1d0   :  { %v6965_v10 = vpop.f32.mrb[12].mxu0 }
 0x1d1   :  { %v6969_v57 = vpop.f32.mrb[12].mxu1  ;;  %v6971_v23 = vpop.f32.mrb[13].mxu0 }
 0x1d2   :  { %v6973_v59 = vpop.f32.mrb[13].mxu1  ;;  %v6975_v44 = vpop.f32.mrb[14].mxu0 }
 0x1d3   :  { %v6977_v60 = vpop.f32.mrb[14].mxu1  ;;  %v6979_v62 = vpop.f32.mrb[15].mxu0 }
 0x1d4   :  { %v6981_v61 = vpop.f32.mrb[15].mxu1 }
 0x1d8   :  { %v6992_v6 = vpop.f32.mrb[16].mxu0 }
 0x1d9   :  { %v6997_v27 = vpop.f32.mrb[16].mxu1  ;;  %v6999_v12 = vpop.f32.mrb[17].mxu0 }
 0x1da   :  { %v7007_v14 = vpop.f32.mrb[17].mxu1  ;;  %v2825_v15 = vpop.f32.mrb[18].mxu0 }
 0x1db   :  { %v7013_v63 = vadd.f32 %v6995_v9, %v2825_v15  ;;  %v3051_v19 = vpop.f32.mrb[18].mxu1  ;;  %v2827_v20 = vpop.f32.mrb[19].mxu0 }
 0x1dc   :  { %v7016_v16 = vadd.f32 %v7002_v13, %v3051_v19  ;;  %v7019_v21 = vadd.f32 %v7005_v56, %v2827_v20  ;;  %v3053_v22 = vpop.f32.mrb[19].mxu1 }
 0x1dd   :  { %7920 = vst [vmem:[#allocation2_spill] sm:$0xff] %v7013_v63  ;;  %v7022_v35 = vadd.f32 %v7010_v18, %v3053_v22  ;;  %v7222_v63 = vadd.f32 %v7002_v13, %v6969_v57 }
 0x1de   :  { %7921 = vst [vmem:[#allocation3_spill] sm:$0xff] %v7016_v16  ;;  %7922 = vst [vmem:[#allocation4_spill] sm:$0xff] %v7019_v21 }
 0x1df   :  { %7923 = vst [vmem:[#allocation5_spill] sm:$0xff] %v7022_v35 }
 0x1e0   :  { %v2831_v24 = vpop.f32.mrb[20].mxu0 }
 0x1e1   :  { %v7025_v26 = vadd.f32 %v6995_v9, %v2831_v24  ;;  %v3057_v29 = vpop.f32.mrb[20].mxu1  ;;  %v2833_v30 = vpop.f32.mrb[21].mxu0 }
 0x1e2   :  { %v7028_v47 = vadd.f32 %v7002_v13, %v3057_v29  ;;  %v7031_v32 = vadd.f32 %v7005_v56, %v2833_v30  ;;  %v3059_v33 = vpop.f32.mrb[21].mxu1  ;;  %v2835_v36 = vpop.f32.mrb[22].mxu0 }
 0x1e3   :  { %7924 = vst [vmem:[#allocation6_spill] sm:$0xff] %v7025_v26  ;;  %v7034_v40 = vadd.f32 %v7010_v18, %v3059_v33  ;;  %v7037_v53 = vadd.f32 %v6995_v9, %v2835_v36  ;;  %v3061_v0 = vpop.f32.mrb[22].mxu1  ;;  %v2837_v28 = vpop.f32.mrb[23].mxu0 }
 0x1e4   :  { %7925 = vst [vmem:[#allocation7_spill] sm:$0xff] %v7028_v47  ;;  %7926 = vst [vmem:[#allocation8_spill] sm:$0xff] %v7031_v32  ;;  %v7040_v7 = vadd.f32 %v7002_v13, %v3061_v0  ;;  %v7043_v8 = vadd.f32 %v7005_v56, %v2837_v28  ;;  %v3063_v15 = vpop.f32.mrb[23].mxu1 }
 0x1e5   :  { %7927 = vst [vmem:[#allocation9_spill] sm:$0xff] %v7034_v40  ;;  %7928 = vst [vmem:[#allocation10_spill] sm:$0xff] %v7037_v53  ;;  %v7046_v19 = vadd.f32 %v7010_v18, %v3063_v15  ;;  %v7198_v53 = vadd.f32 %v7005_v56, %v6961_v38 }
 0x1e6   :  { %7929 = vst [vmem:[#allocation11_spill] sm:$0xff] %v7040_v7  ;;  %7930 = vst [vmem:[#allocation12_spill] sm:$0xff] %v7043_v8  ;;  %v3590_v7 = vadd.f32 %v7002_v13, %v6927_v17  ;;  %v7154_v17 = vadd.f32 %v6995_v9, %v6941_v37 }
 0x1e7   :  { %7931 = vst [vmem:[#allocation13_spill] sm:$0xff] %v7046_v19 }
 0x1e8   :  { %v2841_v20 = vpop.f32.mrb[24].mxu0 }
 0x1e9   :  { %v7049_v22 = vadd.f32 %v6995_v9, %v2841_v20  ;;  %v3067_v24 = vpop.f32.mrb[24].mxu1  ;;  %v2843_v29 = vpop.f32.mrb[25].mxu0 }
 0x1ea   :  { %v7052_v30 = vadd.f32 %v7002_v13, %v3067_v24  ;;  %v7055_v33 = vadd.f32 %v7005_v56, %v2843_v29  ;;  %v3069_v36 = vpop.f32.mrb[25].mxu1  ;;  %v2845_v0 = vpop.f32.mrb[26].mxu0 }
 0x1eb   :  { %7932 = vst [vmem:[#allocation14_spill] sm:$0xff] %v7049_v22  ;;  %v7058_v28 = vadd.f32 %v7010_v18, %v3069_v36  ;;  %v7061_v15 = vadd.f32 %v6995_v9, %v2845_v0  ;;  %v3071_v19 = vpop.f32.mrb[26].mxu1  ;;  %v2847_v8 = vpop.f32.mrb[27].mxu0 }
 0x1ec   :  { %7933 = vst [vmem:[#allocation15_spill] sm:$0xff] %v7052_v30  ;;  %7934 = vst [vmem:[#allocation16_spill] sm:$0xff] %v7055_v33  ;;  %v7064_v20 = vadd.f32 %v7002_v13, %v3071_v19  ;;  %v7067_v22 = vadd.f32 %v7005_v56, %v2847_v8  ;;  %v3073_v24 = vpop.f32.mrb[27].mxu1 }
 0x1ed   :  { %7935 = vst [vmem:[#allocation17_spill] sm:$0xff] %v7058_v28  ;;  %7936 = vst [vmem:[#allocation18_spill] sm:$0xff] %v7061_v15  ;;  %v7070_v29 = vadd.f32 %v7010_v18, %v3073_v24 }
 0x1ee   :  { %7937 = vst [vmem:[#allocation19_spill] sm:$0xff] %v7064_v20  ;;  %7938 = vst [vmem:[#allocation20_spill] sm:$0xff] %v7067_v22 }
 0x1ef   :  { %7939 = vst [vmem:[#allocation21_spill] sm:$0xff] %v7070_v29 }
 0x1f0   :  { %v2851_v33 = vpop.f32.mrb[28].mxu0 }
 0x1f1   :  { %v7073_v30 = vadd.f32 %v6995_v9, %v2851_v33  ;;  %v3077_v36 = vpop.f32.mrb[28].mxu1  ;;  %v2853_v28 = vpop.f32.mrb[29].mxu0 }
 0x1f2   :  { %v7076_v0 = vadd.f32 %v7002_v13, %v3077_v36  ;;  %v7079_v15 = vadd.f32 %v7005_v56, %v2853_v28  ;;  %v3079_v19 = vpop.f32.mrb[29].mxu1  ;;  %v2855_v20 = vpop.f32.mrb[30].mxu0 }
 0x1f3   :  { %7940 = vst [vmem:[#allocation22_spill] sm:$0xff] %v7073_v30  ;;  %v7082_v8 = vadd.f32 %v7010_v18, %v3079_v19  ;;  %v7085_v24 = vadd.f32 %v6995_v9, %v2855_v20  ;;  %v3081_v29 = vpop.f32.mrb[30].mxu1  ;;  %v2857_v22 = vpop.f32.mrb[31].mxu0  ;;  %v3558_v19 = vsub.s32 4, %v6967_v55  ;;  %v3562_v20 = vsub.s32 5, %v6967_v55 }
 0x1f4   :  { %7941 = vst [vmem:[#allocation23_spill] sm:$0xff] %v7076_v0  ;;  %7942 = vst [vmem:[#allocation24_spill] sm:$0xff] %v7079_v15  ;;  %v7088_v33 = vadd.f32 %v7002_v13, %v3081_v29  ;;  %v7091_v30 = vadd.f32 %v7005_v56, %v2857_v22  ;;  %v3083_v36 = vpop.f32.mrb[31].mxu1  ;;  %v7096_v15 = vpop.permute.xlu0 %3757  ;;  %v3583_v0 = vadd.f32 %v7010_v18, %v6923_v58 }
 0x1f5   :  { %7943 = vst [vmem:[#allocation25_spill] sm:$0xff] %v7082_v8  ;;  %7944 = vst [vmem:[#allocation26_spill] sm:$0xff] %v7085_v24  ;;  %v7094_v28 = vadd.f32 %v7010_v18, %v3083_v36  ;;  %v3566_v8 = vsub.s32 6, %v6967_v55  ;;  %v3570_v24 = vsub.s32 7, %v6967_v55  ;;  %v7103_v29 = vrot.slane %v6987_v4, %v3558_v19  ;;  %v7110_v36 = vpop.permute.xlu1 %3763 }
 0x1f6   :  { %7945 = vst [vmem:[#allocation27_spill] sm:$0xff] %v7088_v33  ;;  %7946 = vst [vmem:[#allocation28_spill] sm:$0xff] %v7091_v30  ;;  %vm3804_vm0 = vcmp.eq.s32.totalorder %v7096_v15, 1  ;;  %v7116_v33 = vrot.slane %v6987_v4, %v3562_v20  ;;  %v3582_v19 = vadd.f32 %v7002_v13, %v6919_v39  ;;  %v3589_v20 = vadd.f32 %v7005_v56, %v6929_v25 }
 0x1f7   :  { %7947 = vst [vmem:[#allocation29_spill] sm:$0xff] %v7094_v28  ;;  %v7106_v22 = vrot.slane %v6987_v4, %v3566_v8  ;;  %v3580_v28 = vadd.f32 %v6995_v9, %v6917_v3  ;;  %v7119_v55 = vrot.slane %v6987_v4, %v3570_v24  ;;  %v3581_v8 = vadd.f32 %v7005_v56, %v6921_v46 }
 0x1f8   :  { %v7108_v30 = vpop.permute.xlu0 %3760  ;;  %v3588_v3 = vadd.f32 %v6995_v9, %v6925_v5  ;;  %v3591_v4 = vadd.f32 %v7010_v18, %v6931_v42  ;;  %v7138_v39 = vadd.f32 %v6995_v9, %v6933_v51  ;;  %v7142_v46 = vadd.f32 %v7002_v13, %v6935_v1 }
 0x1f9   :  { %vm3805_vm1 = vcmp.eq.s32.totalorder %v7108_v30, 1  ;;  %v7146_v58 = vadd.f32 %v7005_v56, %v6937_v11  ;;  %v7150_v5 = vadd.f32 %v7010_v18, %v6939_v31  ;;  %v7158_v25 = vadd.f32 %v7002_v13, %v6943_v54  ;;  %v7181_v54 = vpop.permute.xlu1 %3766 }
 0x1fa   :  { %v7162_v42 = vadd.f32 %v7005_v56, %v6945_v41  ;;  %v7166_v51 = vadd.f32 %v7010_v18, %v6947_v34  ;;  %v7170_v1 = vadd.f32 %v6995_v9, %v6949_v2  ;;  %v7174_v11 = vadd.f32 %v7002_v13, %v6951_v43 }
 0x1fb   :  { %v7178_v31 = vadd.f32 %v7005_v56, %v6953_v45  ;;  %vm3806_vm2 = vcmp.eq.s32.totalorder %v7110_v36, 1  ;;  %v7185_v41 = vadd.f32 %v7010_v18, %v6955_v48  ;;  %v7189_v34 = vadd.f32 %v6995_v9, %v6957_v49 }
 0x1fc   :  { %v7193_v2 = vadd.f32 %v7002_v13, %v6959_v52  ;;  %v7202_v48 = vadd.f32 %v7010_v18, %v6963_v50  ;;  %vm3807_vm3 = vcmp.eq.s32.totalorder %v7181_v54, 1  ;;  %v7209_v52 = vadd.f32 %v6995_v9, %v6965_v10 }
 0x1fd   :  { %v7236_v15 = vadd.f32 %v7005_v56, %v6971_v23  ;;  %v7247_v23 = vadd.f32 %v6995_v9, %v6975_v44  ;;  %v7273_v36 = vadd.f32 %v7002_v13, %v6977_v60 }
 0x238   :  { %v3233_v37 = vpop.f32.mrb[32].mxu0 }
 0x239   :  { %v3584_v43 = vadd.f32 %v7103_v29, %v3233_v37  ;;  %v3459_v45 = vpop.f32.mrb[32].mxu1  ;;  %v3235_v24 = vpop.f32.mrb[33].mxu0 }
 0x23a   :  { %v3586_v40 = vadd.f32 %v7106_v22, %v3459_v45  ;;  %v3585_v49 = vadd.f32 %v7116_v33, %v3235_v24  ;;  %v3461_v32 = vpop.f32.mrb[33].mxu1  ;;  %v3237_v47 = vpop.f32.mrb[34].mxu0 }
 0x23b   :  { %v3820_v38 = vsel %vm3804_vm0, %v3580_v28, %v3584_v43  ;;  %v3587_v37 = vadd.f32 %v7119_v55, %v3461_v32  ;;  %v3592_v50 = vadd.f32 %v7103_v29, %v3237_v47  ;;  %v3463_v26 = vpop.f32.mrb[34].mxu1  ;;  %v3239_v35 = vpop.f32.mrb[35].mxu0 }
 0x23c   :  { %v4744_v45 = vmul.f32 -1.442695, %v3820_v38  ;;  %v3822_v24 = vsel %vm3804_vm0, %v3582_v19, %v3586_v40  ;;  %v3821_v21 = vsel %vm3804_vm0, %v3581_v8, %v3585_v49  ;;  %v3594_v16 = vadd.f32 %v7106_v22, %v3463_v26  ;;  %v3465_v10 = vpop.f32.mrb[35].mxu1 }
 0x23d   :  { %v4760_v28 = vmul.f32 -1.442695, %v3821_v21  ;;  %v3823_v47 = vsel %vm3804_vm0, %v3583_v0, %v3587_v37  ;;  %v3593_v32 = vadd.f32 %v7116_v33, %v3239_v35  ;;  %v3595_v40 = vadd.f32 %v7119_v55, %v3465_v10 }
 0x23e   :  { %5178 = vpow2.f32 %v4744_v45  ;;  %v4776_v43 = vmul.f32 -1.442695, %v3823_v47  ;;  %v3824_v19 = vsel %vm3805_vm1, %v3588_v3, %v3592_v50  ;;  %v3826_v57 = vsel %vm3805_vm1, %v3590_v7, %v3594_v16 }
 0x23f   :  { %5180 = vpow2.f32 %v4760_v28  ;;  %v3825_v26 = vsel %vm3805_vm1, %v3589_v20, %v3593_v32  ;;  %v4745_v21 = vmul.f32 -1.442695, %v3824_v19  ;;  %v3827_v35 = vsel %vm3805_vm1, %v3591_v4, %v3595_v40 }
 0x240   :  { %5182 = vpow2.f32 %v4776_v43  ;;  %v4761_v0 = vmul.f32 -1.442695, %v3825_v26  ;;  %v3243_v8 = vpop.f32.mrb[36].mxu0  ;;  %v7242_v3 = vadd.f32 %v7010_v18, %v6973_v59  ;;  %v4777_v20 = vmul.f32 -1.442695, %v3827_v35 }
 0x241   :  { %5184 = vpow2.f32 %v4745_v21  ;;  %v3600_v49 = vadd.f32 %v7103_v29, %v3243_v8  ;;  %v3469_v16 = vpop.f32.mrb[36].mxu1  ;;  %v3245_v7 = vpop.f32.mrb[37].mxu0 }
 0x242   :  { %5186 = vpow2.f32 %v4761_v0  ;;  %v3602_v30 = vadd.f32 %v7106_v22, %v3469_v16  ;;  %v3601_v4 = vadd.f32 %v7116_v33, %v3245_v7  ;;  %v3471_v38 = vpop.f32.mrb[37].mxu1  ;;  %v3247_v37 = vpop.f32.mrb[38].mxu0 }
 0x243   :  { %5188 = vtanh.f32 %v3822_v24  ;;  %v3828_v59 = vsel %vm3806_vm2, %v7138_v39, %v3600_v49  ;;  %v3603_v50 = vadd.f32 %v7119_v55, %v3471_v38  ;;  %v3608_v45 = vadd.f32 %v7103_v29, %v3247_v37  ;;  %v3473_v10 = vpop.f32.mrb[38].mxu1  ;;  %v3249_v28 = vpop.f32.mrb[39].mxu0 }
 0x244   :  { %5190 = vpow2.f32 %v4777_v20  ;;  %v4746_v44 = vmul.f32 -1.442695, %v3828_v59  ;;  %v3830_v47 = vsel %vm3806_vm2, %v7142_v46, %v3602_v30  ;;  %v3829_v24 = vsel %vm3806_vm2, %v7146_v58, %v3601_v4  ;;  %v3475_v32 = vpop.f32.mrb[39].mxu1  ;;  %v3770_v21 = vpop.permute.xlu0 %3769 }
 0x245   :  { %5192 = vtanh.f32 %v3826_v57  ;;  %v4762_v43 = vmul.f32 -1.442695, %v3829_v24  ;;  %v3831_v39 = vsel %vm3806_vm2, %v7150_v5, %v3603_v50  ;;  %v3832_v40 = vsel %vm3807_vm3, %v7154_v17, %v3608_v45  ;;  %v7282_v0 = vpop.permute.xlu1 %3772 }
 0x246   :  { %5194 = vpow2.f32 %v4746_v44  ;;  %v4778_v19 = vmul.f32 -1.442695, %v3831_v39  ;;  %v4747_v26 = vmul.f32 -1.442695, %v3832_v40  ;;  %v3610_v46 = vadd.f32 %v7106_v22, %v3473_v10 }
 0x247   :  { %5196 = vpow2.f32 %v4762_v43  ;;  %v3609_v58 = vadd.f32 %v7116_v33, %v3249_v28  ;;  %v3611_v57 = vadd.f32 %v7119_v55, %v3475_v32  ;;  %vm3808_vm4 = vcmp.eq.s32.totalorder %v3770_v21, 1 }
 0x248   :  { %v5179_v35 = vpop.eup %5178  ;;  %v7277_v5 = vadd.f32 %v7005_v56, %v6979_v62  ;;  %5198 = vtanh.f32 %v3830_v47  ;;  %v3834_v17 = vsel %vm3807_vm3, %v7158_v25, %v3610_v46  ;;  %v3253_v8 = vpop.f32.mrb[40].mxu0  ;;  %v7294_v25 = vadd.f32 %v7010_v18, %v6981_v61 }
 0x249   :  { %v5181_v20 = vpop.eup %5180  ;;  %v3932_v49 = vadd.f32 1.0, %v5179_v35  ;;  %5200 = vpow2.f32 %v4747_v26  ;;  %v3833_v60 = vsel %vm3807_vm3, %v7162_v42, %v3609_v58  ;;  %v7290_v62 = vsel %vm3807_vm3, %v7166_v51, %v3611_v57  ;;  %v3479_v16 = vpop.f32.mrb[40].mxu1 }
 0x24a   :  { %v3255_v7 = vpop.f32.mrb[41].mxu0  ;;  %v5183_v30 = vpop.eup %5182  ;;  %v4028_v4 = vadd.f32 1.0, %v5181_v20  ;;  %5202 = vpow2.f32 %v4778_v19  ;;  %vm3809_vm5 = vcmp.eq.s32.totalorder %v7282_v0, 1  ;;  %v4763_v42 = vmul.f32 -1.442695, %v3833_v60 }
 0x24b   :  { %v3481_v38 = vpop.f32.mrb[41].mxu1  ;;  %v5185_v37 = vpop.eup %5184  ;;  %5204 = vrcp.f32 %v3932_v49  ;;  %v3616_v59 = vadd.f32 %v7103_v29, %v3253_v8  ;;  %v3618_v51 = vadd.f32 %v7106_v22, %v3479_v16  ;;  %v3617_v61 = vadd.f32 %v7116_v33, %v3255_v7 }
 0x24c   :  { %v3257_v54 = vpop.f32.mrb[42].mxu0  ;;  %v3483_v50 = vpop.f32.mrb[42].mxu1  ;;  %5206 = vrcp.f32 %v4028_v4  ;;  %v3933_v10 = vadd.f32 1.0, %v5185_v37  ;;  %v3619_v28 = vadd.f32 %v7119_v55, %v3481_v38  ;;  %v4140_v19 = vadd.f32 1.0, %v5183_v30 }
 0x24d   :  { %v5187_v45 = vpop.eup %5186  ;;  %v3259_v44 = vpop.f32.mrb[43].mxu0  ;;  %5208 = vtanh.f32 %v3834_v17  ;;  %v3836_v43 = vsel %vm3808_vm4, %v7170_v1, %v3616_v59  ;;  %v7305_v39 = vsel %vm3808_vm4, %v7174_v11, %v3618_v51  ;;  %v3837_v26 = vsel %vm3808_vm4, %v7178_v31, %v3617_v61 }
 0x24e   :  { %v3485_v47 = vpop.f32.mrb[43].mxu1  ;;  %v5189_v24 = vpop.eup %5188  ;;  %v4029_v32 = vadd.f32 1.0, %v5187_v45  ;;  %5210 = vrcp.f32 %v3933_v10  ;;  %v7311_v46 = vsel %vm3808_vm4, %v7185_v41, %v3619_v28  ;;  %v7319_v1 = vadd.f32 %v6995_v9, %v6992_v6 }
 0x24f   :  { %v5191_v40 = vpop.eup %5190  ;;  %v7313_v58 = vpop.permute.xlu0 %3775  ;;  %v7323_v11 = vadd.f32 %v7002_v13, %v6997_v27  ;;  %v3624_v41 = vadd.f32 %v7103_v29, %v3257_v54  ;;  %v3626_v35 = vadd.f32 %v7106_v22, %v3483_v50  ;;  %v3625_v17 = vadd.f32 %v7116_v33, %v3259_v44 }
 0x250   :  { %v7315_v57 = vpop.eup %5192  ;;  %5212 = vrcp.f32 %v4029_v32  ;;  %vm3810_vm6 = vcmp.eq.s32.totalorder %v7313_v58, 1  ;;  %v7326_v21 = vpop.permute.xlu1 %3778  ;;  %v4141_v9 = vadd.f32 1.0, %v5191_v40  ;;  %v3627_v27 = vadd.f32 %v7119_v55, %v3485_v47 }
 0x251   :  { %v5195_v31 = vpop.eup %5194  ;;  %5214 = vpow2.f32 %v4763_v42  ;;  %v3263_v8 = vpop.f32.mrb[44].mxu0  ;;  %v3840_v30 = vsel %vm3809_vm5, %v7189_v34, %v3624_v41  ;;  %v7341_v4 = vsel %vm3809_vm5, %v7193_v2, %v3626_v35  ;;  %v7345_v59 = vadd.f32 %v7005_v56, %v6999_v12  ;;  %v78_v2 = vld [vmem:[%s7916_s3] sm:$0xff] }
 0x252   :  { %v5197_v6 = vpop.eup %5196  ;;  %v3934_v20 = vadd.f32 1.0, %v5195_v31  ;;  %v3632_v13 = vadd.f32 %v7103_v29, %v3263_v8  ;;  %v3489_v49 = vpop.f32.mrb[44].mxu1  ;;  %5216 = vrcp.f32 %v4140_v19  ;;  %v4748_v51 = vmul.f32 -1.442695, %v3836_v43  ;;  %v79_v19 = vld [vmem:[%s7916_s3 + $0x8] sm:$0xff] }
 0x253   :  { %v3265_v60 = vpop.f32.mrb[45].mxu0  ;;  %v7333_v16 = vpop.eup %5198  ;;  %v4030_v7 = vadd.f32 1.0, %v5197_v6  ;;  %v7350_v54 = vsel %vm3809_vm5, %v7198_v53, %v3625_v17  ;;  %vm3811_vm7 = vcmp.eq.s32.totalorder %v7326_v21, 1  ;;  %v7359_v12 = vsel %vm3809_vm5, %v7202_v48, %v3627_v27 }
 0x254   :  { %v3491_v38 = vpop.f32.mrb[45].mxu1  ;;  %v3267_v37 = vpop.f32.mrb[46].mxu0  ;;  %5218 = vrcp.f32 %v3934_v20  ;;  %v4764_v53 = vmul.f32 -1.442695, %v3837_v26  ;;  %v7364_v28 = vsel %vm3810_vm6, %v7209_v52, %v3632_v13  ;;  %v3634_v44 = vadd.f32 %v7106_v22, %v3489_v49 }
 0x255   :  { %v5201_v42 = vpop.eup %5200  ;;  %v3493_v34 = vpop.f32.mrb[46].mxu1  ;;  %5220 = vrcp.f32 %v4030_v7  ;;  %v4779_v43 = vmul.f32 -1.442695, %v7290_v62  ;;  %v3633_v0 = vadd.f32 %v7116_v33, %v3265_v60  ;;  %v4749_v31 = vmul.f32 -1.442695, %v3840_v30 }
 0x256   :  { %v3269_v50 = vpop.f32.mrb[47].mxu0  ;;  %v5203_v45 = vpop.eup %5202  ;;  %v3935_v10 = vadd.f32 1.0, %v5201_v42  ;;  %5222 = vrcp.f32 %v4141_v9  ;;  %v7377_v52 = vsel %vm3810_vm6, %v7222_v63, %v3634_v44  ;;  %v3640_v35 = vadd.f32 %v7103_v29, %v3267_v37 }
 0x257   :  { %v3495_v56 = vpop.f32.mrb[47].mxu1  ;;  %v5205_v61 = vpop.eup %5204  ;;  %v7385_v41 = vsel %vm3810_vm6, %v7236_v15, %v3633_v0  ;;  %v3642_v17 = vadd.f32 %v7106_v22, %v3493_v34  ;;  %v4142_v30 = vadd.f32 1.0, %v5203_v45  ;;  %v4780_v37 = vmul.f32 -1.442695, %v7311_v46 }
 0x258   :  { %v5207_v47 = vpop.eup %5206  ;;  %v4204_v32 = vmul.f32 %v5205_v61, %v5189_v24  ;;  %5224 = vrcp.f32 %v3935_v10  ;;  %v3635_v24 = vadd.f32 %v7119_v55, %v3491_v38  ;;  %v7380_v62 = vpop.permute.xlu0 %3781  ;;  %v7399_v60 = vsel %vm3811_vm7, %v7247_v23, %v3640_v35  ;;  %v80_v23 = vld [vmem:[%s7916_s3 + $0x10] sm:$0xff] }
 0x259   :  { %v7369_v48 = vpop.eup %5208  ;;  %v4188_v40 = vmul.f32 %v5207_v47, %v78_v2  ;;  %5226 = vpow2.f32 %v4748_v51  ;;  %v3273_v8 = vpop.f32.mrb[48].mxu0  ;;  %vm3812_vm8 = vcmp.eq.s32.totalorder %v7380_v62, 1  ;;  %v7413_v51 = vsel %vm3811_vm7, %v7273_v36, %v3642_v17  ;;  %v7948_v62 = vld [vmem:[#allocation2_spill] sm:$0xff] }
 0x25a   :  { %v5211_v26 = vpop.eup %5210  ;;  %5228 = vpow2.f32 %v4764_v53  ;;  %v3499_v20 = vpop.f32.mrb[48].mxu1  ;;  %v7394_v15 = vsel %vm3810_vm6, %v7242_v3, %v3635_v24  ;;  %v3641_v34 = vadd.f32 %v7116_v33, %v3269_v50  ;;  %v4765_v10 = vmul.f32 -1.442695, %v7350_v54 }
 0x25b   :  { %v5213_v6 = vpop.eup %5212  ;;  %v4220_v9 = vadd.f32 %v4204_v32, %v4188_v40  ;;  %v4205_v63 = vmul.f32 %v5211_v26, %v7315_v57  ;;  %v3275_v27 = vpop.f32.mrb[49].mxu0  ;;  %5230 = vpow2.f32 %v4779_v43  ;;  %v3643_v61 = vadd.f32 %v7119_v55, %v3495_v56 }
 0x25c   :  { %v5215_v13 = vpop.eup %5214  ;;  %v4189_v49 = vmul.f32 %v5213_v6, %v79_v19  ;;  %v3501_v7 = vpop.f32.mrb[49].mxu1  ;;  %v3648_v53 = vadd.f32 %v7103_v29, %v3273_v8  ;;  %v7428_v50 = vsel %vm3811_vm7, %v7277_v5, %v3641_v34  ;;  %v3650_v47 = vadd.f32 %v7106_v22, %v3499_v20 }
 0x25d   :  { %v3277_v57 = vpop.f32.mrb[50].mxu0  ;;  %5232 = vtanh.f32 %v4220_v9  ;;  %4284 = vst [vmem:[%s7917_s8] sm:$0xff] %v4220_v9  ;;  %v4031_v38 = vadd.f32 1.0, %v5215_v13  ;;  %v3503_v42 = vpop.f32.mrb[50].mxu1  ;;  %v3647_v56 = vadd.f32 %v7010_v18, %v7007_v14  ;;  %v7438_v43 = vsel %vm3811_vm7, %v7294_v25, %v3643_v61 }
 0x25e   :  { %v7405_v58 = vpop.eup %5216  ;;  %v4221_v3 = vadd.f32 %v4205_v63, %v4189_v49  ;;  %5234 = vpow2.f32 %v4749_v31  ;;  %v3279_v45 = vpop.f32.mrb[51].mxu0  ;;  %v4781_v0 = vmul.f32 -1.442695, %v7359_v12  ;;  %v7446_v40 = vsel %vm3812_vm8, %v7319_v1, %v3648_v53 }
 0x25f   :  { %v7416_v2 = vpop.f32.mrb[51].mxu1  ;;  %v5219_v46 = vpop.eup %5218  ;;  %5236 = vrcp.f32 %v4031_v38  ;;  %v7451_v14 = vsel %vm3812_vm8, %v7323_v11, %v3650_v47  ;;  %v4750_v12 = vmul.f32 -1.442695, %v7364_v28  ;;  %v3649_v1 = vadd.f32 %v7116_v33, %v3275_v27 }
 0x260   :  { %v5221_v44 = vpop.eup %5220  ;;  %5238 = vtanh.f32 %v4221_v3  ;;  %4285 = vst [vmem:[%s7917_s8 + $0x8] sm:$0xff] %v4221_v3  ;;  %v4206_v36 = vmul.f32 %v5219_v46, %v7333_v16  ;;  %v7441_v5 = vpop.permute.xlu1 %3784  ;;  %v3651_v35 = vadd.f32 %v7119_v55, %v3501_v7  ;;  %v3656_v28 = vadd.f32 %v7103_v29, %v3277_v57  ;;  %v7949_v3 = vld [vmem:[#allocation3_spill] sm:$0xff] }
 0x261   :  { %v7431_v54 = vpop.eup %5222  ;;  %v4190_v32 = vmul.f32 %v5221_v44, %v80_v23  ;;  %5240 = vrcp.f32 %v4142_v30  ;;  %v3283_v18 = vpop.f32.mrb[52].mxu0  ;;  %v7477_v13 = vsel %vm3812_vm8, %v7345_v59, %v3649_v1  ;;  %v81_v30 = vld [vmem:[%s7916_s3 + $0x18] sm:$0xff]  ;;  %vm3813_vm9 = vcmp.eq.s32.totalorder %v7441_v5, 1 }
 0x262   :  { %v5225_v16 = vpop.eup %5224  ;;  %5242 = vpow2.f32 %v4780_v37  ;;  %v3509_v24 = vpop.f32.mrb[52].mxu1  ;;  %v7481_v49 = vsel %vm3812_vm8, %v3647_v56, %v3651_v35  ;;  %v4766_v38 = vmul.f32 -1.442695, %v7385_v41  ;;  %v7950_v41 = vld [vmem:[#allocation4_spill] sm:$0xff]  ;;  %v4751_v44 = vmul.f32 -1.442695, %v7399_v60 }
 0x263   :  { %v5227_v21 = vpop.eup %5226  ;;  %v4222_v25 = vadd.f32 %v4206_v36, %v4190_v32  ;;  %v4207_v19 = vmul.f32 %v5225_v16, %v7369_v48  ;;  %5244 = vpow2.f32 %v4765_v10  ;;  %v3285_v26 = vpop.f32.mrb[53].mxu0  ;;  %v3658_v48 = vadd.f32 %v7106_v22, %v3503_v42  ;;  %v7951_v60 = vld [vmem:[#allocation5_spill] sm:$0xff]  ;;  %v7952_v35 = vld [vmem:[#allocation6_spill] sm:$0xff] }
 0x264   :  { %v3936_v31 = vadd.f32 1.0, %v5227_v21  ;;  %5246 = vtanh.f32 %v7305_v39  ;;  %v7458_v17 = vpop.f32.mrb[53].mxu1  ;;  %v7460_v11 = vpop.f32.mrb[54].mxu0  ;;  %v3657_v39 = vadd.f32 %v7116_v33, %v3279_v45  ;;  %v7495_v42 = vsel %vm3813_vm9, %v7948_v62, %v3656_v28 }
 0x265   :  { %v5229_v8 = vpop.eup %5228  ;;  %5248 = vtanh.f32 %v4222_v25  ;;  %4286 = vst [vmem:[%s7917_s8 + $0x10] sm:$0xff] %v4222_v25  ;;  %v7468_v6 = vpop.f32.mrb[54].mxu1  ;;  %v7500_v23 = vsel %vm3813_vm9, %v7949_v3, %v3658_v48  ;;  %v3659_v36 = vadd.f32 %v7119_v55, %v7416_v2  ;;  %v3664_v32 = vadd.f32 %v7103_v29, %v3283_v18  ;;  %v82_v3 = vld [vmem:[%s7916_s3 + $0x20] sm:$0xff] }
 0x266   :  { %v7470_v9 = vpop.f32.mrb[55].mxu0  ;;  %v5231_v63 = vpop.eup %5230  ;;  %5250 = vrcp.f32 %v3936_v31  ;;  %v4032_v20 = vadd.f32 1.0, %v5229_v8  ;;  %v3666_v16 = vadd.f32 %v7106_v22, %v3509_v24  ;;  %v3665_v31 = vadd.f32 %v7116_v33, %v3285_v26 }
 0x267   :  { %v7472_v27 = vpop.permute.xlu0 %3787  ;;  %v7483_v7 = vpop.f32.mrb[55].mxu1  ;;  %5252 = vpow2.f32 %v4750_v12  ;;  %v4143_v45 = vadd.f32 1.0, %v5231_v63  ;;  %v7528_v2 = vsel %vm3813_vm9, %v7951_v60, %v3659_v36  ;;  %v4752_v36 = vmul.f32 -1.442695, %v7446_v40 }
 0x268   :  { %v5233_v57 = vpop.eup %5232  ;;  %vm3814_vm10 = vcmp.eq.s32.totalorder %v7472_v27, 1  ;;  %5254 = vrcp.f32 %v4032_v20  ;;  %v7511_v53 = vpop.permute.xlu1 %3790 }
 0x269   :  { %v5235_v59 = vpop.eup %5234  ;;  %v4252_v37 = vmul.f32 %v5233_v57, %v7405_v58  ;;  %5256 = vtanh.f32 %v7341_v4  ;;  %v7506_v58 = vsel %vm3813_vm9, %v7950_v41, %v3657_v39  ;;  %v7516_v4 = vpop.f32.mrb[56].mxu0  ;;  %v7542_v5 = vsel %vm3814_vm10, %v7952_v35, %v3664_v32  ;;  %v7953_v39 = vld [vmem:[#allocation7_spill] sm:$0xff]  ;;  %v7955_v41 = vld [vmem:[#allocation9_spill] sm:$0xff] }
 0x26a   :  { %v5237_v34 = vpop.eup %5236  ;;  %v3937_v46 = vadd.f32 1.0, %v5235_v59  ;;  %5258 = vpow2.f32 %v4781_v0  ;;  %v7521_v21 = vpop.f32.mrb[56].mxu1  ;;  %vm3815_vm11 = vcmp.eq.s32.totalorder %v7511_v53, 1  ;;  %v4767_v57 = vmul.f32 -1.442695, %v7428_v50  ;;  %v83_v53 = vld [vmem:[%s7916_s3 + $0x28] sm:$0xff] }
 0x26b   :  { %v5239_v10 = vpop.eup %5238  ;;  %4268 = vst [vmem:[%s7918_s7] sm:$0xff] %v4252_v37  ;;  %v4191_v61 = vmul.f32 %v5237_v34, %v81_v30  ;;  %v7523_v0 = vpop.f32.mrb[57].mxu0  ;;  %v7954_v30 = vld [vmem:[#allocation8_spill] sm:$0xff]  ;;  %v3667_v59 = vadd.f32 %v7119_v55, %v7458_v17  ;;  %v3672_v50 = vadd.f32 %v7103_v29, %v7460_v11  ;;  %v3674_v17 = vadd.f32 %v7106_v22, %v7468_v6 }
 0x26c   :  { %v5241_v47 = vpop.eup %5240  ;;  %v4253_v56 = vmul.f32 %v5239_v10, %v7431_v54  ;;  %5260 = vrcp.f32 %v3937_v46  ;;  %v7531_v54 = vpop.f32.mrb[57].mxu1 }
 0x26d   :  { %v5243_v25 = vpop.eup %5242  ;;  %v4223_v12 = vadd.f32 %v4207_v19, %v4191_v61  ;;  %5262 = vpow2.f32 %v4766_v38  ;;  %v7533_v1 = vpop.f32.mrb[58].mxu0  ;;  %v4782_v19 = vmul.f32 -1.442695, %v7394_v15  ;;  %v7555_v15 = vsel %vm3814_vm10, %v7953_v39, %v3666_v16 }
 0x26e   :  { %v5245_v18 = vpop.eup %5244  ;;  %4269 = vst [vmem:[%s7918_s7 + $0x8] sm:$0xff] %v4253_v56  ;;  %v4827_v24 = vpack.c.bf16 %v4253_v56, %v4252_v37  ;;  %5264 = vrcp.f32 %v4143_v45  ;;  %v7544_v8 = vpop.f32.mrb[58].mxu1  ;;  %v7566_v38 = vsel %vm3814_vm10, %v7954_v30, %v3665_v31  ;;  %v4144_v34 = vadd.f32 1.0, %v5243_v25  ;;  %v7957_v25 = vld [vmem:[#allocation11_spill] sm:$0xff] }
 0x26f   :  { %v7546_v26 = vpop.f32.mrb[59].mxu0  ;;  %v5247_v28 = vpop.eup %5246  ;;  %5266 = vtanh.f32 %v4223_v12  ;;  %4287 = vst [vmem:[%s7917_s8 + $0x18] sm:$0xff] %v4223_v12  ;;  %v4033_v48 = vadd.f32 1.0, %v5245_v18  ;;  %v7580_v10 = vsel %vm3814_vm10, %v7955_v41, %v3667_v59  ;;  %v4783_v16 = vmul.f32 -1.442695, %v7438_v43  ;;  %v7959_v59 = vld [vmem:[#allocation13_spill] sm:$0xff] }
 0x270   :  { %v7557_v63 = vpop.f32.mrb[59].mxu1  ;;  %v5249_v20 = vpop.eup %5248  ;;  %4828 = vst [vmem:[%s7919_s9] sm:$0xff] %v4827_v24   ;;  %5268 = vpow2.f32 %v4751_v44  ;;  %v3673_v31 = vadd.f32 %v7116_v33, %v7470_v9  ;;  %v3675_v18 = vadd.f32 %v7119_v55, %v7483_v7  ;;  %v3680_v43 = vadd.f32 %v7103_v29, %v7516_v4  ;;  %v7958_v4 = vld [vmem:[#allocation12_spill] sm:$0xff] }
 0x271   :  { %v5251_v37 = vpop.eup %5250  ;;  %v7570_v62 = vmul.f32 %v5249_v20, %v5241_v47  ;;  %5270 = vrcp.f32 %v4033_v48  ;;  %v7589_v11 = vpop.permute.xlu0 %3793  ;;  %v7956_v47 = vld [vmem:[#allocation10_spill] sm:$0xff]  ;;  %v3682_v48 = vadd.f32 %v7106_v22, %v7521_v21  ;;  %v3681_v39 = vadd.f32 %v7116_v33, %v7523_v0 }
 0x272   :  { %v5253_v45 = vpop.eup %5252  ;;  %v4208_v46 = vmul.f32 %v5251_v37, %v5247_v28  ;;  %5272 = vpow2.f32 %v4782_v19  ;;  %v7595_v27 = vsel %vm3815_vm11, %v7956_v47, %v3672_v50  ;;  %v7597_v56 = vpop.f32.mrb[60].mxu0  ;;  %v7630_v30 = vsel %vm3815_vm11, %v7958_v4, %v3673_v31  ;;  %v7962_v47 = vld [vmem:[#allocation16_spill] sm:$0xff] }
 0x273   :  { %v5255_v61 = vpop.eup %5254  ;;  %4270 = vst [vmem:[%s7918_s7 + $0x10] sm:$0xff] %v7570_v62  ;;  %v3938_v44 = vadd.f32 1.0, %v5253_v45  ;;  %5274 = vtanh.f32 %v7377_v52  ;;  %v7603_v52 = vsel %vm3815_vm11, %v7957_v25, %v3674_v17  ;;  %v7605_v12 = vpop.f32.mrb[60].mxu1  ;;  %v7635_v37 = vsel %vm3815_vm11, %v7959_v59, %v3675_v18  ;;  %v7961_v17 = vld [vmem:[#allocation15_spill] sm:$0xff] }
 0x274   :  { %v5257_v6 = vpop.eup %5256  ;;  %v4192_v32 = vmul.f32 %v5255_v61, %v82_v3  ;;  %5276 = vpow2.f32 %v4767_v57  ;;  %v7607_v40 = vpop.f32.mrb[61].mxu0  ;;  %vm3816_vm12 = vcmp.eq.s32.totalorder %v7589_v11, 1  ;;  %v4768_v50 = vmul.f32 -1.442695, %v7477_v13 }
 0x275   :  { %v5259_v60 = vpop.eup %5258  ;;  %5278 = vrcp.f32 %v3938_v44  ;;  %v7615_v24 = vpop.f32.mrb[61].mxu1  ;;  %v7655_v61 = vsel %vm3816_vm12, %v7961_v17, %v3682_v48  ;;  %v4753_v31 = vmul.f32 -1.442695, %v7495_v42  ;;  %v3683_v18 = vadd.f32 %v7119_v55, %v7531_v54  ;;  %v7963_v48 = vld [vmem:[#allocation17_spill] sm:$0xff] }
 0x276   :  { %v7617_v19 = vpop.f32.mrb[62].mxu0  ;;  %v5261_v35 = vpop.eup %5260  ;;  %v4224_v28 = vadd.f32 %v4208_v46, %v4192_v32  ;;  %5280 = vrcp.f32 %v4144_v34  ;;  %v7960_v46 = vld [vmem:[#allocation14_spill] sm:$0xff]  ;;  %v4145_v13 = vadd.f32 1.0, %v5259_v60  ;;  %v3690_v54 = vadd.f32 %v7106_v22, %v7544_v8  ;;  %v7965_v8 = vld [vmem:[#allocation19_spill] sm:$0xff] }
 0x277   :  { %v7623_v9 = vpop.f32.mrb[62].mxu1  ;;  %v7625_v20 = vpop.f32.mrb[63].mxu0  ;;  %v4209_v57 = vmul.f32 %v5261_v35, %v5257_v6  ;;  %5282 = vpow2.f32 %v4752_v36  ;;  %v7650_v41 = vsel %vm3816_vm12, %v7960_v46, %v3680_v43  ;;  %v7660_v6 = vsel %vm3816_vm12, %v7962_v47, %v3681_v39 }
 0x278   :  { %v5263_v7 = vpop.eup %5262  ;;  %v7637_v21 = vpop.f32.mrb[63].mxu1  ;;  %5284 = vtanh.f32 %v4224_v28  ;;  %4288 = vst [vmem:[%s7917_s8 + $0x20] sm:$0xff] %v4224_v28  ;;  %v3688_v28 = vadd.f32 %v7103_v29, %v7533_v1  ;;  %v7677_v42 = vsel %vm3816_vm12, %v7963_v48, %v3683_v18  ;;  %v3689_v39 = vadd.f32 %v7116_v33, %v7546_v26  ;;  %v7964_v1 = vld [vmem:[#allocation18_spill] sm:$0xff] }
 0x279   :  { %v5265_v0 = vpop.eup %5264  ;;  %v4034_v3 = vadd.f32 1.0, %v5263_v7  ;;  %v3797_v34 = vpop.permute.xlu1 %3796  ;;  %5286 = vpow2.f32 %v4783_v16  ;;  %v4784_v17 = vmul.f32 -1.442695, %v7481_v49  ;;  %v3698_v49 = vadd.f32 %v7106_v22, %v7605_v12 }
 0x27a   :  { %v5267_v45 = vpop.eup %5266  ;;  %vm3817_vm13 = vcmp.eq.s32.totalorder %v3797_v34, 1  ;;  %v7663_v25 = vpop.permute.xlu0 %3799  ;;  %v3697_v12 = vadd.f32 %v7116_v33, %v7607_v40  ;;  %v3704_v48 = vadd.f32 %v7103_v29, %v7617_v19  ;;  %v3706_v40 = vadd.f32 %v7106_v22, %v7623_v9  ;;  %v7971_v19 = vld [vmem:[#allocation25_spill] sm:$0xff] }
 0x27b   :  { %v5269_v44 = vpop.eup %5268  ;;  %v4255_v36 = vmul.f32 %v5267_v45, %v5265_v0  ;;  %5288 = vrcp.f32 %v4034_v3  ;;  %vm3818_vm14 = vcmp.eq.s32.totalorder %v7663_v25, 1  ;;  %v7689_v11 = vsel %vm3817_vm13, %v7964_v1, %v3688_v28 }
 0x27c   :  { %v5271_v32 = vpop.eup %5270  ;;  %v3939_v16 = vadd.f32 1.0, %v5269_v44  ;;  %5290 = vtanh.f32 %v7413_v51  ;;  %v7693_v26 = vsel %vm3817_vm13, %v7965_v8, %v3690_v54  ;;  %v4785_v9 = vmul.f32 -1.442695, %v7528_v2 }
 0x27d   :  { %v5273_v43 = vpop.eup %5272  ;;  %4271 = vst [vmem:[%s7918_s7 + $0x18] sm:$0xff] %v4255_v36  ;;  %v4832_v60 = vpack.c.bf16 %v4255_v36, %v7570_v62  ;;  %v4193_v35 = vmul.f32 %v5271_v32, %v83_v53  ;;  %5292 = vpow2.f32 %v4768_v50  ;;  %v7966_v50 = vld [vmem:[#allocation20_spill] sm:$0xff]  ;;  %v3691_v53 = vadd.f32 %v7119_v55, %v7557_v63  ;;  %v7705_v44 = vpop.permute.xlu1 %3802  ;;  %v7967_v63 = vld [vmem:[#allocation21_spill] sm:$0xff] }
 0x27e   :  { %v5275_v51 = vpop.eup %5274  ;;  %5294 = vrcp.f32 %v3939_v16  ;;  %v4146_v59 = vadd.f32 1.0, %v5273_v43  ;;  %v7700_v45 = vsel %vm3817_vm13, %v7966_v50, %v3689_v39  ;;  %v4769_v36 = vmul.f32 -1.442695, %v7506_v58  ;;  %v84_v32 = vld [vmem:[%s7916_s3 + $0x30] sm:$0xff]  ;;  %v7968_v43 = vld [vmem:[#allocation22_spill] sm:$0xff]  ;;  %v7973_v50 = vld [vmem:[#allocation27_spill] sm:$0xff] }
 0x27f   :  { %v5277_v7 = vpop.eup %5276  ;;  %4864 = vst [vmem:[%s7919_s9 + $0x8] sm:$0xff] %v4832_v60   ;;  %v4225_v62 = vadd.f32 %v4209_v57, %v4193_v35  ;;  %5296 = vrcp.f32 %v4145_v13  ;;  %v3696_v13 = vadd.f32 %v7103_v29, %v7597_v56  ;;  %v4754_v56 = vmul.f32 -1.442695, %v7542_v5  ;;  %v7970_v39 = vld [vmem:[#allocation24_spill] sm:$0xff] }
 0x280   :  { %v5279_v4 = vpop.eup %5278  ;;  %v4035_v0 = vadd.f32 1.0, %v5277_v7  ;;  %5298 = vpow2.f32 %v4753_v31  ;;  %v7716_v31 = vsel %vm3817_vm13, %v7967_v63, %v3691_v53  ;;  %vm3819_vm15 = vcmp.eq.s32.totalorder %v7705_v44, 1 }
 0x281   :  { %v5281_v3 = vpop.eup %5280  ;;  %5300 = vtanh.f32 %v4225_v62  ;;  %4289 = vst [vmem:[%s7917_s8 + $0x28] sm:$0xff] %v4225_v62  ;;  %v4210_v57 = vmul.f32 %v5279_v4, %v5275_v51  ;;  %v7724_v60 = vsel %vm3818_vm14, %v7968_v43, %v3696_v13  ;;  %v3699_v51 = vadd.f32 %v7119_v55, %v7615_v24 }
 0x282   :  { %v5283_v46 = vpop.eup %5282  ;;  %5302 = vrcp.f32 %v4035_v0  ;;  %v7744_v7 = vsel %vm3818_vm14, %v7970_v39, %v3697_v12  ;;  %v3705_v62 = vadd.f32 %v7116_v33, %v7625_v20  ;;  %v4770_v20 = vmul.f32 -1.442695, %v7566_v38  ;;  %v86_v12 = vld [vmem:[%s7916_s3 + $0x40] sm:$0xff] }
 0x283   :  { %v5285_v47 = vpop.eup %5284  ;;  %v3940_v16 = vadd.f32 1.0, %v5283_v46  ;;  %5304 = vtanh.f32 %v7451_v14  ;;  %v7969_v14 = vld [vmem:[#allocation23_spill] sm:$0xff]  ;;  %v7754_v8 = vsel %vm3818_vm14, %v7971_v19, %v3699_v51  ;;  %v7772_v53 = vsel %vm3819_vm15, %v7973_v50, %v3706_v40  ;;  %v7974_v46 = vld [vmem:[#allocation28_spill] sm:$0xff] }
 0x284   :  { %v5287_v18 = vpop.eup %5286  ;;  %v4256_v58 = vmul.f32 %v5285_v47, %v5281_v3  ;;  %5306 = vrcp.f32 %v4146_v59  ;;  %v7730_v34 = vsel %vm3818_vm14, %v7969_v14, %v3698_v49  ;;  %v7972_v3 = vld [vmem:[#allocation26_spill] sm:$0xff]  ;;  %v4755_v2 = vmul.f32 -1.442695, %v7595_v27  ;;  %v7975_v49 = vld [vmem:[#allocation29_spill] sm:$0xff]  ;;  %v87_v19 = vld [vmem:[%s7916_s3 + $0x48] sm:$0xff] }
 0x285   :  { %v5289_v35 = vpop.eup %5288  ;;  %5308 = vrcp.f32 %v3940_v16  ;;  %v4147_v59 = vadd.f32 1.0, %v5287_v18  ;;  %v7759_v22 = vsel %vm3819_vm15, %v7972_v3, %v3704_v48  ;;  %v3707_v38 = vadd.f32 %v7119_v55, %v7637_v21 }
 0x286   :  { %v5291_v28 = vpop.eup %5290  ;;  %4272 = vst [vmem:[%s7918_s7 + $0x20] sm:$0xff] %v4256_v58  ;;  %v4194_v5 = vmul.f32 %v5289_v35, %v84_v32  ;;  %5310 = vpow2.f32 %v4769_v36  ;;  %v4771_v35 = vmul.f32 -1.442695, %v7630_v30  ;;  %v4756_v48 = vmul.f32 -1.442695, %v7650_v41 }
 0x287   :  { %v5293_v54 = vpop.eup %5292  ;;  %5312 = vpow2.f32 %v4784_v17  ;;  %v7777_v17 = vsel %vm3819_vm15, %v7974_v46, %v3705_v62  ;;  %v7788_v18 = vsel %vm3819_vm15, %v7975_v49, %v3707_v38  ;;  %v4773_v38 = vmul.f32 -1.442695, %v7700_v45 }
 0x288   :  { %v5295_v1 = vpop.eup %5294  ;;  %v4226_v4 = vadd.f32 %v4210_v57, %v4194_v5  ;;  %v4036_v24 = vadd.f32 1.0, %v5293_v54  ;;  %5314 = vpow2.f32 %v4754_v56  ;;  %v4786_v5 = vmul.f32 -1.442695, %v7580_v10 }
 0x289   :  { %v5297_v0 = vpop.eup %5296  ;;  %v4211_v29 = vmul.f32 %v5295_v1, %v5291_v28  ;;  %5316 = vtanh.f32 %v7500_v23  ;;  %v85_v23 = vld [vmem:[%s7916_s3 + $0x38] sm:$0xff] }
 0x28a   :  { %v5299_v33 = vpop.eup %5298  ;;  %5318 = vtanh.f32 %v4226_v4  ;;  %4290 = vst [vmem:[%s7917_s8 + $0x30] sm:$0xff] %v4226_v4 }
 0x28b   :  { %v5301_v25 = vpop.eup %5300  ;;  %5320 = vrcp.f32 %v4036_v24  ;;  %v3941_v57 = vadd.f32 1.0, %v5299_v33  ;;  %v4787_v33 = vmul.f32 -1.442695, %v7635_v37 }
 0x28c   :  { %v5303_v36 = vpop.eup %5302  ;;  %v4257_v13 = vmul.f32 %v5301_v25, %v5297_v0  ;;  %5322 = vrcp.f32 %v4147_v59  ;;  %v4772_v0 = vmul.f32 -1.442695, %v7660_v6 }
 0x28d   :  { %v5305_v47 = vpop.eup %5304  ;;  %v4195_v32 = vmul.f32 %v5303_v36, %v85_v23  ;;  %5324 = vrcp.f32 %v3941_v57 }
 0x28e   :  { %v5307_v16 = vpop.eup %5306  ;;  %4273 = vst [vmem:[%s7918_s7 + $0x28] sm:$0xff] %v4257_v13  ;;  %v4837_v63 = vpack.c.bf16 %v4257_v13, %v4256_v58  ;;  %5326 = vpow2.f32 %v4770_v20 }
 0x28f   :  { %v5309_v56 = vpop.eup %5308  ;;  %v4227_v27 = vadd.f32 %v4211_v29, %v4195_v32  ;;  %5328 = vpow2.f32 %v4785_v9  ;;  %v4757_v9 = vmul.f32 -1.442695, %v7689_v11  ;;  %v88_v32 = vld [vmem:[%s7916_s3 + $0x50] sm:$0xff] }
 0x290   :  { %v5311_v43 = vpop.eup %5310  ;;  %4865 = vst [vmem:[%s7919_s9 + $0x10] sm:$0xff] %v4837_v63   ;;  %v4212_v55 = vmul.f32 %v5309_v56, %v5305_v47  ;;  %5330 = vpow2.f32 %v4755_v2  ;;  %v4788_v63 = vmul.f32 -1.442695, %v7677_v42  ;;  %v4758_v56 = vmul.f32 -1.442695, %v7724_v60 }
 0x291   :  { %v5313_v21 = vpop.eup %5312  ;;  %5332 = vtanh.f32 %v4227_v27  ;;  %4291 = vst [vmem:[%s7917_s8 + $0x38] sm:$0xff] %v4227_v27  ;;  %v4037_v58 = vadd.f32 1.0, %v5311_v43 }
 0x292   :  { %v5315_v44 = vpop.eup %5314  ;;  %v4148_v40 = vadd.f32 1.0, %v5313_v21 }
 0x293   :  { %v5317_v14 = vpop.eup %5316  ;;  %5334 = vrcp.f32 %v4037_v58  ;;  %v3942_v28 = vadd.f32 1.0, %v5315_v44 }
 0x294   :  { %v5319_v51 = vpop.eup %5318  ;;  %5336 = vtanh.f32 %v7555_v15 }
 0x295   :  { %v5321_v54 = vpop.eup %5320  ;;  %v4258_v39 = vmul.f32 %v5319_v51, %v5307_v16  ;;  %5338 = vrcp.f32 %v3942_v28 }
 0x296   :  { %v5323_v62 = vpop.eup %5322  ;;  %v4196_v30 = vmul.f32 %v5321_v54, %v86_v12  ;;  %5340 = vpow2.f32 %v4771_v35  ;;  %v4774_v12 = vmul.f32 -1.442695, %v7744_v7 }
 0x297   :  { %v5325_v1 = vpop.eup %5324  ;;  %4274 = vst [vmem:[%s7918_s7 + $0x30] sm:$0xff] %v4258_v39  ;;  %5342 = vpow2.f32 %v4786_v5  ;;  %v89_v5 = vld [vmem:[%s7916_s3 + $0x58] sm:$0xff] }
 0x298   :  { %v5327_v4 = vpop.eup %5326  ;;  %v4228_v10 = vadd.f32 %v4212_v55, %v4196_v30  ;;  %v4213_v59 = vmul.f32 %v5325_v1, %v5317_v14  ;;  %5344 = vpow2.f32 %v4756_v48  ;;  %v4789_v48 = vmul.f32 -1.442695, %v7716_v31 }
 0x299   :  { %v5329_v15 = vpop.eup %5328  ;;  %5346 = vrcp.f32 %v4148_v40  ;;  %v4038_v41 = vadd.f32 1.0, %v5327_v4 }
 0x29a   :  { %v5331_v24 = vpop.eup %5330  ;;  %5348 = vtanh.f32 %v4228_v10  ;;  %4292 = vst [vmem:[%s7917_s8 + $0x40] sm:$0xff] %v4228_v10  ;;  %v4149_v25 = vadd.f32 1.0, %v5329_v15 }
 0x29b   :  { %v5333_v29 = vpop.eup %5332  ;;  %5350 = vrcp.f32 %v4038_v41  ;;  %v3943_v3 = vadd.f32 1.0, %v5331_v24  ;;  %v4775_v24 = vmul.f32 -1.442695, %v7777_v17 }
 0x29c   :  { %v4259_v23 = vmul.f32 %v5333_v29, %v5323_v62  ;;  %5352 = vtanh.f32 %v7603_v52  ;;  %v90_v29 = vld [vmem:[%s7916_s3 + $0x60] sm:$0xff] }
 0x29d   :  { %v5335_v20 = vpop.eup %5334  ;;  %5354 = vrcp.f32 %v3943_v3 }
 0x29e   :  { %v5337_v57 = vpop.eup %5336  ;;  %4275 = vst [vmem:[%s7918_s7 + $0x38] sm:$0xff] %v4259_v23  ;;  %v4842_v6 = vpack.c.bf16 %v4259_v23, %v4258_v39  ;;  %v4197_v50 = vmul.f32 %v5335_v20, %v87_v19  ;;  %5356 = vpow2.f32 %v4772_v0  ;;  %v4759_v39 = vmul.f32 -1.442695, %v7759_v22 }
 0x29f   :  { %v5339_v46 = vpop.eup %5338  ;;  %5358 = vpow2.f32 %v4787_v33  ;;  %v4790_v33 = vmul.f32 -1.442695, %v7754_v8 }
 0x2a0   :  { %v5341_v36 = vpop.eup %5340  ;;  %4866 = vst [vmem:[%s7919_s9 + $0x18] sm:$0xff] %v4842_v6   ;;  %v4229_v52 = vadd.f32 %v4213_v59, %v4197_v50  ;;  %v4214_v37 = vmul.f32 %v5339_v46, %v5337_v57  ;;  %5360 = vpow2.f32 %v4757_v9 }
 0x2a1   :  { %v5343_v11 = vpop.eup %5342  ;;  %5362 = vrcp.f32 %v4149_v25  ;;  %v4039_v13 = vadd.f32 1.0, %v5341_v36 }
 0x2a2   :  { %v5345_v2 = vpop.eup %5344  ;;  %5364 = vtanh.f32 %v4229_v52  ;;  %4293 = vst [vmem:[%s7917_s8 + $0x48] sm:$0xff] %v4229_v52  ;;  %v4150_v55 = vadd.f32 1.0, %v5343_v11 }
 0x2a3   :  { %v5347_v47 = vpop.eup %5346  ;;  %5366 = vrcp.f32 %v4039_v13  ;;  %v3944_v16 = vadd.f32 1.0, %v5345_v2  ;;  %v4791_v2 = vmul.f32 -1.442695, %v7788_v18 }
 0x2a4   :  { %v5349_v49 = vpop.eup %5348  ;;  %5368 = vtanh.f32 %v7655_v61 }
 0x2a5   :  { %v5351_v27 = vpop.eup %5350  ;;  %v4260_v43 = vmul.f32 %v5349_v49, %v5347_v47  ;;  %5370 = vrcp.f32 %v3944_v16 }
 0x2a6   :  { %v5353_v21 = vpop.eup %5352  ;;  %v4198_v45 = vmul.f32 %v5351_v27, %v88_v32  ;;  %5372 = vpow2.f32 %v4773_v38 }
 0x2a7   :  { %v5355_v58 = vpop.eup %5354  ;;  %4276 = vst [vmem:[%s7918_s7 + $0x40] sm:$0xff] %v4260_v43  ;;  %5374 = vpow2.f32 %v4788_v63 }
 0x2a8   :  { %v5357_v44 = vpop.eup %5356  ;;  %v4230_v42 = vadd.f32 %v4214_v37, %v4198_v45  ;;  %v4215_v35 = vmul.f32 %v5355_v58, %v5353_v21  ;;  %5376 = vpow2.f32 %v4758_v56  ;;  %v91_v37 = vld [vmem:[%s7916_s3 + $0x68] sm:$0xff]  ;;  %v92_v45 = vld [vmem:[%s7916_s3 + $0x70] sm:$0xff] }
 0x2a9   :  { %v5359_v61 = vpop.eup %5358  ;;  %5378 = vrcp.f32 %v4150_v55  ;;  %v4040_v60 = vadd.f32 1.0, %v5357_v44 }
 0x2aa   :  { %v5361_v14 = vpop.eup %5360  ;;  %5380 = vtanh.f32 %v4230_v42  ;;  %4294 = vst [vmem:[%s7917_s8 + $0x50] sm:$0xff] %v4230_v42  ;;  %v4151_v30 = vadd.f32 1.0, %v5359_v61 }
 0x2ab   :  { %v5363_v28 = vpop.eup %5362  ;;  %5382 = vrcp.f32 %v4040_v60  ;;  %v3945_v51 = vadd.f32 1.0, %v5361_v14 }
 0x2ac   :  { %v5365_v54 = vpop.eup %5364  ;;  %5384 = vtanh.f32 %v7693_v26 }
 0x2ad   :  { %v5367_v40 = vpop.eup %5366  ;;  %v4261_v62 = vmul.f32 %v5365_v54, %v5363_v28  ;;  %5386 = vrcp.f32 %v3945_v51 }
 0x2ae   :  { %v5369_v1 = vpop.eup %5368  ;;  %v4199_v7 = vmul.f32 %v5367_v40, %v89_v5  ;;  %5388 = vpow2.f32 %v4774_v12 }
 0x2af   :  { %v5371_v4 = vpop.eup %5370  ;;  %4277 = vst [vmem:[%s7918_s7 + $0x48] sm:$0xff] %v4261_v62  ;;  %v4847_v10 = vpack.c.bf16 %v4261_v62, %v4260_v43  ;;  %5390 = vpow2.f32 %v4789_v48  ;;  %v93_v48 = vld [vmem:[%s7916_s3 + $0x78] sm:$0xff] }
 0x2b0   :  { %v5373_v31 = vpop.eup %5372  ;;  %v4231_v59 = vadd.f32 %v4215_v35, %v4199_v7  ;;  %v4216_v15 = vmul.f32 %v5371_v4, %v5369_v1  ;;  %5392 = vpow2.f32 %v4759_v39 }
 0x2b1   :  { %v5375_v26 = vpop.eup %5374  ;;  %4867 = vst [vmem:[%s7919_s9 + $0x20] sm:$0xff] %v4847_v10   ;;  %5394 = vrcp.f32 %v4151_v30  ;;  %v4041_v22 = vadd.f32 1.0, %v5373_v31 }
 0x2b2   :  { %v5377_v41 = vpop.eup %5376  ;;  %5396 = vtanh.f32 %v4231_v59  ;;  %4295 = vst [vmem:[%s7917_s8 + $0x58] sm:$0xff] %v4231_v59  ;;  %v4152_v20 = vadd.f32 1.0, %v5375_v26 }
 0x2b3   :  { %v5379_v0 = vpop.eup %5378  ;;  %5398 = vrcp.f32 %v4041_v22  ;;  %v3946_v19 = vadd.f32 1.0, %v5377_v41 }
 0x2b4   :  { %v5381_v3 = vpop.eup %5380  ;;  %5400 = vtanh.f32 %v7730_v34 }
 0x2b5   :  { %v5383_v23 = vpop.eup %5382  ;;  %v4262_v9 = vmul.f32 %v5381_v3, %v5379_v0  ;;  %5402 = vrcp.f32 %v3946_v19 }
 0x2b6   :  { %v5385_v25 = vpop.eup %5384  ;;  %v4200_v57 = vmul.f32 %v5383_v23, %v90_v29  ;;  %5404 = vpow2.f32 %v4775_v24 }
 0x2b7   :  { %v5387_v17 = vpop.eup %5386  ;;  %4278 = vst [vmem:[%s7918_s7 + $0x50] sm:$0xff] %v4262_v9  ;;  %5406 = vpow2.f32 %v4790_v33 }
 0x2b8   :  { %v5389_v6 = vpop.eup %5388  ;;  %v4232_v50 = vadd.f32 %v4216_v15, %v4200_v57  ;;  %v4217_v46 = vmul.f32 %v5387_v17, %v5385_v25  ;;  %5408 = vrcp.f32 %v4152_v20 }
 0x2b9   :  { %v5391_v36 = vpop.eup %5390  ;;  %v4042_v34 = vadd.f32 1.0, %v5389_v6 }
 0x2ba   :  { %v5393_v8 = vpop.eup %5392  ;;  %5410 = vtanh.f32 %v4232_v50  ;;  %4296 = vst [vmem:[%s7917_s8 + $0x60] sm:$0xff] %v4232_v50  ;;  %v4153_v32 = vadd.f32 1.0, %v5391_v36 }
 0x2bb   :  { %v5395_v52 = vpop.eup %5394  ;;  %5412 = vrcp.f32 %v4042_v34  ;;  %v3947_v11 = vadd.f32 1.0, %v5393_v8 }
 0x2bc   :  { %v5397_v13 = vpop.eup %5396  ;;  %5414 = vtanh.f32 %v7772_v53 }
 0x2bd   :  { %v5399_v38 = vpop.eup %5398  ;;  %v4263_v47 = vmul.f32 %v5397_v13, %v5395_v52  ;;  %5416 = vrcp.f32 %v3947_v11 }
 0x2be   :  { %v5401_v16 = vpop.eup %5400  ;;  %v4201_v63 = vmul.f32 %v5399_v38, %v91_v37  ;;  %5418 = vpow2.f32 %v4791_v2 }
 0x2bf   :  { %v5403_v49 = vpop.eup %5402  ;;  %4279 = vst [vmem:[%s7918_s7 + $0x58] sm:$0xff] %v4263_v47  ;;  %v4852_v56 = vpack.c.bf16 %v4263_v47, %v4262_v9  ;;  %5420 = vrcp.f32 %v4153_v32 }
 0x2c0   :  { %v5405_v27 = vpop.eup %5404  ;;  %v4233_v43 = vadd.f32 %v4217_v46, %v4201_v63  ;;  %v4218_v55 = vmul.f32 %v5403_v49, %v5401_v16 }
 0x2c1   :  { %4868 = vst [vmem:[%s7919_s9 + $0x28] sm:$0xff] %v4852_v56   ;;  %v4043_v53 = vadd.f32 1.0, %v5405_v27  ;;  %v5407_v18 = vpop.eup %5406 }
 0x2c2   :  { %5422 = vtanh.f32 %v4233_v43  ;;  %4297 = vst [vmem:[%s7917_s8 + $0x68] sm:$0xff] %v4233_v43  ;;  %v5409_v21 = vpop.eup %5408  ;;  %v4154_v35 = vadd.f32 1.0, %v5407_v18 }
 0x2c3   :  { %5424 = vrcp.f32 %v4043_v53 }
 0x2c4   :  { %v5411_v58 = vpop.eup %5410  ;;  %5426 = vrcp.f32 %v4154_v35 }
 0x2c5   :  { %v5413_v44 = vpop.eup %5412  ;;  %v4264_v42 = vmul.f32 %v5411_v58, %v5409_v21 }
 0x2c6   :  { %v5415_v61 = vpop.eup %5414  ;;  %v4202_v60 = vmul.f32 %v5413_v44, %v92_v45 }
 0x2c7   :  { %v5417_v14 = vpop.eup %5416  ;;  %4280 = vst [vmem:[%s7918_s7 + $0x60] sm:$0xff] %v4264_v42 }
 0x2c8   :  { %v4234_v12 = vadd.f32 %v4218_v55, %v4202_v60  ;;  %v4219_v28 = vmul.f32 %v5417_v14, %v5415_v61  ;;  %v5419_v5 = vpop.eup %5418 }
 0x2c9   :  { %v5421_v51 = vpop.eup %5420  ;;  %v4155_v62 = vadd.f32 1.0, %v5419_v5 }
 0x2ca   :  { %5428 = vtanh.f32 %v4234_v12  ;;  %4298 = vst [vmem:[%s7917_s8 + $0x70] sm:$0xff] %v4234_v12 }
 0x2cb   :  { %5430 = vrcp.f32 %v4155_v62 }
 0x2cc   :  { %v5423_v54 = vpop.eup %5422 }
 0x2cd   :  { %v5425_v39 = vpop.eup %5424  ;;  %v4265_v40 = vmul.f32 %v5423_v54, %v5421_v51 }
 0x2ce   :  { %v4203_v30 = vmul.f32 %v5425_v39, %v93_v48  ;;  %v5427_v4 = vpop.eup %5426 }
 0x2cf   :  { %4281 = vst [vmem:[%s7918_s7 + $0x68] sm:$0xff] %v4265_v40  ;;  %v4857_v1 = vpack.c.bf16 %v4265_v40, %v4264_v42 }
 0x2d0   :  { %v4235_v7 = vadd.f32 %v4219_v28, %v4203_v30 }
 0x2d1   :  { %4869 = vst [vmem:[%s7919_s9 + $0x30] sm:$0xff] %v4857_v1  }
 0x2d2   :  { %5432 = vtanh.f32 %v4235_v7  ;;  %4299 = vst [vmem:[%s7917_s8 + $0x78] sm:$0xff] %v4235_v7 }
 0x2d4   :  { %v5429_v10 = vpop.eup %5428 }
 0x2d5   :  { %v4266_v31 = vmul.f32 %v5429_v10, %v5427_v4  ;;  %v5431_v59 = vpop.eup %5430 }
 0x2d7   :  { %4282 = vst [vmem:[%s7918_s7 + $0x70] sm:$0xff] %v4266_v31 }
 0x2dc   :  { %v5433_v15 = vpop.eup %5432 }
 0x2dd   :  { %v4267_v26 = vmul.f32 %v5433_v15, %v5431_v59 }
 0x2df   :  { %4283 = vst [vmem:[%s7918_s7 + $0x78] sm:$0xff] %v4267_v26  ;;  %v4862_v22 = vpack.c.bf16 %v4267_v26, %v4266_v31 }
 0x2e1   :  { %4870 = vst [vmem:[%s7919_s9 + $0x38] sm:$0xff] %v4862_v22  }

// kernel: neurosat_forward.9
= control target key start
LH: loop header
LB: loop body
LE: loop exit
PB: predicated region body
PF: predicated region fallthrough
CT: control target
= control target key end

     0   :  { %15 = vsyncpa [#allocation3], 0  ;;  %v5521_v8 = vmov 0   ;;  %s7903_s0 = inlined_call_operand.vmem [shape: f32[128,1], index: 0, kind: input, shape index: {}]   ;;  %s7904_s1 = inlined_call_operand.vmem [shape: bf16[128,512], index: 1, kind: input, shape index: {}]   ;;  %s7905_s2 = inlined_call_operand.vmem [shape: f32[128,128], index: 2, kind: input, shape index: {}]   ;;  %s7906_s3 = inlined_call_operand.vmem [shape: f32[128,128], index: 3, kind: input, shape index: {}]   ;;  %s7907_s4 = inlined_call_operand.vmem [shape: bf16[512,1024], index: 4, kind: input, shape index: {}]   ;;  %s7908_s5 = inlined_call_operand.vmem [shape: bf16[128,1024], index: 5, kind: input, shape index: {}]   ;;  %s7909_s6 = inlined_call_operand.vmem [shape: f32[1,1024], index: 6, kind: input, shape index: {}]   ;;  %s7910_s7 = inlined_call_operand.hbm [shape: f32[128,128], index: 7, kind: output, shape index: {0}]   ;;  %s7911_s8 = inlined_call_operand.hbm [shape: f32[128,128], index: 8, kind: output, shape index: {1}]   ;;  %s7912_s9 = inlined_call_operand.vmem [shape: bf16[128,128], index: 9, kind: output, shape index: {2}]  }
   0x1   :  { %v360_v0 = vld [vmem:[%s7908_s5] sm:$0xff]  ;;  %v361_v2 = vld [vmem:[%s7908_s5 + $0x8] sm:$0xff]  ;;  %776 = vmatprep.mubr.bf16.mxu0 %v5521_v8  ;;  %889 = vmatprep.mubr.bf16.mxu1 %v5521_v8  ;;  %v362_v63 = vld [vmem:[%s7908_s5 + $0x10] sm:$0xff] }
   0x2   :  { %v364_v1 = vld [vmem:[%s7908_s5 + $0x20] sm:$0xff]  ;;  %v365_v4 = vld [vmem:[%s7908_s5 + $0x28] sm:$0xff]  ;;  %5158 = vset.pattern.permute.xlu0 %v5521_v8  ;;  %5159 = vset.pattern.permute.xlu1 %v5521_v8 }
   0x3   :  { %v4419_v3 = vcombine.high %v360_v0, %v364_v1  ;;  %v4418_v5 = vcombine.low %v360_v0, %v364_v1  ;;  %v368_v6 = vld [vmem:[%s7908_s5 + $0x40] sm:$0xff]  ;;  %v4421_v9 = vcombine.high %v361_v2, %v365_v4  ;;  %v4420_v10 = vcombine.low %v361_v2, %v365_v4  ;;  %v369_v12 = vld [vmem:[%s7908_s5 + $0x48] sm:$0xff]  ;;  %v366_v0 = vld [vmem:[%s7908_s5 + $0x30] sm:$0xff] }
   0x4   :  { %v372_v7 = vld [vmem:[%s7908_s5 + $0x60] sm:$0xff]  ;;  %v373_v13 = vld [vmem:[%s7908_s5 + $0x68] sm:$0xff]  ;;  %v363_v1 = vld [vmem:[%s7908_s5 + $0x18] sm:$0xff] }
   0x5   :  { %v4427_v11 = vcombine.high %v368_v6, %v372_v7  ;;  %v376_v14 = vld [vmem:[%s7908_s5 + $0x80] sm:$0xff]  ;;  %744 = vmatprep.subr.bf16.mxu0 %v4419_v3  ;;  %v4429_v15 = vcombine.high %v369_v12, %v373_v13  ;;  %v377_v17 = vld [vmem:[%s7908_s5 + $0x88] sm:$0xff]  ;;  %857 = vmatprep.subr.bf16.mxu1 %v4421_v9  ;;  %v4426_v19 = vcombine.low %v368_v6, %v372_v7  ;;  %v367_v2 = vld [vmem:[%s7908_s5 + $0x38] sm:$0xff] }
   0x6   :  { %v380_v16 = vld [vmem:[%s7908_s5 + $0xa0] sm:$0xff]  ;;  %v381_v18 = vld [vmem:[%s7908_s5 + $0xa8] sm:$0xff]  ;;  %745 = vmatpush1.bf16.msra.mxu0 %v4418_v5  ;;  %858 = vmatpush1.bf16.msra.mxu1 %v4420_v10  ;;  %v4428_v20 = vcombine.low %v369_v12, %v373_v13  ;;  %v4423_v7 = vcombine.high %v362_v63, %v366_v0  ;;  %v4425_v9 = vcombine.high %v363_v1, %v367_v2  ;;  %v374_v12 = vld [vmem:[%s7908_s5 + $0x70] sm:$0xff] }
   0x7   :  { %746 = vmatprep.subr.bf16.mxu0 %v4427_v11  ;;  %v4435_v21 = vcombine.high %v376_v14, %v380_v16  ;;  %859 = vmatprep.subr.bf16.mxu1 %v4429_v15  ;;  %v4437_v22 = vcombine.high %v377_v17, %v381_v18  ;;  %v384_v23 = vld [vmem:[%s7908_s5 + $0xc0] sm:$0xff]  ;;  %v385_v25 = vld [vmem:[%s7908_s5 + $0xc8] sm:$0xff]  ;;  %v4434_v27 = vcombine.low %v376_v14, %v380_v16  ;;  %v370_v11 = vld [vmem:[%s7908_s5 + $0x50] sm:$0xff] }
   0x8   :  { %v388_v24 = vld [vmem:[%s7908_s5 + $0xe0] sm:$0xff]  ;;  %v389_v26 = vld [vmem:[%s7908_s5 + $0xe8] sm:$0xff]  ;;  %v4436_v28 = vcombine.low %v377_v17, %v381_v18  ;;  %v4422_v13 = vcombine.low %v362_v63, %v366_v0  ;;  %v371_v14 = vld [vmem:[%s7908_s5 + $0x58] sm:$0xff]  ;;  %v4431_v16 = vcombine.high %v370_v11, %v374_v12  ;;  %v4424_v17 = vcombine.low %v363_v1, %v367_v2 }
   0x9   :  { %v4443_v29 = vcombine.high %v384_v23, %v388_v24  ;;  %v4445_v30 = vcombine.high %v385_v25, %v389_v26  ;;  %v392_v31 = vld [vmem:[%s7908_s5 + $0x100] sm:$0xff]  ;;  %v393_v33 = vld [vmem:[%s7908_s5 + $0x108] sm:$0xff]  ;;  %v4442_v35 = vcombine.low %v384_v23, %v388_v24  ;;  %v4444_v36 = vcombine.low %v385_v25, %v389_v26  ;;  %v375_v15 = vld [vmem:[%s7908_s5 + $0x78] sm:$0xff] }
   0xa   :  { %747 = vmatpush1.bf16.msra.mxu0 %v4426_v19  ;;  %860 = vmatpush1.bf16.msra.mxu1 %v4428_v20  ;;  %v396_v32 = vld [vmem:[%s7908_s5 + $0x120] sm:$0xff]  ;;  %v397_v34 = vld [vmem:[%s7908_s5 + $0x128] sm:$0xff]  ;;  %v378_v18 = vld [vmem:[%s7908_s5 + $0x90] sm:$0xff]  ;;  %v4430_v23 = vcombine.low %v370_v11, %v374_v12 }
   0xb   :  { %748 = vmatprep.subr.bf16.mxu0 %v4435_v21  ;;  %861 = vmatprep.subr.bf16.mxu1 %v4437_v22  ;;  %v4451_v37 = vcombine.high %v392_v31, %v396_v32  ;;  %v4453_v38 = vcombine.high %v393_v33, %v397_v34  ;;  %v400_v39 = vld [vmem:[%s7908_s5 + $0x140] sm:$0xff]  ;;  %v401_v41 = vld [vmem:[%s7908_s5 + $0x148] sm:$0xff]  ;;  %v4450_v43 = vcombine.low %v392_v31, %v396_v32  ;;  %v382_v19 = vld [vmem:[%s7908_s5 + $0xb0] sm:$0xff] }
   0xc   :  { %v404_v40 = vld [vmem:[%s7908_s5 + $0x160] sm:$0xff]  ;;  %v405_v42 = vld [vmem:[%s7908_s5 + $0x168] sm:$0xff]  ;;  %v4452_v44 = vcombine.low %v393_v33, %v397_v34  ;;  %v66_v20 = vld [vmem:[%s7905_s2 + $0x10] sm:$0xff]  ;;  %v4433_v21 = vcombine.high %v371_v14, %v375_v15  ;;  %v4439_v26 = vcombine.high %v378_v18, %v382_v19  ;;  %v4438_v34 = vcombine.low %v378_v18, %v382_v19 }
   0xd   :  { %v4459_v45 = vcombine.high %v400_v39, %v404_v40  ;;  %v4461_v46 = vcombine.high %v401_v41, %v405_v42  ;;  %v408_v47 = vld [vmem:[%s7908_s5 + $0x180] sm:$0xff]  ;;  %v409_v49 = vld [vmem:[%s7908_s5 + $0x188] sm:$0xff]  ;;  %v4458_v51 = vcombine.low %v400_v39, %v404_v40  ;;  %v4460_v52 = vcombine.low %v401_v41, %v405_v42  ;;  %v67_v22 = vld [vmem:[%s7905_s2 + $0x18] sm:$0xff] }
   0xe   :  { %749 = vmatpush1.bf16.msra.mxu0 %v4434_v27  ;;  %862 = vmatpush1.bf16.msra.mxu1 %v4436_v28  ;;  %v412_v48 = vld [vmem:[%s7908_s5 + $0x1a0] sm:$0xff]  ;;  %v413_v50 = vld [vmem:[%s7908_s5 + $0x1a8] sm:$0xff]  ;;  %v379_v24 = vld [vmem:[%s7908_s5 + $0x98] sm:$0xff]  ;;  %v4432_v27 = vcombine.low %v371_v14, %v375_v15  ;;  %v5730_v28 = vpack.c.bf16 %v67_v22, %v66_v20 }
   0xf   :  { %750 = vmatprep.subr.bf16.mxu0 %v4443_v29  ;;  %863 = vmatprep.subr.bf16.mxu1 %v4445_v30  ;;  %v4467_v53 = vcombine.high %v408_v47, %v412_v48  ;;  %v4469_v54 = vcombine.high %v409_v49, %v413_v50  ;;  %v416_v55 = vld [vmem:[%s7908_s5 + $0x1c0] sm:$0xff]  ;;  %v417_v57 = vld [vmem:[%s7908_s5 + $0x1c8] sm:$0xff]  ;;  %v4466_v59 = vcombine.low %v408_v47, %v412_v48  ;;  %v383_v25 = vld [vmem:[%s7908_s5 + $0xb8] sm:$0xff] }
  0x10   :  { %v420_v56 = vld [vmem:[%s7908_s5 + $0x1e0] sm:$0xff]  ;;  %v421_v58 = vld [vmem:[%s7908_s5 + $0x1e8] sm:$0xff]  ;;  %v4468_v60 = vcombine.low %v409_v49, %v413_v50  ;;  %v386_v29 = vld [vmem:[%s7908_s5 + $0xd0] sm:$0xff]  ;;  %v4441_v31 = vcombine.high %v379_v24, %v383_v25 }
  0x11   :  { %v4475_v61 = vcombine.high %v416_v55, %v420_v56  ;;  %v4477_v62 = vcombine.high %v417_v57, %v421_v58  ;;  %v4474_v3 = vcombine.low %v416_v55, %v420_v56  ;;  %v64_v4 = vld [vmem:[%s7905_s2] sm:$0xff]  ;;  %v65_v5 = vld [vmem:[%s7905_s2 + $0x8] sm:$0xff]  ;;  %v4476_v6 = vcombine.low %v417_v57, %v421_v58  ;;  %v390_v30 = vld [vmem:[%s7908_s5 + $0xf0] sm:$0xff] }
  0x12   :  { %751 = vmatpush1.bf16.msra.mxu0 %v4442_v35  ;;  %864 = vmatpush1.bf16.msra.mxu1 %v4444_v36  ;;  %v5694_v10 = vpack.c.bf16 %v65_v5, %v64_v4  ;;  %v387_v32 = vld [vmem:[%s7908_s5 + $0xd8] sm:$0xff]  ;;  %v4447_v35 = vcombine.high %v386_v29, %v390_v30  ;;  %v4440_v36 = vcombine.low %v379_v24, %v383_v25  ;;  %v398_v39 = vld [vmem:[%s7908_s5 + $0x130] sm:$0xff]  ;;  %v69_v41 = vld [vmem:[%s7905_s2 + $0x28] sm:$0xff] }
  0x13   :  { %752 = vmatprep.subr.bf16.mxu0 %v4451_v37  ;;  %865 = vmatprep.subr.bf16.mxu1 %v4453_v38  ;;  %v391_v33 = vld [vmem:[%s7908_s5 + $0xf8] sm:$0xff]  ;;  %v68_v37 = vld [vmem:[%s7905_s2 + $0x20] sm:$0xff]  ;;  %v394_v38 = vld [vmem:[%s7908_s5 + $0x110] sm:$0xff] }
  0x14   :  { %v4449_v40 = vcombine.high %v387_v32, %v391_v33  ;;  %v395_v42 = vld [vmem:[%s7908_s5 + $0x118] sm:$0xff]  ;;  %v5766_v47 = vpack.c.bf16 %v69_v41, %v68_v37  ;;  %v402_v48 = vld [vmem:[%s7908_s5 + $0x150] sm:$0xff]  ;;  %v72_v11 = vld [vmem:[%s7905_s2 + $0x40] sm:$0xff] }
  0x15   :  { %v406_v49 = vld [vmem:[%s7908_s5 + $0x170] sm:$0xff]  ;;  %v71_v55 = vld [vmem:[%s7905_s2 + $0x38] sm:$0xff]  ;;  %v73_v12 = vld [vmem:[%s7905_s2 + $0x48] sm:$0xff] }
  0x16   :  { %753 = vmatpush1.bf16.msra.mxu0 %v4450_v43  ;;  %866 = vmatpush1.bf16.msra.mxu1 %v4452_v44  ;;  %v399_v43 = vld [vmem:[%s7908_s5 + $0x138] sm:$0xff]  ;;  %v4446_v44 = vcombine.low %v386_v29, %v390_v30  ;;  %v4463_v56 = vcombine.high %v402_v48, %v406_v49  ;;  %v410_v58 = vld [vmem:[%s7908_s5 + $0x190] sm:$0xff]  ;;  %v4462_v63 = vcombine.low %v402_v48, %v406_v49  ;;  %v97_v18 = vld [vmem:[%s7907_s4 + $0x8] sm:$0xff] }
  0x17   :  { %754 = vmatprep.subr.bf16.mxu0 %v4459_v45  ;;  %867 = vmatprep.subr.bf16.mxu1 %v4461_v46  ;;  %v4455_v45 = vcombine.high %v394_v38, %v398_v39  ;;  %v4448_v46 = vcombine.low %v387_v32, %v391_v33  ;;  %v4457_v50 = vcombine.high %v395_v42, %v399_v43  ;;  %v422_v4 = vld [vmem:[%s7908_s5 + $0x1f0] sm:$0xff]  ;;  %v101_v19 = vld [vmem:[%s7907_s4 + $0x28] sm:$0xff]  ;;  %v76_v29 = vld [vmem:[%s7905_s2 + $0x60] sm:$0xff] }
  0x18   :  { %v4456_v57 = vcombine.low %v395_v42, %v399_v43  ;;  %v4517_v24 = vcombine.high %v97_v18, %v101_v19  ;;  %v74_v25 = vld [vmem:[%s7905_s2 + $0x50] sm:$0xff]  ;;  %v77_v30 = vld [vmem:[%s7905_s2 + $0x68] sm:$0xff] }
  0x1a   :  { %755 = vmatpush1.bf16.msra.mxu0 %v4458_v51  ;;  %868 = vmatpush1.bf16.msra.mxu1 %v4460_v52  ;;  %v403_v51 = vld [vmem:[%s7908_s5 + $0x158] sm:$0xff] }
  0x1b   :  { %756 = vmatprep.subr.bf16.mxu0 %v4467_v53  ;;  %869 = vmatprep.subr.bf16.mxu1 %v4469_v54  ;;  %v407_v52 = vld [vmem:[%s7908_s5 + $0x178] sm:$0xff]  ;;  %v4454_v53 = vcombine.low %v394_v38, %v398_v39  ;;  %v70_v54 = vld [vmem:[%s7905_s2 + $0x30] sm:$0xff] }
  0x1c   :  { %v4464_v1 = vcombine.low %v403_v51, %v407_v52  ;;  %v5802_v2 = vpack.c.bf16 %v71_v55, %v70_v54 }
  0x1e   :  { %757 = vmatpush1.bf16.msra.mxu0 %v4466_v59  ;;  %870 = vmatpush1.bf16.msra.mxu1 %v4468_v60  ;;  %v414_v59 = vld [vmem:[%s7908_s5 + $0x1b0] sm:$0xff]  ;;  %v4465_v60 = vcombine.high %v403_v51, %v407_v52 }
  0x1f   :  { %758 = vmatprep.subr.bf16.mxu0 %v4475_v61  ;;  %871 = vmatprep.subr.bf16.mxu1 %v4477_v62  ;;  %v411_v61 = vld [vmem:[%s7908_s5 + $0x198] sm:$0xff]  ;;  %v4471_v0 = vcombine.high %v410_v58, %v414_v59 }
  0x20   :  { %v415_v62 = vld [vmem:[%s7908_s5 + $0x1b8] sm:$0xff] }
  0x21   :  { %v4473_v5 = vcombine.high %v411_v61, %v415_v62  ;;  %v4472_v14 = vcombine.low %v411_v61, %v415_v62 }
  0x22   :  { %759 = vmatpush1.bf16.msra.mxu0 %v4474_v3  ;;  %872 = vmatpush1.bf16.msra.mxu1 %v4476_v6  ;;  %v418_v3 = vld [vmem:[%s7908_s5 + $0x1d0] sm:$0xff]  ;;  %v419_v6 = vld [vmem:[%s7908_s5 + $0x1d8] sm:$0xff] }
  0x23   :  { %970 = vmatprep.subr.bf16.mxu0 %v4423_v7  ;;  %1083 = vmatprep.subr.bf16.mxu1 %v4425_v9  ;;  %v423_v7 = vld [vmem:[%s7908_s5 + $0x1f8] sm:$0xff]  ;;  %v4470_v9 = vcombine.low %v410_v58, %v414_v59  ;;  %v4478_v20 = vcombine.low %v418_v3, %v422_v4 }
  0x24   :  { %v4481_v15 = vcombine.high %v419_v6, %v423_v7 }
  0x25   :  { %777 = vmatmul.mubr.bf16.vlgmr.msra.gmra.mrb[0].mxu0 %v5694_v10  ;;  %890 = vmatmul.mubr.bf16.vlgmr.msra.gmra.mrb[0].mxu1 %v5694_v10 }
  0x26   :  { %971 = vmatpush1.bf16.msra.mxu0 %v4422_v13  ;;  %786 = vmatprep.mubr.bf16.mxu0 %v5521_v8  ;;  %v4479_v13 = vcombine.high %v418_v3, %v422_v4 }
  0x27   :  { %899 = vmatprep.mubr.bf16.mxu1 %v5521_v8  ;;  %972 = vmatprep.subr.bf16.mxu0 %v4431_v16  ;;  %v96_v16 = vld [vmem:[%s7907_s4] sm:$0xff] }
  0x28   :  { %1084 = vmatpush1.bf16.msra.mxu1 %v4424_v17  ;;  %v100_v17 = vld [vmem:[%s7907_s4 + $0x20] sm:$0xff] }
  0x29   :  { %1085 = vmatprep.subr.bf16.mxu1 %v4433_v21  ;;  %v4480_v21 = vcombine.low %v419_v6, %v423_v7  ;;  %v4515_v22 = vcombine.high %v96_v16, %v100_v17 }
  0x2a   :  { %973 = vmatpush1.bf16.msra.mxu0 %v4430_v23  ;;  %v5838_v23 = vpack.c.bf16 %v73_v12, %v72_v11 }
  0x2b   :  { %974 = vmatprep.subr.bf16.mxu0 %v4439_v26  ;;  %v75_v26 = vld [vmem:[%s7905_s2 + $0x58] sm:$0xff] }
  0x2c   :  { %1086 = vmatpush1.bf16.msra.mxu1 %v4432_v27  ;;  %v5850_v27 = vpack.c.bf16 %v75_v26, %v74_v25 }
  0x2d   :  { %787 = vmatmul.mubr.bf16.gmra.mrb[4].mxu0 %v5730_v28  ;;  %1087 = vmatprep.subr.bf16.mxu1 %v4441_v31 }
  0x2e   :  { %900 = vmatmul.mubr.bf16.gmra.mrb[4].mxu1 %v5730_v28  ;;  %796 = vmatprep.mubr.bf16.mxu0 %v5521_v8 }
  0x2f   :  { %909 = vmatprep.mubr.bf16.mxu1 %v5521_v8  ;;  %975 = vmatpush1.bf16.msra.mxu0 %v4438_v34 }
  0x30   :  { %976 = vmatprep.subr.bf16.mxu0 %v4447_v35  ;;  %1088 = vmatpush1.bf16.msra.mxu1 %v4440_v36 }
  0x31   :  { %1089 = vmatprep.subr.bf16.mxu1 %v4449_v40 }
  0x33   :  { %977 = vmatpush1.bf16.msra.mxu0 %v4446_v44 }
  0x34   :  { %978 = vmatprep.subr.bf16.mxu0 %v4455_v45  ;;  %1090 = vmatpush1.bf16.msra.mxu1 %v4448_v46 }
  0x35   :  { %797 = vmatmul.mubr.bf16.gmra.mrb[8].mxu0 %v5766_v47  ;;  %1091 = vmatprep.subr.bf16.mxu1 %v4457_v50 }
  0x36   :  { %910 = vmatmul.mubr.bf16.gmra.mrb[8].mxu1 %v5766_v47  ;;  %806 = vmatprep.mubr.bf16.mxu0 %v5521_v8 }
  0x37   :  { %919 = vmatprep.mubr.bf16.mxu1 %v5521_v8  ;;  %979 = vmatpush1.bf16.msra.mxu0 %v4454_v53 }
  0x38   :  { %980 = vmatprep.subr.bf16.mxu0 %v4463_v56  ;;  %1092 = vmatpush1.bf16.msra.mxu1 %v4456_v57 }
  0x39   :  { %1093 = vmatprep.subr.bf16.mxu1 %v4465_v60 }
  0x3b   :  { %981 = vmatpush1.bf16.msra.mxu0 %v4462_v63 }
  0x3c   :  { %982 = vmatprep.subr.bf16.mxu0 %v4471_v0  ;;  %1094 = vmatpush1.bf16.msra.mxu1 %v4464_v1 }
  0x3d   :  { %807 = vmatmul.mubr.bf16.gmra.mrb[12].mxu0 %v5802_v2  ;;  %1095 = vmatprep.subr.bf16.mxu1 %v4473_v5 }
  0x3e   :  { %920 = vmatmul.mubr.bf16.gmra.mrb[12].mxu1 %v5802_v2  ;;  %816 = vmatprep.mubr.bf16.mxu0 %v5521_v8 }
  0x3f   :  { %929 = vmatprep.mubr.bf16.mxu1 %v5521_v8  ;;  %983 = vmatpush1.bf16.msra.mxu0 %v4470_v9 }
  0x40   :  { %984 = vmatprep.subr.bf16.mxu0 %v4479_v13  ;;  %1096 = vmatpush1.bf16.msra.mxu1 %v4472_v14 }
  0x41   :  { %1097 = vmatprep.subr.bf16.mxu1 %v4481_v15 }
  0x43   :  { %985 = vmatpush1.bf16.msra.mxu0 %v4478_v20 }
  0x44   :  { %1098 = vmatpush1.bf16.msra.mxu1 %v4480_v21  ;;  %2636 = vmatprep.subr.bf16.mxu0 %v4515_v22 }
  0x45   :  { %817 = vmatmul.mubr.bf16.gmra.mrb[16].mxu0 %v5838_v23  ;;  %2862 = vmatprep.subr.bf16.mxu1 %v4517_v24 }
  0x46   :  { %930 = vmatmul.mubr.bf16.gmra.mrb[16].mxu1 %v5838_v23  ;;  %826 = vmatprep.mubr.bf16.mxu0 %v5521_v8 }
  0x47   :  { %939 = vmatprep.mubr.bf16.mxu1 %v5521_v8 }
  0x4d   :  { %827 = vmatmul.mubr.bf16.gmra.mrb[20].mxu0 %v5850_v27 }
  0x4e   :  { %940 = vmatmul.mubr.bf16.gmra.mrb[20].mxu1 %v5850_v27  ;;  %836 = vmatprep.mubr.bf16.mxu0 %v5521_v8 }
  0x4f   :  { %949 = vmatprep.mubr.bf16.mxu1 %v5521_v8 }
  0x50   :  { %16 = vsyncpa [#allocation5], 0  ;;  %v5862_v31 = vpack.c.bf16 %v77_v30, %v76_v29  ;;  %v78_v32 = vld [vmem:[%s7905_s2 + $0x70] sm:$0xff]  ;;  %v79_v33 = vld [vmem:[%s7905_s2 + $0x78] sm:$0xff]  ;;  %v4514_v39 = vcombine.low %v96_v16, %v100_v17  ;;  %v4516_v40 = vcombine.low %v97_v18, %v101_v19  ;;  %s5522_s17 = smov [#allocation4]  }
  0x51   :  { %v5874_v34 = vpack.c.bf16 %v79_v33, %v78_v32  ;;  %v104_v35 = vld [vmem:[%s7907_s4 + $0x40] sm:$0xff]  ;;  %v105_v37 = vld [vmem:[%s7907_s4 + $0x48] sm:$0xff]  ;;  %s4399_s18 = sshll.u32 %s5522_s17, 4  ;;  %s4400_s18 = int_to_ptr.vmem [resolvable:$true] %s4399_s18 }
  0x52   :  { %v108_v36 = vld [vmem:[%s7907_s4 + $0x60] sm:$0xff]  ;;  %v109_v38 = vld [vmem:[%s7907_s4 + $0x68] sm:$0xff]  ;;  %p5478_p1 = scmp.lt.s32.totalorder %s4400_s18, %s4400_s18 }
  0x53   :  { %v4523_v41 = vcombine.high %v104_v35, %v108_v36  ;;  %v4525_v42 = vcombine.high %v105_v37, %v109_v38  ;;  %v112_v43 = vld [vmem:[%s7907_s4 + $0x80] sm:$0xff]  ;;  %v113_v45 = vld [vmem:[%s7907_s4 + $0x88] sm:$0xff]  ;;  %v4522_v48 = vcombine.low %v104_v35, %v108_v36  ;;  %v4524_v49 = vcombine.low %v105_v37, %v109_v38 }
  0x54   :  { %v116_v44 = vld [vmem:[%s7907_s4 + $0xa0] sm:$0xff]  ;;  %v117_v46 = vld [vmem:[%s7907_s4 + $0xa8] sm:$0xff] }
  0x55   :  { %837 = vmatmul.mubr.bf16.gmra.mrb[24].mxu0 %v5862_v31  ;;  %v4531_v50 = vcombine.high %v112_v43, %v116_v44  ;;  %v4533_v51 = vcombine.high %v113_v45, %v117_v46  ;;  %v120_v52 = vld [vmem:[%s7907_s4 + $0xc0] sm:$0xff]  ;;  %v125_v54 = vld [vmem:[%s7907_s4 + $0xe8] sm:$0xff]  ;;  %v4530_v55 = vcombine.low %v112_v43, %v116_v44  ;;  %v4532_v56 = vcombine.low %v113_v45, %v117_v46 }
  0x56   :  { %950 = vmatmul.mubr.bf16.gmra.mrb[24].mxu1 %v5862_v31  ;;  %846 = vmatprep.mubr.bf16.mxu0 %v5521_v8  ;;  %v124_v53 = vld [vmem:[%s7907_s4 + $0xe0] sm:$0xff]  ;;  %v129_v61 = vld [vmem:[%s7907_s4 + $0x108] sm:$0xff] }
  0x57   :  { %959 = vmatprep.mubr.bf16.mxu1 %v5521_v8  ;;  %v4539_v57 = vcombine.high %v120_v52, %v124_v53  ;;  %v128_v59 = vld [vmem:[%s7907_s4 + $0x100] sm:$0xff]  ;;  %v133_v62 = vld [vmem:[%s7907_s4 + $0x128] sm:$0xff]  ;;  %v4538_v63 = vcombine.low %v120_v52, %v124_v53 }
  0x58   :  { %v132_v60 = vld [vmem:[%s7907_s4 + $0x120] sm:$0xff]  ;;  %v4549_v3 = vcombine.high %v129_v61, %v133_v62  ;;  %v141_v6 = vld [vmem:[%s7907_s4 + $0x168] sm:$0xff]  ;;  %v4548_v9 = vcombine.low %v129_v61, %v133_v62 }
  0x59   :  { %v4547_v1 = vcombine.high %v128_v59, %v132_v60  ;;  %v136_v4 = vld [vmem:[%s7907_s4 + $0x140] sm:$0xff]  ;;  %v4546_v7 = vcombine.low %v128_v59, %v132_v60  ;;  %v145_v15 = vld [vmem:[%s7907_s4 + $0x188] sm:$0xff] }
  0x5a   :  { %v140_v5 = vld [vmem:[%s7907_s4 + $0x160] sm:$0xff]  ;;  %v149_v16 = vld [vmem:[%s7907_s4 + $0x1a8] sm:$0xff] }
  0x5b   :  { %v4555_v11 = vcombine.high %v136_v4, %v140_v5  ;;  %v144_v13 = vld [vmem:[%s7907_s4 + $0x180] sm:$0xff]  ;;  %v4554_v17 = vcombine.low %v136_v4, %v140_v5  ;;  %v4565_v20 = vcombine.high %v145_v15, %v149_v16  ;;  %v157_v24 = vld [vmem:[%s7907_s4 + $0x1e8] sm:$0xff]  ;;  %v4564_v26 = vcombine.low %v145_v15, %v149_v16 }
  0x5c   :  { %v148_v14 = vld [vmem:[%s7907_s4 + $0x1a0] sm:$0xff]  ;;  %v161_v35 = vld [vmem:[%s7907_s4 + $0x208] sm:$0xff] }
  0x5d   :  { %847 = vmatmul.mubr.bf16.gmra.mrb[28].mxu0 %v5874_v34  ;;  %v4563_v19 = vcombine.high %v144_v13, %v148_v14  ;;  %v152_v21 = vld [vmem:[%s7907_s4 + $0x1c0] sm:$0xff]  ;;  %v4562_v25 = vcombine.low %v144_v13, %v148_v14  ;;  %v165_v36 = vld [vmem:[%s7907_s4 + $0x228] sm:$0xff] }
  0x5e   :  { %960 = vmatmul.mubr.bf16.gmra.mrb[28].mxu1 %v5874_v34  ;;  %1002 = vmatprep.mubr.bf16.mxu0 %v5521_v8  ;;  %v156_v22 = vld [vmem:[%s7907_s4 + $0x1e0] sm:$0xff]  ;;  %v173_v43 = vld [vmem:[%s7907_s4 + $0x268] sm:$0xff]  ;;  %v4580_v45 = vcombine.low %v161_v35, %v165_v36 }
  0x5f   :  { %1115 = vmatprep.mubr.bf16.mxu1 %v5521_v8  ;;  %v4571_v29 = vcombine.high %v152_v21, %v156_v22  ;;  %v160_v32 = vld [vmem:[%s7907_s4 + $0x200] sm:$0xff]  ;;  %v4570_v37 = vcombine.low %v152_v21, %v156_v22  ;;  %v181_v52 = vld [vmem:[%s7907_s4 + $0x2a8] sm:$0xff] }
  0x60   :  { %v164_v33 = vld [vmem:[%s7907_s4 + $0x220] sm:$0xff] }
  0x61   :  { %v4578_v44 = vcombine.low %v160_v32, %v164_v33  ;;  %v208_v16 = vld [vmem:[%s7907_s4 + $0x380] sm:$0xff] }
  0x65   :  { %1003 = vmatmul.mubr.bf16.vlgmr.msra.gmra.mrb[32].mxu0 %v5694_v10 }
  0x66   :  { %1116 = vmatmul.mubr.bf16.vlgmr.msra.gmra.mrb[32].mxu1 %v5694_v10  ;;  %2637 = vmatpush1.bf16.msra.mxu0 %v4514_v39  ;;  %v121_v10 = vld [vmem:[%s7907_s4 + $0xc8] sm:$0xff]  ;;  %v4579_v39 = vcombine.high %v160_v32, %v164_v33 }
  0x67   :  { %2863 = vmatpush1.bf16.msra.mxu1 %v4516_v40  ;;  %2638 = vmatprep.subr.bf16.mxu0 %v4523_v41  ;;  %v4541_v58 = vcombine.high %v121_v10, %v125_v54  ;;  %v4540_v0 = vcombine.low %v121_v10, %v125_v54  ;;  %v4581_v40 = vcombine.high %v161_v35, %v165_v36  ;;  %v168_v41 = vld [vmem:[%s7907_s4 + $0x240] sm:$0xff] }
  0x68   :  { %2864 = vmatprep.subr.bf16.mxu1 %v4525_v42  ;;  %1012 = vmatprep.mubr.bf16.mxu0 %v5521_v8  ;;  %v172_v42 = vld [vmem:[%s7907_s4 + $0x260] sm:$0xff] }
  0x69   :  { %1125 = vmatprep.mubr.bf16.mxu1 %v5521_v8  ;;  %v4587_v46 = vcombine.high %v168_v41, %v172_v42  ;;  %v4586_v53 = vcombine.low %v168_v41, %v172_v42  ;;  %v6091_v35 = vld [vmem:[%s7904_s1 + $0x4] ss:$16 sps:$4 sm:$0xff]  }
  0x6a   :  { %2639 = vmatpush1.bf16.msra.mxu0 %v4522_v48  ;;  %v224_v36 = vld [vmem:[%s7907_s4 + $0x400] sm:$0xff] }
  0x6b   :  { %2865 = vmatpush1.bf16.msra.mxu1 %v4524_v49  ;;  %2640 = vmatprep.subr.bf16.mxu0 %v4531_v50  ;;  %v176_v49 = vld [vmem:[%s7907_s4 + $0x280] sm:$0xff] }
  0x6c   :  { %2866 = vmatprep.subr.bf16.mxu1 %v4533_v51  ;;  %v180_v50 = vld [vmem:[%s7907_s4 + $0x2a0] sm:$0xff]  ;;  %v177_v51 = vld [vmem:[%s7907_s4 + $0x288] sm:$0xff] }
  0x6d   :  { %1013 = vmatmul.mubr.bf16.gmra.mrb[36].mxu0 %v5730_v28  ;;  %v4595_v54 = vcombine.high %v176_v49, %v180_v50  ;;  %v4594_v59 = vcombine.low %v176_v49, %v180_v50  ;;  %v4596_v60 = vcombine.low %v177_v51, %v181_v52 }
  0x6e   :  { %1126 = vmatmul.mubr.bf16.gmra.mrb[36].mxu1 %v5730_v28  ;;  %2641 = vmatpush1.bf16.msra.mxu0 %v4530_v55  ;;  %v137_v28 = vld [vmem:[%s7907_s4 + $0x148] sm:$0xff]  ;;  %v4597_v55 = vcombine.high %v177_v51, %v181_v52  ;;  %v6129_v52 = vld [vmem:[%s7904_s1 + $0x24] ss:$16 sps:$4 sm:$0xff]  }
  0x6f   :  { %2867 = vmatpush1.bf16.msra.mxu1 %v4532_v56  ;;  %2642 = vmatprep.subr.bf16.mxu0 %v4539_v57  ;;  %v4557_v12 = vcombine.high %v137_v28, %v141_v6  ;;  %v4556_v18 = vcombine.low %v137_v28, %v141_v6  ;;  %v184_v56 = vld [vmem:[%s7907_s4 + $0x2c0] sm:$0xff] }
  0x70   :  { %2868 = vmatprep.subr.bf16.mxu1 %v4541_v58  ;;  %1022 = vmatprep.mubr.bf16.mxu0 %v5521_v8  ;;  %v188_v57 = vld [vmem:[%s7907_s4 + $0x2e0] sm:$0xff]  ;;  %v189_v58 = vld [vmem:[%s7907_s4 + $0x2e8] sm:$0xff] }
  0x71   :  { %1135 = vmatprep.mubr.bf16.mxu1 %v5521_v8  ;;  %v4603_v61 = vcombine.high %v184_v56, %v188_v57  ;;  %v4602_v4 = vcombine.low %v184_v56, %v188_v57 }
  0x72   :  { %2643 = vmatpush1.bf16.msra.mxu0 %v4538_v63  ;;  %v192_v63 = vld [vmem:[%s7907_s4 + $0x300] sm:$0xff] }
  0x73   :  { %2869 = vmatpush1.bf16.msra.mxu1 %v4540_v0  ;;  %2644 = vmatprep.subr.bf16.mxu0 %v4547_v1  ;;  %v196_v0 = vld [vmem:[%s7907_s4 + $0x320] sm:$0xff]  ;;  %v193_v1 = vld [vmem:[%s7907_s4 + $0x308] sm:$0xff] }
  0x74   :  { %2870 = vmatprep.subr.bf16.mxu1 %v4549_v3  ;;  %v197_v3 = vld [vmem:[%s7907_s4 + $0x328] sm:$0xff]  ;;  %v4611_v28 = vcombine.high %v192_v63, %v196_v0 }
  0x75   :  { %1023 = vmatmul.mubr.bf16.gmra.mrb[40].mxu0 %v5766_v47  ;;  %v4613_v6 = vcombine.high %v193_v1, %v197_v3  ;;  %v4612_v13 = vcombine.low %v193_v1, %v197_v3 }
  0x76   :  { %1136 = vmatmul.mubr.bf16.gmra.mrb[40].mxu1 %v5766_v47  ;;  %2645 = vmatpush1.bf16.msra.mxu0 %v4546_v7  ;;  %v153_v47 = vld [vmem:[%s7907_s4 + $0x1c8] sm:$0xff]  ;;  %v200_v7 = vld [vmem:[%s7907_s4 + $0x340] sm:$0xff] }
  0x77   :  { %2871 = vmatpush1.bf16.msra.mxu1 %v4548_v9  ;;  %2646 = vmatprep.subr.bf16.mxu0 %v4555_v11  ;;  %v4573_v30 = vcombine.high %v153_v47, %v157_v24  ;;  %v4572_v38 = vcombine.low %v153_v47, %v157_v24  ;;  %v204_v9 = vld [vmem:[%s7907_s4 + $0x360] sm:$0xff]  ;;  %v205_v11 = vld [vmem:[%s7907_s4 + $0x368] sm:$0xff] }
  0x78   :  { %2872 = vmatprep.subr.bf16.mxu1 %v4557_v12  ;;  %1032 = vmatprep.mubr.bf16.mxu0 %v5521_v8  ;;  %v4610_v12 = vcombine.low %v192_v63, %v196_v0  ;;  %v4619_v14 = vcombine.high %v200_v7, %v204_v9  ;;  %v216_v24 = vld [vmem:[%s7907_s4 + $0x3c0] sm:$0xff]  ;;  %v253_v63 = vld [vmem:[%s7907_s4 + $0x4e8] sm:$0xff] }
  0x79   :  { %1145 = vmatprep.mubr.bf16.mxu1 %v5521_v8 }
  0x7a   :  { %2647 = vmatpush1.bf16.msra.mxu0 %v4554_v17  ;;  %v212_v17 = vld [vmem:[%s7907_s4 + $0x3a0] sm:$0xff] }
  0x7b   :  { %2873 = vmatpush1.bf16.msra.mxu1 %v4556_v18  ;;  %2648 = vmatprep.subr.bf16.mxu0 %v4563_v19  ;;  %v209_v18 = vld [vmem:[%s7907_s4 + $0x388] sm:$0xff]  ;;  %v4627_v22 = vcombine.high %v208_v16, %v212_v17 }
  0x7c   :  { %2874 = vmatprep.subr.bf16.mxu1 %v4565_v20  ;;  %v213_v19 = vld [vmem:[%s7907_s4 + $0x3a8] sm:$0xff]  ;;  %v4618_v20 = vcombine.low %v200_v7, %v204_v9 }
  0x7d   :  { %1033 = vmatmul.mubr.bf16.gmra.mrb[44].mxu0 %v5802_v2  ;;  %v4629_v47 = vcombine.high %v209_v18, %v213_v19  ;;  %v257_v7 = vld [vmem:[%s7907_s4 + $0x508] sm:$0xff] }
  0x7e   :  { %1146 = vmatmul.mubr.bf16.gmra.mrb[44].mxu1 %v5802_v2  ;;  %2649 = vmatpush1.bf16.msra.mxu0 %v4562_v25  ;;  %v169_v2 = vld [vmem:[%s7907_s4 + $0x248] sm:$0xff]  ;;  %v220_v25 = vld [vmem:[%s7907_s4 + $0x3e0] sm:$0xff] }
  0x7f   :  { %2875 = vmatpush1.bf16.msra.mxu1 %v4564_v26  ;;  %2650 = vmatprep.subr.bf16.mxu0 %v4571_v29  ;;  %v4589_v48 = vcombine.high %v169_v2, %v173_v43  ;;  %v4588_v10 = vcombine.low %v169_v2, %v173_v43  ;;  %v221_v26 = vld [vmem:[%s7907_s4 + $0x3e8] sm:$0xff]  ;;  %v4626_v29 = vcombine.low %v208_v16, %v212_v17  ;;  %v232_v43 = vld [vmem:[%s7907_s4 + $0x440] sm:$0xff] }
  0x80   :  { %2876 = vmatprep.subr.bf16.mxu1 %v4573_v30  ;;  %1042 = vmatprep.mubr.bf16.mxu0 %v5521_v8  ;;  %v4628_v30 = vcombine.low %v209_v18, %v213_v19  ;;  %v4635_v32 = vcombine.high %v216_v24, %v220_v25  ;;  %v261_v9 = vld [vmem:[%s7907_s4 + $0x528] sm:$0xff]  ;;  %v6194_v16 = vld [vmem:[%s7904_s1 + $0x40] ss:$16 sps:$4 sm:$0xff]  }
  0x81   :  { %1155 = vmatprep.mubr.bf16.mxu1 %v5521_v8  ;;  %v265_v17 = vld [vmem:[%s7907_s4 + $0x548] sm:$0xff] }
  0x82   :  { %2651 = vmatpush1.bf16.msra.mxu0 %v4570_v37  ;;  %v228_v37 = vld [vmem:[%s7907_s4 + $0x420] sm:$0xff]  ;;  %v269_v18 = vld [vmem:[%s7907_s4 + $0x568] sm:$0xff] }
  0x83   :  { %2877 = vmatpush1.bf16.msra.mxu1 %v4572_v38  ;;  %2652 = vmatprep.subr.bf16.mxu0 %v4579_v39  ;;  %v225_v38 = vld [vmem:[%s7907_s4 + $0x408] sm:$0xff]  ;;  %v4643_v42 = vcombine.high %v224_v36, %v228_v37 }
  0x84   :  { %2878 = vmatprep.subr.bf16.mxu1 %v4581_v40  ;;  %v229_v39 = vld [vmem:[%s7907_s4 + $0x428] sm:$0xff]  ;;  %v4634_v40 = vcombine.low %v216_v24, %v220_v25  ;;  %v272_v24 = vld [vmem:[%s7907_s4 + $0x580] sm:$0xff] }
  0x85   :  { %1043 = vmatmul.mubr.bf16.gmra.mrb[48].mxu0 %v5838_v23  ;;  %v4645_v2 = vcombine.high %v225_v38, %v229_v39  ;;  %v4644_v49 = vcombine.low %v225_v38, %v229_v39  ;;  %v276_v25 = vld [vmem:[%s7907_s4 + $0x5a0] sm:$0xff]  ;;  %v281_v39 = vld [vmem:[%s7907_s4 + $0x5c8] sm:$0xff] }
  0x86   :  { %1156 = vmatmul.mubr.bf16.gmra.mrb[48].mxu1 %v5838_v23  ;;  %2653 = vmatpush1.bf16.msra.mxu0 %v4578_v44  ;;  %v185_v23 = vld [vmem:[%s7907_s4 + $0x2c8] sm:$0xff]  ;;  %v236_v44 = vld [vmem:[%s7907_s4 + $0x460] sm:$0xff] }
  0x87   :  { %2879 = vmatpush1.bf16.msra.mxu1 %v4580_v45  ;;  %2654 = vmatprep.subr.bf16.mxu0 %v4587_v46  ;;  %v4605_v62 = vcombine.high %v185_v23, %v189_v58  ;;  %v4604_v5 = vcombine.low %v185_v23, %v189_v58  ;;  %v233_v45 = vld [vmem:[%s7907_s4 + $0x448] sm:$0xff]  ;;  %v4651_v50 = vcombine.high %v232_v43, %v236_v44  ;;  %v6232_v38 = vld [vmem:[%s7904_s1 + $0x60] ss:$16 sps:$4 sm:$0xff]  }
  0x88   :  { %2880 = vmatprep.subr.bf16.mxu1 %v4589_v48  ;;  %1052 = vmatprep.mubr.bf16.mxu0 %v5521_v8  ;;  %v237_v46 = vld [vmem:[%s7907_s4 + $0x468] sm:$0xff]  ;;  %v4642_v48 = vcombine.low %v224_v36, %v228_v37  ;;  %v4650_v56 = vcombine.low %v232_v43, %v236_v44  ;;  %v280_v36 = vld [vmem:[%s7907_s4 + $0x5c0] sm:$0xff] }
  0x89   :  { %1165 = vmatprep.mubr.bf16.mxu1 %v5521_v8  ;;  %v4653_v51 = vcombine.high %v233_v45, %v237_v46  ;;  %v4652_v57 = vcombine.low %v233_v45, %v237_v46  ;;  %v284_v37 = vld [vmem:[%s7907_s4 + $0x5e0] sm:$0xff] }
  0x8a   :  { %2655 = vmatpush1.bf16.msra.mxu0 %v4586_v53  ;;  %v240_v53 = vld [vmem:[%s7907_s4 + $0x480] sm:$0xff] }
  0x8b   :  { %2881 = vmatpush1.bf16.msra.mxu1 %v4588_v10  ;;  %2656 = vmatprep.subr.bf16.mxu0 %v4595_v54  ;;  %v244_v10 = vld [vmem:[%s7907_s4 + $0x4a0] sm:$0xff]  ;;  %v241_v54 = vld [vmem:[%s7907_s4 + $0x488] sm:$0xff] }
  0x8c   :  { %2882 = vmatprep.subr.bf16.mxu1 %v4597_v55  ;;  %v245_v55 = vld [vmem:[%s7907_s4 + $0x4a8] sm:$0xff]  ;;  %v4659_v23 = vcombine.high %v240_v53, %v244_v10  ;;  %v4658_v0 = vcombine.low %v240_v53, %v244_v10  ;;  %v6243_v44 = vld [vmem:[%s7904_s1 + $0x84] ss:$16 sps:$4 sm:$0xff]  }
  0x8d   :  { %1053 = vmatmul.mubr.bf16.gmra.mrb[52].mxu0 %v5850_v27  ;;  %v4661_v58 = vcombine.high %v241_v54, %v245_v55  ;;  %v4660_v1 = vcombine.low %v241_v54, %v245_v55  ;;  %v288_v45 = vld [vmem:[%s7907_s4 + $0x600] sm:$0xff] }
  0x8e   :  { %1166 = vmatmul.mubr.bf16.gmra.mrb[52].mxu1 %v5850_v27  ;;  %2657 = vmatpush1.bf16.msra.mxu0 %v4594_v59  ;;  %v201_v27 = vld [vmem:[%s7907_s4 + $0x348] sm:$0xff]  ;;  %v248_v59 = vld [vmem:[%s7907_s4 + $0x4c0] sm:$0xff] }
  0x8f   :  { %2883 = vmatpush1.bf16.msra.mxu1 %v4596_v60  ;;  %2658 = vmatprep.subr.bf16.mxu0 %v4603_v61  ;;  %v4621_v15 = vcombine.high %v201_v27, %v205_v11  ;;  %v4620_v21 = vcombine.low %v201_v27, %v205_v11  ;;  %v252_v60 = vld [vmem:[%s7907_s4 + $0x4e0] sm:$0xff] }
  0x90   :  { %2884 = vmatprep.subr.bf16.mxu1 %v4605_v62  ;;  %1062 = vmatprep.mubr.bf16.mxu0 %v5521_v8  ;;  %v6156_v61 = vld [vmem:[%s7904_s1 + $0x20] ss:$16 sps:$4 sm:$0xff]   ;;  %v249_v62 = vld [vmem:[%s7907_s4 + $0x4c8] sm:$0xff]  ;;  %v4667_v3 = vcombine.high %v248_v59, %v252_v60  ;;  %v4666_v27 = vcombine.low %v248_v59, %v252_v60 }
  0x91   :  { %1175 = vmatprep.mubr.bf16.mxu1 %v5521_v8  ;;  %v4668_v11 = vcombine.low %v249_v62, %v253_v63  ;;  %v292_v46 = vld [vmem:[%s7907_s4 + $0x620] sm:$0xff] }
  0x92   :  { %2659 = vmatpush1.bf16.msra.mxu0 %v4602_v4  ;;  %v4669_v4 = vcombine.high %v249_v62, %v253_v63  ;;  %v4707_v53 = vcombine.high %v288_v45, %v292_v46  ;;  %v296_v54 = vld [vmem:[%s7907_s4 + $0x640] sm:$0xff] }
  0x93   :  { %2885 = vmatpush1.bf16.msra.mxu1 %v4604_v5  ;;  %2660 = vmatprep.subr.bf16.mxu0 %v4611_v28  ;;  %v6167_v5 = vld [vmem:[%s7904_s1 + $0x44] ss:$16 sps:$4 sm:$0xff]  }
  0x94   :  { %2886 = vmatprep.subr.bf16.mxu1 %v4613_v6  ;;  %v256_v28 = vld [vmem:[%s7907_s4 + $0x500] sm:$0xff] }
  0x95   :  { %1063 = vmatmul.mubr.bf16.gmra.mrb[56].mxu0 %v5862_v31  ;;  %v260_v6 = vld [vmem:[%s7907_s4 + $0x520] sm:$0xff] }
  0x96   :  { %1176 = vmatmul.mubr.bf16.gmra.mrb[56].mxu1 %v5862_v31  ;;  %2661 = vmatpush1.bf16.msra.mxu0 %v4610_v12  ;;  %v217_v31 = vld [vmem:[%s7907_s4 + $0x3c8] sm:$0xff]  ;;  %v4675_v12 = vcombine.high %v256_v28, %v260_v6  ;;  %v4674_v19 = vcombine.low %v256_v28, %v260_v6  ;;  %v300_v55 = vld [vmem:[%s7907_s4 + $0x660] sm:$0xff] }
  0x97   :  { %2887 = vmatpush1.bf16.msra.mxu1 %v4612_v13  ;;  %2662 = vmatprep.subr.bf16.mxu0 %v4619_v14  ;;  %v4637_v33 = vcombine.high %v217_v31, %v221_v26  ;;  %v4636_v41 = vcombine.low %v217_v31, %v221_v26  ;;  %v4677_v13 = vcombine.high %v257_v7, %v261_v9  ;;  %v264_v14 = vld [vmem:[%s7907_s4 + $0x540] sm:$0xff]  ;;  %v273_v31 = vld [vmem:[%s7907_s4 + $0x588] sm:$0xff] }
  0x98   :  { %2888 = vmatprep.subr.bf16.mxu1 %v4621_v15  ;;  %1072 = vmatprep.mubr.bf16.mxu0 %v5521_v8  ;;  %v268_v15 = vld [vmem:[%s7907_s4 + $0x560] sm:$0xff]  ;;  %v277_v26 = vld [vmem:[%s7907_s4 + $0x5a8] sm:$0xff]  ;;  %v4715_v60 = vcombine.high %v296_v54, %v300_v55  ;;  %v4714_v28 = vcombine.low %v296_v54, %v300_v55 }
  0x99   :  { %1185 = vmatprep.mubr.bf16.mxu1 %v5521_v8  ;;  %v6281_v63 = vld [vmem:[%s7904_s1 + $0xa4] ss:$16 sps:$4 sm:$0xff]  }
  0x9a   :  { %2663 = vmatpush1.bf16.msra.mxu0 %v4618_v20  ;;  %v4676_v20 = vcombine.low %v257_v7, %v261_v9  ;;  %v344_v54 = vld [vmem:[%s7907_s4 + $0x7c0] sm:$0xff] }
  0x9b   :  { %2889 = vmatpush1.bf16.msra.mxu1 %v4620_v21  ;;  %2664 = vmatprep.subr.bf16.mxu0 %v4627_v22  ;;  %v4683_v21 = vcombine.high %v264_v14, %v268_v15  ;;  %v4685_v22 = vcombine.high %v265_v17, %v269_v18  ;;  %v348_v55 = vld [vmem:[%s7907_s4 + $0x7e0] sm:$0xff] }
  0x9c   :  { %2890 = vmatprep.subr.bf16.mxu1 %v4629_v47  ;;  %v6205_v47 = vld [vmem:[%s7904_s1 + $0x64] ss:$16 sps:$4 sm:$0xff]  }
  0x9d   :  { %1073 = vmatmul.mubr.bf16.gmra.mrb[60].mxu0 %v5874_v34 }
  0x9e   :  { %1186 = vmatmul.mubr.bf16.gmra.mrb[60].mxu1 %v5874_v34  ;;  %2665 = vmatpush1.bf16.msra.mxu0 %v4626_v29  ;;  %v6117_v34 = vld [vmem:[%s7904_s1] ss:$16 sps:$4 sm:$0xff]   ;;  %v4682_v29 = vcombine.low %v264_v14, %v268_v15  ;;  %v317_v14 = vld [vmem:[%s7907_s4 + $0x6e8] sm:$0xff] }
  0x9f   :  { %2891 = vmatpush1.bf16.msra.mxu1 %v4628_v30  ;;  %2666 = vmatprep.subr.bf16.mxu0 %v4635_v32  ;;  %v4684_v30 = vcombine.low %v265_v17, %v269_v18  ;;  %v4691_v32 = vcombine.high %v272_v24, %v276_v25 }
  0xa0   :  { %2892 = vmatprep.subr.bf16.mxu1 %v4637_v33  ;;  %2668 = vmatprep.mubr.bf16.mxu0 %v6091_v35  ;;  %v4693_v33 = vcombine.high %v273_v31, %v277_v26 }
  0xa1   :  { %2894 = vmatprep.mubr.bf16.mxu1 %v6091_v35 }
  0xa2   :  { %2667 = vmatpush1.bf16.msra.mxu0 %v4634_v40  ;;  %v285_v40 = vld [vmem:[%s7907_s4 + $0x5e8] sm:$0xff] }
  0xa3   :  { %2893 = vmatpush1.bf16.msra.mxu1 %v4636_v41  ;;  %2749 = vmatprep.subr.bf16.mxu0 %v4643_v42  ;;  %v4690_v41 = vcombine.low %v272_v24, %v276_v25  ;;  %v4692_v42 = vcombine.low %v273_v31, %v277_v26  ;;  %v4701_v43 = vcombine.high %v281_v39, %v285_v40  ;;  %v321_v24 = vld [vmem:[%s7907_s4 + $0x708] sm:$0xff] }
  0xa4   :  { %2975 = vmatprep.subr.bf16.mxu1 %v4645_v2  ;;  %v4699_v2 = vcombine.high %v280_v36, %v284_v37  ;;  %v325_v25 = vld [vmem:[%s7907_s4 + $0x728] sm:$0xff] }
  0xa5   :  { %2669 = vmatmul.mubr.bf16.vlgmr.msra.gmra.mrb[0].mxu0 %v6117_v34 }
  0xa6   :  { %2895 = vmatmul.mubr.bf16.vlgmr.msra.gmra.mrb[0].mxu1 %v6117_v34  ;;  %2750 = vmatpush1.bf16.msra.mxu0 %v4642_v48  ;;  %v289_v48 = vld [vmem:[%s7907_s4 + $0x608] sm:$0xff] }
  0xa7   :  { %2976 = vmatpush1.bf16.msra.mxu1 %v4644_v49  ;;  %2751 = vmatprep.subr.bf16.mxu0 %v4651_v50  ;;  %v293_v49 = vld [vmem:[%s7907_s4 + $0x628] sm:$0xff]  ;;  %v4698_v50 = vcombine.low %v280_v36, %v284_v37  ;;  %v5180_v36 = vld [vmem:[%s7904_s1 + $0xc0] ss:$16 sps:$4 sm:$0xff]  }
  0xa8   :  { %2977 = vmatprep.subr.bf16.mxu1 %v4653_v51  ;;  %2678 = vmatprep.mubr.bf16.mxu0 %v6129_v52  ;;  %v4700_v51 = vcombine.low %v281_v39, %v285_v40  ;;  %v4709_v10 = vcombine.high %v289_v48, %v293_v49  ;;  %v4708_v59 = vcombine.low %v289_v48, %v293_v49  ;;  %v329_v37 = vld [vmem:[%s7907_s4 + $0x748] sm:$0xff] }
  0xa9   :  { %2904 = vmatprep.mubr.bf16.mxu1 %v6129_v52  ;;  %v333_v39 = vld [vmem:[%s7907_s4 + $0x768] sm:$0xff] }
  0xaa   :  { %2752 = vmatpush1.bf16.msra.mxu0 %v4650_v56  ;;  %v6270_v56 = vld [vmem:[%s7904_s1 + $0x80] ss:$16 sps:$4 sm:$0xff]   ;;  %v337_v48 = vld [vmem:[%s7907_s4 + $0x788] sm:$0xff] }
  0xab   :  { %2978 = vmatpush1.bf16.msra.mxu1 %v4652_v57  ;;  %2753 = vmatprep.subr.bf16.mxu0 %v4659_v23  ;;  %v297_v57 = vld [vmem:[%s7907_s4 + $0x648] sm:$0xff] }
  0xac   :  { %2979 = vmatprep.subr.bf16.mxu1 %v4661_v58  ;;  %v301_v23 = vld [vmem:[%s7907_s4 + $0x668] sm:$0xff]  ;;  %v4706_v58 = vcombine.low %v288_v45, %v292_v46  ;;  %v336_v45 = vld [vmem:[%s7907_s4 + $0x780] sm:$0xff] }
  0xad   :  { %2679 = vmatmul.mubr.bf16.gmra.mrb[4].mxu0 %v6156_v61  ;;  %v4717_v62 = vcombine.high %v297_v57, %v301_v23  ;;  %v4716_v6 = vcombine.low %v297_v57, %v301_v23  ;;  %v340_v46 = vld [vmem:[%s7907_s4 + $0x7a0] sm:$0xff]  ;;  %v341_v49 = vld [vmem:[%s7907_s4 + $0x7a8] sm:$0xff] }
  0xae   :  { %2905 = vmatmul.mubr.bf16.gmra.mrb[4].mxu1 %v6156_v61  ;;  %2754 = vmatpush1.bf16.msra.mxu0 %v4658_v0  ;;  %v304_v0 = vld [vmem:[%s7907_s4 + $0x680] sm:$0xff]  ;;  %v345_v23 = vld [vmem:[%s7907_s4 + $0x7c8] sm:$0xff] }
  0xaf   :  { %2980 = vmatpush1.bf16.msra.mxu1 %v4660_v1  ;;  %2755 = vmatprep.subr.bf16.mxu0 %v4667_v3  ;;  %v308_v1 = vld [vmem:[%s7907_s4 + $0x6a0] sm:$0xff]  ;;  %v305_v3 = vld [vmem:[%s7907_s4 + $0x688] sm:$0xff] }
  0xb0   :  { %2981 = vmatprep.subr.bf16.mxu1 %v4669_v4  ;;  %2688 = vmatprep.mubr.bf16.mxu0 %v6167_v5  ;;  %v309_v4 = vld [vmem:[%s7907_s4 + $0x6a8] sm:$0xff]  ;;  %v4723_v7 = vcombine.high %v304_v0, %v308_v1  ;;  %v4722_v15 = vcombine.low %v304_v0, %v308_v1  ;;  %v5183_v57 = vld [vmem:[%s7904_s1 + $0xe0] ss:$16 sps:$4 sm:$0xff]  }
  0xb1   :  { %2914 = vmatprep.mubr.bf16.mxu1 %v6167_v5  ;;  %v4725_v9 = vcombine.high %v305_v3, %v309_v4  ;;  %v4724_v17 = vcombine.low %v305_v3, %v309_v4  ;;  %v5186_v1 = vld [vmem:[%s7904_s1 + $0xc] ss:$16 sps:$4 sm:$0xff]   ;;  %v98_v3 = vld [vmem:[%s7907_s4 + $0x10] sm:$0xff] }
  0xb2   :  { %2756 = vmatpush1.bf16.msra.mxu0 %v4666_v27  ;;  %v312_v27 = vld [vmem:[%s7907_s4 + $0x6c0] sm:$0xff]  ;;  %v102_v4 = vld [vmem:[%s7907_s4 + $0x30] sm:$0xff] }
  0xb3   :  { %2982 = vmatpush1.bf16.msra.mxu1 %v4668_v11  ;;  %2757 = vmatprep.subr.bf16.mxu0 %v4675_v12  ;;  %v316_v11 = vld [vmem:[%s7907_s4 + $0x6e0] sm:$0xff] }
  0xb4   :  { %2983 = vmatprep.subr.bf16.mxu1 %v4677_v13  ;;  %v5177_v12 = vld [vmem:[%s7904_s1 + $0xa0] ss:$16 sps:$4 sm:$0xff]   ;;  %v313_v13 = vld [vmem:[%s7907_s4 + $0x6c8] sm:$0xff]  ;;  %v4731_v18 = vcombine.high %v312_v27, %v316_v11  ;;  %v4730_v31 = vcombine.low %v312_v27, %v316_v11  ;;  %v4519_v27 = vcombine.high %v98_v3, %v102_v4 }
  0xb5   :  { %2689 = vmatmul.mubr.bf16.gmra.mrb[8].mxu0 %v6194_v16  ;;  %v4732_v26 = vcombine.low %v313_v13, %v317_v14 }
  0xb6   :  { %2915 = vmatmul.mubr.bf16.gmra.mrb[8].mxu1 %v6194_v16  ;;  %2758 = vmatpush1.bf16.msra.mxu0 %v4674_v19  ;;  %v4733_v19 = vcombine.high %v313_v13, %v317_v14  ;;  %v110_v13 = vld [vmem:[%s7907_s4 + $0x70] sm:$0xff]  ;;  %v5184_v14 = vld [vmem:[%s7904_s1 + $0x8] ss:$16 sps:$4 sm:$0xff]  }
  0xb7   :  { %2984 = vmatpush1.bf16.msra.mxu1 %v4676_v20  ;;  %2759 = vmatprep.subr.bf16.mxu0 %v4683_v21  ;;  %v5178_v20 = vld [vmem:[%s7904_s1 + $0xc4] ss:$16 sps:$4 sm:$0xff]  }
  0xb8   :  { %2985 = vmatprep.subr.bf16.mxu1 %v4685_v22  ;;  %2698 = vmatprep.mubr.bf16.mxu0 %v6205_v47  ;;  %v320_v21 = vld [vmem:[%s7907_s4 + $0x700] sm:$0xff] }
  0xb9   :  { %2924 = vmatprep.mubr.bf16.mxu1 %v6205_v47  ;;  %v324_v22 = vld [vmem:[%s7907_s4 + $0x720] sm:$0xff] }
  0xba   :  { %2760 = vmatpush1.bf16.msra.mxu0 %v4682_v29  ;;  %v4739_v29 = vcombine.high %v320_v21, %v324_v22  ;;  %v4738_v40 = vcombine.low %v320_v21, %v324_v22  ;;  %v5187_v22 = vld [vmem:[%s7904_s1 + $0x2c] ss:$16 sps:$4 sm:$0xff]  }
  0xbb   :  { %2986 = vmatpush1.bf16.msra.mxu1 %v4684_v30  ;;  %2761 = vmatprep.subr.bf16.mxu0 %v4691_v32  ;;  %v4741_v30 = vcombine.high %v321_v24, %v325_v25  ;;  %v328_v32 = vld [vmem:[%s7907_s4 + $0x740] sm:$0xff] }
  0xbc   :  { %2987 = vmatprep.subr.bf16.mxu1 %v4693_v33  ;;  %v332_v33 = vld [vmem:[%s7907_s4 + $0x760] sm:$0xff] }
  0xbd   :  { %2699 = vmatmul.mubr.bf16.gmra.mrb[12].mxu0 %v6232_v38 }
  0xbe   :  { %2925 = vmatmul.mubr.bf16.gmra.mrb[12].mxu1 %v6232_v38  ;;  %2762 = vmatpush1.bf16.msra.mxu0 %v4690_v41  ;;  %v4740_v41 = vcombine.low %v321_v24, %v325_v25  ;;  %v114_v24 = vld [vmem:[%s7907_s4 + $0x90] sm:$0xff] }
  0xbf   :  { %2988 = vmatpush1.bf16.msra.mxu1 %v4692_v42  ;;  %2763 = vmatprep.subr.bf16.mxu0 %v4699_v2  ;;  %v4747_v42 = vcombine.high %v328_v32, %v332_v33  ;;  %v4749_v2 = vcombine.high %v329_v37, %v333_v39  ;;  %v118_v25 = vld [vmem:[%s7907_s4 + $0xb0] sm:$0xff] }
  0xc0   :  { %2989 = vmatprep.subr.bf16.mxu1 %v4701_v43  ;;  %2708 = vmatprep.mubr.bf16.mxu0 %v6243_v44  ;;  %v5181_v43 = vld [vmem:[%s7904_s1 + $0xe4] ss:$16 sps:$4 sm:$0xff]  }
  0xc1   :  { %2934 = vmatprep.mubr.bf16.mxu1 %v6243_v44 }
  0xc2   :  { %2764 = vmatpush1.bf16.msra.mxu0 %v4698_v50  ;;  %v4746_v50 = vcombine.low %v328_v32, %v332_v33  ;;  %v4535_v32 = vcombine.high %v114_v24, %v118_v25 }
  0xc3   :  { %2990 = vmatpush1.bf16.msra.mxu1 %v4700_v51  ;;  %2765 = vmatprep.subr.bf16.mxu0 %v4707_v53  ;;  %v4748_v51 = vcombine.low %v329_v37, %v333_v39  ;;  %v4755_v53 = vcombine.high %v336_v45, %v340_v46  ;;  %v126_v37 = vld [vmem:[%s7907_s4 + $0xf0] sm:$0xff]  ;;  %v6428_v39 = vld [vmem:[%s7904_s1 + $0x28] ss:$16 sps:$4 sm:$0xff]  }
  0xc4   :  { %2991 = vmatprep.subr.bf16.mxu1 %v4709_v10  ;;  %v4757_v10 = vcombine.high %v337_v48, %v341_v49 }
  0xc5   :  { %2709 = vmatmul.mubr.bf16.gmra.mrb[16].mxu0 %v6270_v56 }
  0xc6   :  { %2935 = vmatmul.mubr.bf16.gmra.mrb[16].mxu1 %v6270_v56  ;;  %2766 = vmatpush1.bf16.msra.mxu0 %v4706_v58  ;;  %v349_v58 = vld [vmem:[%s7907_s4 + $0x7e8] sm:$0xff] }
  0xc7   :  { %2992 = vmatpush1.bf16.msra.mxu1 %v4708_v59  ;;  %2767 = vmatprep.subr.bf16.mxu0 %v4715_v60  ;;  %v4754_v59 = vcombine.low %v336_v45, %v340_v46  ;;  %v4756_v60 = vcombine.low %v337_v48, %v341_v49  ;;  %v4765_v0 = vcombine.high %v345_v23, %v349_v58  ;;  %v6439_v46 = vld [vmem:[%s7904_s1 + $0x4c] ss:$16 sps:$4 sm:$0xff]   ;;  %v130_v48 = vld [vmem:[%s7907_s4 + $0x110] sm:$0xff] }
  0xc8   :  { %2993 = vmatprep.subr.bf16.mxu1 %v4717_v62  ;;  %2718 = vmatprep.mubr.bf16.mxu0 %v6281_v63  ;;  %v4763_v62 = vcombine.high %v344_v54, %v348_v55  ;;  %v134_v49 = vld [vmem:[%s7907_s4 + $0x130] sm:$0xff] }
  0xc9   :  { %2944 = vmatprep.mubr.bf16.mxu1 %v6281_v63 }
  0xca   :  { %2768 = vmatpush1.bf16.msra.mxu0 %v4714_v28  ;;  %v99_v28 = vld [vmem:[%s7907_s4 + $0x18] sm:$0xff] }
  0xcb   :  { %2994 = vmatpush1.bf16.msra.mxu1 %v4716_v6  ;;  %2769 = vmatprep.subr.bf16.mxu0 %v4723_v7  ;;  %v103_v6 = vld [vmem:[%s7907_s4 + $0x38] sm:$0xff]  ;;  %v4762_v7 = vcombine.low %v344_v54, %v348_v55  ;;  %v4551_v54 = vcombine.high %v130_v48, %v134_v49 }
  0xcc   :  { %2995 = vmatprep.subr.bf16.mxu1 %v4725_v9  ;;  %v4764_v9 = vcombine.low %v345_v23, %v349_v58  ;;  %v4521_v11 = vcombine.high %v99_v28, %v103_v6  ;;  %v142_v23 = vld [vmem:[%s7907_s4 + $0x170] sm:$0xff]  ;;  %v6466_v58 = vld [vmem:[%s7904_s1 + $0x48] ss:$16 sps:$4 sm:$0xff]  }
  0xcd   :  { %2719 = vmatmul.mubr.bf16.gmra.mrb[20].mxu0 %v5177_v12 }
  0xce   :  { %2945 = vmatmul.mubr.bf16.gmra.mrb[20].mxu1 %v5177_v12  ;;  %2770 = vmatpush1.bf16.msra.mxu0 %v4722_v15  ;;  %v106_v12 = vld [vmem:[%s7907_s4 + $0x50] sm:$0xff]  ;;  %v107_v15 = vld [vmem:[%s7907_s4 + $0x58] sm:$0xff] }
  0xcf   :  { %2996 = vmatpush1.bf16.msra.mxu1 %v4724_v17  ;;  %2771 = vmatprep.subr.bf16.mxu0 %v4731_v18  ;;  %v111_v17 = vld [vmem:[%s7907_s4 + $0x78] sm:$0xff]  ;;  %v4518_v18 = vcombine.low %v98_v3, %v102_v4 }
  0xd0   :  { %2997 = vmatprep.subr.bf16.mxu1 %v4733_v19  ;;  %2728 = vmatprep.mubr.bf16.mxu0 %v5178_v20  ;;  %v4520_v19 = vcombine.low %v99_v28, %v103_v6  ;;  %v4529_v21 = vcombine.high %v107_v15, %v111_v17  ;;  %v6477_v4 = vld [vmem:[%s7904_s1 + $0x6c] ss:$16 sps:$4 sm:$0xff]   ;;  %v146_v28 = vld [vmem:[%s7907_s4 + $0x190] sm:$0xff] }
  0xd1   :  { %2954 = vmatprep.mubr.bf16.mxu1 %v5178_v20  ;;  %v4527_v20 = vcombine.high %v106_v12, %v110_v13  ;;  %v150_v6 = vld [vmem:[%s7907_s4 + $0x1b0] sm:$0xff] }
  0xd2   :  { %2772 = vmatpush1.bf16.msra.mxu0 %v4730_v31  ;;  %v115_v31 = vld [vmem:[%s7907_s4 + $0x98] sm:$0xff] }
  0xd3   :  { %2998 = vmatpush1.bf16.msra.mxu1 %v4732_v26  ;;  %2773 = vmatprep.subr.bf16.mxu0 %v4739_v29  ;;  %v119_v26 = vld [vmem:[%s7907_s4 + $0xb8] sm:$0xff]  ;;  %v4526_v29 = vcombine.low %v106_v12, %v110_v13  ;;  %v4567_v12 = vcombine.high %v146_v28, %v150_v6 }
  0xd4   :  { %2999 = vmatprep.subr.bf16.mxu1 %v4741_v30  ;;  %v4528_v30 = vcombine.low %v107_v15, %v111_v17  ;;  %v4537_v33 = vcombine.high %v115_v31, %v119_v26  ;;  %v158_v15 = vld [vmem:[%s7907_s4 + $0x1f0] sm:$0xff]  ;;  %v6504_v17 = vld [vmem:[%s7904_s1 + $0x68] ss:$16 sps:$4 sm:$0xff]  }
  0xd5   :  { %2729 = vmatmul.mubr.bf16.gmra.mrb[24].mxu0 %v5180_v36 }
  0xd6   :  { %2955 = vmatmul.mubr.bf16.gmra.mrb[24].mxu1 %v5180_v36  ;;  %2774 = vmatpush1.bf16.msra.mxu0 %v4738_v40  ;;  %v122_v36 = vld [vmem:[%s7907_s4 + $0xd0] sm:$0xff]  ;;  %v123_v40 = vld [vmem:[%s7907_s4 + $0xd8] sm:$0xff] }
  0xd7   :  { %3000 = vmatpush1.bf16.msra.mxu1 %v4740_v41  ;;  %2775 = vmatprep.subr.bf16.mxu0 %v4747_v42  ;;  %v127_v41 = vld [vmem:[%s7907_s4 + $0xf8] sm:$0xff]  ;;  %v4534_v42 = vcombine.low %v114_v24, %v118_v25 }
  0xd8   :  { %3001 = vmatprep.subr.bf16.mxu1 %v4749_v2  ;;  %2738 = vmatprep.mubr.bf16.mxu0 %v5181_v43  ;;  %v4536_v2 = vcombine.low %v115_v31, %v119_v26  ;;  %v4545_v45 = vcombine.high %v123_v40, %v127_v41  ;;  %v6515_v25 = vld [vmem:[%s7904_s1 + $0x8c] ss:$16 sps:$4 sm:$0xff]   ;;  %v162_v31 = vld [vmem:[%s7907_s4 + $0x210] sm:$0xff] }
  0xd9   :  { %2964 = vmatprep.mubr.bf16.mxu1 %v5181_v43  ;;  %v4543_v43 = vcombine.high %v122_v36, %v126_v37  ;;  %v166_v26 = vld [vmem:[%s7907_s4 + $0x230] sm:$0xff] }
  0xda   :  { %2776 = vmatpush1.bf16.msra.mxu0 %v4746_v50  ;;  %v131_v50 = vld [vmem:[%s7907_s4 + $0x118] sm:$0xff] }
  0xdb   :  { %3002 = vmatpush1.bf16.msra.mxu1 %v4748_v51  ;;  %2777 = vmatprep.subr.bf16.mxu0 %v4755_v53  ;;  %v135_v51 = vld [vmem:[%s7907_s4 + $0x138] sm:$0xff]  ;;  %v4542_v53 = vcombine.low %v122_v36, %v126_v37  ;;  %v4583_v36 = vcombine.high %v162_v31, %v166_v26 }
  0xdc   :  { %3003 = vmatprep.subr.bf16.mxu1 %v4757_v10  ;;  %v4544_v10 = vcombine.low %v123_v40, %v127_v41  ;;  %v4553_v55 = vcombine.high %v131_v50, %v135_v51  ;;  %v170_v40 = vld [vmem:[%s7907_s4 + $0x250] sm:$0xff] }
  0xdd   :  { %2739 = vmatmul.mubr.bf16.gmra.mrb[28].mxu0 %v5183_v57  ;;  %v174_v41 = vld [vmem:[%s7907_s4 + $0x270] sm:$0xff] }
  0xde   :  { %2965 = vmatmul.mubr.bf16.gmra.mrb[28].mxu1 %v5183_v57  ;;  %2778 = vmatpush1.bf16.msra.mxu0 %v4754_v59  ;;  %v138_v57 = vld [vmem:[%s7907_s4 + $0x150] sm:$0xff]  ;;  %v139_v59 = vld [vmem:[%s7907_s4 + $0x158] sm:$0xff] }
  0xdf   :  { %3004 = vmatpush1.bf16.msra.mxu1 %v4756_v60  ;;  %2779 = vmatprep.subr.bf16.mxu0 %v4763_v62  ;;  %v143_v60 = vld [vmem:[%s7907_s4 + $0x178] sm:$0xff]  ;;  %v4550_v62 = vcombine.low %v130_v48, %v134_v49  ;;  %v4591_v49 = vcombine.high %v170_v40, %v174_v41 }
  0xe0   :  { %3005 = vmatprep.subr.bf16.mxu1 %v4765_v0  ;;  %2781 = vmatprep.mubr.bf16.mxu0 %v5186_v1  ;;  %v4552_v0 = vcombine.low %v131_v50, %v135_v51  ;;  %v4561_v3 = vcombine.high %v139_v59, %v143_v60  ;;  %v6553_v51 = vld [vmem:[%s7904_s1 + $0xac] ss:$16 sps:$4 sm:$0xff]  }
  0xe1   :  { %3007 = vmatprep.mubr.bf16.mxu1 %v5186_v1  ;;  %v4559_v1 = vcombine.high %v138_v57, %v142_v23 }
  0xe2   :  { %2780 = vmatpush1.bf16.msra.mxu0 %v4762_v7  ;;  %v147_v7 = vld [vmem:[%s7907_s4 + $0x198] sm:$0xff] }
  0xe3   :  { %3006 = vmatpush1.bf16.msra.mxu1 %v4764_v9  ;;  %3088 = vmatprep.subr.bf16.mxu0 %v4519_v27  ;;  %v151_v9 = vld [vmem:[%s7907_s4 + $0x1b8] sm:$0xff]  ;;  %v4558_v27 = vcombine.low %v138_v57, %v142_v23  ;;  %v4590_v57 = vcombine.low %v170_v40, %v174_v41  ;;  %v210_v40 = vld [vmem:[%s7907_s4 + $0x390] sm:$0xff] }
  0xe4   :  { %3314 = vmatprep.subr.bf16.mxu1 %v4521_v11  ;;  %v4560_v11 = vcombine.low %v139_v59, %v143_v60  ;;  %v4569_v13 = vcombine.high %v147_v7, %v151_v9  ;;  %v214_v41 = vld [vmem:[%s7907_s4 + $0x3b0] sm:$0xff] }
  0xe5   :  { %2782 = vmatmul.mubr.bf16.vlgmr.msra.gmra.mrb[0].mxu0 %v5184_v14 }
  0xe6   :  { %3008 = vmatmul.mubr.bf16.vlgmr.msra.gmra.mrb[0].mxu1 %v5184_v14  ;;  %3089 = vmatpush1.bf16.msra.mxu0 %v4518_v18  ;;  %v154_v14 = vld [vmem:[%s7907_s4 + $0x1d0] sm:$0xff]  ;;  %v155_v18 = vld [vmem:[%s7907_s4 + $0x1d8] sm:$0xff] }
  0xe7   :  { %3315 = vmatpush1.bf16.msra.mxu1 %v4520_v19  ;;  %3090 = vmatprep.subr.bf16.mxu0 %v4527_v20  ;;  %v159_v19 = vld [vmem:[%s7907_s4 + $0x1f8] sm:$0xff]  ;;  %v4566_v20 = vcombine.low %v146_v28, %v150_v6 }
  0xe8   :  { %3316 = vmatprep.subr.bf16.mxu1 %v4529_v21  ;;  %2791 = vmatprep.mubr.bf16.mxu0 %v5187_v22  ;;  %v4568_v21 = vcombine.low %v147_v7, %v151_v9  ;;  %v4577_v24 = vcombine.high %v155_v18, %v159_v19  ;;  %v191_v28 = vld [vmem:[%s7907_s4 + $0x2f8] sm:$0xff] }
  0xe9   :  { %3017 = vmatprep.mubr.bf16.mxu1 %v5187_v22  ;;  %v4575_v22 = vcombine.high %v154_v14, %v158_v15 }
  0xea   :  { %3091 = vmatpush1.bf16.msra.mxu0 %v4526_v29  ;;  %v163_v29 = vld [vmem:[%s7907_s4 + $0x218] sm:$0xff] }
  0xeb   :  { %3317 = vmatpush1.bf16.msra.mxu1 %v4528_v30  ;;  %3092 = vmatprep.subr.bf16.mxu0 %v4535_v32  ;;  %v167_v30 = vld [vmem:[%s7907_s4 + $0x238] sm:$0xff]  ;;  %v4574_v32 = vcombine.low %v154_v14, %v158_v15 }
  0xec   :  { %3318 = vmatprep.subr.bf16.mxu1 %v4537_v33  ;;  %v4576_v33 = vcombine.low %v155_v18, %v159_v19  ;;  %v4585_v37 = vcombine.high %v163_v29, %v167_v30  ;;  %v4584_v48 = vcombine.low %v163_v29, %v167_v30  ;;  %v195_v14 = vld [vmem:[%s7907_s4 + $0x318] sm:$0xff] }
  0xed   :  { %2792 = vmatmul.mubr.bf16.gmra.mrb[4].mxu0 %v6428_v39  ;;  %v199_v15 = vld [vmem:[%s7907_s4 + $0x338] sm:$0xff] }
  0xee   :  { %3018 = vmatmul.mubr.bf16.gmra.mrb[4].mxu1 %v6428_v39  ;;  %3093 = vmatpush1.bf16.msra.mxu0 %v4534_v42  ;;  %v6542_v42 = vld [vmem:[%s7904_s1 + $0x88] ss:$16 sps:$4 sm:$0xff]  }
  0xef   :  { %3319 = vmatpush1.bf16.msra.mxu1 %v4536_v2  ;;  %3094 = vmatprep.subr.bf16.mxu0 %v4543_v43  ;;  %v171_v2 = vld [vmem:[%s7907_s4 + $0x258] sm:$0xff] }
  0xf0   :  { %3320 = vmatprep.subr.bf16.mxu1 %v4545_v45  ;;  %2801 = vmatprep.mubr.bf16.mxu0 %v6439_v46  ;;  %v175_v43 = vld [vmem:[%s7907_s4 + $0x278] sm:$0xff]  ;;  %v4582_v45 = vcombine.low %v162_v31, %v166_v26 }
  0xf1   :  { %3027 = vmatprep.mubr.bf16.mxu1 %v6439_v46  ;;  %v4593_v50 = vcombine.high %v171_v2, %v175_v43  ;;  %v4592_v23 = vcombine.low %v171_v2, %v175_v43  ;;  %v6618_v31 = vld [vmem:[%s7904_s1 + $0xc8] ss:$16 sps:$4 sm:$0xff]  }
  0xf2   :  { %3095 = vmatpush1.bf16.msra.mxu0 %v4542_v53  ;;  %v178_v53 = vld [vmem:[%s7907_s4 + $0x290] sm:$0xff]  ;;  %v203_v26 = vld [vmem:[%s7907_s4 + $0x358] sm:$0xff] }
  0xf3   :  { %3321 = vmatpush1.bf16.msra.mxu1 %v4544_v10  ;;  %3096 = vmatprep.subr.bf16.mxu0 %v4551_v54  ;;  %v182_v10 = vld [vmem:[%s7907_s4 + $0x2b0] sm:$0xff]  ;;  %v179_v54 = vld [vmem:[%s7907_s4 + $0x298] sm:$0xff] }
  0xf4   :  { %3322 = vmatprep.subr.bf16.mxu1 %v4553_v55  ;;  %v183_v55 = vld [vmem:[%s7907_s4 + $0x2b8] sm:$0xff]  ;;  %v4599_v59 = vcombine.high %v178_v53, %v182_v10  ;;  %v4598_v6 = vcombine.low %v178_v53, %v182_v10  ;;  %v218_v53 = vld [vmem:[%s7907_s4 + $0x3d0] sm:$0xff] }
  0xf5   :  { %2802 = vmatmul.mubr.bf16.gmra.mrb[8].mxu0 %v6466_v58  ;;  %v4601_v60 = vcombine.high %v179_v54, %v183_v55  ;;  %v4600_v7 = vcombine.low %v179_v54, %v183_v55  ;;  %v207_v29 = vld [vmem:[%s7907_s4 + $0x378] sm:$0xff]  ;;  %v222_v10 = vld [vmem:[%s7907_s4 + $0x3f0] sm:$0xff] }
  0xf6   :  { %3028 = vmatmul.mubr.bf16.gmra.mrb[8].mxu1 %v6466_v58  ;;  %3097 = vmatpush1.bf16.msra.mxu0 %v4550_v62  ;;  %v186_v62 = vld [vmem:[%s7907_s4 + $0x2d0] sm:$0xff]  ;;  %v211_v2 = vld [vmem:[%s7907_s4 + $0x398] sm:$0xff] }
  0xf7   :  { %3323 = vmatpush1.bf16.msra.mxu1 %v4552_v0  ;;  %3098 = vmatprep.subr.bf16.mxu0 %v4559_v1  ;;  %v190_v0 = vld [vmem:[%s7907_s4 + $0x2f0] sm:$0xff]  ;;  %v6580_v1 = vld [vmem:[%s7904_s1 + $0xa8] ss:$16 sps:$4 sm:$0xff]  }
  0xf8   :  { %3324 = vmatprep.subr.bf16.mxu1 %v4561_v3  ;;  %2811 = vmatprep.mubr.bf16.mxu0 %v6477_v4  ;;  %v187_v3 = vld [vmem:[%s7907_s4 + $0x2d8] sm:$0xff]  ;;  %v4607_v9 = vcombine.high %v186_v62, %v190_v0  ;;  %v4606_v18 = vcombine.low %v186_v62, %v190_v0  ;;  %v226_v0 = vld [vmem:[%s7907_s4 + $0x410] sm:$0xff] }
  0xf9   :  { %3037 = vmatprep.mubr.bf16.mxu1 %v6477_v4  ;;  %v4608_v19 = vcombine.low %v187_v3, %v191_v28  ;;  %v215_v43 = vld [vmem:[%s7907_s4 + $0x3b8] sm:$0xff] }
  0xfa   :  { %3099 = vmatpush1.bf16.msra.mxu0 %v4558_v27  ;;  %v4609_v27 = vcombine.high %v187_v3, %v191_v28  ;;  %v6656_v54 = vld [vmem:[%s7904_s1 + $0xe8] ss:$16 sps:$4 sm:$0xff]   ;;  %v230_v3 = vld [vmem:[%s7907_s4 + $0x430] sm:$0xff] }
  0xfb   :  { %3325 = vmatpush1.bf16.msra.mxu1 %v4560_v11  ;;  %3100 = vmatprep.subr.bf16.mxu0 %v4567_v12  ;;  %v6591_v11 = vld [vmem:[%s7904_s1 + $0xcc] ss:$16 sps:$4 sm:$0xff]   ;;  %v194_v12 = vld [vmem:[%s7907_s4 + $0x310] sm:$0xff] }
  0xfc   :  { %3326 = vmatprep.subr.bf16.mxu1 %v4569_v13  ;;  %v198_v13 = vld [vmem:[%s7907_s4 + $0x330] sm:$0xff]  ;;  %v219_v55 = vld [vmem:[%s7907_s4 + $0x3d8] sm:$0xff] }
  0xfd   :  { %2812 = vmatmul.mubr.bf16.gmra.mrb[12].mxu0 %v6504_v17  ;;  %v4614_v30 = vcombine.low %v194_v12, %v198_v13  ;;  %v227_v28 = vld [vmem:[%s7907_s4 + $0x418] sm:$0xff] }
  0xfe   :  { %3038 = vmatmul.mubr.bf16.gmra.mrb[12].mxu1 %v6504_v17  ;;  %3101 = vmatpush1.bf16.msra.mxu0 %v4566_v20  ;;  %v4615_v20 = vcombine.high %v194_v12, %v198_v13  ;;  %v4647_v12 = vcombine.high %v226_v0, %v230_v3 }
  0xff   :  { %3327 = vmatpush1.bf16.msra.mxu1 %v4568_v21  ;;  %3102 = vmatprep.subr.bf16.mxu0 %v4575_v22  ;;  %v4617_v21 = vcombine.high %v195_v14, %v199_v15  ;;  %v202_v22 = vld [vmem:[%s7907_s4 + $0x350] sm:$0xff] }
 0x100   :  { %3328 = vmatprep.subr.bf16.mxu1 %v4577_v24  ;;  %2821 = vmatprep.mubr.bf16.mxu0 %v6515_v25  ;;  %v206_v24 = vld [vmem:[%s7907_s4 + $0x370] sm:$0xff] }
 0x101   :  { %3047 = vmatprep.mubr.bf16.mxu1 %v6515_v25 }
 0x102   :  { %3103 = vmatpush1.bf16.msra.mxu0 %v4574_v32  ;;  %v4616_v32 = vcombine.low %v195_v14, %v199_v15  ;;  %v234_v14 = vld [vmem:[%s7907_s4 + $0x450] sm:$0xff] }
 0x103   :  { %3329 = vmatpush1.bf16.msra.mxu1 %v4576_v33  ;;  %3104 = vmatprep.subr.bf16.mxu0 %v4583_v36  ;;  %v4623_v33 = vcombine.high %v202_v22, %v206_v24  ;;  %v4625_v36 = vcombine.high %v203_v26, %v207_v29  ;;  %v238_v15 = vld [vmem:[%s7907_s4 + $0x470] sm:$0xff] }
 0x104   :  { %3330 = vmatprep.subr.bf16.mxu1 %v4585_v37  ;;  %v6629_v37 = vld [vmem:[%s7904_s1 + $0xec] ss:$16 sps:$4 sm:$0xff]  }
 0x105   :  { %2822 = vmatmul.mubr.bf16.gmra.mrb[16].mxu0 %v6542_v42 }
 0x106   :  { %3048 = vmatmul.mubr.bf16.gmra.mrb[16].mxu1 %v6542_v42  ;;  %3105 = vmatpush1.bf16.msra.mxu0 %v4582_v45  ;;  %v4622_v45 = vcombine.low %v202_v22, %v206_v24  ;;  %v4655_v24 = vcombine.high %v234_v14, %v238_v15 }
 0x107   :  { %3331 = vmatpush1.bf16.msra.mxu1 %v4584_v48  ;;  %3106 = vmatprep.subr.bf16.mxu0 %v4591_v49  ;;  %v4624_v48 = vcombine.low %v203_v26, %v207_v29  ;;  %v4631_v49 = vcombine.high %v210_v40, %v214_v41  ;;  %v246_v29 = vld [vmem:[%s7907_s4 + $0x4b0] sm:$0xff] }
 0x108   :  { %3332 = vmatprep.subr.bf16.mxu1 %v4593_v50  ;;  %2831 = vmatprep.mubr.bf16.mxu0 %v6553_v51  ;;  %v4633_v50 = vcombine.high %v211_v2, %v215_v43 }
 0x109   :  { %3057 = vmatprep.mubr.bf16.mxu1 %v6553_v51 }
 0x10a   :  { %3107 = vmatpush1.bf16.msra.mxu0 %v4590_v57  ;;  %v223_v57 = vld [vmem:[%s7907_s4 + $0x3f8] sm:$0xff] }
 0x10b   :  { %3333 = vmatpush1.bf16.msra.mxu1 %v4592_v23  ;;  %3108 = vmatprep.subr.bf16.mxu0 %v4599_v59  ;;  %v4630_v23 = vcombine.low %v210_v40, %v214_v41  ;;  %v4632_v59 = vcombine.low %v211_v2, %v215_v43  ;;  %v4641_v62 = vcombine.high %v219_v55, %v223_v57  ;;  %v250_v2 = vld [vmem:[%s7907_s4 + $0x4d0] sm:$0xff] }
 0x10c   :  { %3334 = vmatprep.subr.bf16.mxu1 %v4601_v60  ;;  %v4639_v60 = vcombine.high %v218_v53, %v222_v10  ;;  %v254_v43 = vld [vmem:[%s7907_s4 + $0x4f0] sm:$0xff] }
 0x10d   :  { %2832 = vmatmul.mubr.bf16.gmra.mrb[20].mxu0 %v6580_v1 }
 0x10e   :  { %3058 = vmatmul.mubr.bf16.gmra.mrb[20].mxu1 %v6580_v1  ;;  %3109 = vmatpush1.bf16.msra.mxu0 %v4598_v6  ;;  %v231_v6 = vld [vmem:[%s7907_s4 + $0x438] sm:$0xff] }
 0x10f   :  { %3335 = vmatpush1.bf16.msra.mxu1 %v4600_v7  ;;  %3110 = vmatprep.subr.bf16.mxu0 %v4607_v9  ;;  %v4638_v7 = vcombine.low %v218_v53, %v222_v10  ;;  %v3710_v9 = vld [vmem:[%s7903_s0] sm:$0xff]  ;;  %v4649_v13 = vcombine.high %v227_v28, %v231_v6  ;;  %v4648_v22 = vcombine.low %v227_v28, %v231_v6  ;;  %v262_v10 = vld [vmem:[%s7907_s4 + $0x530] sm:$0xff]  ;;  %v271_v28 = vld [vmem:[%s7907_s4 + $0x578] sm:$0xff] }
 0x110   :  { %3336 = vmatprep.subr.bf16.mxu1 %v4609_v27  ;;  %2841 = vmatprep.mubr.bf16.mxu0 %v6591_v11  ;;  %v4640_v27 = vcombine.low %v219_v55, %v223_v57  ;;  %vm3726_vm0 = vcmp.gt.f32.partialorder %v3710_v9, 0.5  ;;  %v259_v55 = vld [vmem:[%s7907_s4 + $0x518] sm:$0xff] }
 0x111   :  { %3067 = vmatprep.mubr.bf16.mxu1 %v6591_v11  ;;  %v263_v57 = vld [vmem:[%s7907_s4 + $0x538] sm:$0xff] }
 0x112   :  { %3111 = vmatpush1.bf16.msra.mxu0 %v4606_v18  ;;  %v3742_v18 = vsel %vm3726_vm0, 1, %v5521_v8 }
 0x113   :  { %3337 = vmatpush1.bf16.msra.mxu1 %v4608_v19  ;;  %3112 = vmatprep.subr.bf16.mxu0 %v4615_v20  ;;  %v235_v19 = vld [vmem:[%s7907_s4 + $0x458] sm:$0xff] }
 0x114   :  { %3338 = vmatprep.subr.bf16.mxu1 %v4617_v21  ;;  %v239_v20 = vld [vmem:[%s7907_s4 + $0x478] sm:$0xff]  ;;  %3759 = vperm.xlu0 %5158, %v3742_v18   ;;  %v4646_v21 = vcombine.low %v226_v0, %v230_v3  ;;  %v266_v0 = vld [vmem:[%s7907_s4 + $0x550] sm:$0xff] }
 0x115   :  { %2842 = vmatmul.mubr.bf16.gmra.mrb[24].mxu0 %v6618_v31  ;;  %v4657_v26 = vcombine.high %v235_v19, %v239_v20  ;;  %v270_v3 = vld [vmem:[%s7907_s4 + $0x570] sm:$0xff] }
 0x116   :  { %3068 = vmatmul.mubr.bf16.gmra.mrb[24].mxu1 %v6618_v31  ;;  %3113 = vmatpush1.bf16.msra.mxu0 %v4614_v30  ;;  %v243_v30 = vld [vmem:[%s7907_s4 + $0x498] sm:$0xff]  ;;  %v4687_v9 = vcombine.high %v266_v0, %v270_v3 }
 0x117   :  { %3339 = vmatpush1.bf16.msra.mxu1 %v4616_v32  ;;  %3114 = vmatprep.subr.bf16.mxu0 %v4623_v33  ;;  %v247_v32 = vld [vmem:[%s7907_s4 + $0x4b8] sm:$0xff]  ;;  %v4654_v33 = vcombine.low %v234_v14, %v238_v15  ;;  %v4686_v15 = vcombine.low %v266_v0, %v270_v3  ;;  %v306_v0 = vld [vmem:[%s7907_s4 + $0x690] sm:$0xff] }
 0x118   :  { %3340 = vmatprep.subr.bf16.mxu1 %v4625_v36  ;;  %2851 = vmatprep.mubr.bf16.mxu0 %v6629_v37  ;;  %v4656_v36 = vcombine.low %v235_v19, %v239_v20  ;;  %v4665_v41 = vcombine.high %v243_v30, %v247_v32  ;;  %v279_v14 = vld [vmem:[%s7907_s4 + $0x5b8] sm:$0xff]  ;;  %v310_v3 = vld [vmem:[%s7907_s4 + $0x6b0] sm:$0xff] }
 0x119   :  { %3077 = vmatprep.mubr.bf16.mxu1 %v6629_v37 }
 0x11a   :  { %3115 = vmatpush1.bf16.msra.mxu0 %v4622_v45  ;;  %v255_v45 = vld [vmem:[%s7907_s4 + $0x4f8] sm:$0xff] }
 0x11b   :  { %3341 = vmatpush1.bf16.msra.mxu1 %v4624_v48  ;;  %3116 = vmatprep.subr.bf16.mxu0 %v4631_v49  ;;  %v4664_v49 = vcombine.low %v243_v30, %v247_v32 }
 0x11c   :  { %3342 = vmatprep.subr.bf16.mxu1 %v4633_v50  ;;  %v4671_v50 = vcombine.high %v250_v2, %v254_v43 }
 0x11d   :  { %2852 = vmatmul.mubr.bf16.gmra.mrb[28].mxu0 %v6656_v54 }
 0x11e   :  { %3078 = vmatmul.mubr.bf16.gmra.mrb[28].mxu1 %v6656_v54  ;;  %3117 = vmatpush1.bf16.msra.mxu0 %v4630_v23  ;;  %v4670_v23 = vcombine.low %v250_v2, %v254_v43  ;;  %v295_v2 = vld [vmem:[%s7907_s4 + $0x638] sm:$0xff] }
 0x11f   :  { %3343 = vmatpush1.bf16.msra.mxu1 %v4632_v59  ;;  %3118 = vmatprep.subr.bf16.mxu0 %v4639_v60 }
 0x120   :  { %3344 = vmatprep.subr.bf16.mxu1 %v4641_v62  ;;  %3120 = vmatprep.mubr.bf16.mxu0 %v6091_v35  ;;  %v4681_v62 = vcombine.high %v259_v55, %v263_v57 }
 0x121   :  { %3346 = vmatprep.mubr.bf16.mxu1 %v6091_v35  ;;  %v242_v35 = vld [vmem:[%s7907_s4 + $0x490] sm:$0xff] }
 0x122   :  { %3119 = vmatpush1.bf16.msra.mxu0 %v4638_v7  ;;  %v4663_v40 = vcombine.high %v242_v35, %v246_v29  ;;  %v4662_v48 = vcombine.low %v242_v35, %v246_v29  ;;  %v4680_v7 = vcombine.low %v259_v55, %v263_v57  ;;  %v3711_v35 = vld [vmem:[%s7903_s0 + $0x8] sm:$0xff] }
 0x123   :  { %3345 = vmatpush1.bf16.msra.mxu1 %v4640_v27  ;;  %3201 = vmatprep.subr.bf16.mxu0 %v4647_v12  ;;  %v278_v12 = vld [vmem:[%s7907_s4 + $0x5b0] sm:$0xff]  ;;  %vm3727_vm1 = vcmp.gt.f32.partialorder %v3711_v35, 0.5 }
 0x124   :  { %3427 = vmatprep.subr.bf16.mxu1 %v4649_v13  ;;  %v275_v13 = vld [vmem:[%s7907_s4 + $0x598] sm:$0xff]  ;;  %v322_v35 = vld [vmem:[%s7907_s4 + $0x710] sm:$0xff] }
 0x125   :  { %3121 = vmatmul.mubr.bf16.vlgmr.msra.gmra.mrb[32].mxu0 %v6117_v34  ;;  %v4697_v20 = vcombine.high %v275_v13, %v279_v14  ;;  %v4696_v29 = vcombine.low %v275_v13, %v279_v14  ;;  %v318_v14 = vld [vmem:[%s7907_s4 + $0x6f0] sm:$0xff] }
 0x126   :  { %3347 = vmatmul.mubr.bf16.vlgmr.msra.gmra.mrb[32].mxu1 %v6117_v34  ;;  %3202 = vmatpush1.bf16.msra.mxu0 %v4646_v21  ;;  %v251_v34 = vld [vmem:[%s7907_s4 + $0x4d8] sm:$0xff]  ;;  %v282_v21 = vld [vmem:[%s7907_s4 + $0x5d0] sm:$0xff] }
 0x127   :  { %3428 = vmatpush1.bf16.msra.mxu1 %v4648_v22  ;;  %3203 = vmatprep.subr.bf16.mxu0 %v4655_v24  ;;  %v4673_v53 = vcombine.high %v251_v34, %v255_v45  ;;  %v4672_v59 = vcombine.low %v251_v34, %v255_v45  ;;  %v286_v22 = vld [vmem:[%s7907_s4 + $0x5f0] sm:$0xff]  ;;  %v287_v24 = vld [vmem:[%s7907_s4 + $0x5f8] sm:$0xff] }
 0x128   :  { %3429 = vmatprep.subr.bf16.mxu1 %v4657_v26  ;;  %3130 = vmatprep.mubr.bf16.mxu0 %v6129_v52  ;;  %v4703_v30 = vcombine.high %v282_v21, %v286_v22  ;;  %v4702_v43 = vcombine.low %v282_v21, %v286_v22 }
 0x129   :  { %3356 = vmatprep.mubr.bf16.mxu1 %v6129_v52  ;;  %v258_v52 = vld [vmem:[%s7907_s4 + $0x510] sm:$0xff] }
 0x12a   :  { %3204 = vmatpush1.bf16.msra.mxu0 %v4654_v33  ;;  %v4679_v60 = vcombine.high %v258_v52, %v262_v10  ;;  %v4678_v6 = vcombine.low %v258_v52, %v262_v10  ;;  %v290_v33 = vld [vmem:[%s7907_s4 + $0x610] sm:$0xff]  ;;  %v299_v52 = vld [vmem:[%s7907_s4 + $0x658] sm:$0xff] }
 0x12b   :  { %3430 = vmatpush1.bf16.msra.mxu1 %v4656_v36  ;;  %3205 = vmatprep.subr.bf16.mxu0 %v4663_v40  ;;  %v294_v36 = vld [vmem:[%s7907_s4 + $0x630] sm:$0xff]  ;;  %v3743_v40 = vsel %vm3727_vm1, 1, %v5521_v8  ;;  %v303_v10 = vld [vmem:[%s7907_s4 + $0x678] sm:$0xff] }
 0x12c   :  { %3431 = vmatprep.subr.bf16.mxu1 %v4665_v41  ;;  %v291_v41 = vld [vmem:[%s7907_s4 + $0x618] sm:$0xff]  ;;  %3762 = vperm.xlu0 %5158, %v3743_v40   ;;  %v4710_v55 = vcombine.low %v290_v33, %v294_v36 }
 0x12d   :  { %3131 = vmatmul.mubr.bf16.gmra.mrb[36].mxu0 %v6156_v61 }
 0x12e   :  { %3357 = vmatmul.mubr.bf16.gmra.mrb[36].mxu1 %v6156_v61  ;;  %3206 = vmatpush1.bf16.msra.mxu0 %v4662_v48  ;;  %v267_v61 = vld [vmem:[%s7907_s4 + $0x558] sm:$0xff]  ;;  %v4711_v48 = vcombine.high %v290_v33, %v294_v36 }
 0x12f   :  { %3432 = vmatpush1.bf16.msra.mxu1 %v4664_v49  ;;  %3207 = vmatprep.subr.bf16.mxu0 %v4671_v50  ;;  %v4689_v27 = vcombine.high %v267_v61, %v271_v28  ;;  %v4688_v18 = vcombine.low %v267_v61, %v271_v28  ;;  %v3713_v49 = vld [vmem:[%s7903_s0 + $0x18] sm:$0xff]  ;;  %v4713_v50 = vcombine.high %v291_v41, %v295_v2 }
 0x130   :  { %3433 = vmatprep.subr.bf16.mxu1 %v4673_v53  ;;  %3140 = vmatprep.mubr.bf16.mxu0 %v6167_v5  ;;  %v302_v53 = vld [vmem:[%s7907_s4 + $0x670] sm:$0xff]  ;;  %vm3729_vm3 = vcmp.gt.f32.partialorder %v3713_v49, 0.5  ;;  %v307_v61 = vld [vmem:[%s7907_s4 + $0x698] sm:$0xff] }
 0x131   :  { %3366 = vmatprep.mubr.bf16.mxu1 %v6167_v5  ;;  %v274_v5 = vld [vmem:[%s7907_s4 + $0x590] sm:$0xff]  ;;  %v3745_v57 = vsel %vm3729_vm3, 1, %v5521_v8  ;;  %v311_v28 = vld [vmem:[%s7907_s4 + $0x6b8] sm:$0xff] }
 0x132   :  { %3208 = vmatpush1.bf16.msra.mxu0 %v4670_v23  ;;  %v4695_v19 = vcombine.high %v274_v5, %v278_v12  ;;  %v4694_v26 = vcombine.low %v274_v5, %v278_v12  ;;  %v4712_v23 = vcombine.low %v291_v41, %v295_v2  ;;  %v3717_v12 = vld [vmem:[%s7903_s0 + $0x38] sm:$0xff]  ;;  %v4729_v13 = vcombine.high %v307_v61, %v311_v28  ;;  %v334_v49 = vld [vmem:[%s7907_s4 + $0x770] sm:$0xff] }
 0x133   :  { %3434 = vmatpush1.bf16.msra.mxu1 %v4672_v59  ;;  %3209 = vmatprep.subr.bf16.mxu0 %v4679_v60  ;;  %v3714_v60 = vld [vmem:[%s7903_s0 + $0x20] sm:$0xff]  ;;  %vm3733_vm6 = vcmp.gt.f32.partialorder %v3717_v12, 0.5  ;;  %v4728_v22 = vcombine.low %v307_v61, %v311_v28  ;;  %v327_v33 = vld [vmem:[%s7907_s4 + $0x738] sm:$0xff] }
 0x134   :  { %3435 = vmatprep.subr.bf16.mxu1 %v4681_v62  ;;  %v4721_v62 = vcombine.high %v299_v52, %v303_v10  ;;  %vm3730_vm5 = vcmp.gt.f32.partialorder %v3714_v60, 0.5  ;;  %v3749_v21 = vsel %vm3733_vm6, 1, %v5521_v8  ;;  %v342_v60 = vld [vmem:[%s7907_s4 + $0x7b0] sm:$0xff]  ;;  %v343_v61 = vld [vmem:[%s7907_s4 + $0x7b8] sm:$0xff] }
 0x135   :  { %3141 = vmatmul.mubr.bf16.gmra.mrb[40].mxu0 %v6194_v16  ;;  %v3746_v5 = vsel %vm3730_vm5, 1, %v5521_v8 }
 0x136   :  { %3367 = vmatmul.mubr.bf16.gmra.mrb[40].mxu1 %v6194_v16  ;;  %3210 = vmatpush1.bf16.msra.mxu0 %v4678_v6  ;;  %v283_v16 = vld [vmem:[%s7907_s4 + $0x5d8] sm:$0xff] }
 0x137   :  { %3436 = vmatpush1.bf16.msra.mxu1 %v4680_v7  ;;  %3211 = vmatprep.subr.bf16.mxu0 %v4687_v9  ;;  %v4705_v32 = vcombine.high %v283_v16, %v287_v24  ;;  %v4704_v45 = vcombine.low %v283_v16, %v287_v24  ;;  %v4720_v9 = vcombine.low %v299_v52, %v303_v10  ;;  %v3719_v24 = vld [vmem:[%s7903_s0 + $0x48] sm:$0xff]  ;;  %v3720_v52 = vld [vmem:[%s7903_s0 + $0x50] sm:$0xff] }
 0x138   :  { %3437 = vmatprep.subr.bf16.mxu1 %v4689_v27  ;;  %3150 = vmatprep.mubr.bf16.mxu0 %v6205_v47  ;;  %v4727_v27 = vcombine.high %v306_v0, %v310_v3  ;;  %vm3735_vm8 = vcmp.gt.f32.partialorder %v3719_v24, 0.5  ;;  %vm3736_vm11 = vcmp.gt.f32.partialorder %v3720_v52, 0.5  ;;  %v3724_v24 = vld [vmem:[%s7903_s0 + $0x70] sm:$0xff]  ;;  %v3542_v52 = vlaneseq }
 0x139   :  { %3376 = vmatprep.mubr.bf16.mxu1 %v6205_v47  ;;  %v3712_v47 = vld [vmem:[%s7903_s0 + $0x10] sm:$0xff]  ;;  %3771 = vperm.xlu0 %5158, %v3746_v5   ;;  %vm3740_vm15 = vcmp.gt.f32.partialorder %v3724_v24, 0.5 }
 0x13a   :  { %3212 = vmatpush1.bf16.msra.mxu0 %v4686_v15  ;;  %vm3728_vm2 = vcmp.gt.f32.partialorder %v3712_v47, 0.5  ;;  %v3716_v15 = vld [vmem:[%s7903_s0 + $0x30] sm:$0xff] }
 0x13b   :  { %3438 = vmatpush1.bf16.msra.mxu1 %v4688_v18  ;;  %3213 = vmatprep.subr.bf16.mxu0 %v4695_v19  ;;  %v3744_v34 = vsel %vm3728_vm2, 1, %v5521_v8  ;;  %v5464_v18 = vld [vmem:[%s7904_s1 + $0xa4] ss:$16 sps:$4 sm:$0xff]   ;;  %v319_v19 = vld [vmem:[%s7907_s4 + $0x6f8] sm:$0xff]  ;;  %vm3732_vm7 = vcmp.gt.f32.partialorder %v3716_v15, 0.5 }
 0x13c   :  { %3439 = vmatprep.subr.bf16.mxu1 %v4697_v20  ;;  %3765 = vperm.xlu1 %5159, %v3744_v34   ;;  %v4726_v20 = vcombine.low %v306_v0, %v310_v3  ;;  %v5465_v47 = vld [vmem:[%s7904_s1 + $0xa0] ss:$16 sps:$4 sm:$0xff]   ;;  %v3748_v40 = vsel %vm3732_vm7, 1, %v5521_v8  ;;  %v5466_v34 = vld [vmem:[%s7904_s1 + $0xc4] ss:$16 sps:$4 sm:$0xff]   ;;  %v339_v3 = vld [vmem:[%s7907_s4 + $0x798] sm:$0xff] }
 0x13d   :  { %3151 = vmatmul.mubr.bf16.gmra.mrb[44].mxu0 %v6232_v38  ;;  %3777 = vperm.xlu0 %5158, %v3748_v40   ;;  %v5467_v0 = vld [vmem:[%s7904_s1 + $0xc0] ss:$16 sps:$4 sm:$0xff]   ;;  %v5468_v5 = vld [vmem:[%s7904_s1 + $0xe4] ss:$16 sps:$4 sm:$0xff]   ;;  %v4761_v12 = vcombine.high %v339_v3, %v343_v61  ;;  %v347_v15 = vld [vmem:[%s7907_s4 + $0x7d8] sm:$0xff] }
 0x13e   :  { %3377 = vmatmul.mubr.bf16.gmra.mrb[44].mxu1 %v6232_v38  ;;  %3214 = vmatpush1.bf16.msra.mxu0 %v4694_v26  ;;  %v298_v38 = vld [vmem:[%s7907_s4 + $0x650] sm:$0xff]  ;;  %v5472_v40 = vld [vmem:[%s7904_s1 + $0x2c] ss:$16 sps:$4 sm:$0xff]  }
 0x13f   :  { %3440 = vmatpush1.bf16.msra.mxu1 %v4696_v29  ;;  %3215 = vmatprep.subr.bf16.mxu0 %v4703_v30  ;;  %v4719_v59 = vcombine.high %v298_v38, %v302_v53  ;;  %v4718_v6 = vcombine.low %v298_v38, %v302_v53  ;;  %v326_v29 = vld [vmem:[%s7907_s4 + $0x730] sm:$0xff]  ;;  %v3718_v30 = vld [vmem:[%s7903_s0 + $0x40] sm:$0xff]  ;;  %v331_v38 = vld [vmem:[%s7907_s4 + $0x758] sm:$0xff] }
 0x140   :  { %3441 = vmatprep.subr.bf16.mxu1 %v4705_v32  ;;  %3160 = vmatprep.mubr.bf16.mxu0 %v6243_v44  ;;  %v323_v32 = vld [vmem:[%s7907_s4 + $0x718] sm:$0xff]  ;;  %v4743_v2 = vcombine.high %v322_v35, %v326_v29  ;;  %vm3734_vm9 = vcmp.gt.f32.partialorder %v3718_v30, 0.5  ;;  %v4742_v10 = vcombine.low %v322_v35, %v326_v29 }
 0x141   :  { %3386 = vmatprep.mubr.bf16.mxu1 %v6243_v44  ;;  %v3715_v44 = vld [vmem:[%s7903_s0 + $0x28] sm:$0xff]  ;;  %3768 = vperm.xlu1 %5159, %v3745_v57   ;;  %v335_v53 = vld [vmem:[%s7907_s4 + $0x778] sm:$0xff]  ;;  %v4744_v57 = vcombine.low %v323_v32, %v327_v33 }
 0x142   :  { %3216 = vmatpush1.bf16.msra.mxu0 %v4702_v43  ;;  %vm3731_vm4 = vcmp.gt.f32.partialorder %v3715_v44, 0.5  ;;  %v3751_v43 = vsel %vm3735_vm8, 1, %v5521_v8  ;;  %v338_v44 = vld [vmem:[%s7907_s4 + $0x790] sm:$0xff] }
 0x143   :  { %3442 = vmatpush1.bf16.msra.mxu1 %v4704_v45  ;;  %3217 = vmatprep.subr.bf16.mxu0 %v4711_v48  ;;  %v3747_v7 = vsel %vm3731_vm4, 1, %v5521_v8  ;;  %v4745_v45 = vcombine.high %v323_v32, %v327_v33  ;;  %v330_v48 = vld [vmem:[%s7907_s4 + $0x750] sm:$0xff]  ;;  %v5470_v32 = vld [vmem:[%s7904_s1 + $0xc] ss:$16 sps:$4 sm:$0xff]   ;;  %v3756_v33 = vsel %vm3740_vm15, 1, %v5521_v8 }
 0x144   :  { %3443 = vmatprep.subr.bf16.mxu1 %v4713_v50  ;;  %v3721_v50 = vld [vmem:[%s7903_s0 + $0x58] sm:$0xff]  ;;  %v4750_v28 = vcombine.low %v330_v48, %v334_v49 }
 0x145   :  { %3161 = vmatmul.mubr.bf16.gmra.mrb[48].mxu0 %v6270_v56  ;;  %3774 = vperm.xlu1 %5159, %v3747_v7   ;;  %vm3737_vm10 = vcmp.gt.f32.partialorder %v3721_v50, 0.5  ;;  %v4752_v7 = vcombine.low %v331_v38, %v335_v53 }
 0x146   :  { %3387 = vmatmul.mubr.bf16.gmra.mrb[48].mxu1 %v6270_v56  ;;  %3218 = vmatpush1.bf16.msra.mxu0 %v4710_v55  ;;  %v314_v56 = vld [vmem:[%s7907_s4 + $0x6d0] sm:$0xff]  ;;  %v3750_v55 = vsel %vm3734_vm9, 1, %v5521_v8 }
 0x147   :  { %3444 = vmatpush1.bf16.msra.mxu1 %v4712_v23  ;;  %3219 = vmatprep.subr.bf16.mxu0 %v4719_v59  ;;  %v4735_v16 = vcombine.high %v314_v56, %v318_v14  ;;  %v4734_v36 = vcombine.low %v314_v56, %v318_v14  ;;  %v4751_v23 = vcombine.high %v330_v48, %v334_v49  ;;  %v350_v56 = vld [vmem:[%s7907_s4 + $0x7f0] sm:$0xff]  ;;  %v3722_v14 = vld [vmem:[%s7903_s0 + $0x60] sm:$0xff] }
 0x148   :  { %3445 = vmatprep.subr.bf16.mxu1 %v4721_v62  ;;  %3170 = vmatprep.mubr.bf16.mxu0 %v6281_v63  ;;  %v315_v63 = vld [vmem:[%s7907_s4 + $0x6d8] sm:$0xff]  ;;  %v4753_v59 = vcombine.high %v331_v38, %v335_v53  ;;  %v3723_v62 = vld [vmem:[%s7903_s0 + $0x68] sm:$0xff]  ;;  %vm3738_vm13 = vcmp.gt.f32.partialorder %v3722_v14, 0.5 }
 0x149   :  { %3396 = vmatprep.mubr.bf16.mxu1 %v5464_v18  ;;  %v4737_v26 = vcombine.high %v315_v63, %v319_v19  ;;  %3780 = vperm.xlu1 %5159, %v3749_v21   ;;  %v4736_v41 = vcombine.low %v315_v63, %v319_v19  ;;  %vm3739_vm12 = vcmp.gt.f32.partialorder %v3723_v62, 0.5  ;;  %v351_v18 = vld [vmem:[%s7907_s4 + $0x7f8] sm:$0xff]  ;;  %v4758_v19 = vcombine.low %v338_v44, %v342_v60 }
 0x14a   :  { %3220 = vmatpush1.bf16.msra.mxu0 %v4718_v6  ;;  %3783 = vperm.xlu0 %5158, %v3750_v55   ;;  %v3753_v6 = vsel %vm3737_vm10, 1, %v5521_v8  ;;  %v3725_v63 = vld [vmem:[%s7903_s0 + $0x78] sm:$0xff]  ;;  %v4760_v21 = vcombine.low %v339_v3, %v343_v61  ;;  %v3754_v29 = vsel %vm3738_vm13, 1, %v5521_v8  ;;  %v4768_v30 = vcombine.low %v347_v15, %v351_v18  ;;  %v7069_v61 = vld [vmem:[%s7909_s6] sm:$0xff] }
 0x14b   :  { %3446 = vmatpush1.bf16.msra.mxu1 %v4720_v9  ;;  %3221 = vmatprep.subr.bf16.mxu0 %v4727_v27  ;;  %v4759_v9 = vcombine.high %v338_v44, %v342_v60  ;;  %v3752_v27 = vsel %vm3736_vm11, 1, %v5521_v8  ;;  %vm3741_vm14 = vcmp.gt.f32.partialorder %v3725_v63, 0.5  ;;  %v7049_v55 = vshrl.u32 %v3542_v52, 7 }
 0x14c   :  { %3447 = vmatprep.subr.bf16.mxu1 %v4729_v13  ;;  %v346_v13 = vld [vmem:[%s7907_s4 + $0x7d0] sm:$0xff] }
 0x14d   :  { %3171 = vmatmul.mubr.bf16.gmra.mrb[52].mxu0 %v5465_v47  ;;  %3786 = vperm.xlu1 %5159, %v3751_v43   ;;  %v4766_v35 = vcombine.low %v346_v13, %v350_v56  ;;  %v3544_v3 = vsub.s32 0, %v7049_v55 }
 0x14e   :  { %3397 = vmatmul.mubr.bf16.gmra.mrb[52].mxu1 %v5465_v47  ;;  %3222 = vmatpush1.bf16.msra.mxu0 %v4726_v20  ;;  %v3755_v20 = vsel %vm3739_vm12, 1, %v5521_v8  ;;  %v3757_v47 = vsel %vm3741_vm14, 1, %v5521_v8 }
 0x14f   :  { %3448 = vmatpush1.bf16.msra.mxu1 %v4728_v22  ;;  %3223 = vmatprep.subr.bf16.mxu0 %v4735_v16  ;;  %v4767_v22 = vcombine.high %v346_v13, %v350_v56  ;;  %v4769_v16 = vcombine.high %v347_v15, %v351_v18 }
 0x150   :  { %3449 = vmatprep.subr.bf16.mxu1 %v4737_v26  ;;  %3180 = vmatprep.mubr.bf16.mxu0 %v5466_v34  ;;  %v5469_v26 = vld [vmem:[%s7904_s1 + $0xe0] ss:$16 sps:$4 sm:$0xff]  }
 0x151   :  { %3406 = vmatprep.mubr.bf16.mxu1 %v5466_v34  ;;  %3792 = vperm.xlu1 %5159, %v3753_v6   ;;  %v3548_v6 = vsub.s32 1, %v7049_v55 }
 0x152   :  { %3224 = vmatpush1.bf16.msra.mxu0 %v4734_v36  ;;  %3789 = vperm.xlu0 %5158, %v3752_v27   ;;  %v5471_v36 = vld [vmem:[%s7904_s1 + $0x8] ss:$16 sps:$4 sm:$0xff]   ;;  %v7077_v27 = vrot.slane %v7069_v61, %v3544_v3 }
 0x153   :  { %3450 = vmatpush1.bf16.msra.mxu1 %v4736_v41  ;;  %3225 = vmatprep.subr.bf16.mxu0 %v4743_v2  ;;  %v7087_v56 = vrot.slane %v7069_v61, %v3548_v6 }
 0x154   :  { %3451 = vmatprep.subr.bf16.mxu1 %v4745_v45 }
 0x155   :  { %3181 = vmatmul.mubr.bf16.gmra.mrb[56].mxu0 %v5467_v0  ;;  %3798 = vperm.xlu1 %5159, %v3755_v20  }
 0x156   :  { %3407 = vmatmul.mubr.bf16.gmra.mrb[56].mxu1 %v5467_v0  ;;  %3226 = vmatpush1.bf16.msra.mxu0 %v4742_v10 }
 0x157   :  { %3452 = vmatpush1.bf16.msra.mxu1 %v4744_v57  ;;  %3227 = vmatprep.subr.bf16.mxu0 %v4751_v23 }
 0x158   :  { %3453 = vmatprep.subr.bf16.mxu1 %v4753_v59  ;;  %3190 = vmatprep.mubr.bf16.mxu0 %v5468_v5 }
 0x159   :  { %3416 = vmatprep.mubr.bf16.mxu1 %v5468_v5  ;;  %3795 = vperm.xlu0 %5158, %v3754_v29  }
 0x15a   :  { %3228 = vmatpush1.bf16.msra.mxu0 %v4750_v28  ;;  %3804 = vperm.xlu1 %5159, %v3757_v47   ;;  %v3552_v28 = vsub.s32 2, %v7049_v55 }
 0x15b   :  { %3454 = vmatpush1.bf16.msra.mxu1 %v4752_v7  ;;  %3229 = vmatprep.subr.bf16.mxu0 %v4759_v9  ;;  %v3556_v7 = vsub.s32 3, %v7049_v55 }
 0x15c   :  { %3455 = vmatprep.subr.bf16.mxu1 %v4761_v12  ;;  %v7084_v13 = vrot.slane %v7069_v61, %v3552_v28 }
 0x15d   :  { %3191 = vmatmul.mubr.bf16.gmra.mrb[60].mxu0 %v5469_v26  ;;  %3801 = vperm.xlu0 %5158, %v3756_v33   ;;  %v7092_v18 = vrot.slane %v7069_v61, %v3556_v7 }
 0x15e   :  { %3417 = vmatmul.mubr.bf16.gmra.mrb[60].mxu1 %v5469_v26  ;;  %3230 = vmatpush1.bf16.msra.mxu0 %v4758_v19 }
 0x15f   :  { %3456 = vmatpush1.bf16.msra.mxu1 %v4760_v21  ;;  %3231 = vmatprep.subr.bf16.mxu0 %v4767_v22 }
 0x160   :  { %3457 = vmatprep.subr.bf16.mxu1 %v4769_v16  ;;  %3233 = vmatprep.mubr.bf16.mxu0 %v5470_v32 }
 0x161   :  { %3459 = vmatprep.mubr.bf16.mxu1 %v5470_v32 }
 0x162   :  { %3232 = vmatpush1.bf16.msra.mxu0 %v4766_v35 }
 0x163   :  { %3458 = vmatpush1.bf16.msra.mxu1 %v4768_v30 }
 0x165   :  { %3234 = vmatmul.mubr.bf16.vlgmr.msra.gmra.mrb[32].mxu0 %v5471_v36 }
 0x166   :  { %3460 = vmatmul.mubr.bf16.vlgmr.msra.gmra.mrb[32].mxu1 %v5471_v36  ;;  %3243 = vmatprep.mubr.bf16.mxu0 %v5472_v40 }
 0x167   :  { %3469 = vmatprep.mubr.bf16.mxu1 %v5472_v40 }
 0x16d   :  { %3244 = vmatmul.mubr.bf16.gmra.mrb[36].mxu0 %v6428_v39 }
 0x16e   :  { %3470 = vmatmul.mubr.bf16.gmra.mrb[36].mxu1 %v6428_v39  ;;  %3253 = vmatprep.mubr.bf16.mxu0 %v6439_v46 }
 0x16f   :  { %3479 = vmatprep.mubr.bf16.mxu1 %v6439_v46 }
 0x175   :  { %3254 = vmatmul.mubr.bf16.gmra.mrb[40].mxu0 %v6466_v58 }
 0x176   :  { %3480 = vmatmul.mubr.bf16.gmra.mrb[40].mxu1 %v6466_v58  ;;  %3263 = vmatprep.mubr.bf16.mxu0 %v6477_v4 }
 0x177   :  { %3489 = vmatprep.mubr.bf16.mxu1 %v6477_v4 }
 0x17d   :  { %3264 = vmatmul.mubr.bf16.gmra.mrb[44].mxu0 %v6504_v17 }
 0x17e   :  { %3490 = vmatmul.mubr.bf16.gmra.mrb[44].mxu1 %v6504_v17  ;;  %3273 = vmatprep.mubr.bf16.mxu0 %v6515_v25 }
 0x17f   :  { %3499 = vmatprep.mubr.bf16.mxu1 %v6515_v25 }
 0x185   :  { %3274 = vmatmul.mubr.bf16.gmra.mrb[48].mxu0 %v6542_v42 }
 0x186   :  { %3500 = vmatmul.mubr.bf16.gmra.mrb[48].mxu1 %v6542_v42  ;;  %3283 = vmatprep.mubr.bf16.mxu0 %v6553_v51 }
 0x187   :  { %3509 = vmatprep.mubr.bf16.mxu1 %v6553_v51 }
 0x18d   :  { %3284 = vmatmul.mubr.bf16.gmra.mrb[52].mxu0 %v6580_v1 }
 0x18e   :  { %3510 = vmatmul.mubr.bf16.gmra.mrb[52].mxu1 %v6580_v1  ;;  %3293 = vmatprep.mubr.bf16.mxu0 %v6591_v11 }
 0x18f   :  { %3519 = vmatprep.mubr.bf16.mxu1 %v6591_v11 }
 0x195   :  { %3294 = vmatmul.mubr.bf16.gmra.mrb[56].mxu0 %v6618_v31 }
 0x196   :  { %3520 = vmatmul.mubr.bf16.gmra.mrb[56].mxu1 %v6618_v31  ;;  %3303 = vmatprep.mubr.bf16.mxu0 %v6629_v37 }
 0x197   :  { %3529 = vmatprep.mubr.bf16.mxu1 %v6629_v37 }
 0x19d   :  { %3304 = vmatmul.mubr.bf16.gmra.mrb[60].mxu0 %v6656_v54 }
 0x19e   :  { %3530 = vmatmul.mubr.bf16.gmra.mrb[60].mxu1 %v6656_v54 }
 0x1b8   :  { %v6999_v8 = vpop.f32.mrb[0].mxu0 }
 0x1b9   :  { %v7001_v39 = vpop.f32.mrb[0].mxu1  ;;  %v7003_v46 = vpop.f32.mrb[1].mxu0 }
 0x1ba   :  { %v7005_v58 = vpop.f32.mrb[1].mxu1  ;;  %v7007_v4 = vpop.f32.mrb[2].mxu0 }
 0x1bb   :  { %v7009_v17 = vpop.f32.mrb[2].mxu1  ;;  %v7011_v25 = vpop.f32.mrb[3].mxu0 }
 0x1bc   :  { %v7013_v42 = vpop.f32.mrb[3].mxu1 }
 0x1c0   :  { %v7015_v51 = vpop.f32.mrb[4].mxu0 }
 0x1c1   :  { %v7017_v1 = vpop.f32.mrb[4].mxu1  ;;  %v7019_v11 = vpop.f32.mrb[5].mxu0 }
 0x1c2   :  { %v7021_v31 = vpop.f32.mrb[5].mxu1  ;;  %v7023_v37 = vpop.f32.mrb[6].mxu0 }
 0x1c3   :  { %v7025_v54 = vpop.f32.mrb[6].mxu1  ;;  %v7027_v41 = vpop.f32.mrb[7].mxu0 }
 0x1c4   :  { %v7029_v2 = vpop.f32.mrb[7].mxu1 }
 0x1c8   :  { %v7031_v43 = vpop.f32.mrb[8].mxu0 }
 0x1c9   :  { %v7033_v34 = vpop.f32.mrb[8].mxu1  ;;  %v7035_v45 = vpop.f32.mrb[9].mxu0 }
 0x1ca   :  { %v7037_v48 = vpop.f32.mrb[9].mxu1  ;;  %v7039_v49 = vpop.f32.mrb[10].mxu0 }
 0x1cb   :  { %v7041_v50 = vpop.f32.mrb[10].mxu1  ;;  %v7043_v38 = vpop.f32.mrb[11].mxu0 }
 0x1cc   :  { %v7045_v53 = vpop.f32.mrb[11].mxu1 }
 0x1d0   :  { %v7047_v10 = vpop.f32.mrb[12].mxu0 }
 0x1d1   :  { %v7051_v57 = vpop.f32.mrb[12].mxu1  ;;  %v7053_v23 = vpop.f32.mrb[13].mxu0 }
 0x1d2   :  { %v7055_v59 = vpop.f32.mrb[13].mxu1  ;;  %v7057_v44 = vpop.f32.mrb[14].mxu0 }
 0x1d3   :  { %v7059_v60 = vpop.f32.mrb[14].mxu1  ;;  %v7061_v62 = vpop.f32.mrb[15].mxu0 }
 0x1d4   :  { %v7063_v0 = vpop.f32.mrb[15].mxu1 }
 0x1d8   :  { %v7074_v9 = vpop.f32.mrb[16].mxu0 }
 0x1d9   :  { %v7079_v5 = vpop.f32.mrb[16].mxu1  ;;  %v7081_v12 = vpop.f32.mrb[17].mxu0 }
 0x1da   :  { %v7089_v14 = vpop.f32.mrb[17].mxu1  ;;  %v2827_v15 = vpop.f32.mrb[18].mxu0 }
 0x1db   :  { %v7095_v63 = vadd.f32 %v7077_v27, %v2827_v15  ;;  %v3053_v19 = vpop.f32.mrb[18].mxu1  ;;  %v2829_v20 = vpop.f32.mrb[19].mxu0 }
 0x1dc   :  { %v7098_v21 = vadd.f32 %v7084_v13, %v3053_v19  ;;  %v7101_v22 = vadd.f32 %v7087_v56, %v2829_v20  ;;  %v3055_v16 = vpop.f32.mrb[19].mxu1 }
 0x1dd   :  { %7913 = vst [vmem:[#allocation8_spill] sm:$0xff] %v7095_v63  ;;  %v7104_v24 = vadd.f32 %v7092_v18, %v3055_v16  ;;  %v7304_v63 = vadd.f32 %v7084_v13, %v7051_v57 }
 0x1de   :  { %7914 = vst [vmem:[#allocation9_spill] sm:$0xff] %v7098_v21  ;;  %7915 = vst [vmem:[#allocation10_spill] sm:$0xff] %v7101_v22 }
 0x1df   :  { %7916 = vst [vmem:[#allocation11_spill] sm:$0xff] %v7104_v24 }
 0x1e0   :  { %v2833_v26 = vpop.f32.mrb[20].mxu0 }
 0x1e1   :  { %v7107_v35 = vadd.f32 %v7077_v27, %v2833_v26  ;;  %v3059_v29 = vpop.f32.mrb[20].mxu1  ;;  %v2835_v30 = vpop.f32.mrb[21].mxu0 }
 0x1e2   :  { %v7110_v47 = vadd.f32 %v7084_v13, %v3059_v29  ;;  %v7113_v32 = vadd.f32 %v7087_v56, %v2835_v30  ;;  %v3061_v33 = vpop.f32.mrb[21].mxu1  ;;  %v2837_v36 = vpop.f32.mrb[22].mxu0 }
 0x1e3   :  { %7917 = vst [vmem:[#allocation12_spill] sm:$0xff] %v7107_v35  ;;  %v7116_v40 = vadd.f32 %v7092_v18, %v3061_v33  ;;  %v7119_v52 = vadd.f32 %v7077_v27, %v2837_v36  ;;  %v3063_v3 = vpop.f32.mrb[22].mxu1  ;;  %v2839_v28 = vpop.f32.mrb[23].mxu0 }
 0x1e4   :  { %7918 = vst [vmem:[#allocation13_spill] sm:$0xff] %v7110_v47  ;;  %7919 = vst [vmem:[#allocation14_spill] sm:$0xff] %v7113_v32  ;;  %v7122_v6 = vadd.f32 %v7084_v13, %v3063_v3  ;;  %v7125_v7 = vadd.f32 %v7087_v56, %v2839_v28  ;;  %v3065_v15 = vpop.f32.mrb[23].mxu1 }
 0x1e5   :  { %7920 = vst [vmem:[#allocation15_spill] sm:$0xff] %v7116_v40  ;;  %7921 = vst [vmem:[#allocation16_spill] sm:$0xff] %v7119_v52  ;;  %v7128_v19 = vadd.f32 %v7092_v18, %v3065_v15  ;;  %v7280_v52 = vadd.f32 %v7087_v56, %v7043_v38 }
 0x1e6   :  { %7922 = vst [vmem:[#allocation17_spill] sm:$0xff] %v7122_v6  ;;  %7923 = vst [vmem:[#allocation18_spill] sm:$0xff] %v7125_v7  ;;  %v3585_v6 = vadd.f32 %v7092_v18, %v7005_v58  ;;  %v7228_v58 = vadd.f32 %v7087_v56, %v7019_v11  ;;  %v7256_v11 = vadd.f32 %v7084_v13, %v7033_v34 }
 0x1e7   :  { %7924 = vst [vmem:[#allocation19_spill] sm:$0xff] %v7128_v19 }
 0x1e8   :  { %v2843_v20 = vpop.f32.mrb[24].mxu0 }
 0x1e9   :  { %v7131_v16 = vadd.f32 %v7077_v27, %v2843_v20  ;;  %v3069_v26 = vpop.f32.mrb[24].mxu1  ;;  %v2845_v29 = vpop.f32.mrb[25].mxu0 }
 0x1ea   :  { %v7134_v30 = vadd.f32 %v7084_v13, %v3069_v26  ;;  %v7137_v33 = vadd.f32 %v7087_v56, %v2845_v29  ;;  %v3071_v36 = vpop.f32.mrb[25].mxu1  ;;  %v2847_v3 = vpop.f32.mrb[26].mxu0 }
 0x1eb   :  { %7925 = vst [vmem:[#allocation20_spill] sm:$0xff] %v7131_v16  ;;  %v7140_v28 = vadd.f32 %v7092_v18, %v3071_v36  ;;  %v7143_v15 = vadd.f32 %v7077_v27, %v2847_v3  ;;  %v3073_v19 = vpop.f32.mrb[26].mxu1  ;;  %v2849_v7 = vpop.f32.mrb[27].mxu0 }
 0x1ec   :  { %7926 = vst [vmem:[#allocation21_spill] sm:$0xff] %v7134_v30  ;;  %7927 = vst [vmem:[#allocation22_spill] sm:$0xff] %v7137_v33  ;;  %v7146_v20 = vadd.f32 %v7084_v13, %v3073_v19  ;;  %v7149_v16 = vadd.f32 %v7087_v56, %v2849_v7  ;;  %v3075_v26 = vpop.f32.mrb[27].mxu1 }
 0x1ed   :  { %7928 = vst [vmem:[#allocation23_spill] sm:$0xff] %v7140_v28  ;;  %7929 = vst [vmem:[#allocation24_spill] sm:$0xff] %v7143_v15  ;;  %v7152_v29 = vadd.f32 %v7092_v18, %v3075_v26 }
 0x1ee   :  { %7930 = vst [vmem:[#allocation25_spill] sm:$0xff] %v7146_v20  ;;  %7931 = vst [vmem:[#allocation26_spill] sm:$0xff] %v7149_v16 }
 0x1ef   :  { %7932 = vst [vmem:[#allocation27_spill] sm:$0xff] %v7152_v29 }
 0x1f0   :  { %v2853_v33 = vpop.f32.mrb[28].mxu0 }
 0x1f1   :  { %v7155_v30 = vadd.f32 %v7077_v27, %v2853_v33  ;;  %v3079_v36 = vpop.f32.mrb[28].mxu1  ;;  %v2855_v28 = vpop.f32.mrb[29].mxu0 }
 0x1f2   :  { %v7158_v3 = vadd.f32 %v7084_v13, %v3079_v36  ;;  %v7161_v15 = vadd.f32 %v7087_v56, %v2855_v28  ;;  %v3081_v19 = vpop.f32.mrb[29].mxu1  ;;  %v2857_v20 = vpop.f32.mrb[30].mxu0 }
 0x1f3   :  { %7933 = vst [vmem:[#allocation28_spill] sm:$0xff] %v7155_v30  ;;  %v7164_v7 = vadd.f32 %v7092_v18, %v3081_v19  ;;  %v7167_v26 = vadd.f32 %v7077_v27, %v2857_v20  ;;  %v3083_v29 = vpop.f32.mrb[30].mxu1  ;;  %v2859_v16 = vpop.f32.mrb[31].mxu0  ;;  %v3560_v19 = vsub.s32 4, %v7049_v55  ;;  %v3564_v20 = vsub.s32 5, %v7049_v55 }
 0x1f4   :  { %7934 = vst [vmem:[#allocation29_spill] sm:$0xff] %v7158_v3  ;;  %7935 = vst [vmem:[#allocation30_spill] sm:$0xff] %v7161_v15  ;;  %v7170_v33 = vadd.f32 %v7084_v13, %v3083_v29  ;;  %v7173_v30 = vadd.f32 %v7087_v56, %v2859_v16  ;;  %v3085_v36 = vpop.f32.mrb[31].mxu1  ;;  %v7178_v15 = vpop.permute.xlu0 %3759  ;;  %v3583_v3 = vadd.f32 %v7087_v56, %v7003_v46 }
 0x1f5   :  { %7936 = vst [vmem:[#allocation31_spill] sm:$0xff] %v7164_v7  ;;  %7937 = vst [vmem:[#allocation32_spill] sm:$0xff] %v7167_v26  ;;  %v7176_v28 = vadd.f32 %v7092_v18, %v3085_v36  ;;  %v3568_v7 = vsub.s32 6, %v7049_v55  ;;  %v3572_v26 = vsub.s32 7, %v7049_v55  ;;  %vm3806_vm0 = vcmp.eq.s32.totalorder %v7178_v15, 1 }
 0x1f6   :  { %7938 = vst [vmem:[#allocation33_spill] sm:$0xff] %v7170_v33  ;;  %7939 = vst [vmem:[#allocation34_spill] sm:$0xff] %v7173_v30  ;;  %v7186_v29 = vrot.slane %v7069_v61, %v3560_v19  ;;  %v7190_v30 = vpop.permute.xlu1 %3765  ;;  %v3582_v36 = vadd.f32 %v7077_v27, %v6999_v8  ;;  %v7198_v33 = vrot.slane %v7069_v61, %v3564_v20 }
 0x1f7   :  { %7940 = vst [vmem:[#allocation35_spill] sm:$0xff] %v7176_v28  ;;  %v7195_v28 = vrot.slane %v7069_v61, %v3568_v7  ;;  %v7201_v55 = vrot.slane %v7069_v61, %v3572_v26  ;;  %v3584_v19 = vadd.f32 %v7084_v13, %v7001_v39  ;;  %v3590_v8 = vadd.f32 %v7077_v27, %v7007_v4 }
 0x1f8   :  { %v7188_v16 = vpop.permute.xlu0 %3762  ;;  %v3592_v7 = vadd.f32 %v7084_v13, %v7009_v17  ;;  %v3591_v20 = vadd.f32 %v7087_v56, %v7011_v25  ;;  %v3593_v61 = vadd.f32 %v7092_v18, %v7013_v42  ;;  %v7220_v39 = vadd.f32 %v7077_v27, %v7015_v51 }
 0x1f9   :  { %vm3807_vm1 = vcmp.eq.s32.totalorder %v7188_v16, 1  ;;  %v7224_v46 = vadd.f32 %v7084_v13, %v7017_v1  ;;  %v7232_v4 = vadd.f32 %v7092_v18, %v7021_v31  ;;  %v7236_v17 = vadd.f32 %v7077_v27, %v7023_v37 }
 0x1fa   :  { %v7240_v25 = vadd.f32 %v7084_v13, %v7025_v54  ;;  %v7244_v42 = vadd.f32 %v7087_v56, %v7027_v41  ;;  %v7248_v51 = vadd.f32 %v7092_v18, %v7029_v2  ;;  %v7252_v1 = vadd.f32 %v7077_v27, %v7031_v43  ;;  %v7263_v54 = vpop.permute.xlu1 %3768 }
 0x1fb   :  { %v7260_v31 = vadd.f32 %v7087_v56, %v7035_v45  ;;  %vm3808_vm2 = vcmp.eq.s32.totalorder %v7190_v30, 1  ;;  %v7267_v41 = vadd.f32 %v7092_v18, %v7037_v48  ;;  %v7271_v2 = vadd.f32 %v7077_v27, %v7039_v49 }
 0x1fc   :  { %v7275_v43 = vadd.f32 %v7084_v13, %v7041_v50  ;;  %v7284_v48 = vadd.f32 %v7092_v18, %v7045_v53  ;;  %vm3809_vm3 = vcmp.eq.s32.totalorder %v7263_v54, 1  ;;  %v7291_v50 = vadd.f32 %v7077_v27, %v7047_v10 }
 0x1fd   :  { %v7324_v15 = vadd.f32 %v7077_v27, %v7057_v44 }
 0x238   :  { %v3235_v37 = vpop.f32.mrb[32].mxu0 }
 0x239   :  { %v3586_v34 = vadd.f32 %v7186_v29, %v3235_v37  ;;  %v3461_v45 = vpop.f32.mrb[32].mxu1  ;;  %v3237_v26 = vpop.f32.mrb[33].mxu0 }
 0x23a   :  { %v3588_v40 = vadd.f32 %v7195_v28, %v3461_v45  ;;  %v3587_v49 = vadd.f32 %v7198_v33, %v3237_v26  ;;  %v3463_v32 = vpop.f32.mrb[33].mxu1  ;;  %v3239_v47 = vpop.f32.mrb[34].mxu0 }
 0x23b   :  { %v3822_v38 = vsel %vm3806_vm0, %v3582_v36, %v3586_v34  ;;  %v3589_v37 = vadd.f32 %v7201_v55, %v3463_v32  ;;  %v3594_v53 = vadd.f32 %v7186_v29, %v3239_v47  ;;  %v3465_v35 = vpop.f32.mrb[34].mxu1  ;;  %v3241_v24 = vpop.f32.mrb[35].mxu0 }
 0x23c   :  { %v4770_v45 = vmul.f32 -1.442695, %v3822_v38  ;;  %v3824_v26 = vsel %vm3806_vm0, %v3584_v19, %v3588_v40  ;;  %v3823_v22 = vsel %vm3806_vm0, %v3583_v3, %v3587_v49  ;;  %v3596_v21 = vadd.f32 %v7195_v28, %v3465_v35  ;;  %v3467_v10 = vpop.f32.mrb[35].mxu1 }
 0x23d   :  { %v4786_v36 = vmul.f32 -1.442695, %v3823_v22  ;;  %v3825_v47 = vsel %vm3806_vm0, %v3585_v6, %v3589_v37  ;;  %v3826_v32 = vsel %vm3807_vm1, %v3590_v8, %v3594_v53  ;;  %v7314_v35 = vadd.f32 %v7087_v56, %v7053_v23 }
 0x23e   :  { %5208 = vpow2.f32 %v4770_v45  ;;  %v4802_v34 = vmul.f32 -1.442695, %v3825_v47  ;;  %v3828_v40 = vsel %vm3807_vm1, %v3592_v7, %v3596_v21  ;;  %v4771_v3 = vmul.f32 -1.442695, %v3826_v32 }
 0x23f   :  { %5210 = vpow2.f32 %v4786_v36  ;;  %v3595_v57 = vadd.f32 %v7198_v33, %v3241_v24  ;;  %v3597_v22 = vadd.f32 %v7201_v55, %v3467_v10  ;;  %v7320_v6 = vadd.f32 %v7092_v18, %v7055_v59 }
 0x240   :  { %v7328_v21 = vadd.f32 %v7084_v13, %v7059_v60  ;;  %5212 = vpow2.f32 %v4802_v34  ;;  %v3245_v23 = vpop.f32.mrb[36].mxu0 }
 0x241   :  { %5214 = vpow2.f32 %v4771_v3  ;;  %v3827_v24 = vsel %vm3807_vm1, %v3591_v20, %v3595_v57  ;;  %v3829_v19 = vsel %vm3807_vm1, %v3593_v61, %v3597_v22  ;;  %v3602_v59 = vadd.f32 %v7186_v29, %v3245_v23  ;;  %v3471_v8 = vpop.f32.mrb[36].mxu1  ;;  %v3247_v7 = vpop.f32.mrb[37].mxu0 }
 0x242   :  { %5216 = vtanh.f32 %v3824_v26  ;;  %v4787_v44 = vmul.f32 -1.442695, %v3827_v24  ;;  %v4803_v49 = vmul.f32 -1.442695, %v3829_v19  ;;  %v3604_v38 = vadd.f32 %v7195_v28, %v3471_v8  ;;  %v3473_v60 = vpop.f32.mrb[37].mxu1  ;;  %v3249_v37 = vpop.f32.mrb[38].mxu0 }
 0x243   :  { %v3830_v53 = vsel %vm3808_vm2, %v7220_v39, %v3602_v59  ;;  %v3603_v20 = vadd.f32 %v7198_v33, %v3247_v7  ;;  %v3605_v16 = vadd.f32 %v7201_v55, %v3473_v60  ;;  %v3610_v61 = vadd.f32 %v7186_v29, %v3249_v37  ;;  %v3475_v45 = vpop.f32.mrb[38].mxu1  ;;  %v3251_v10 = vpop.f32.mrb[39].mxu0 }
 0x244   :  { %5218 = vpow2.f32 %v4787_v44  ;;  %v4772_v26 = vmul.f32 -1.442695, %v3830_v53  ;;  %v3832_v36 = vsel %vm3808_vm2, %v7224_v46, %v3604_v38  ;;  %v3612_v47 = vadd.f32 %v7195_v28, %v3475_v45  ;;  %v3477_v32 = vpop.f32.mrb[39].mxu1 }
 0x245   :  { %5220 = vtanh.f32 %v3828_v40  ;;  %v3831_v39 = vsel %vm3808_vm2, %v7228_v58, %v3603_v20  ;;  %v3833_v34 = vsel %vm3808_vm2, %v7232_v4, %v3605_v16  ;;  %v3834_v3 = vsel %vm3809_vm3, %v7236_v17, %v3610_v61  ;;  %v7366_v40 = vpop.permute.xlu1 %3774  ;;  %v3772_v17 = vpop.permute.xlu0 %3771 }
 0x246   :  { %v7357_v57 = vadd.f32 %v7087_v56, %v7061_v62  ;;  %5222 = vpow2.f32 %v4772_v26  ;;  %v4788_v46 = vmul.f32 -1.442695, %v3831_v39  ;;  %v4773_v22 = vmul.f32 -1.442695, %v3834_v3 }
 0x247   :  { %5224 = vpow2.f32 %v4803_v49  ;;  %v7362_v58 = vsel %vm3809_vm3, %v7240_v25, %v3612_v47  ;;  %v3611_v30 = vadd.f32 %v7198_v33, %v3251_v10  ;;  %v3613_v4 = vadd.f32 %v7201_v55, %v3477_v32 }
 0x248   :  { %v5209_v23 = vpop.eup %5208  ;;  %v7370_v62 = vadd.f32 %v7092_v18, %v7063_v0  ;;  %5226 = vpow2.f32 %v4788_v46  ;;  %vm3811_vm4 = vcmp.eq.s32.totalorder %v7366_v40, 1  ;;  %vm3810_vm5 = vcmp.eq.s32.totalorder %v3772_v17, 1  ;;  %v3255_v24 = vpop.f32.mrb[40].mxu0 }
 0x249   :  { %v5211_v19 = vpop.eup %5210  ;;  %v3934_v25 = vadd.f32 1.0, %v5209_v23  ;;  %v4804_v59 = vmul.f32 -1.442695, %v3833_v34  ;;  %v3835_v8 = vsel %vm3809_vm3, %v7244_v42, %v3611_v30  ;;  %v3837_v7 = vsel %vm3809_vm3, %v7248_v51, %v3613_v4  ;;  %v3481_v44 = vpop.f32.mrb[40].mxu1 }
 0x24a   :  { %v3257_v49 = vpop.f32.mrb[41].mxu0  ;;  %v5213_v0 = vpop.eup %5212  ;;  %v7381_v38 = vadd.f32 %v7077_v27, %v7074_v9  ;;  %v7385_v60 = vadd.f32 %v7084_v13, %v7079_v5  ;;  %v4030_v37 = vadd.f32 1.0, %v5211_v19  ;;  %5228 = vpow2.f32 %v4773_v22 }
 0x24b   :  { %v3483_v53 = vpop.f32.mrb[41].mxu1  ;;  %v5215_v20 = vpop.eup %5214  ;;  %5230 = vrcp.f32 %v3934_v25  ;;  %v4789_v42 = vmul.f32 -1.442695, %v3835_v8  ;;  %v3618_v54 = vadd.f32 %v7186_v29, %v3255_v24  ;;  %v3620_v51 = vadd.f32 %v7195_v28, %v3481_v44 }
 0x24c   :  { %v3259_v16 = vpop.f32.mrb[42].mxu0  ;;  %v3485_v61 = vpop.f32.mrb[42].mxu1  ;;  %5232 = vrcp.f32 %v4030_v37  ;;  %v3935_v9 = vadd.f32 1.0, %v5215_v20  ;;  %v3619_v27 = vadd.f32 %v7198_v33, %v3257_v49  ;;  %v3621_v5 = vadd.f32 %v7201_v55, %v3483_v53 }
 0x24d   :  { %v5217_v45 = vpop.eup %5216  ;;  %v3261_v13 = vpop.f32.mrb[43].mxu0  ;;  %5234 = vpow2.f32 %v4804_v59  ;;  %v3838_v26 = vsel %vm3810_vm5, %v7252_v1, %v3618_v54  ;;  %v7395_v47 = vsel %vm3810_vm5, %v7256_v11, %v3620_v51  ;;  %v3626_v32 = vadd.f32 %v7186_v29, %v3259_v16 }
 0x24e   :  { %v3487_v10 = vpop.f32.mrb[43].mxu1  ;;  %v5219_v39 = vpop.eup %5218  ;;  %v4142_v34 = vadd.f32 1.0, %v5213_v0  ;;  %5236 = vrcp.f32 %v3935_v9  ;;  %v3839_v46 = vsel %vm3810_vm5, %v7260_v31, %v3619_v27  ;;  %v3841_v22 = vsel %vm3810_vm5, %v7267_v41, %v3621_v5 }
 0x24f   :  { %v7398_v3 = vpop.permute.xlu0 %3777  ;;  %v7404_v30 = vpop.eup %5220  ;;  %v7408_v1 = vadd.f32 %v7087_v56, %v7081_v12  ;;  %v4031_v11 = vadd.f32 1.0, %v5219_v39  ;;  %5238 = vtanh.f32 %v3832_v36  ;;  %v3842_v31 = vsel %vm3811_vm4, %v7271_v2, %v3626_v32 }
 0x250   :  { %v7410_v4 = vpop.permute.xlu1 %3780  ;;  %vm3812_vm6 = vcmp.eq.s32.totalorder %v7398_v3, 1  ;;  %v5223_v23 = vpop.eup %5222  ;;  %5240 = vpow2.f32 %v4789_v42  ;;  %v3628_v41 = vadd.f32 %v7195_v28, %v3485_v61  ;;  %v4805_v56 = vmul.f32 -1.442695, %v3837_v7 }
 0x251   :  { %vm3813_vm7 = vcmp.eq.s32.totalorder %v7410_v4, 1  ;;  %v3265_v17 = vpop.f32.mrb[44].mxu0  ;;  %v5225_v24 = vpop.eup %5224  ;;  %5242 = vrcp.f32 %v4031_v11  ;;  %v3936_v12 = vadd.f32 1.0, %v5223_v23  ;;  %v3627_v36 = vadd.f32 %v7198_v33, %v3261_v13 }
 0x252   :  { %v3491_v19 = vpop.f32.mrb[44].mxu1  ;;  %v3267_v25 = vpop.f32.mrb[45].mxu0  ;;  %5244 = vrcp.f32 %v4142_v34  ;;  %v7422_v8 = vsel %vm3811_vm4, %v7275_v43, %v3628_v41  ;;  %v3629_v2 = vadd.f32 %v7201_v55, %v3487_v10  ;;  %v3634_v44 = vadd.f32 %v7186_v29, %v3265_v17  ;;  %v80_v43 = vld [vmem:[%s7906_s3] sm:$0xff] }
 0x253   :  { %v5227_v59 = vpop.eup %5226  ;;  %v3493_v49 = vpop.f32.mrb[45].mxu1  ;;  %5246 = vrcp.f32 %v3936_v12  ;;  %v7429_v7 = vsel %vm3811_vm4, %v7280_v52, %v3627_v36  ;;  %v3636_v53 = vadd.f32 %v7195_v28, %v3491_v19  ;;  %v4774_v51 = vmul.f32 -1.442695, %v3838_v26 }
 0x254   :  { %v3269_v0 = vpop.f32.mrb[46].mxu0  ;;  %v4032_v37 = vadd.f32 1.0, %v5227_v59  ;;  %v3495_v20 = vpop.f32.mrb[46].mxu1  ;;  %5248 = vtanh.f32 %v7362_v58  ;;  %v4790_v16 = vmul.f32 -1.442695, %v3839_v46  ;;  %v7439_v61 = vsel %vm3811_vm4, %v7284_v48, %v3629_v2 }
 0x255   :  { %v3271_v42 = vpop.f32.mrb[47].mxu0  ;;  %v5229_v54 = vpop.eup %5228  ;;  %v4143_v27 = vadd.f32 1.0, %v5225_v24  ;;  %v7444_v13 = vsel %vm3812_vm6, %v7291_v50, %v3634_v44  ;;  %v4806_v58 = vmul.f32 -1.442695, %v3841_v22  ;;  %v7449_v40 = vsel %vm3812_vm6, %v7304_v63, %v3636_v53  ;;  %v81_v24 = vld [vmem:[%s7906_s3 + $0x8] sm:$0xff] }
 0x256   :  { %v3497_v52 = vpop.f32.mrb[47].mxu1  ;;  %v5231_v9 = vpop.eup %5230  ;;  %5250 = vrcp.f32 %v4032_v37  ;;  %v3937_v5 = vadd.f32 1.0, %v5229_v54  ;;  %v3635_v39 = vadd.f32 %v7198_v33, %v3267_v25  ;;  %v3637_v34 = vadd.f32 %v7201_v55, %v3493_v49  ;;  %v82_v54 = vld [vmem:[%s7906_s3 + $0x10] sm:$0xff] }
 0x257   :  { %v5233_v10 = vpop.eup %5232  ;;  %v4206_v32 = vmul.f32 %v5231_v9, %v5217_v45  ;;  %5252 = vpow2.f32 %v4805_v56  ;;  %v7453_v50 = vpop.permute.xlu0 %3783  ;;  %v3642_v45 = vadd.f32 %v7186_v29, %v3269_v0  ;;  %v3644_v22 = vadd.f32 %v7195_v28, %v3495_v20 }
 0x258   :  { %v5235_v48 = vpop.eup %5234  ;;  %v4190_v26 = vmul.f32 %v5233_v10, %v80_v43  ;;  %5254 = vrcp.f32 %v3937_v5  ;;  %v3643_v11 = vadd.f32 %v7198_v33, %v3271_v42  ;;  %v3275_v23 = vpop.f32.mrb[48].mxu0  ;;  %v7465_v12 = vsel %vm3812_vm6, %v7314_v35, %v3635_v39 }
 0x259   :  { %v5237_v46 = vpop.eup %5236  ;;  %5256 = vpow2.f32 %v4774_v51  ;;  %v3501_v56 = vpop.f32.mrb[48].mxu1  ;;  %v4775_v25 = vmul.f32 -1.442695, %v3842_v31  ;;  %v7470_v59 = vsel %vm3812_vm6, %v7320_v6, %v3637_v34  ;;  %v4144_v35 = vadd.f32 1.0, %v5235_v48 }
 0x25a   :  { %v5239_v63 = vpop.eup %5238  ;;  %v4222_v41 = vadd.f32 %v4206_v32, %v4190_v26  ;;  %v4207_v17 = vmul.f32 %v5237_v46, %v7404_v30  ;;  %5258 = vrcp.f32 %v4143_v27  ;;  %v3277_v36 = vpop.f32.mrb[49].mxu0  ;;  %v7475_v30 = vsel %vm3813_vm7, %v7324_v15, %v3642_v45 }
 0x25b   :  { %v5241_v19 = vpop.eup %5240  ;;  %5260 = vpow2.f32 %v4790_v16  ;;  %v3503_v2 = vpop.f32.mrb[49].mxu1  ;;  %vm3814_vm8 = vcmp.eq.s32.totalorder %v7453_v50, 1  ;;  %v7485_v15 = vsel %vm3813_vm7, %v7328_v21, %v3644_v22  ;;  %v7490_v3 = vsel %vm3813_vm7, %v7357_v57, %v3643_v11  ;;  %v83_v50 = vld [vmem:[%s7906_s3 + $0x18] sm:$0xff] }
 0x25c   :  { %v3279_v44 = vpop.f32.mrb[50].mxu0  ;;  %v5243_v49 = vpop.eup %5242  ;;  %5262 = vtanh.f32 %v4222_v41  ;;  %4286 = vst [vmem:[#allocation4] sm:$0xff] %v4222_v41  ;;  %v4033_v0 = vadd.f32 1.0, %v5241_v19  ;;  %v4791_v43 = vmul.f32 -1.442695, %v7429_v7  ;;  %v3645_v21 = vadd.f32 %v7201_v55, %v3497_v52 }
 0x25d   :  { %v7478_v31 = vpop.f32.mrb[50].mxu1  ;;  %v7480_v37 = vpop.eup %5244  ;;  %v4191_v6 = vmul.f32 %v5243_v49, %v81_v24  ;;  %5264 = vpow2.f32 %v4806_v58  ;;  %v3650_v51 = vadd.f32 %v7186_v29, %v3275_v23  ;;  %v3652_v27 = vadd.f32 %v7195_v28, %v3501_v56 }
 0x25e   :  { %v7492_v53 = vpop.f32.mrb[51].mxu0  ;;  %v7494_v20 = vpop.f32.mrb[51].mxu1  ;;  %5266 = vrcp.f32 %v4033_v0  ;;  %v3649_v10 = vadd.f32 %v7092_v18, %v7089_v14  ;;  %v7508_v7 = vsel %vm3813_vm7, %v7370_v62, %v3645_v21  ;;  %v4776_v26 = vmul.f32 -1.442695, %v7444_v13  ;;  %v7942_v21 = vld [vmem:[#allocation9_spill] sm:$0xff] }
 0x25f   :  { %v5247_v42 = vpop.eup %5246  ;;  %v4223_v9 = vadd.f32 %v4207_v17, %v4191_v6  ;;  %5268 = vpow2.f32 %v4775_v25  ;;  %v3787_v32 = vpop.permute.xlu1 %3786  ;;  %v7513_v52 = vsel %vm3814_vm8, %v7381_v38, %v3650_v51  ;;  %v7520_v62 = vsel %vm3814_vm8, %v7385_v60, %v3652_v27 }
 0x260   :  { %v5249_v16 = vpop.eup %5248  ;;  %v4208_v57 = vmul.f32 %v5247_v42, %v5239_v63  ;;  %5270 = vrcp.f32 %v4144_v35  ;;  %vm3815_vm9 = vcmp.eq.s32.totalorder %v3787_v32, 1  ;;  %v3285_v14 = vpop.f32.mrb[52].mxu0  ;;  %v3651_v4 = vadd.f32 %v7198_v33, %v3277_v36 }
 0x261   :  { %v5251_v5 = vpop.eup %5250  ;;  %5272 = vtanh.f32 %v4223_v9  ;;  %4287 = vst [vmem:[#allocation4 + $0x8] sm:$0xff] %v4223_v9  ;;  %v3653_v38 = vadd.f32 %v7201_v55, %v3503_v2  ;;  %v3511_v39 = vpop.f32.mrb[52].mxu1  ;;  %v3658_v13 = vadd.f32 %v7186_v29, %v3279_v44  ;;  %v4807_v19 = vmul.f32 -1.442695, %v7439_v61 }
 0x262   :  { %v5253_v58 = vpop.eup %5252  ;;  %v4192_v48 = vmul.f32 %v5251_v5, %v82_v54  ;;  %5274 = vtanh.f32 %v7395_v47  ;;  %v7524_v34 = vpop.f32.mrb[53].mxu0  ;;  %v7535_v63 = vsel %vm3814_vm8, %v7408_v1, %v3651_v4  ;;  %v4792_v49 = vmul.f32 -1.442695, %v7465_v12  ;;  %v7945_v4 = vld [vmem:[#allocation12_spill] sm:$0xff] }
 0x263   :  { %v5255_v18 = vpop.eup %5254  ;;  %5276 = vpow2.f32 %v4791_v43  ;;  %v7527_v11 = vpop.f32.mrb[53].mxu1  ;;  %v7539_v41 = vsel %vm3814_vm8, %v3649_v10, %v3653_v38  ;;  %v4145_v36 = vadd.f32 1.0, %v5253_v58  ;;  %v3660_v35 = vadd.f32 %v7195_v28, %v7478_v31 }
 0x264   :  { %v5257_v46 = vpop.eup %5256  ;;  %v4224_v45 = vadd.f32 %v4208_v57, %v4192_v48  ;;  %v4209_v22 = vmul.f32 %v5255_v18, %v5249_v16  ;;  %v7529_v47 = vpop.f32.mrb[54].mxu0  ;;  %5278 = vtanh.f32 %v7422_v8  ;;  %v7941_v8 = vld [vmem:[#allocation8_spill] sm:$0xff]  ;;  %v3659_v42 = vadd.f32 %v7198_v33, %v7492_v53  ;;  %v7943_v16 = vld [vmem:[#allocation10_spill] sm:$0xff]  ;;  %v7944_v53 = vld [vmem:[#allocation11_spill] sm:$0xff] }
 0x265   :  { %v5259_v23 = vpop.eup %5258  ;;  %v3938_v60 = vadd.f32 1.0, %v5257_v46  ;;  %v7541_v17 = vpop.f32.mrb[54].mxu1  ;;  %v7548_v25 = vsel %vm3815_vm9, %v7941_v8, %v3658_v13  ;;  %v3661_v54 = vadd.f32 %v7201_v55, %v7494_v20  ;;  %v7565_v12 = vsel %vm3815_vm9, %v7942_v21, %v3660_v35  ;;  %v7947_v35 = vld [vmem:[#allocation14_spill] sm:$0xff] }
 0x266   :  { %v7543_v24 = vpop.f32.mrb[55].mxu0  ;;  %v5261_v56 = vpop.eup %5260  ;;  %5280 = vtanh.f32 %v4224_v45  ;;  %4288 = vst [vmem:[#allocation4 + $0x10] sm:$0xff] %v4224_v45  ;;  %v3666_v31 = vadd.f32 %v7186_v29, %v3285_v14  ;;  %v7570_v9 = vsel %vm3815_vm9, %v7943_v16, %v3659_v42  ;;  %v4808_v58 = vmul.f32 -1.442695, %v7470_v59 }
 0x267   :  { %v7550_v1 = vpop.f32.mrb[55].mxu1  ;;  %v5263_v2 = vpop.eup %5262  ;;  %5282 = vrcp.f32 %v3938_v60  ;;  %v4034_v44 = vadd.f32 1.0, %v5261_v56  ;;  %v7574_v20 = vsel %vm3815_vm9, %v7944_v53, %v3661_v54  ;;  %v4777_v48 = vmul.f32 -1.442695, %v7475_v30 }
 0x268   :  { %v5265_v0 = vpop.eup %5264  ;;  %v4254_v61 = vmul.f32 %v5263_v2, %v7480_v37  ;;  %5284 = vpow2.f32 %v4776_v26  ;;  %v3790_v6 = vpop.permute.xlu0 %3789  ;;  %v3668_v38 = vadd.f32 %v7195_v28, %v3511_v39  ;;  %v3667_v30 = vadd.f32 %v7198_v33, %v7524_v34 }
 0x269   :  { %v5267_v43 = vpop.eup %5266  ;;  %5286 = vrcp.f32 %v4034_v44  ;;  %vm3816_vm10 = vcmp.eq.s32.totalorder %v3790_v6, 1  ;;  %v7576_v57 = vpop.f32.mrb[56].mxu0  ;;  %v4146_v59 = vadd.f32 1.0, %v5265_v0  ;;  %v3669_v8 = vadd.f32 %v7201_v55, %v7527_v11 }
 0x26a   :  { %v5269_v51 = vpop.eup %5268  ;;  %4270 = vst [vmem:[#allocation2] sm:$0xff] %v4254_v61  ;;  %v4193_v37 = vmul.f32 %v5267_v43, %v83_v50  ;;  %5288 = vrcp.f32 %v4145_v36  ;;  %v7578_v10 = vpop.permute.xlu1 %3792  ;;  %v7586_v32 = vsel %vm3816_vm10, %v7945_v4, %v3666_v31  ;;  %v7614_v0 = vsel %vm3816_vm10, %v7947_v35, %v3667_v30  ;;  %v7951_v30 = vld [vmem:[#allocation18_spill] sm:$0xff] }
 0x26b   :  { %v5271_v27 = vpop.eup %5270  ;;  %v3939_v5 = vadd.f32 1.0, %v5269_v51  ;;  %5290 = vpow2.f32 %v4807_v19  ;;  %v7582_v26 = vpop.f32.mrb[56].mxu1  ;;  %v7946_v19 = vld [vmem:[#allocation13_spill] sm:$0xff]  ;;  %vm3817_vm11 = vcmp.eq.s32.totalorder %v7578_v10, 1  ;;  %v4793_v11 = vmul.f32 -1.442695, %v7490_v3 }
 0x26c   :  { %v5273_v14 = vpop.eup %5272  ;;  %v4225_v18 = vadd.f32 %v4209_v22, %v4193_v37  ;;  %5292 = vpow2.f32 %v4792_v49  ;;  %v7589_v46 = vpop.f32.mrb[57].mxu0  ;;  %v7601_v39 = vsel %vm3816_vm10, %v7946_v19, %v3668_v38  ;;  %v4809_v21 = vmul.f32 -1.442695, %v7508_v7  ;;  %v7949_v3 = vld [vmem:[#allocation16_spill] sm:$0xff]  ;;  %v7952_v19 = vld [vmem:[#allocation19_spill] sm:$0xff] }
 0x26d   :  { %v7591_v45 = vpop.f32.mrb[57].mxu1  ;;  %v5275_v13 = vpop.eup %5274  ;;  %v4255_v60 = vmul.f32 %v5273_v14, %v5259_v23  ;;  %5294 = vrcp.f32 %v3939_v5  ;;  %v3674_v23 = vadd.f32 %v7186_v29, %v7529_v47  ;;  %v7948_v47 = vld [vmem:[#allocation15_spill] sm:$0xff]  ;;  %v4778_v53 = vmul.f32 -1.442695, %v7513_v52 }
 0x26e   :  { %v7595_v56 = vpop.f32.mrb[58].mxu0  ;;  %v7597_v22 = vpop.f32.mrb[58].mxu1  ;;  %5296 = vtanh.f32 %v4225_v18  ;;  %4289 = vst [vmem:[#allocation4 + $0x18] sm:$0xff] %v4225_v18  ;;  %v7620_v54 = vsel %vm3816_vm10, %v7948_v47, %v3669_v8  ;;  %v3675_v14 = vadd.f32 %v7198_v33, %v7543_v24  ;;  %v3677_v18 = vadd.f32 %v7201_v55, %v7550_v1 }
 0x26f   :  { %v5277_v36 = vpop.eup %5276  ;;  %v7607_v2 = vpop.f32.mrb[59].mxu0  ;;  %4271 = vst [vmem:[#allocation2 + $0x8] sm:$0xff] %v4255_v60  ;;  %v4853_v44 = vpack.c.bf16 %v4255_v60, %v4254_v61  ;;  %5298 = vtanh.f32 %v7449_v40  ;;  %v84_v61 = vld [vmem:[%s7906_s3 + $0x20] sm:$0xff]  ;;  %v7636_v6 = vsel %vm3817_vm11, %v7949_v3, %v3674_v23  ;;  %v3684_v23 = vadd.f32 %v7195_v28, %v7582_v26 }
 0x270   :  { %v7609_v34 = vpop.f32.mrb[59].mxu1  ;;  %v5279_v50 = vpop.eup %5278  ;;  %v4035_v49 = vadd.f32 1.0, %v5277_v36  ;;  %5300 = vpow2.f32 %v4777_v48  ;;  %v7668_v36 = vsel %vm3817_vm11, %v7951_v30, %v3675_v14  ;;  %v7673_v8 = vsel %vm3817_vm11, %v7952_v19, %v3677_v18  ;;  %v7956_v19 = vld [vmem:[#allocation23_spill] sm:$0xff] }
 0x271   :  { %v5281_v42 = vpop.eup %5280  ;;  %4854 = vst [vmem:[%s7912_s9] sm:$0xff] %v4853_v44   ;;  %v7631_v31 = vpop.permute.xlu1 %3798 }
 0x272   :  { %v5283_v43 = vpop.eup %5282  ;;  %v7625_v40 = vmul.f32 %v5281_v42, %v5271_v27  ;;  %5302 = vrcp.f32 %v4035_v49  ;;  %v7638_v16 = vpop.permute.xlu0 %3795  ;;  %v3676_v27 = vadd.f32 %v7195_v28, %v7541_v17  ;;  %v7950_v17 = vld [vmem:[#allocation17_spill] sm:$0xff]  ;;  %v4794_v42 = vmul.f32 -1.442695, %v7535_v63 }
 0x273   :  { %v5285_v51 = vpop.eup %5284  ;;  %v4210_v37 = vmul.f32 %v5283_v43, %v5275_v13  ;;  %5304 = vrcp.f32 %v4146_v59  ;;  %v7643_v5 = vpop.f32.mrb[60].mxu0  ;;  %vm3818_vm12 = vcmp.eq.s32.totalorder %v7638_v16, 1  ;;  %v7953_v43 = vld [vmem:[#allocation20_spill] sm:$0xff]  ;;  %v3683_v63 = vadd.f32 %v7198_v33, %v7589_v46 }
 0x274   :  { %v5287_v7 = vpop.eup %5286  ;;  %4272 = vst [vmem:[#allocation2 + $0x10] sm:$0xff] %v7625_v40  ;;  %v3940_v48 = vadd.f32 1.0, %v5285_v51  ;;  %5306 = vpow2.f32 %v4808_v58  ;;  %v7650_v4 = vpop.f32.mrb[60].mxu1  ;;  %v7657_v60 = vsel %vm3817_vm11, %v7950_v17, %v3676_v27  ;;  %v3682_v58 = vadd.f32 %v7186_v29, %v7576_v57 }
 0x275   :  { %v7652_v38 = vpop.f32.mrb[61].mxu0  ;;  %v5289_v52 = vpop.eup %5288  ;;  %v4194_v13 = vmul.f32 %v5287_v7, %v84_v61  ;;  %5308 = vpow2.f32 %v4793_v11  ;;  %v7954_v61 = vld [vmem:[#allocation21_spill] sm:$0xff]  ;;  %v3685_v7 = vadd.f32 %v7201_v55, %v7591_v45  ;;  %vm3819_vm13 = vcmp.eq.s32.totalorder %v7631_v31, 1 }
 0x276   :  { %v7661_v59 = vpop.f32.mrb[61].mxu1  ;;  %v7663_v24 = vpop.f32.mrb[62].mxu0  ;;  %5310 = vrcp.f32 %v3940_v48  ;;  %v7688_v26 = vsel %vm3818_vm12, %v7953_v43, %v3682_v58  ;;  %v7693_v3 = vsel %vm3818_vm12, %v7954_v61, %v3684_v23  ;;  %v3690_v48 = vadd.f32 %v7186_v29, %v7595_v56  ;;  %v7962_v31 = vld [vmem:[#allocation29_spill] sm:$0xff] }
 0x277   :  { %v5291_v1 = vpop.eup %5290  ;;  %v7677_v57 = vpop.f32.mrb[62].mxu1  ;;  %v4226_v35 = vadd.f32 %v4210_v37, %v4194_v13  ;;  %5312 = vpow2.f32 %v4809_v21  ;;  %v4779_v56 = vmul.f32 -1.442695, %v7548_v25  ;;  %v7720_v23 = vsel %vm3818_vm12, %v7956_v19, %v3685_v7  ;;  %v7960_v7 = vld [vmem:[#allocation27_spill] sm:$0xff] }
 0x278   :  { %v7679_v44 = vpop.f32.mrb[63].mxu0  ;;  %v5293_v49 = vpop.eup %5292  ;;  %5314 = vpow2.f32 %v4778_v53  ;;  %v85_v53 = vld [vmem:[%s7906_s3 + $0x28] sm:$0xff]  ;;  %v4147_v18 = vadd.f32 1.0, %v5291_v1  ;;  %v4810_v25 = vmul.f32 -1.442695, %v7539_v41  ;;  %v3693_v43 = vadd.f32 %v7201_v55, %v7609_v34 }
 0x279   :  { %v7683_v11 = vpop.f32.mrb[63].mxu1  ;;  %v5295_v47 = vpop.eup %5294  ;;  %v4036_v10 = vadd.f32 1.0, %v5293_v49  ;;  %5316 = vtanh.f32 %v4226_v35  ;;  %4290 = vst [vmem:[#allocation4 + $0x20] sm:$0xff] %v4226_v35  ;;  %v7958_v35 = vld [vmem:[#allocation25_spill] sm:$0xff]  ;;  %v3698_v41 = vadd.f32 %v7186_v29, %v7643_v5  ;;  %v86_v5 = vld [vmem:[%s7906_s3 + $0x30] sm:$0xff]  ;;  %v3701_v19 = vadd.f32 %v7201_v55, %v7661_v59 }
 0x27a   :  { %v5297_v21 = vpop.eup %5296  ;;  %v4211_v51 = vmul.f32 %v5295_v47, %v5279_v50  ;;  %v7955_v50 = vld [vmem:[#allocation22_spill] sm:$0xff]  ;;  %v7713_v58 = vpop.permute.xlu1 %3804  ;;  %v7753_v34 = vsel %vm3819_vm13, %v7960_v7, %v3693_v43  ;;  %v4811_v7 = vmul.f32 -1.442695, %v7574_v20 }
 0x27b   :  { %v5299_v37 = vpop.eup %5298  ;;  %v4257_v27 = vmul.f32 %v5297_v21, %v5289_v52  ;;  %5318 = vrcp.f32 %v4036_v10  ;;  %v7708_v46 = vsel %vm3818_vm12, %v7955_v50, %v3683_v63  ;;  %v3692_v52 = vadd.f32 %v7195_v28, %v7597_v22  ;;  %v7957_v22 = vld [vmem:[#allocation24_spill] sm:$0xff]  ;;  %v3802_v47 = vpop.permute.xlu0 %3801 }
 0x27c   :  { %v5301_v14 = vpop.eup %5300  ;;  %5320 = vpow2.f32 %v4794_v42  ;;  %v7725_v49 = vsel %vm3819_vm13, %v7957_v22, %v3690_v48  ;;  %vm3821_vm14 = vcmp.eq.s32.totalorder %v7713_v58, 1  ;;  %v3691_v10 = vadd.f32 %v7198_v33, %v7607_v2  ;;  %v7961_v50 = vld [vmem:[#allocation28_spill] sm:$0xff] }
 0x27d   :  { %v5303_v13 = vpop.eup %5302  ;;  %4273 = vst [vmem:[#allocation2 + $0x18] sm:$0xff] %v4257_v27  ;;  %v4858_v17 = vpack.c.bf16 %v4257_v27, %v7625_v40  ;;  %v3941_v45 = vadd.f32 1.0, %v5301_v14  ;;  %5322 = vtanh.f32 %v7485_v15  ;;  %v7734_v15 = vsel %vm3819_vm13, %v7958_v35, %v3692_v52 }
 0x27e   :  { %v5305_v1 = vpop.eup %5304  ;;  %v4195_v30 = vmul.f32 %v5303_v13, %v85_v53  ;;  %v3700_v63 = vadd.f32 %v7195_v28, %v7650_v4  ;;  %v7959_v53 = vld [vmem:[#allocation26_spill] sm:$0xff]  ;;  %vm3820_vm15 = vcmp.eq.s32.totalorder %v3802_v47, 1  ;;  %v3706_v22 = vadd.f32 %v7186_v29, %v7663_v24  ;;  %v7964_v29 = vld [vmem:[#allocation31_spill] sm:$0xff] }
 0x27f   :  { %v5307_v40 = vpop.eup %5306  ;;  %4890 = vst [vmem:[%s7912_s9 + $0x8] sm:$0xff] %v4858_v17   ;;  %5324 = vrcp.f32 %v3941_v45  ;;  %v7748_v2 = vsel %vm3819_vm13, %v7959_v53, %v3691_v10  ;;  %v7761_v52 = vsel %vm3820_vm15, %v7961_v50, %v3698_v41  ;;  %v7785_v24 = vsel %vm3820_vm15, %v7964_v29, %v3701_v19  ;;  %v7965_v10 = vld [vmem:[#allocation32_spill] sm:$0xff]  ;;  %v87_v47 = vld [vmem:[%s7906_s3 + $0x38] sm:$0xff]  ;;  %v7967_v41 = vld [vmem:[#allocation34_spill] sm:$0xff] }
 0x280   :  { %v5309_v16 = vpop.eup %5308  ;;  %v4227_v42 = vadd.f32 %v4211_v51, %v4195_v30  ;;  %5326 = vrcp.f32 %v4147_v18  ;;  %v4148_v4 = vadd.f32 1.0, %v5307_v40  ;;  %v7765_v13 = vsel %vm3820_vm15, %v7962_v31, %v3700_v63 }
 0x281   :  { %v5311_v61 = vpop.eup %5310  ;;  %v4037_v21 = vadd.f32 1.0, %v5309_v16  ;;  %5328 = vpow2.f32 %v4779_v56  ;;  %v4780_v56 = vmul.f32 -1.442695, %v7586_v32  ;;  %v3707_v32 = vadd.f32 %v7198_v33, %v7679_v44 }
 0x282   :  { %v5313_v51 = vpop.eup %5312  ;;  %5330 = vtanh.f32 %v4227_v42  ;;  %4291 = vst [vmem:[#allocation4 + $0x28] sm:$0xff] %v4227_v42  ;;  %v4212_v27 = vmul.f32 %v5311_v61, %v5299_v37  ;;  %v4795_v37 = vmul.f32 -1.442695, %v7570_v9  ;;  %v3699_v9 = vadd.f32 %v7198_v33, %v7652_v38 }
 0x283   :  { %v5315_v48 = vpop.eup %5314  ;;  %5332 = vrcp.f32 %v4037_v21  ;;  %v4149_v59 = vadd.f32 1.0, %v5313_v51  ;;  %v7790_v43 = vsel %vm3821_vm14, %v7965_v10, %v3706_v22  ;;  %v4796_v21 = vmul.f32 -1.442695, %v7614_v0  ;;  %v7968_v0 = vld [vmem:[#allocation35_spill] sm:$0xff] }
 0x284   :  { %v5317_v14 = vpop.eup %5316  ;;  %v3942_v18 = vadd.f32 1.0, %v5315_v48  ;;  %5334 = vpow2.f32 %v4810_v25  ;;  %v7963_v25 = vld [vmem:[#allocation30_spill] sm:$0xff]  ;;  %v7804_v63 = vsel %vm3821_vm14, %v7967_v41, %v3707_v32  ;;  %v3709_v51 = vadd.f32 %v7201_v55, %v7683_v11 }
 0x285   :  { %v5319_v17 = vpop.eup %5318  ;;  %v4258_v45 = vmul.f32 %v5317_v14, %v5305_v1  ;;  %5336 = vtanh.f32 %v7520_v62  ;;  %v7777_v1 = vsel %vm3820_vm15, %v7963_v25, %v3699_v9  ;;  %v3708_v62 = vadd.f32 %v7195_v28, %v7677_v57  ;;  %v7966_v28 = vld [vmem:[#allocation33_spill] sm:$0xff] }
 0x286   :  { %v4196_v30 = vmul.f32 %v5319_v17, %v86_v5  ;;  %5338 = vrcp.f32 %v3942_v18  ;;  %v5321_v40 = vpop.eup %5320  ;;  %v4797_v9 = vmul.f32 -1.442695, %v7668_v36  ;;  %v4812_v22 = vmul.f32 -1.442695, %v7620_v54 }
 0x287   :  { %4274 = vst [vmem:[#allocation2 + $0x20] sm:$0xff] %v4258_v45  ;;  %5340 = vpow2.f32 %v4795_v37  ;;  %v5323_v38 = vpop.eup %5322  ;;  %v4038_v16 = vadd.f32 1.0, %v5321_v40  ;;  %v7795_v33 = vsel %vm3821_vm14, %v7966_v28, %v3708_v62  ;;  %v7814_v37 = vsel %vm3821_vm14, %v7968_v0, %v3709_v51  ;;  %v89_v28 = vld [vmem:[%s7906_s3 + $0x48] sm:$0xff] }
 0x288   :  { %v4228_v35 = vadd.f32 %v4212_v27, %v4196_v30  ;;  %5342 = vrcp.f32 %v4148_v4  ;;  %v4781_v4 = vmul.f32 -1.442695, %v7636_v6  ;;  %v4782_v62 = vmul.f32 -1.442695, %v7688_v26 }
 0x289   :  { %v5325_v42 = vpop.eup %5324  ;;  %5344 = vpow2.f32 %v4780_v56  ;;  %v4798_v10 = vmul.f32 -1.442695, %v7708_v46  ;;  %v4799_v0 = vmul.f32 -1.442695, %v7748_v2 }
 0x28a   :  { %v5327_v57 = vpop.eup %5326  ;;  %5346 = vtanh.f32 %v4228_v35  ;;  %4292 = vst [vmem:[#allocation4 + $0x30] sm:$0xff] %v4228_v35  ;;  %v4213_v44 = vmul.f32 %v5325_v42, %v5323_v38 }
 0x28b   :  { %v5329_v61 = vpop.eup %5328  ;;  %5348 = vrcp.f32 %v4038_v16 }
 0x28c   :  { %v5331_v27 = vpop.eup %5330  ;;  %v3943_v53 = vadd.f32 1.0, %v5329_v61  ;;  %5350 = vtanh.f32 %v7565_v12 }
 0x28d   :  { %v5333_v48 = vpop.eup %5332  ;;  %v4259_v5 = vmul.f32 %v5331_v27, %v5327_v57  ;;  %5352 = vrcp.f32 %v4149_v59 }
 0x28e   :  { %v5335_v14 = vpop.eup %5334  ;;  %v4197_v18 = vmul.f32 %v5333_v48, %v87_v47  ;;  %5354 = vrcp.f32 %v3943_v53 }
 0x28f   :  { %v5337_v55 = vpop.eup %5336  ;;  %4275 = vst [vmem:[#allocation2 + $0x28] sm:$0xff] %v4259_v5  ;;  %v4863_v11 = vpack.c.bf16 %v4259_v5, %v4258_v45  ;;  %5356 = vpow2.f32 %v4796_v21  ;;  %v4150_v31 = vadd.f32 1.0, %v5335_v14  ;;  %v88_v45 = vld [vmem:[%s7906_s3 + $0x40] sm:$0xff]  ;;  %v4783_v21 = vmul.f32 -1.442695, %v7725_v49 }
 0x290   :  { %v5339_v12 = vpop.eup %5338  ;;  %v4229_v50 = vadd.f32 %v4213_v44, %v4197_v18  ;;  %5358 = vpow2.f32 %v4811_v7  ;;  %v4813_v44 = vmul.f32 -1.442695, %v7673_v8  ;;  %v90_v18 = vld [vmem:[%s7906_s3 + $0x50] sm:$0xff] }
 0x291   :  { %v5341_v20 = vpop.eup %5340  ;;  %4891 = vst [vmem:[%s7912_s9 + $0x10] sm:$0xff] %v4863_v11   ;;  %v4214_v6 = vmul.f32 %v5339_v12, %v5337_v55  ;;  %5360 = vpow2.f32 %v4781_v4  ;;  %v4814_v11 = vmul.f32 -1.442695, %v7720_v23 }
 0x292   :  { %v5343_v58 = vpop.eup %5342  ;;  %5362 = vtanh.f32 %v4229_v50  ;;  %4293 = vst [vmem:[#allocation4 + $0x38] sm:$0xff] %v4229_v50  ;;  %v4039_v17 = vadd.f32 1.0, %v5341_v20  ;;  %v4784_v50 = vmul.f32 -1.442695, %v7761_v52 }
 0x293   :  { %v5345_v56 = vpop.eup %5344  ;;  %5364 = vtanh.f32 %v7601_v39 }
 0x294   :  { %v5347_v30 = vpop.eup %5346  ;;  %5366 = vrcp.f32 %v4039_v17  ;;  %v3944_v19 = vadd.f32 1.0, %v5345_v56 }
 0x295   :  { %v5349_v40 = vpop.eup %5348  ;;  %v4260_v25 = vmul.f32 %v5347_v30, %v5343_v58  ;;  %5368 = vrcp.f32 %v4150_v31 }
 0x296   :  { %v5351_v32 = vpop.eup %5350  ;;  %v4198_v38 = vmul.f32 %v5349_v40, %v88_v45  ;;  %5370 = vrcp.f32 %v3944_v19  ;;  %v91_v19 = vld [vmem:[%s7906_s3 + $0x58] sm:$0xff]  ;;  %v4815_v40 = vmul.f32 -1.442695, %v7753_v34 }
 0x297   :  { %v5353_v35 = vpop.eup %5352  ;;  %4276 = vst [vmem:[#allocation2 + $0x30] sm:$0xff] %v4260_v25  ;;  %5372 = vpow2.f32 %v4797_v9 }
 0x298   :  { %v5355_v59 = vpop.eup %5354  ;;  %v4230_v39 = vadd.f32 %v4214_v6, %v4198_v38  ;;  %5374 = vpow2.f32 %v4812_v22 }
 0x299   :  { %v5357_v36 = vpop.eup %5356  ;;  %v4215_v16 = vmul.f32 %v5355_v59, %v5351_v32  ;;  %5376 = vpow2.f32 %v4782_v62  ;;  %v4785_v62 = vmul.f32 -1.442695, %v7790_v43 }
 0x29a   :  { %v5359_v42 = vpop.eup %5358  ;;  %5378 = vtanh.f32 %v4230_v39  ;;  %4294 = vst [vmem:[#allocation4 + $0x40] sm:$0xff] %v4230_v39  ;;  %v4040_v54 = vadd.f32 1.0, %v5357_v36 }
 0x29b   :  { %v5361_v29 = vpop.eup %5360  ;;  %v4151_v51 = vadd.f32 1.0, %v5359_v42 }
 0x29c   :  { %v5363_v26 = vpop.eup %5362  ;;  %5380 = vrcp.f32 %v4040_v54  ;;  %v3945_v57 = vadd.f32 1.0, %v5361_v29  ;;  %v4801_v29 = vmul.f32 -1.442695, %v7804_v63 }
 0x29d   :  { %v5365_v61 = vpop.eup %5364  ;;  %v4261_v47 = vmul.f32 %v5363_v26, %v5353_v35  ;;  %5382 = vtanh.f32 %v7657_v60  ;;  %v92_v26 = vld [vmem:[%s7906_s3 + $0x60] sm:$0xff] }
 0x29e   :  { %v5367_v41 = vpop.eup %5366  ;;  %5384 = vrcp.f32 %v3945_v57 }
 0x29f   :  { %v5369_v27 = vpop.eup %5368  ;;  %4277 = vst [vmem:[#allocation2 + $0x38] sm:$0xff] %v4261_v47  ;;  %v4868_v46 = vpack.c.bf16 %v4261_v47, %v4260_v25  ;;  %v4199_v53 = vmul.f32 %v5367_v41, %v89_v28  ;;  %5386 = vpow2.f32 %v4798_v10 }
 0x2a0   :  { %v5371_v7 = vpop.eup %5370  ;;  %5388 = vpow2.f32 %v4813_v44  ;;  %v4816_v44 = vmul.f32 -1.442695, %v7785_v24  ;;  %v93_v24 = vld [vmem:[%s7906_s3 + $0x68] sm:$0xff] }
 0x2a1   :  { %v5373_v48 = vpop.eup %5372  ;;  %4892 = vst [vmem:[%s7912_s9 + $0x18] sm:$0xff] %v4868_v46   ;;  %v4231_v8 = vadd.f32 %v4215_v16, %v4199_v53  ;;  %v4216_v5 = vmul.f32 %v5371_v7, %v5365_v61  ;;  %5390 = vpow2.f32 %v4783_v21 }
 0x2a2   :  { %v5375_v60 = vpop.eup %5374  ;;  %5392 = vrcp.f32 %v4151_v51  ;;  %v4041_v49 = vadd.f32 1.0, %v5373_v48 }
 0x2a3   :  { %v5377_v4 = vpop.eup %5376  ;;  %5394 = vtanh.f32 %v4231_v8  ;;  %4295 = vst [vmem:[#allocation4 + $0x48] sm:$0xff] %v4231_v8  ;;  %v4152_v6 = vadd.f32 1.0, %v5375_v60 }
 0x2a4   :  { %v5379_v14 = vpop.eup %5378  ;;  %5396 = vrcp.f32 %v4041_v49  ;;  %v3946_v55 = vadd.f32 1.0, %v5377_v4  ;;  %v4817_v49 = vmul.f32 -1.442695, %v7814_v37 }
 0x2a5   :  { %v4262_v12 = vmul.f32 %v5379_v14, %v5369_v27  ;;  %5398 = vtanh.f32 %v7693_v3  ;;  %v4800_v3 = vmul.f32 -1.442695, %v7777_v1 }
 0x2a6   :  { %v5381_v20 = vpop.eup %5380  ;;  %5400 = vrcp.f32 %v3946_v55 }
 0x2a7   :  { %v5383_v31 = vpop.eup %5382  ;;  %4278 = vst [vmem:[#allocation2 + $0x40] sm:$0xff] %v4262_v12  ;;  %v4200_v2 = vmul.f32 %v5381_v20, %v90_v18  ;;  %5402 = vpow2.f32 %v4799_v0 }
 0x2a8   :  { %v5385_v58 = vpop.eup %5384  ;;  %5404 = vpow2.f32 %v4814_v11 }
 0x2a9   :  { %v5387_v17 = vpop.eup %5386  ;;  %v4232_v56 = vadd.f32 %v4216_v5, %v4200_v2  ;;  %v4217_v45 = vmul.f32 %v5385_v58, %v5383_v31  ;;  %5406 = vpow2.f32 %v4784_v50  ;;  %v94_v2 = vld [vmem:[%s7906_s3 + $0x70] sm:$0xff] }
 0x2aa   :  { %v5389_v9 = vpop.eup %5388  ;;  %5408 = vrcp.f32 %v4152_v6  ;;  %v4042_v23 = vadd.f32 1.0, %v5387_v17 }
 0x2ab   :  { %v5391_v30 = vpop.eup %5390  ;;  %5410 = vtanh.f32 %v4232_v56  ;;  %4296 = vst [vmem:[#allocation4 + $0x50] sm:$0xff] %v4232_v56  ;;  %v4153_v35 = vadd.f32 1.0, %v5389_v9 }
 0x2ac   :  { %v5393_v52 = vpop.eup %5392  ;;  %5412 = vrcp.f32 %v4042_v23  ;;  %v3947_v22 = vadd.f32 1.0, %v5391_v30 }
 0x2ad   :  { %v5395_v25 = vpop.eup %5394  ;;  %5414 = vtanh.f32 %v7734_v15 }
 0x2ae   :  { %v5397_v32 = vpop.eup %5396  ;;  %v4263_v38 = vmul.f32 %v5395_v25, %v5393_v52  ;;  %5416 = vrcp.f32 %v3947_v22 }
 0x2af   :  { %v5399_v59 = vpop.eup %5398  ;;  %v4201_v1 = vmul.f32 %v5397_v32, %v91_v19  ;;  %5418 = vpow2.f32 %v4800_v3 }
 0x2b0   :  { %v5401_v39 = vpop.eup %5400  ;;  %4279 = vst [vmem:[#allocation2 + $0x48] sm:$0xff] %v4263_v38  ;;  %v4873_v36 = vpack.c.bf16 %v4263_v38, %v4262_v12  ;;  %5420 = vpow2.f32 %v4815_v40  ;;  %v95_v40 = vld [vmem:[%s7906_s3 + $0x78] sm:$0xff]  ;;  %s5473_s3 = scalar_lea.vmem %s4400_s18, 2048 }
 0x2b1   :  { %v5403_v16 = vpop.eup %5402  ;;  %v4233_v42 = vadd.f32 %v4217_v45, %v4201_v1  ;;  %v4218_v54 = vmul.f32 %v5401_v39, %v5399_v59  ;;  %5422 = vpow2.f32 %v4785_v62  ;;  %p5474_p0 = scmp.ne.s32.totalorder %s4400_s18, %s5473_s3  ;;  %p5479_p2 = scmp.lt.s32.totalorder %s5473_s3, %s5473_s3 }
 0x2b2   :  { %v5405_v34 = vpop.eup %5404  ;;  %4893 = vst [vmem:[%s7912_s9 + $0x20] sm:$0xff] %v4873_v36   ;;  %5424 = vrcp.f32 %v4153_v35  ;;  %v4043_v15 = vadd.f32 1.0, %v5403_v16 }
 0x2b3   :  { %v5407_v43 = vpop.eup %5406  ;;  %5426 = vtanh.f32 %v4233_v42  ;;  %4297 = vst [vmem:[#allocation4 + $0x58] sm:$0xff] %v4233_v42  ;;  %v4154_v21 = vadd.f32 1.0, %v5405_v34  ;;  %p5480_p3 = por %p5479_p2, %p5478_p1 }
 0x2b4   :  { %v5409_v10 = vpop.eup %5408  ;;  %5428 = vrcp.f32 %v4043_v15  ;;  %v3948_v28 = vadd.f32 1.0, %v5407_v43 }
 0x2b5   :  { %v5411_v57 = vpop.eup %5410  ;;  %5430 = vtanh.f32 %v7765_v13  ;;  %p5481_p4 = pnand %p5480_p3, %p5474_p0 }
 0x2b6   :  { %v5413_v61 = vpop.eup %5412  ;;  %v4264_v47 = vmul.f32 %v5411_v57, %v5409_v10  ;;  %5432 = vrcp.f32 %v3948_v28 }
 0x2b7   :  { %v5415_v41 = vpop.eup %5414  ;;  %v4202_v51 = vmul.f32 %v5413_v61, %v92_v26  ;;  %5434 = vpow2.f32 %v4801_v29 }
 0x2b8   :  { %v5417_v63 = vpop.eup %5416  ;;  %4280 = vst [vmem:[#allocation2 + $0x50] sm:$0xff] %v4264_v47  ;;  %5436 = vpow2.f32 %v4816_v44 }
 0x2b9   :  { %v5419_v27 = vpop.eup %5418  ;;  %v4234_v46 = vadd.f32 %v4218_v54, %v4202_v51  ;;  %v4219_v53 = vmul.f32 %v5417_v63, %v5415_v41  ;;  %5438 = vrcp.f32 %v4154_v21 }
 0x2ba   :  { %v5421_v7 = vpop.eup %5420  ;;  %v4044_v48 = vadd.f32 1.0, %v5419_v27 }
 0x2bb   :  { %v5423_v8 = vpop.eup %5422  ;;  %5440 = vtanh.f32 %v4234_v46  ;;  %4298 = vst [vmem:[#allocation4 + $0x60] sm:$0xff] %v4234_v46  ;;  %v4155_v14 = vadd.f32 1.0, %v5421_v7 }
 0x2bc   :  { %v5425_v13 = vpop.eup %5424  ;;  %5442 = vrcp.f32 %v4044_v48  ;;  %v3949_v5 = vadd.f32 1.0, %v5423_v8 }
 0x2bd   :  { %v5427_v60 = vpop.eup %5426  ;;  %5444 = vtanh.f32 %v7795_v33 }
 0x2be   :  { %v5429_v4 = vpop.eup %5428  ;;  %v4265_v0 = vmul.f32 %v5427_v60, %v5425_v13  ;;  %5446 = vrcp.f32 %v3949_v5 }
 0x2bf   :  { %v5431_v18 = vpop.eup %5430  ;;  %v4203_v55 = vmul.f32 %v5429_v4, %v93_v24  ;;  %5448 = vpow2.f32 %v4817_v49 }
 0x2c0   :  { %v5433_v11 = vpop.eup %5432  ;;  %4281 = vst [vmem:[#allocation2 + $0x58] sm:$0xff] %v4265_v0  ;;  %v4878_v12 = vpack.c.bf16 %v4265_v0, %v4264_v47  ;;  %5450 = vrcp.f32 %v4155_v14 }
 0x2c1   :  { %v5435_v50 = vpop.eup %5434  ;;  %v4235_v20 = vadd.f32 %v4219_v53, %v4203_v55  ;;  %v4220_v6 = vmul.f32 %v5433_v11, %v5431_v18 }
 0x2c2   :  { %4894 = vst [vmem:[%s7912_s9 + $0x28] sm:$0xff] %v4878_v12   ;;  %v4045_v33 = vadd.f32 1.0, %v5435_v50  ;;  %v5437_v37 = vpop.eup %5436 }
 0x2c3   :  { %5452 = vtanh.f32 %v4235_v20  ;;  %4299 = vst [vmem:[#allocation4 + $0x68] sm:$0xff] %v4235_v20  ;;  %v5439_v31 = vpop.eup %5438  ;;  %v4156_v45 = vadd.f32 1.0, %v5437_v37 }
 0x2c4   :  { %5454 = vrcp.f32 %v4045_v33 }
 0x2c5   :  { %v5441_v58 = vpop.eup %5440  ;;  %5456 = vrcp.f32 %v4156_v45 }
 0x2c6   :  { %v5443_v17 = vpop.eup %5442  ;;  %v4266_v56 = vmul.f32 %v5441_v58, %v5439_v31 }
 0x2c7   :  { %v5445_v9 = vpop.eup %5444  ;;  %v4204_v23 = vmul.f32 %v5443_v17, %v94_v2 }
 0x2c8   :  { %v5447_v30 = vpop.eup %5446  ;;  %4282 = vst [vmem:[#allocation2 + $0x60] sm:$0xff] %v4266_v56 }
 0x2c9   :  { %v4236_v3 = vadd.f32 %v4220_v6, %v4204_v23  ;;  %v4221_v52 = vmul.f32 %v5447_v30, %v5445_v9  ;;  %v5449_v19 = vpop.eup %5448 }
 0x2ca   :  { %v5451_v22 = vpop.eup %5450  ;;  %v4157_v38 = vadd.f32 1.0, %v5449_v19 }
 0x2cb   :  { %5458 = vtanh.f32 %v4236_v3  ;;  %4300 = vst [vmem:[#allocation4 + $0x70] sm:$0xff] %v4236_v3 }
 0x2cc   :  { %5460 = vrcp.f32 %v4157_v38 }
 0x2cd   :  { %v5453_v25 = vpop.eup %5452 }
 0x2ce   :  { %v5455_v62 = vpop.eup %5454  ;;  %v4267_v32 = vmul.f32 %v5453_v25, %v5451_v22 }
 0x2cf   :  { %v4205_v35 = vmul.f32 %v5455_v62, %v95_v40  ;;  %v5457_v39 = vpop.eup %5456 }
 0x2d0   :  { %4283 = vst [vmem:[#allocation2 + $0x68] sm:$0xff] %v4267_v32  ;;  %v4883_v59 = vpack.c.bf16 %v4267_v32, %v4266_v56 }
 0x2d1   :  { %v4237_v1 = vadd.f32 %v4221_v52, %v4205_v35 }
 0x2d2   :  { %4895 = vst [vmem:[%s7912_s9 + $0x30] sm:$0xff] %v4883_v59  }
 0x2d3   :  { %5462 = vtanh.f32 %v4237_v1  ;;  %4301 = vst [vmem:[#allocation4 + $0x78] sm:$0xff] %v4237_v1 }
 0x2d4   :  { %5484 = shalt.err (!%p5481_p4)
}
 0x2d5   :  { %s5485_s22 = scalar_lea.hbm %s7911_s8, 2048 }
 0x2d6   :  { %p5486_p5 = scmp.ne.s32.totalorder %s7911_s8, %s5485_s22  ;;  %p5489_p6 = scmp.lt.u32.totalorder %s5485_s22, %s7911_s8 }
 0x2d8   :  { %p5491_p7 = pnand %p5489_p6, %p5486_p5 }
 0x2da   :  { %5494 = shalt.err (!%p5491_p7)
}
 0x2db   :  { %s5523_s25 = smov 128   ;;  %s5524_s26 = smov 8   ;;  %v5459_v36 = vpop.eup %5458 }
 0x2dc   :  { %4405 = dma.vmem_to_hbm [thread:$0]  %s4400_s18, 2048, %s7911_s8, [#allocation5], %s5523_s25, %s5523_s25, %s5524_s26   ;;  %v4268_v16 = vmul.f32 %v5459_v36, %v5457_v39  ;;  %v5461_v42 = vpop.eup %5460 }
 0x2dd   :  { %s5525_s29 = smov [#allocation2]   ;;  %v5463_v54 = vpop.eup %5462 }
 0x2de   :  { %4284 = vst [vmem:[#allocation2 + $0x70] sm:$0xff] %v4268_v16  ;;  %s4387_s30 = sshll.u32 %s5525_s29, 4  ;;  %v4269_v34 = vmul.f32 %v5463_v54, %v5461_v42  ;;  %s4388_s30 = int_to_ptr.vmem [resolvable:$true] %s4387_s30 }
 0x2df   :  { %s5495_s10 = scalar_lea.vmem %s4388_s30, 2048  ;;  %p5500_p9 = scmp.lt.s32.totalorder %s4388_s30, %s4388_s30 }
 0x2e0   :  { %4285 = vst [vmem:[#allocation2 + $0x78] sm:$0xff] %v4269_v34  ;;  %v4888_v15 = vpack.c.bf16 %v4269_v34, %v4268_v16  ;;  %p5496_p8 = scmp.ne.s32.totalorder %s4388_s30, %s5495_s10  ;;  %p5501_p10 = scmp.lt.s32.totalorder %s5495_s10, %s5495_s10 }
 0x2e2   :  { %p5502_p11 = por %p5501_p10, %p5500_p9 }
 0x2e4   :  { %p5503_p12 = pnand %p5502_p11, %p5496_p8 }
 0x2e6   :  { %5506 = shalt.err (!%p5503_p12)
}
 0x2e7   :  { %s5507_s2 = scalar_lea.hbm %s7910_s7, 2048 }
 0x2e8   :  { %p5508_p13 = scmp.ne.s32.totalorder %s7910_s7, %s5507_s2  ;;  %p5511_p0 = scmp.lt.u32.totalorder %s5507_s2, %s7910_s7 }
 0x2ea   :  { %p5513_p1 = pnand %p5511_p0, %p5508_p13 }
 0x2ec   :  { %5516 = shalt.err (!%p5513_p1)
}
 0x2ed   :  { %4393 = dma.vmem_to_hbm [thread:$0]  %s4388_s30, 2048, %s7910_s7, [#allocation3], %s5523_s25, %s5523_s25, %s5524_s26  }
 0x2ee   :  { %4896 = vst [vmem:[%s7912_s9 + $0x38] sm:$0xff] %v4888_v15  }
 0x2ef   :  { %5517 = dma.done.wait [#allocation3], 2048  }
 0x2f0   :  { %5518 = vsyncadd [#allocation3], 4294965248 }
 0x2f1   :  { %5519 = dma.done.wait [#allocation5], 2048  }
 0x2f2   :  { %5520 = vsyncadd [#allocation5], 4294965248 }
 0x2f3   :  { %4416 = vsyncpa [#allocation3], 1 }
 0x2f4   :  { %4417 = vsyncpa [#allocation5], 1 }

// kernel: neurosat_forward.11
= control target key start
LH: loop header
LB: loop body
LE: loop exit
PB: predicated region body
PF: predicated region fallthrough
CT: control target
= control target key end

     0   :  { %v1170_v3 = vmov 0   ;;  %s2008_s1 = inlined_call_operand.vmem [shape: bf16[128,1024], index: 1, kind: input, shape index: {}]   ;;  %s2009_s0 = inlined_call_operand.vmem [shape: bf16[128,128], index: 0, kind: input, shape index: {}]   ;;  %s2010_s2 = inlined_call_operand.vmem [shape: f32[1,1024], index: 2, kind: input, shape index: {}]   ;;  %s2011_s3 = inlined_call_operand.vmem [shape: f32[128,1024], index: 3, kind: output, shape index: {}]  }
   0x1   :  { %v31_v0 = vld [vmem:[%s2008_s1] sm:$0xff]  ;;  %v32_v2 = vld [vmem:[%s2008_s1 + $0x8] sm:$0xff]  ;;  %537 = vmatprep.mubr.bf16.mxu0 %v1170_v3  ;;  %650 = vmatprep.mubr.bf16.mxu1 %v1170_v3  ;;  %v33_v63 = vld [vmem:[%s2008_s1 + $0x10] sm:$0xff] }
   0x2   :  { %v35_v1 = vld [vmem:[%s2008_s1 + $0x20] sm:$0xff]  ;;  %v36_v5 = vld [vmem:[%s2008_s1 + $0x28] sm:$0xff] }
   0x3   :  { %v1098_v4 = vcombine.high %v31_v0, %v35_v1  ;;  %v1097_v6 = vcombine.low %v31_v0, %v35_v1  ;;  %v39_v7 = vld [vmem:[%s2008_s1 + $0x40] sm:$0xff]  ;;  %v1100_v9 = vcombine.high %v32_v2, %v36_v5  ;;  %v1099_v10 = vcombine.low %v32_v2, %v36_v5  ;;  %v40_v12 = vld [vmem:[%s2008_s1 + $0x48] sm:$0xff]  ;;  %v37_v0 = vld [vmem:[%s2008_s1 + $0x30] sm:$0xff] }
   0x4   :  { %v43_v8 = vld [vmem:[%s2008_s1 + $0x60] sm:$0xff]  ;;  %v44_v13 = vld [vmem:[%s2008_s1 + $0x68] sm:$0xff]  ;;  %v34_v1 = vld [vmem:[%s2008_s1 + $0x18] sm:$0xff] }
   0x5   :  { %v1106_v11 = vcombine.high %v39_v7, %v43_v8  ;;  %v47_v14 = vld [vmem:[%s2008_s1 + $0x80] sm:$0xff]  ;;  %505 = vmatprep.subr.bf16.mxu0 %v1098_v4  ;;  %v1108_v15 = vcombine.high %v40_v12, %v44_v13  ;;  %v48_v17 = vld [vmem:[%s2008_s1 + $0x88] sm:$0xff]  ;;  %618 = vmatprep.subr.bf16.mxu1 %v1100_v9  ;;  %v1105_v19 = vcombine.low %v39_v7, %v43_v8  ;;  %v38_v2 = vld [vmem:[%s2008_s1 + $0x38] sm:$0xff] }
   0x6   :  { %v51_v16 = vld [vmem:[%s2008_s1 + $0xa0] sm:$0xff]  ;;  %v52_v18 = vld [vmem:[%s2008_s1 + $0xa8] sm:$0xff]  ;;  %506 = vmatpush1.bf16.msra.mxu0 %v1097_v6  ;;  %619 = vmatpush1.bf16.msra.mxu1 %v1099_v10  ;;  %v1107_v20 = vcombine.low %v40_v12, %v44_v13  ;;  %v1102_v6 = vcombine.high %v33_v63, %v37_v0  ;;  %v1104_v7 = vcombine.high %v34_v1, %v38_v2  ;;  %v41_v9 = vld [vmem:[%s2008_s1 + $0x50] sm:$0xff] }
   0x7   :  { %507 = vmatprep.subr.bf16.mxu0 %v1106_v11  ;;  %v1114_v21 = vcombine.high %v47_v14, %v51_v16  ;;  %620 = vmatprep.subr.bf16.mxu1 %v1108_v15  ;;  %v1116_v22 = vcombine.high %v48_v17, %v52_v18  ;;  %v55_v23 = vld [vmem:[%s2008_s1 + $0xc0] sm:$0xff]  ;;  %v56_v25 = vld [vmem:[%s2008_s1 + $0xc8] sm:$0xff]  ;;  %v1113_v27 = vcombine.low %v47_v14, %v51_v16  ;;  %v45_v10 = vld [vmem:[%s2008_s1 + $0x70] sm:$0xff] }
   0x8   :  { %v59_v24 = vld [vmem:[%s2008_s1 + $0xe0] sm:$0xff]  ;;  %v60_v26 = vld [vmem:[%s2008_s1 + $0xe8] sm:$0xff]  ;;  %v1115_v28 = vcombine.low %v48_v17, %v52_v18  ;;  %v1101_v11 = vcombine.low %v33_v63, %v37_v0  ;;  %v42_v12 = vld [vmem:[%s2008_s1 + $0x58] sm:$0xff]  ;;  %v1103_v14 = vcombine.low %v34_v1, %v38_v2  ;;  %v1110_v15 = vcombine.high %v41_v9, %v45_v10 }
   0x9   :  { %v1122_v29 = vcombine.high %v55_v23, %v59_v24  ;;  %v1124_v30 = vcombine.high %v56_v25, %v60_v26  ;;  %v63_v31 = vld [vmem:[%s2008_s1 + $0x100] sm:$0xff]  ;;  %v64_v33 = vld [vmem:[%s2008_s1 + $0x108] sm:$0xff]  ;;  %v1121_v35 = vcombine.low %v55_v23, %v59_v24  ;;  %v1123_v36 = vcombine.low %v56_v25, %v60_v26  ;;  %v46_v13 = vld [vmem:[%s2008_s1 + $0x78] sm:$0xff] }
   0xa   :  { %508 = vmatpush1.bf16.msra.mxu0 %v1105_v19  ;;  %621 = vmatpush1.bf16.msra.mxu1 %v1107_v20  ;;  %v67_v32 = vld [vmem:[%s2008_s1 + $0x120] sm:$0xff]  ;;  %v68_v34 = vld [vmem:[%s2008_s1 + $0x128] sm:$0xff]  ;;  %v49_v16 = vld [vmem:[%s2008_s1 + $0x90] sm:$0xff]  ;;  %v1112_v18 = vcombine.high %v42_v12, %v46_v13 }
   0xb   :  { %509 = vmatprep.subr.bf16.mxu0 %v1114_v21  ;;  %622 = vmatprep.subr.bf16.mxu1 %v1116_v22  ;;  %v1130_v37 = vcombine.high %v63_v31, %v67_v32  ;;  %v1132_v38 = vcombine.high %v64_v33, %v68_v34  ;;  %v71_v39 = vld [vmem:[%s2008_s1 + $0x140] sm:$0xff]  ;;  %v72_v41 = vld [vmem:[%s2008_s1 + $0x148] sm:$0xff]  ;;  %v1129_v43 = vcombine.low %v63_v31, %v67_v32  ;;  %v53_v17 = vld [vmem:[%s2008_s1 + $0xb0] sm:$0xff] }
   0xc   :  { %v75_v40 = vld [vmem:[%s2008_s1 + $0x160] sm:$0xff]  ;;  %v76_v42 = vld [vmem:[%s2008_s1 + $0x168] sm:$0xff]  ;;  %v1131_v44 = vcombine.low %v64_v33, %v68_v34  ;;  %v50_v19 = vld [vmem:[%s2008_s1 + $0x98] sm:$0xff]  ;;  %v1109_v21 = vcombine.low %v41_v9, %v45_v10  ;;  %v1111_v22 = vcombine.low %v42_v12, %v46_v13  ;;  %v1118_v23 = vcombine.high %v49_v16, %v53_v17 }
   0xd   :  { %v1138_v45 = vcombine.high %v71_v39, %v75_v40  ;;  %v1140_v46 = vcombine.high %v72_v41, %v76_v42  ;;  %v79_v47 = vld [vmem:[%s2008_s1 + $0x180] sm:$0xff]  ;;  %v80_v49 = vld [vmem:[%s2008_s1 + $0x188] sm:$0xff]  ;;  %v1137_v51 = vcombine.low %v71_v39, %v75_v40  ;;  %v1139_v52 = vcombine.low %v72_v41, %v76_v42  ;;  %v54_v20 = vld [vmem:[%s2008_s1 + $0xb8] sm:$0xff] }
   0xe   :  { %510 = vmatpush1.bf16.msra.mxu0 %v1113_v27  ;;  %623 = vmatpush1.bf16.msra.mxu1 %v1115_v28  ;;  %v83_v48 = vld [vmem:[%s2008_s1 + $0x1a0] sm:$0xff]  ;;  %v84_v50 = vld [vmem:[%s2008_s1 + $0x1a8] sm:$0xff]  ;;  %v1120_v24 = vcombine.high %v50_v19, %v54_v20  ;;  %v57_v26 = vld [vmem:[%s2008_s1 + $0xd0] sm:$0xff]  ;;  %v1119_v31 = vcombine.low %v50_v19, %v54_v20 }
   0xf   :  { %511 = vmatprep.subr.bf16.mxu0 %v1122_v29  ;;  %624 = vmatprep.subr.bf16.mxu1 %v1124_v30  ;;  %v1146_v53 = vcombine.high %v79_v47, %v83_v48  ;;  %v87_v54 = vld [vmem:[%s2008_s1 + $0x1c0] sm:$0xff]  ;;  %v1148_v55 = vcombine.high %v80_v49, %v84_v50  ;;  %v88_v57 = vld [vmem:[%s2008_s1 + $0x1c8] sm:$0xff]  ;;  %v1145_v59 = vcombine.low %v79_v47, %v83_v48  ;;  %v61_v27 = vld [vmem:[%s2008_s1 + $0xf0] sm:$0xff] }
  0x10   :  { %v91_v56 = vld [vmem:[%s2008_s1 + $0x1e0] sm:$0xff]  ;;  %v92_v58 = vld [vmem:[%s2008_s1 + $0x1e8] sm:$0xff]  ;;  %v1147_v60 = vcombine.low %v80_v49, %v84_v50  ;;  %v58_v28 = vld [vmem:[%s2008_s1 + $0xd8] sm:$0xff]  ;;  %v1117_v30 = vcombine.low %v49_v16, %v53_v17  ;;  %v1126_v32 = vcombine.high %v57_v26, %v61_v27 }
  0x11   :  { %v1154_v61 = vcombine.high %v87_v54, %v91_v56  ;;  %v1156_v62 = vcombine.high %v88_v57, %v92_v58  ;;  %v1153_v4 = vcombine.low %v87_v54, %v91_v56  ;;  %v1155_v5 = vcombine.low %v88_v57, %v92_v58  ;;  %v1304_v8 = vld [vmem:[%s2009_s0] sm:$0xff]   ;;  %v1337_v25 = vld [vmem:[%s2009_s0 + $0x8] sm:$0xff]   ;;  %v62_v29 = vld [vmem:[%s2008_s1 + $0xf8] sm:$0xff] }
  0x12   :  { %512 = vmatpush1.bf16.msra.mxu0 %v1121_v35  ;;  %625 = vmatpush1.bf16.msra.mxu1 %v1123_v36  ;;  %v1128_v33 = vcombine.high %v58_v28, %v62_v29  ;;  %v65_v34 = vld [vmem:[%s2008_s1 + $0x110] sm:$0xff]  ;;  %v66_v36 = vld [vmem:[%s2008_s1 + $0x118] sm:$0xff]  ;;  %v1127_v39 = vcombine.low %v58_v28, %v62_v29  ;;  %v1167_v9 = vld [vmem:[%s2009_s0 + $0x28] sm:$0xff]  }
  0x13   :  { %513 = vmatprep.subr.bf16.mxu0 %v1130_v37  ;;  %626 = vmatprep.subr.bf16.mxu1 %v1132_v38  ;;  %v69_v35 = vld [vmem:[%s2008_s1 + $0x130] sm:$0xff]  ;;  %v70_v37 = vld [vmem:[%s2008_s1 + $0x138] sm:$0xff]  ;;  %v1125_v38 = vcombine.low %v57_v26, %v61_v27 }
  0x14   :  { %v1134_v40 = vcombine.high %v65_v34, %v69_v35  ;;  %v1370_v41 = vld [vmem:[%s2009_s0 + $0x10] sm:$0xff]   ;;  %v1136_v42 = vcombine.high %v66_v36, %v70_v37  ;;  %v1133_v47 = vcombine.low %v65_v34, %v69_v35  ;;  %v1135_v48 = vcombine.low %v66_v36, %v70_v37  ;;  %v86_v54 = vld [vmem:[%s2008_s1 + $0x1b8] sm:$0xff] }
  0x15   :  { %v1165_v58 = vld [vmem:[%s2009_s0 + $0x18] sm:$0xff]   ;;  %v1168_v10 = vld [vmem:[%s2009_s0 + $0x30] sm:$0xff]  }
  0x16   :  { %514 = vmatpush1.bf16.msra.mxu0 %v1129_v43  ;;  %627 = vmatpush1.bf16.msra.mxu1 %v1131_v44  ;;  %v73_v43 = vld [vmem:[%s2008_s1 + $0x150] sm:$0xff]  ;;  %v94_v63 = vld [vmem:[%s2008_s1 + $0x1f8] sm:$0xff] }
  0x17   :  { %515 = vmatprep.subr.bf16.mxu0 %v1138_v45  ;;  %628 = vmatprep.subr.bf16.mxu1 %v1140_v46  ;;  %v77_v44 = vld [vmem:[%s2008_s1 + $0x170] sm:$0xff]  ;;  %v74_v45 = vld [vmem:[%s2008_s1 + $0x158] sm:$0xff] }
  0x18   :  { %v78_v46 = vld [vmem:[%s2008_s1 + $0x178] sm:$0xff]  ;;  %v1142_v49 = vcombine.high %v73_v43, %v77_v44 }
  0x19   :  { %v1144_v50 = vcombine.high %v74_v45, %v78_v46  ;;  %v1143_v56 = vcombine.low %v74_v45, %v78_v46 }
  0x1a   :  { %516 = vmatpush1.bf16.msra.mxu0 %v1137_v51  ;;  %629 = vmatpush1.bf16.msra.mxu1 %v1139_v52  ;;  %v81_v51 = vld [vmem:[%s2008_s1 + $0x190] sm:$0xff] }
  0x1b   :  { %517 = vmatprep.subr.bf16.mxu0 %v1146_v53  ;;  %630 = vmatprep.subr.bf16.mxu1 %v1148_v55  ;;  %v85_v52 = vld [vmem:[%s2008_s1 + $0x1b0] sm:$0xff]  ;;  %v82_v53 = vld [vmem:[%s2008_s1 + $0x198] sm:$0xff]  ;;  %v1141_v55 = vcombine.low %v73_v43, %v77_v44 }
  0x1c   :  { %v1150_v57 = vcombine.high %v81_v51, %v85_v52  ;;  %v1149_v0 = vcombine.low %v81_v51, %v85_v52  ;;  %v1151_v1 = vcombine.low %v82_v53, %v86_v54 }
  0x1e   :  { %518 = vmatpush1.bf16.msra.mxu0 %v1145_v59  ;;  %631 = vmatpush1.bf16.msra.mxu1 %v1147_v60  ;;  %v1152_v59 = vcombine.high %v82_v53, %v86_v54  ;;  %v89_v60 = vld [vmem:[%s2008_s1 + $0x1d0] sm:$0xff] }
  0x1f   :  { %519 = vmatprep.subr.bf16.mxu0 %v1154_v61  ;;  %632 = vmatprep.subr.bf16.mxu1 %v1156_v62  ;;  %v93_v61 = vld [vmem:[%s2008_s1 + $0x1f0] sm:$0xff]  ;;  %v90_v62 = vld [vmem:[%s2008_s1 + $0x1d8] sm:$0xff] }
  0x20   :  { %v1158_v2 = vcombine.high %v89_v60, %v93_v61 }
  0x22   :  { %520 = vmatpush1.bf16.msra.mxu0 %v1153_v4  ;;  %633 = vmatpush1.bf16.msra.mxu1 %v1155_v5  ;;  %v1160_v4 = vcombine.high %v90_v62, %v94_v63  ;;  %v1157_v5 = vcombine.low %v89_v60, %v93_v61 }
  0x23   :  { %731 = vmatprep.subr.bf16.mxu0 %v1102_v6  ;;  %844 = vmatprep.subr.bf16.mxu1 %v1104_v7  ;;  %v1159_v6 = vcombine.low %v90_v62, %v94_v63  ;;  %v1166_v7 = vld [vmem:[%s2009_s0 + $0x20] sm:$0xff]  }
  0x25   :  { %538 = vmatmul.mubr.bf16.vlgmr.msra.gmra.mrb[0].mxu0 %v1304_v8  ;;  %651 = vmatmul.mubr.bf16.vlgmr.msra.gmra.mrb[0].mxu1 %v1304_v8 }
  0x26   :  { %732 = vmatpush1.bf16.msra.mxu0 %v1101_v11  ;;  %845 = vmatpush1.bf16.msra.mxu1 %v1103_v14  ;;  %v1169_v11 = vld [vmem:[%s2009_s0 + $0x38] sm:$0xff]   ;;  %v1463_v14 = vld [vmem:[%s2010_s2] sm:$0xff] }
  0x27   :  { %547 = vmatprep.mubr.bf16.mxu0 %v1170_v3  ;;  %660 = vmatprep.mubr.bf16.mxu1 %v1170_v3 }
  0x28   :  { %733 = vmatprep.subr.bf16.mxu0 %v1110_v15  ;;  %846 = vmatprep.subr.bf16.mxu1 %v1112_v18 }
  0x2a   :  { %734 = vmatpush1.bf16.msra.mxu0 %v1109_v21  ;;  %847 = vmatpush1.bf16.msra.mxu1 %v1111_v22 }
  0x2b   :  { %735 = vmatprep.subr.bf16.mxu0 %v1118_v23  ;;  %848 = vmatprep.subr.bf16.mxu1 %v1120_v24 }
  0x2d   :  { %548 = vmatmul.mubr.bf16.gmra.mrb[4].mxu0 %v1337_v25  ;;  %661 = vmatmul.mubr.bf16.gmra.mrb[4].mxu1 %v1337_v25 }
  0x2e   :  { %557 = vmatprep.mubr.bf16.mxu0 %v1170_v3  ;;  %670 = vmatprep.mubr.bf16.mxu1 %v1170_v3 }
  0x2f   :  { %736 = vmatpush1.bf16.msra.mxu0 %v1117_v30  ;;  %849 = vmatpush1.bf16.msra.mxu1 %v1119_v31 }
  0x30   :  { %737 = vmatprep.subr.bf16.mxu0 %v1126_v32  ;;  %850 = vmatprep.subr.bf16.mxu1 %v1128_v33 }
  0x33   :  { %738 = vmatpush1.bf16.msra.mxu0 %v1125_v38  ;;  %851 = vmatpush1.bf16.msra.mxu1 %v1127_v39 }
  0x34   :  { %739 = vmatprep.subr.bf16.mxu0 %v1134_v40  ;;  %852 = vmatprep.subr.bf16.mxu1 %v1136_v42 }
  0x35   :  { %558 = vmatmul.mubr.bf16.gmra.mrb[8].mxu0 %v1370_v41  ;;  %671 = vmatmul.mubr.bf16.gmra.mrb[8].mxu1 %v1370_v41 }
  0x36   :  { %567 = vmatprep.mubr.bf16.mxu0 %v1170_v3  ;;  %680 = vmatprep.mubr.bf16.mxu1 %v1170_v3 }
  0x37   :  { %740 = vmatpush1.bf16.msra.mxu0 %v1133_v47  ;;  %853 = vmatpush1.bf16.msra.mxu1 %v1135_v48 }
  0x38   :  { %741 = vmatprep.subr.bf16.mxu0 %v1142_v49  ;;  %854 = vmatprep.subr.bf16.mxu1 %v1144_v50 }
  0x3b   :  { %742 = vmatpush1.bf16.msra.mxu0 %v1141_v55  ;;  %855 = vmatpush1.bf16.msra.mxu1 %v1143_v56 }
  0x3c   :  { %743 = vmatprep.subr.bf16.mxu0 %v1150_v57  ;;  %856 = vmatprep.subr.bf16.mxu1 %v1152_v59 }
  0x3d   :  { %568 = vmatmul.mubr.bf16.gmra.mrb[12].mxu0 %v1165_v58  ;;  %681 = vmatmul.mubr.bf16.gmra.mrb[12].mxu1 %v1165_v58 }
  0x3e   :  { %577 = vmatprep.mubr.bf16.mxu0 %v1170_v3  ;;  %690 = vmatprep.mubr.bf16.mxu1 %v1170_v3 }
  0x3f   :  { %744 = vmatpush1.bf16.msra.mxu0 %v1149_v0  ;;  %857 = vmatpush1.bf16.msra.mxu1 %v1151_v1 }
  0x40   :  { %745 = vmatprep.subr.bf16.mxu0 %v1158_v2  ;;  %858 = vmatprep.subr.bf16.mxu1 %v1160_v4 }
  0x43   :  { %746 = vmatpush1.bf16.msra.mxu0 %v1157_v5  ;;  %859 = vmatpush1.bf16.msra.mxu1 %v1159_v6 }
  0x45   :  { %578 = vmatmul.mubr.bf16.gmra.mrb[16].mxu0 %v1166_v7  ;;  %691 = vmatmul.mubr.bf16.gmra.mrb[16].mxu1 %v1166_v7 }
  0x46   :  { %587 = vmatprep.mubr.bf16.mxu0 %v1170_v3  ;;  %700 = vmatprep.mubr.bf16.mxu1 %v1170_v3 }
  0x4d   :  { %588 = vmatmul.mubr.bf16.gmra.mrb[20].mxu0 %v1167_v9  ;;  %701 = vmatmul.mubr.bf16.gmra.mrb[20].mxu1 %v1167_v9 }
  0x4e   :  { %597 = vmatprep.mubr.bf16.mxu0 %v1170_v3  ;;  %710 = vmatprep.mubr.bf16.mxu1 %v1170_v3 }
  0x55   :  { %598 = vmatmul.mubr.bf16.gmra.mrb[24].mxu0 %v1168_v10  ;;  %711 = vmatmul.mubr.bf16.gmra.mrb[24].mxu1 %v1168_v10 }
  0x56   :  { %607 = vmatprep.mubr.bf16.mxu0 %v1170_v3  ;;  %720 = vmatprep.mubr.bf16.mxu1 %v1170_v3 }
  0x5d   :  { %608 = vmatmul.mubr.bf16.gmra.mrb[28].mxu0 %v1169_v11  ;;  %721 = vmatmul.mubr.bf16.gmra.mrb[28].mxu1 %v1169_v11 }
  0x5e   :  { %763 = vmatprep.mubr.bf16.mxu0 %v1170_v3  ;;  %876 = vmatprep.mubr.bf16.mxu1 %v1170_v3 }
  0x65   :  { %764 = vmatmul.mubr.bf16.vlgmr.msra.gmra.mrb[32].mxu0 %v1304_v8  ;;  %877 = vmatmul.mubr.bf16.vlgmr.msra.gmra.mrb[32].mxu1 %v1304_v8  ;;  %v97_v8 = vlaneseq }
  0x66   :  { %773 = vmatprep.mubr.bf16.mxu0 %v1170_v3  ;;  %886 = vmatprep.mubr.bf16.mxu1 %v1170_v3 }
  0x67   :  { %v1457_v12 = vshrl.u32 %v97_v8, 7 }
  0x69   :  { %v99_v13 = vsub.s32 0, %v1457_v12  ;;  %v107_v15 = vsub.s32 2, %v1457_v12  ;;  %v103_v16 = vsub.s32 1, %v1457_v12  ;;  %v111_v17 = vsub.s32 3, %v1457_v12 }
  0x6b   :  { %v1472_v18 = vrot.slane %v1463_v14, %v107_v15  ;;  %v1475_v19 = vrot.slane %v1463_v14, %v103_v16  ;;  %v1478_v20 = vrot.slane %v1463_v14, %v111_v17 }
  0x6d   :  { %774 = vmatmul.mubr.bf16.gmra.mrb[36].mxu0 %v1337_v25  ;;  %887 = vmatmul.mubr.bf16.gmra.mrb[36].mxu1 %v1337_v25 }
  0x6e   :  { %783 = vmatprep.mubr.bf16.mxu0 %v1170_v3  ;;  %896 = vmatprep.mubr.bf16.mxu1 %v1170_v3 }
  0x75   :  { %784 = vmatmul.mubr.bf16.gmra.mrb[40].mxu0 %v1370_v41  ;;  %897 = vmatmul.mubr.bf16.gmra.mrb[40].mxu1 %v1370_v41 }
  0x76   :  { %793 = vmatprep.mubr.bf16.mxu0 %v1170_v3  ;;  %906 = vmatprep.mubr.bf16.mxu1 %v1170_v3 }
  0x7d   :  { %794 = vmatmul.mubr.bf16.gmra.mrb[44].mxu0 %v1165_v58  ;;  %907 = vmatmul.mubr.bf16.gmra.mrb[44].mxu1 %v1165_v58 }
  0x7e   :  { %803 = vmatprep.mubr.bf16.mxu0 %v1170_v3  ;;  %916 = vmatprep.mubr.bf16.mxu1 %v1170_v3 }
  0x85   :  { %804 = vmatmul.mubr.bf16.gmra.mrb[48].mxu0 %v1166_v7  ;;  %917 = vmatmul.mubr.bf16.gmra.mrb[48].mxu1 %v1166_v7 }
  0x86   :  { %813 = vmatprep.mubr.bf16.mxu0 %v1170_v3  ;;  %926 = vmatprep.mubr.bf16.mxu1 %v1170_v3 }
  0x8d   :  { %814 = vmatmul.mubr.bf16.gmra.mrb[52].mxu0 %v1167_v9  ;;  %927 = vmatmul.mubr.bf16.gmra.mrb[52].mxu1 %v1167_v9 }
  0x8e   :  { %823 = vmatprep.mubr.bf16.mxu0 %v1170_v3  ;;  %936 = vmatprep.mubr.bf16.mxu1 %v1170_v3 }
  0x95   :  { %824 = vmatmul.mubr.bf16.gmra.mrb[56].mxu0 %v1168_v10  ;;  %937 = vmatmul.mubr.bf16.gmra.mrb[56].mxu1 %v1168_v10 }
  0x96   :  { %833 = vmatprep.mubr.bf16.mxu0 %v1170_v3  ;;  %946 = vmatprep.mubr.bf16.mxu1 %v1170_v3  ;;  %v1469_v3 = vrot.slane %v1463_v14, %v99_v13 }
  0x9d   :  { %834 = vmatmul.mubr.bf16.gmra.mrb[60].mxu0 %v1169_v11  ;;  %947 = vmatmul.mubr.bf16.gmra.mrb[60].mxu1 %v1169_v11 }
  0xf8   :  { %v539_v21 = vpop.f32.mrb[0].mxu0  ;;  %v652_v23 = vpop.f32.mrb[0].mxu1 }
  0xf9   :  { %v540_v22 = vadd.f32 %v539_v21, %v1469_v3  ;;  %v541_v24 = vpop.f32.mrb[1].mxu0  ;;  %v653_v25 = vadd.f32 %v652_v23, %v1472_v18  ;;  %v654_v27 = vpop.f32.mrb[1].mxu1 }
  0xfa   :  { %v542_v26 = vadd.f32 %v541_v24, %v1475_v19  ;;  %v543_v28 = vpop.f32.mrb[2].mxu0  ;;  %v655_v29 = vadd.f32 %v654_v27, %v1478_v20  ;;  %v656_v31 = vpop.f32.mrb[2].mxu1 }
  0xfb   :  { %957 = vst [vmem:[%s2011_s3] sm:$0xff] %v540_v22  ;;  %v544_v30 = vadd.f32 %v543_v28, %v1469_v3  ;;  %v545_v32 = vpop.f32.mrb[3].mxu0  ;;  %959 = vst [vmem:[%s2011_s3 + $0x10] sm:$0xff] %v653_v25  ;;  %v657_v33 = vadd.f32 %v656_v31, %v1472_v18  ;;  %v658_v35 = vpop.f32.mrb[3].mxu1 }
  0xfc   :  { %958 = vst [vmem:[%s2011_s3 + $0x8] sm:$0xff] %v542_v26  ;;  %v546_v34 = vadd.f32 %v545_v32, %v1475_v19  ;;  %960 = vst [vmem:[%s2011_s3 + $0x18] sm:$0xff] %v655_v29  ;;  %v659_v36 = vadd.f32 %v658_v35, %v1478_v20 }
  0xfd   :  { %965 = vst [vmem:[%s2011_s3 + $0x40] sm:$0xff] %v544_v30  ;;  %967 = vst [vmem:[%s2011_s3 + $0x50] sm:$0xff] %v657_v33 }
  0xfe   :  { %966 = vst [vmem:[%s2011_s3 + $0x48] sm:$0xff] %v546_v34  ;;  %968 = vst [vmem:[%s2011_s3 + $0x58] sm:$0xff] %v659_v36 }
 0x100   :  { %v549_v37 = vpop.f32.mrb[4].mxu0  ;;  %v662_v39 = vpop.f32.mrb[4].mxu1 }
 0x101   :  { %v550_v38 = vadd.f32 %v549_v37, %v1469_v3  ;;  %v551_v40 = vpop.f32.mrb[5].mxu0  ;;  %v663_v41 = vadd.f32 %v662_v39, %v1472_v18  ;;  %v664_v43 = vpop.f32.mrb[5].mxu1 }
 0x102   :  { %v552_v42 = vadd.f32 %v551_v40, %v1475_v19  ;;  %v553_v44 = vpop.f32.mrb[6].mxu0  ;;  %v665_v45 = vadd.f32 %v664_v43, %v1478_v20  ;;  %v666_v47 = vpop.f32.mrb[6].mxu1 }
 0x103   :  { %973 = vst [vmem:[%s2011_s3 + $0x80] sm:$0xff] %v550_v38  ;;  %v554_v46 = vadd.f32 %v553_v44, %v1469_v3  ;;  %v555_v48 = vpop.f32.mrb[7].mxu0  ;;  %975 = vst [vmem:[%s2011_s3 + $0x90] sm:$0xff] %v663_v41  ;;  %v667_v49 = vadd.f32 %v666_v47, %v1472_v18  ;;  %v668_v51 = vpop.f32.mrb[7].mxu1 }
 0x104   :  { %974 = vst [vmem:[%s2011_s3 + $0x88] sm:$0xff] %v552_v42  ;;  %v556_v50 = vadd.f32 %v555_v48, %v1475_v19  ;;  %976 = vst [vmem:[%s2011_s3 + $0x98] sm:$0xff] %v665_v45  ;;  %v669_v52 = vadd.f32 %v668_v51, %v1478_v20 }
 0x105   :  { %981 = vst [vmem:[%s2011_s3 + $0xc0] sm:$0xff] %v554_v46  ;;  %983 = vst [vmem:[%s2011_s3 + $0xd0] sm:$0xff] %v667_v49 }
 0x106   :  { %982 = vst [vmem:[%s2011_s3 + $0xc8] sm:$0xff] %v556_v50  ;;  %984 = vst [vmem:[%s2011_s3 + $0xd8] sm:$0xff] %v669_v52 }
 0x108   :  { %v559_v53 = vpop.f32.mrb[8].mxu0  ;;  %v672_v55 = vpop.f32.mrb[8].mxu1 }
 0x109   :  { %v560_v54 = vadd.f32 %v559_v53, %v1469_v3  ;;  %v561_v56 = vpop.f32.mrb[9].mxu0  ;;  %v673_v57 = vadd.f32 %v672_v55, %v1472_v18  ;;  %v674_v59 = vpop.f32.mrb[9].mxu1 }
 0x10a   :  { %v562_v58 = vadd.f32 %v561_v56, %v1475_v19  ;;  %v563_v60 = vpop.f32.mrb[10].mxu0  ;;  %v675_v61 = vadd.f32 %v674_v59, %v1478_v20  ;;  %v676_v63 = vpop.f32.mrb[10].mxu1 }
 0x10b   :  { %989 = vst [vmem:[%s2011_s3 + $0x100] sm:$0xff] %v560_v54  ;;  %v564_v62 = vadd.f32 %v563_v60, %v1469_v3  ;;  %v565_v0 = vpop.f32.mrb[11].mxu0  ;;  %991 = vst [vmem:[%s2011_s3 + $0x110] sm:$0xff] %v673_v57  ;;  %v677_v1 = vadd.f32 %v676_v63, %v1472_v18  ;;  %v678_v4 = vpop.f32.mrb[11].mxu1 }
 0x10c   :  { %990 = vst [vmem:[%s2011_s3 + $0x108] sm:$0xff] %v562_v58  ;;  %v566_v2 = vadd.f32 %v565_v0, %v1475_v19  ;;  %992 = vst [vmem:[%s2011_s3 + $0x118] sm:$0xff] %v675_v61  ;;  %v679_v5 = vadd.f32 %v678_v4, %v1478_v20 }
 0x10d   :  { %997 = vst [vmem:[%s2011_s3 + $0x140] sm:$0xff] %v564_v62  ;;  %999 = vst [vmem:[%s2011_s3 + $0x150] sm:$0xff] %v677_v1 }
 0x10e   :  { %998 = vst [vmem:[%s2011_s3 + $0x148] sm:$0xff] %v566_v2  ;;  %1000 = vst [vmem:[%s2011_s3 + $0x158] sm:$0xff] %v679_v5 }
 0x110   :  { %v569_v6 = vpop.f32.mrb[12].mxu0  ;;  %v682_v9 = vpop.f32.mrb[12].mxu1 }
 0x111   :  { %v570_v7 = vadd.f32 %v569_v6, %v1469_v3  ;;  %v571_v10 = vpop.f32.mrb[13].mxu0  ;;  %v683_v11 = vadd.f32 %v682_v9, %v1472_v18  ;;  %v684_v13 = vpop.f32.mrb[13].mxu1 }
 0x112   :  { %v572_v8 = vadd.f32 %v571_v10, %v1475_v19  ;;  %v573_v15 = vpop.f32.mrb[14].mxu0  ;;  %v685_v16 = vadd.f32 %v684_v13, %v1478_v20  ;;  %v686_v21 = vpop.f32.mrb[14].mxu1 }
 0x113   :  { %1005 = vst [vmem:[%s2011_s3 + $0x180] sm:$0xff] %v570_v7  ;;  %v574_v17 = vadd.f32 %v573_v15, %v1469_v3  ;;  %v575_v22 = vpop.f32.mrb[15].mxu0  ;;  %1007 = vst [vmem:[%s2011_s3 + $0x190] sm:$0xff] %v683_v11  ;;  %v687_v23 = vadd.f32 %v686_v21, %v1472_v18  ;;  %v688_v25 = vpop.f32.mrb[15].mxu1  ;;  %v115_v21 = vsub.s32 4, %v1457_v12 }
 0x114   :  { %1006 = vst [vmem:[%s2011_s3 + $0x188] sm:$0xff] %v572_v8  ;;  %v576_v24 = vadd.f32 %v575_v22, %v1475_v19  ;;  %1008 = vst [vmem:[%s2011_s3 + $0x198] sm:$0xff] %v685_v16  ;;  %v689_v26 = vadd.f32 %v688_v25, %v1478_v20 }
 0x115   :  { %1013 = vst [vmem:[%s2011_s3 + $0x1c0] sm:$0xff] %v574_v17  ;;  %1015 = vst [vmem:[%s2011_s3 + $0x1d0] sm:$0xff] %v687_v23 }
 0x116   :  { %1014 = vst [vmem:[%s2011_s3 + $0x1c8] sm:$0xff] %v576_v24  ;;  %1016 = vst [vmem:[%s2011_s3 + $0x1d8] sm:$0xff] %v689_v26  ;;  %v123_v26 = vsub.s32 6, %v1457_v12 }
 0x118   :  { %v579_v27 = vpop.f32.mrb[16].mxu0  ;;  %v692_v29 = vpop.f32.mrb[16].mxu1 }
 0x119   :  { %v580_v28 = vadd.f32 %v579_v27, %v1469_v3  ;;  %v581_v30 = vpop.f32.mrb[17].mxu0  ;;  %v693_v31 = vadd.f32 %v692_v29, %v1472_v18  ;;  %v694_v33 = vpop.f32.mrb[17].mxu1  ;;  %v119_v27 = vsub.s32 5, %v1457_v12 }
 0x11a   :  { %v582_v32 = vadd.f32 %v581_v30, %v1475_v19  ;;  %v583_v34 = vpop.f32.mrb[18].mxu0  ;;  %v695_v35 = vadd.f32 %v694_v33, %v1478_v20  ;;  %v696_v37 = vpop.f32.mrb[18].mxu1 }
 0x11b   :  { %1021 = vst [vmem:[%s2011_s3 + $0x200] sm:$0xff] %v580_v28  ;;  %v584_v36 = vadd.f32 %v583_v34, %v1469_v3  ;;  %v585_v38 = vpop.f32.mrb[19].mxu0  ;;  %1023 = vst [vmem:[%s2011_s3 + $0x210] sm:$0xff] %v693_v31  ;;  %v697_v39 = vadd.f32 %v696_v37, %v1472_v18  ;;  %v698_v41 = vpop.f32.mrb[19].mxu1 }
 0x11c   :  { %1022 = vst [vmem:[%s2011_s3 + $0x208] sm:$0xff] %v582_v32  ;;  %v586_v40 = vadd.f32 %v585_v38, %v1475_v19  ;;  %1024 = vst [vmem:[%s2011_s3 + $0x218] sm:$0xff] %v695_v35  ;;  %v699_v42 = vadd.f32 %v698_v41, %v1478_v20  ;;  %v127_v32 = vsub.s32 7, %v1457_v12 }
 0x11d   :  { %1029 = vst [vmem:[%s2011_s3 + $0x240] sm:$0xff] %v584_v36  ;;  %1031 = vst [vmem:[%s2011_s3 + $0x250] sm:$0xff] %v697_v39 }
 0x11e   :  { %1030 = vst [vmem:[%s2011_s3 + $0x248] sm:$0xff] %v586_v40  ;;  %1032 = vst [vmem:[%s2011_s3 + $0x258] sm:$0xff] %v699_v42 }
 0x120   :  { %v589_v43 = vpop.f32.mrb[20].mxu0  ;;  %v702_v45 = vpop.f32.mrb[20].mxu1 }
 0x121   :  { %v590_v44 = vadd.f32 %v589_v43, %v1469_v3  ;;  %v591_v46 = vpop.f32.mrb[21].mxu0  ;;  %v703_v47 = vadd.f32 %v702_v45, %v1472_v18  ;;  %v704_v49 = vpop.f32.mrb[21].mxu1 }
 0x122   :  { %v592_v48 = vadd.f32 %v591_v46, %v1475_v19  ;;  %v593_v50 = vpop.f32.mrb[22].mxu0  ;;  %v705_v51 = vadd.f32 %v704_v49, %v1478_v20  ;;  %v706_v53 = vpop.f32.mrb[22].mxu1 }
 0x123   :  { %1037 = vst [vmem:[%s2011_s3 + $0x280] sm:$0xff] %v590_v44  ;;  %v594_v52 = vadd.f32 %v593_v50, %v1469_v3  ;;  %v595_v54 = vpop.f32.mrb[23].mxu0  ;;  %1039 = vst [vmem:[%s2011_s3 + $0x290] sm:$0xff] %v703_v47  ;;  %v707_v55 = vadd.f32 %v706_v53, %v1472_v18  ;;  %v708_v57 = vpop.f32.mrb[23].mxu1 }
 0x124   :  { %1038 = vst [vmem:[%s2011_s3 + $0x288] sm:$0xff] %v592_v48  ;;  %v596_v56 = vadd.f32 %v595_v54, %v1475_v19  ;;  %1040 = vst [vmem:[%s2011_s3 + $0x298] sm:$0xff] %v705_v51  ;;  %v709_v58 = vadd.f32 %v708_v57, %v1478_v20 }
 0x125   :  { %1045 = vst [vmem:[%s2011_s3 + $0x2c0] sm:$0xff] %v594_v52  ;;  %1047 = vst [vmem:[%s2011_s3 + $0x2d0] sm:$0xff] %v707_v55 }
 0x126   :  { %1046 = vst [vmem:[%s2011_s3 + $0x2c8] sm:$0xff] %v596_v56  ;;  %1048 = vst [vmem:[%s2011_s3 + $0x2d8] sm:$0xff] %v709_v58 }
 0x128   :  { %v599_v59 = vpop.f32.mrb[24].mxu0  ;;  %v712_v61 = vpop.f32.mrb[24].mxu1 }
 0x129   :  { %v600_v60 = vadd.f32 %v599_v59, %v1469_v3  ;;  %v601_v62 = vpop.f32.mrb[25].mxu0  ;;  %v713_v63 = vadd.f32 %v712_v61, %v1472_v18  ;;  %v714_v1 = vpop.f32.mrb[25].mxu1 }
 0x12a   :  { %v602_v0 = vadd.f32 %v601_v62, %v1475_v19  ;;  %v603_v2 = vpop.f32.mrb[26].mxu0  ;;  %v715_v4 = vadd.f32 %v714_v1, %v1478_v20  ;;  %v716_v6 = vpop.f32.mrb[26].mxu1 }
 0x12b   :  { %1053 = vst [vmem:[%s2011_s3 + $0x300] sm:$0xff] %v600_v60  ;;  %v604_v5 = vadd.f32 %v603_v2, %v1469_v3  ;;  %v605_v7 = vpop.f32.mrb[27].mxu0  ;;  %1055 = vst [vmem:[%s2011_s3 + $0x310] sm:$0xff] %v713_v63  ;;  %v717_v9 = vadd.f32 %v716_v6, %v1472_v18  ;;  %v718_v11 = vpop.f32.mrb[27].mxu1 }
 0x12c   :  { %1054 = vst [vmem:[%s2011_s3 + $0x308] sm:$0xff] %v602_v0  ;;  %v606_v10 = vadd.f32 %v605_v7, %v1475_v19  ;;  %1056 = vst [vmem:[%s2011_s3 + $0x318] sm:$0xff] %v715_v4  ;;  %v719_v8 = vadd.f32 %v718_v11, %v1478_v20 }
 0x12d   :  { %1061 = vst [vmem:[%s2011_s3 + $0x340] sm:$0xff] %v604_v5  ;;  %1063 = vst [vmem:[%s2011_s3 + $0x350] sm:$0xff] %v717_v9 }
 0x12e   :  { %1062 = vst [vmem:[%s2011_s3 + $0x348] sm:$0xff] %v606_v10  ;;  %1064 = vst [vmem:[%s2011_s3 + $0x358] sm:$0xff] %v719_v8 }
 0x130   :  { %v609_v13 = vpop.f32.mrb[28].mxu0  ;;  %v722_v16 = vpop.f32.mrb[28].mxu1 }
 0x131   :  { %v610_v15 = vadd.f32 %v609_v13, %v1469_v3  ;;  %v611_v17 = vpop.f32.mrb[29].mxu0  ;;  %v723_v22 = vadd.f32 %v722_v16, %v1472_v18  ;;  %v724_v24 = vpop.f32.mrb[29].mxu1 }
 0x132   :  { %v612_v23 = vadd.f32 %v611_v17, %v1475_v19  ;;  %v613_v25 = vpop.f32.mrb[30].mxu0  ;;  %v725_v28 = vadd.f32 %v724_v24, %v1478_v20  ;;  %v726_v30 = vpop.f32.mrb[30].mxu1 }
 0x133   :  { %1069 = vst [vmem:[%s2011_s3 + $0x380] sm:$0xff] %v610_v15  ;;  %v614_v29 = vadd.f32 %v613_v25, %v1469_v3  ;;  %v615_v31 = vpop.f32.mrb[31].mxu0  ;;  %1071 = vst [vmem:[%s2011_s3 + $0x390] sm:$0xff] %v723_v22  ;;  %v727_v33 = vadd.f32 %v726_v30, %v1472_v18  ;;  %v728_v35 = vpop.f32.mrb[31].mxu1  ;;  %v1732_v3 = vrot.slane %v1463_v14, %v115_v21 }
 0x134   :  { %1070 = vst [vmem:[%s2011_s3 + $0x388] sm:$0xff] %v612_v23  ;;  %v616_v34 = vadd.f32 %v615_v31, %v1475_v19  ;;  %1072 = vst [vmem:[%s2011_s3 + $0x398] sm:$0xff] %v725_v28  ;;  %v729_v12 = vadd.f32 %v728_v35, %v1478_v20  ;;  %v1741_v18 = vrot.slane %v1463_v14, %v123_v26 }
 0x135   :  { %1077 = vst [vmem:[%s2011_s3 + $0x3c0] sm:$0xff] %v614_v29  ;;  %1079 = vst [vmem:[%s2011_s3 + $0x3d0] sm:$0xff] %v727_v33  ;;  %v1744_v19 = vrot.slane %v1463_v14, %v119_v27  ;;  %v1750_v20 = vrot.slane %v1463_v14, %v127_v32 }
 0x136   :  { %1078 = vst [vmem:[%s2011_s3 + $0x3c8] sm:$0xff] %v616_v34  ;;  %1080 = vst [vmem:[%s2011_s3 + $0x3d8] sm:$0xff] %v729_v12 }
 0x138   :  { %v765_v36 = vpop.f32.mrb[32].mxu0  ;;  %v878_v38 = vpop.f32.mrb[32].mxu1 }
 0x139   :  { %v766_v37 = vadd.f32 %v765_v36, %v1732_v3  ;;  %v767_v39 = vpop.f32.mrb[33].mxu0  ;;  %v879_v40 = vadd.f32 %v878_v38, %v1741_v18  ;;  %v880_v42 = vpop.f32.mrb[33].mxu1 }
 0x13a   :  { %v768_v41 = vadd.f32 %v767_v39, %v1744_v19  ;;  %v769_v43 = vpop.f32.mrb[34].mxu0  ;;  %v881_v44 = vadd.f32 %v880_v42, %v1750_v20  ;;  %v882_v45 = vpop.f32.mrb[34].mxu1 }
 0x13b   :  { %961 = vst [vmem:[%s2011_s3 + $0x20] sm:$0xff] %v766_v37  ;;  %v770_v14 = vadd.f32 %v769_v43, %v1732_v3  ;;  %v771_v46 = vpop.f32.mrb[35].mxu0  ;;  %963 = vst [vmem:[%s2011_s3 + $0x30] sm:$0xff] %v879_v40  ;;  %v883_v47 = vadd.f32 %v882_v45, %v1741_v18  ;;  %v884_v49 = vpop.f32.mrb[35].mxu1 }
 0x13c   :  { %962 = vst [vmem:[%s2011_s3 + $0x28] sm:$0xff] %v768_v41  ;;  %v772_v48 = vadd.f32 %v771_v46, %v1744_v19  ;;  %964 = vst [vmem:[%s2011_s3 + $0x38] sm:$0xff] %v881_v44  ;;  %v885_v50 = vadd.f32 %v884_v49, %v1750_v20 }
 0x13d   :  { %969 = vst [vmem:[%s2011_s3 + $0x60] sm:$0xff] %v770_v14  ;;  %971 = vst [vmem:[%s2011_s3 + $0x70] sm:$0xff] %v883_v47 }
 0x13e   :  { %970 = vst [vmem:[%s2011_s3 + $0x68] sm:$0xff] %v772_v48  ;;  %972 = vst [vmem:[%s2011_s3 + $0x78] sm:$0xff] %v885_v50 }
 0x140   :  { %v775_v51 = vpop.f32.mrb[36].mxu0  ;;  %v888_v53 = vpop.f32.mrb[36].mxu1 }
 0x141   :  { %v776_v52 = vadd.f32 %v775_v51, %v1732_v3  ;;  %v777_v54 = vpop.f32.mrb[37].mxu0  ;;  %v889_v55 = vadd.f32 %v888_v53, %v1741_v18  ;;  %v890_v57 = vpop.f32.mrb[37].mxu1 }
 0x142   :  { %v778_v56 = vadd.f32 %v777_v54, %v1744_v19  ;;  %v779_v58 = vpop.f32.mrb[38].mxu0  ;;  %v891_v59 = vadd.f32 %v890_v57, %v1750_v20  ;;  %v892_v61 = vpop.f32.mrb[38].mxu1 }
 0x143   :  { %977 = vst [vmem:[%s2011_s3 + $0xa0] sm:$0xff] %v776_v52  ;;  %v780_v60 = vadd.f32 %v779_v58, %v1732_v3  ;;  %v781_v62 = vpop.f32.mrb[39].mxu0  ;;  %979 = vst [vmem:[%s2011_s3 + $0xb0] sm:$0xff] %v889_v55  ;;  %v893_v63 = vadd.f32 %v892_v61, %v1741_v18  ;;  %v894_v1 = vpop.f32.mrb[39].mxu1 }
 0x144   :  { %978 = vst [vmem:[%s2011_s3 + $0xa8] sm:$0xff] %v778_v56  ;;  %v782_v0 = vadd.f32 %v781_v62, %v1744_v19  ;;  %980 = vst [vmem:[%s2011_s3 + $0xb8] sm:$0xff] %v891_v59  ;;  %v895_v2 = vadd.f32 %v894_v1, %v1750_v20 }
 0x145   :  { %985 = vst [vmem:[%s2011_s3 + $0xe0] sm:$0xff] %v780_v60  ;;  %987 = vst [vmem:[%s2011_s3 + $0xf0] sm:$0xff] %v893_v63 }
 0x146   :  { %986 = vst [vmem:[%s2011_s3 + $0xe8] sm:$0xff] %v782_v0  ;;  %988 = vst [vmem:[%s2011_s3 + $0xf8] sm:$0xff] %v895_v2 }
 0x148   :  { %v785_v4 = vpop.f32.mrb[40].mxu0  ;;  %v898_v6 = vpop.f32.mrb[40].mxu1 }
 0x149   :  { %v786_v5 = vadd.f32 %v785_v4, %v1732_v3  ;;  %v787_v7 = vpop.f32.mrb[41].mxu0  ;;  %v899_v9 = vadd.f32 %v898_v6, %v1741_v18  ;;  %v900_v11 = vpop.f32.mrb[41].mxu1 }
 0x14a   :  { %v788_v10 = vadd.f32 %v787_v7, %v1744_v19  ;;  %v789_v8 = vpop.f32.mrb[42].mxu0  ;;  %v901_v13 = vadd.f32 %v900_v11, %v1750_v20  ;;  %v902_v16 = vpop.f32.mrb[42].mxu1 }
 0x14b   :  { %993 = vst [vmem:[%s2011_s3 + $0x120] sm:$0xff] %v786_v5  ;;  %v790_v15 = vadd.f32 %v789_v8, %v1732_v3  ;;  %v791_v17 = vpop.f32.mrb[43].mxu0  ;;  %995 = vst [vmem:[%s2011_s3 + $0x130] sm:$0xff] %v899_v9  ;;  %v903_v21 = vadd.f32 %v902_v16, %v1741_v18  ;;  %v904_v23 = vpop.f32.mrb[43].mxu1 }
 0x14c   :  { %994 = vst [vmem:[%s2011_s3 + $0x128] sm:$0xff] %v788_v10  ;;  %v792_v22 = vadd.f32 %v791_v17, %v1744_v19  ;;  %996 = vst [vmem:[%s2011_s3 + $0x138] sm:$0xff] %v901_v13  ;;  %v905_v24 = vadd.f32 %v904_v23, %v1750_v20 }
 0x14d   :  { %1001 = vst [vmem:[%s2011_s3 + $0x160] sm:$0xff] %v790_v15  ;;  %1003 = vst [vmem:[%s2011_s3 + $0x170] sm:$0xff] %v903_v21 }
 0x14e   :  { %1002 = vst [vmem:[%s2011_s3 + $0x168] sm:$0xff] %v792_v22  ;;  %1004 = vst [vmem:[%s2011_s3 + $0x178] sm:$0xff] %v905_v24 }
 0x150   :  { %v795_v25 = vpop.f32.mrb[44].mxu0  ;;  %v908_v27 = vpop.f32.mrb[44].mxu1 }
 0x151   :  { %v796_v26 = vadd.f32 %v795_v25, %v1732_v3  ;;  %v797_v28 = vpop.f32.mrb[45].mxu0  ;;  %v909_v29 = vadd.f32 %v908_v27, %v1741_v18  ;;  %v910_v31 = vpop.f32.mrb[45].mxu1 }
 0x152   :  { %v798_v30 = vadd.f32 %v797_v28, %v1744_v19  ;;  %v799_v32 = vpop.f32.mrb[46].mxu0  ;;  %v911_v33 = vadd.f32 %v910_v31, %v1750_v20  ;;  %v912_v35 = vpop.f32.mrb[46].mxu1 }
 0x153   :  { %1009 = vst [vmem:[%s2011_s3 + $0x1a0] sm:$0xff] %v796_v26  ;;  %v800_v34 = vadd.f32 %v799_v32, %v1732_v3  ;;  %v801_v12 = vpop.f32.mrb[47].mxu0  ;;  %1011 = vst [vmem:[%s2011_s3 + $0x1b0] sm:$0xff] %v909_v29  ;;  %v913_v36 = vadd.f32 %v912_v35, %v1741_v18  ;;  %v914_v38 = vpop.f32.mrb[47].mxu1 }
 0x154   :  { %1010 = vst [vmem:[%s2011_s3 + $0x1a8] sm:$0xff] %v798_v30  ;;  %v802_v37 = vadd.f32 %v801_v12, %v1744_v19  ;;  %1012 = vst [vmem:[%s2011_s3 + $0x1b8] sm:$0xff] %v911_v33  ;;  %v915_v39 = vadd.f32 %v914_v38, %v1750_v20 }
 0x155   :  { %1017 = vst [vmem:[%s2011_s3 + $0x1e0] sm:$0xff] %v800_v34  ;;  %1019 = vst [vmem:[%s2011_s3 + $0x1f0] sm:$0xff] %v913_v36 }
 0x156   :  { %1018 = vst [vmem:[%s2011_s3 + $0x1e8] sm:$0xff] %v802_v37  ;;  %1020 = vst [vmem:[%s2011_s3 + $0x1f8] sm:$0xff] %v915_v39 }
 0x158   :  { %v805_v40 = vpop.f32.mrb[48].mxu0  ;;  %v918_v42 = vpop.f32.mrb[48].mxu1 }
 0x159   :  { %v806_v41 = vadd.f32 %v805_v40, %v1732_v3  ;;  %v807_v43 = vpop.f32.mrb[49].mxu0  ;;  %v919_v44 = vadd.f32 %v918_v42, %v1741_v18  ;;  %v920_v45 = vpop.f32.mrb[49].mxu1 }
 0x15a   :  { %v808_v14 = vadd.f32 %v807_v43, %v1744_v19  ;;  %v809_v46 = vpop.f32.mrb[50].mxu0  ;;  %v921_v47 = vadd.f32 %v920_v45, %v1750_v20  ;;  %v922_v49 = vpop.f32.mrb[50].mxu1 }
 0x15b   :  { %1025 = vst [vmem:[%s2011_s3 + $0x220] sm:$0xff] %v806_v41  ;;  %v810_v48 = vadd.f32 %v809_v46, %v1732_v3  ;;  %v811_v50 = vpop.f32.mrb[51].mxu0  ;;  %1027 = vst [vmem:[%s2011_s3 + $0x230] sm:$0xff] %v919_v44  ;;  %v923_v51 = vadd.f32 %v922_v49, %v1741_v18  ;;  %v924_v53 = vpop.f32.mrb[51].mxu1 }
 0x15c   :  { %1026 = vst [vmem:[%s2011_s3 + $0x228] sm:$0xff] %v808_v14  ;;  %v812_v52 = vadd.f32 %v811_v50, %v1744_v19  ;;  %1028 = vst [vmem:[%s2011_s3 + $0x238] sm:$0xff] %v921_v47  ;;  %v925_v54 = vadd.f32 %v924_v53, %v1750_v20 }
 0x15d   :  { %1033 = vst [vmem:[%s2011_s3 + $0x260] sm:$0xff] %v810_v48  ;;  %1035 = vst [vmem:[%s2011_s3 + $0x270] sm:$0xff] %v923_v51 }
 0x15e   :  { %1034 = vst [vmem:[%s2011_s3 + $0x268] sm:$0xff] %v812_v52  ;;  %1036 = vst [vmem:[%s2011_s3 + $0x278] sm:$0xff] %v925_v54 }
 0x160   :  { %v815_v55 = vpop.f32.mrb[52].mxu0  ;;  %v928_v57 = vpop.f32.mrb[52].mxu1 }
 0x161   :  { %v816_v56 = vadd.f32 %v815_v55, %v1732_v3  ;;  %v817_v58 = vpop.f32.mrb[53].mxu0  ;;  %v929_v59 = vadd.f32 %v928_v57, %v1741_v18  ;;  %v930_v61 = vpop.f32.mrb[53].mxu1 }
 0x162   :  { %v818_v60 = vadd.f32 %v817_v58, %v1744_v19  ;;  %v819_v62 = vpop.f32.mrb[54].mxu0  ;;  %v931_v63 = vadd.f32 %v930_v61, %v1750_v20  ;;  %v932_v1 = vpop.f32.mrb[54].mxu1 }
 0x163   :  { %1041 = vst [vmem:[%s2011_s3 + $0x2a0] sm:$0xff] %v816_v56  ;;  %v820_v0 = vadd.f32 %v819_v62, %v1732_v3  ;;  %v821_v2 = vpop.f32.mrb[55].mxu0  ;;  %1043 = vst [vmem:[%s2011_s3 + $0x2b0] sm:$0xff] %v929_v59  ;;  %v933_v4 = vadd.f32 %v932_v1, %v1741_v18  ;;  %v934_v6 = vpop.f32.mrb[55].mxu1 }
 0x164   :  { %1042 = vst [vmem:[%s2011_s3 + $0x2a8] sm:$0xff] %v818_v60  ;;  %v822_v5 = vadd.f32 %v821_v2, %v1744_v19  ;;  %1044 = vst [vmem:[%s2011_s3 + $0x2b8] sm:$0xff] %v931_v63  ;;  %v935_v7 = vadd.f32 %v934_v6, %v1750_v20 }
 0x165   :  { %1049 = vst [vmem:[%s2011_s3 + $0x2e0] sm:$0xff] %v820_v0  ;;  %1051 = vst [vmem:[%s2011_s3 + $0x2f0] sm:$0xff] %v933_v4 }
 0x166   :  { %1050 = vst [vmem:[%s2011_s3 + $0x2e8] sm:$0xff] %v822_v5  ;;  %1052 = vst [vmem:[%s2011_s3 + $0x2f8] sm:$0xff] %v935_v7 }
 0x168   :  { %v825_v9 = vpop.f32.mrb[56].mxu0  ;;  %v938_v11 = vpop.f32.mrb[56].mxu1 }
 0x169   :  { %v826_v10 = vadd.f32 %v825_v9, %v1732_v3  ;;  %v827_v8 = vpop.f32.mrb[57].mxu0  ;;  %v939_v13 = vadd.f32 %v938_v11, %v1741_v18  ;;  %v940_v16 = vpop.f32.mrb[57].mxu1 }
 0x16a   :  { %v828_v15 = vadd.f32 %v827_v8, %v1744_v19  ;;  %v829_v17 = vpop.f32.mrb[58].mxu0  ;;  %v941_v21 = vadd.f32 %v940_v16, %v1750_v20  ;;  %v942_v23 = vpop.f32.mrb[58].mxu1 }
 0x16b   :  { %1057 = vst [vmem:[%s2011_s3 + $0x320] sm:$0xff] %v826_v10  ;;  %v830_v22 = vadd.f32 %v829_v17, %v1732_v3  ;;  %v831_v24 = vpop.f32.mrb[59].mxu0  ;;  %1059 = vst [vmem:[%s2011_s3 + $0x330] sm:$0xff] %v939_v13  ;;  %v943_v25 = vadd.f32 %v942_v23, %v1741_v18  ;;  %v944_v27 = vpop.f32.mrb[59].mxu1 }
 0x16c   :  { %1058 = vst [vmem:[%s2011_s3 + $0x328] sm:$0xff] %v828_v15  ;;  %v832_v26 = vadd.f32 %v831_v24, %v1744_v19  ;;  %1060 = vst [vmem:[%s2011_s3 + $0x338] sm:$0xff] %v941_v21  ;;  %v945_v28 = vadd.f32 %v944_v27, %v1750_v20 }
 0x16d   :  { %1065 = vst [vmem:[%s2011_s3 + $0x360] sm:$0xff] %v830_v22  ;;  %1067 = vst [vmem:[%s2011_s3 + $0x370] sm:$0xff] %v943_v25 }
 0x16e   :  { %1066 = vst [vmem:[%s2011_s3 + $0x368] sm:$0xff] %v832_v26  ;;  %1068 = vst [vmem:[%s2011_s3 + $0x378] sm:$0xff] %v945_v28 }
 0x170   :  { %v835_v29 = vpop.f32.mrb[60].mxu0  ;;  %v948_v31 = vpop.f32.mrb[60].mxu1 }
 0x171   :  { %v836_v30 = vadd.f32 %v835_v29, %v1732_v3  ;;  %v837_v32 = vpop.f32.mrb[61].mxu0  ;;  %v949_v33 = vadd.f32 %v948_v31, %v1741_v18  ;;  %v950_v35 = vpop.f32.mrb[61].mxu1 }
 0x172   :  { %v838_v34 = vadd.f32 %v837_v32, %v1744_v19  ;;  %v839_v12 = vpop.f32.mrb[62].mxu0  ;;  %v951_v36 = vadd.f32 %v950_v35, %v1750_v20  ;;  %v952_v38 = vpop.f32.mrb[62].mxu1 }
 0x173   :  { %1073 = vst [vmem:[%s2011_s3 + $0x3a0] sm:$0xff] %v836_v30  ;;  %v840_v37 = vadd.f32 %v839_v12, %v1732_v3  ;;  %v841_v39 = vpop.f32.mrb[63].mxu0  ;;  %1075 = vst [vmem:[%s2011_s3 + $0x3b0] sm:$0xff] %v949_v33  ;;  %v953_v40 = vadd.f32 %v952_v38, %v1741_v18  ;;  %v954_v42 = vpop.f32.mrb[63].mxu1 }
 0x174   :  { %1074 = vst [vmem:[%s2011_s3 + $0x3a8] sm:$0xff] %v838_v34  ;;  %v842_v41 = vadd.f32 %v841_v39, %v1744_v19  ;;  %1076 = vst [vmem:[%s2011_s3 + $0x3b8] sm:$0xff] %v951_v36  ;;  %v955_v3 = vadd.f32 %v954_v42, %v1750_v20 }
 0x175   :  { %1081 = vst [vmem:[%s2011_s3 + $0x3e0] sm:$0xff] %v840_v37  ;;  %1083 = vst [vmem:[%s2011_s3 + $0x3f0] sm:$0xff] %v953_v40 }
 0x176   :  { %1082 = vst [vmem:[%s2011_s3 + $0x3e8] sm:$0xff] %v842_v41  ;;  %1084 = vst [vmem:[%s2011_s3 + $0x3f8] sm:$0xff] %v955_v3 }

</bundles_post_ra>
